<compile_context>
chip_gen: v7x
topology: tpu7x:2x2x1
jax: 0.10.0
libtpu: 0.0.40
codegen_flags: <defaults>
</compile_context>

<pallas_src>
import jax
import jax.numpy as jnp
from jax import lax
from jax.experimental import pallas as pl
from jax.experimental.pallas import tpu as pltpu


_CP = pltpu.CompilerParams(dimension_semantics=("parallel",))


# ----------------------------------------------------------------------------
# Kernels
# ----------------------------------------------------------------------------
def fused_pw_kernel(x_ref, w_ref, b_ref, o_ref):
    # x: (tm, Cin) bf16, w: (Cin, Cout) bf16 (BN scale folded), b: (1, Cout) f32
    y = jnp.dot(x_ref[...], w_ref[...], preferred_element_type=jnp.float32)
    o_ref[...] = jnp.maximum(y + b_ref[...], 0.0)


def sepconv_kernel(xw_ref, ws_ref, bs_ref, wt_ref, bt_ref, o_ref, tpad_ref):
    # One batch element per grid step.
    #   xw : (1, D, Hp, W, 3*Cin) bf16   W-im2col'd + H-padded activation
    #   ws : (3, 3*Cin, Cout)     bf16   spatial weights (kh major), BN folded
    #   wt : (3, Cout, Cout)      bf16   temporal weights, BN folded
    #   bs, bt : (1, Cout) f32           folded BN biases
    #   o  : (1, D, H, W, Cout)   f32
    #   tpad : VMEM (D+2, H*W, Cout) bf16  D-padded spatial result (on-chip)
    _, D, H, W, Cout = o_ref.shape
    K3 = xw_ref.shape[-1]
    HW = H * W
    xw = xw_ref[0]                                       # (D, Hp, W, 3*Cin)

    # 1x3x3 spatial conv: 3 matmuls, K = 3*Cin, M = D*H*W (leading-dim slices only).
    acc = jnp.zeros((D * HW, Cout), jnp.float32)
    for kh in range(3):
        lhs = xw[:, kh:kh + H].reshape(D * HW, K3)
        acc = acc + jnp.dot(lhs, ws_ref[kh], preferred_element_type=jnp.float32)
    ys = jnp.maximum(acc + bs_ref[...], 0.0)             # f32 epilogue

    # Keep the spatial output in VMEM, zero-padded along D, for the temporal conv.
    zero_row = jnp.zeros((HW, Cout), jnp.bfloat16)
    tpad_ref[0] = zero_row
    tpad_ref[D + 1] = zero_row
    tpad_ref[1:D + 1] = ys.reshape(D, HW, Cout).astype(jnp.bfloat16)

    # 3x1x1 temporal conv: 3 matmuls, M = D*H*W.
    acc2 = jnp.zeros((D * HW, Cout), jnp.float32)
    for kt in range(3):
        lhs = tpad_ref[kt:kt + D].reshape(D * HW, Cout)
        acc2 = acc2 + jnp.dot(lhs, wt_ref[kt], preferred_element_type=jnp.float32)
    yt = jnp.maximum(acc2 + bt_ref[...], 0.0)
    o_ref[0] = yt.reshape(D, H, W, Cout)


def pool_pw_kernel(xp_ref, w_ref, b_ref, o_ref):
    # One batch element per grid step: 3x3x3 max pool (stride 1) fused with the
    # branch3 1x1 conv + BN + ReLU.
    #   xp : (1, D+2, H+2, W+2, C) bf16, padded with -inf
    #   w  : (C, Cout) bf16 (BN folded), b : (1, Cout) f32
    _, D, H, W, Cout = o_ref.shape
    C = xp_ref.shape[-1]
    x = xp_ref[0]                                        # (Dp, Hp, Wp, C)
    md = jnp.maximum(jnp.maximum(x[0:D], x[1:D + 1]), x[2:D + 2])
    mh = jnp.maximum(jnp.maximum(md[:, 0:H], md[:, 1:H + 1]), md[:, 2:H + 2])
    mw = jnp.maximum(jnp.maximum(mh[:, :, 0:W], mh[:, :, 1:W + 1]),
                     mh[:, :, 2:W + 2])                  # (D, H, W, C)
    z = jnp.dot(mw.reshape(D * H * W, C), w_ref[...],
                preferred_element_type=jnp.float32)
    o_ref[0] = jnp.maximum(z + b_ref[...], 0.0).reshape(D, H, W, Cout)


# ----------------------------------------------------------------------------
# Wrappers (glue: reshapes / padding / BlockSpecs)
# ----------------------------------------------------------------------------
def fused_pointwise(x_cl, w, b):
    # x_cl: (N, D, H, W, Cin) bf16; w: (Cin, Cout) bf16 folded; b: (Cout,) f32.
    N, D, H, W, Cin = x_cl.shape
    Cout = w.shape[1]
    M = N * D * H * W
    # Bigger rows per MXU call when there is enough work, but keep >= 4 grid
    # steps so both v7x TensorCores get pipelined steps.
    tm = 256 if (M % 256 == 0 and M // 256 >= 4) else 128
    assert M % tm == 0, "flattened spatial size must divide the row tile"
    out = pl.pallas_call(
        fused_pw_kernel,
        out_shape=jax.ShapeDtypeStruct((M, Cout), jnp.float32),
        grid=(M // tm,),
        in_specs=[
            pl.BlockSpec((tm, Cin), lambda i: (i, 0)),
            pl.BlockSpec((Cin, Cout), lambda i: (0, 0)),
            pl.BlockSpec((1, Cout), lambda i: (0, 0)),
        ],
        out_specs=pl.BlockSpec((tm, Cout), lambda i: (i, 0)),
        compiler_params=_CP,
    )(x_cl.reshape(M, Cin), w, b.reshape(1, Cout))
    return out.reshape(N, D, H, W, Cout)


def sepconv3d(a_cl, ws, bs, wt, bt):
    # SepConv3d: 1x3x3 conv (pad 1) + BN + ReLU, then 3x1x1 conv (pad 1) + BN + ReLU.
    # a_cl: (N, D, H, W, Cin) bf16; ws: (3, 3, Cin, Cout) bf16; wt: (3, Cout, Cout) bf16.
    N, D, H, W, Cin = a_cl.shape
    Cout = ws.shape[-1]
    Hp = H + 2
    # Zero-pad H/W and im2col along W (kw-major, Cin-minor) in the wrapper so
    # the kernel never slices the sublane (W) axis at unaligned offsets.
    ap = jnp.pad(a_cl, ((0, 0), (0, 0), (1, 1), (1, 1), (0, 0)))
    xw = jnp.concatenate([ap[:, :, :, kw:kw + W, :] for kw in range(3)], axis=-1)
    ws2 = ws.reshape(3, 3 * Cin, Cout)
    return pl.pallas_call(
        sepconv_kernel,
        out_shape=jax.ShapeDtypeStruct((N, D, H, W, Cout), jnp.float32),
        grid=(N,),
        in_specs=[
            pl.BlockSpec((1, D, Hp, W, 3 * Cin), lambda n: (n, 0, 0, 0, 0)),
            pl.BlockSpec((3, 3 * Cin, Cout), lambda n: (0, 0, 0)),
            pl.BlockSpec((1, Cout), lambda n: (0, 0)),
            pl.BlockSpec((3, Cout, Cout), lambda n: (0, 0, 0)),
            pl.BlockSpec((1, Cout), lambda n: (0, 0)),
        ],
        out_specs=pl.BlockSpec((1, D, H, W, Cout), lambda n: (n, 0, 0, 0, 0)),
        scratch_shapes=[pltpu.VMEM((D + 2, H * W, Cout), jnp.bfloat16)],
        compiler_params=_CP,
    )(xw, ws2, bs.reshape(1, Cout), wt, bt.reshape(1, Cout))


def maxpool_pointwise(x_cl, w, b):
    # branch3: 3x3x3 max pool (stride 1, pad 1) fused with 1x1 conv + BN + ReLU.
    N, D, H, W, C = x_cl.shape
    Cout = w.shape[-1]
    xp = jnp.pad(x_cl, ((0, 0), (1, 1), (1, 1), (1, 1), (0, 0)),
                 constant_values=-jnp.inf)
    return pl.pallas_call(
        pool_pw_kernel,
        out_shape=jax.ShapeDtypeStruct((N, D, H, W, Cout), jnp.float32),
        grid=(N,),
        in_specs=[
            pl.BlockSpec((1, D + 2, H + 2, W + 2, C), lambda n: (n, 0, 0, 0, 0)),
            pl.BlockSpec((C, Cout), lambda n: (0, 0)),
            pl.BlockSpec((1, Cout), lambda n: (0, 0)),
        ],
        out_specs=pl.BlockSpec((1, D, H, W, Cout), lambda n: (n, 0, 0, 0, 0)),
        compiler_params=_CP,
    )(xp, w, b.reshape(1, Cout))


# ----------------------------------------------------------------------------
# Parameters (deterministic synthetic init; BN evaluated in inference mode)
# ----------------------------------------------------------------------------
def _conv_w(key, shape, fan_in):
    return jax.random.normal(key, shape, jnp.float32) / jnp.sqrt(float(fan_in))


def _folded_bn(key, c, eps=1e-3):
    k1, k2, k3, k4 = jax.random.split(key, 4)
    gamma = 1.0 + 0.1 * jax.random.normal(k1, (c,), jnp.float32)
    beta = 0.1 * jax.random.normal(k2, (c,), jnp.float32)
    mean = 0.1 * jax.random.normal(k3, (c,), jnp.float32)
    var = 0.5 + jax.random.uniform(k4, (c,), jnp.float32)
    scale = gamma / jnp.sqrt(var + eps)
    bias = beta - mean * scale
    return scale, bias


def init_params(key):
    ks = iter(jax.random.split(key, 40))
    p = {}
    # branch0: BasicConv3d(512, 160, 1)
    p["b0_w"] = _conv_w(next(ks), (512, 160), 512)
    p["b0_s"], p["b0_b"] = _folded_bn(next(ks), 160)
    # branch1: BasicConv3d(512, 112, 1) + SepConv3d(112, 224, 3, pad=1)
    p["b1_w0"] = _conv_w(next(ks), (512, 112), 512)
    p["b1_s0"], p["b1_b0"] = _folded_bn(next(ks), 112)
    p["b1_ws"] = _conv_w(next(ks), (3, 3, 112, 224), 9 * 112)
    p["b1_ss"], p["b1_bs"] = _folded_bn(next(ks), 224)
    p["b1_wt"] = _conv_w(next(ks), (3, 224, 224), 3 * 224)
    p["b1_st"], p["b1_bt"] = _folded_bn(next(ks), 224)
    # branch2: BasicConv3d(512, 24, 1) + SepConv3d(24, 64, 3, pad=1)
    p["b2_w0"] = _conv_w(next(ks), (512, 24), 512)
    p["b2_s0"], p["b2_b0"] = _folded_bn(next(ks), 24)
    p["b2_ws"] = _conv_w(next(ks), (3, 3, 24, 64), 9 * 24)
    p["b2_ss"], p["b2_bs"] = _folded_bn(next(ks), 64)
    p["b2_wt"] = _conv_w(next(ks), (3, 64, 64), 3 * 64)
    p["b2_st"], p["b2_bt"] = _folded_bn(next(ks), 64)
    # branch3: MaxPool3d(3,1,1) + BasicConv3d(512, 64, 1)
    p["b3_w"] = _conv_w(next(ks), (512, 64), 512)
    p["b3_s"], p["b3_b"] = _folded_bn(next(ks), 64)
    return p


def prepare_kernel_params(p):
    """Fold BN scale into conv weights, fuse the 3 input-side 1x1 convs, cast bf16."""
    bf16 = jnp.bfloat16
    kp = {}
    kp["pw_w"] = jnp.concatenate(
        [p["b0_w"] * p["b0_s"], p["b1_w0"] * p["b1_s0"], p["b2_w0"] * p["b2_s0"]],
        axis=1).astype(bf16)                                    # (512, 160+112+24)
    kp["pw_b"] = jnp.concatenate([p["b0_b"], p["b1_b0"], p["b2_b0"]])
    for br in ("b1", "b2"):
        kp[br + "_ws"] = (p[br + "_ws"] * p[br + "_ss"]).astype(bf16)
        kp[br + "_bs"] = p[br + "_bs"]
        kp[br + "_wt"] = (p[br + "_wt"] * p[br + "_st"]).astype(bf16)
        kp[br + "_bt"] = p[br + "_bt"]
    kp["b3_w"] = (p["b3_w"] * p["b3_s"]).astype(bf16)
    kp["b3_b"] = p["b3_b"]
    return kp


# ----------------------------------------------------------------------------
# Mixed_4c forward (Pallas) and pure-JAX reference
# ----------------------------------------------------------------------------
@jax.jit
def mixed_4c(x_ncdhw, kp):
    x = jnp.transpose(x_ncdhw, (0, 2, 3, 4, 1)).astype(jnp.bfloat16)  # NDHWC bf16
    # Fused branch0 / branch1-in / branch2-in 1x1 convs (one matmul, x read once).
    y = fused_pointwise(x, kp["pw_w"], kp["pw_b"])                    # (..., 296) f32
    x0 = y[..., :160]                                                 # branch0 output
    a1 = y[..., 160:272].astype(jnp.bfloat16)                         # branch1 stem
    a2 = y[..., 272:296].astype(jnp.bfloat16)                         # branch2 stem
    x1 = sepconv3d(a1, kp["b1_ws"], kp["b1_bs"], kp["b1_wt"], kp["b1_bt"])
    x2 = sepconv3d(a2, kp["b2_ws"], kp["b2_bs"], kp["b2_wt"], kp["b2_bt"])
    x3 = maxpool_pointwise(x, kp["b3_w"], kp["b3_b"])
    # TODO(synk): write each branch straight into its channel offset of a single
    # output buffer (input_output_aliases) instead of concatenating here.
    out = jnp.concatenate([x0, x1, x2, x3], axis=-1)                  # 160+224+64+64
    return jnp.transpose(out, (0, 4, 1, 2, 3))                        # -> NCDHW


def mixed_4c_reference(x_ncdhw, p):
    dn = ("NDHWC", "DHWIO", "NDHWC")
    x = jnp.transpose(x_ncdhw, (0, 2, 3, 4, 1))

    def pw(h, w, s, b):
        y = lax.conv_general_dilated(h, w.reshape(1, 1, 1, *w.shape),
                                     (1, 1, 1), "VALID", dimension_numbers=dn)
        return jnp.maximum(y * s + b, 0.0)

    def sp(h, w, s, b):
        y = lax.conv_general_dilated(h, w.reshape(1, *w.shape), (1, 1, 1),
                                     ((0, 0), (1, 1), (1, 1)),
                                     dimension_numbers=dn)
        return jnp.maximum(y * s + b, 0.0)

    def tc(h, w, s, b):
        y = lax.conv_general_dilated(h, w.reshape(3, 1, 1, w.shape[1], w.shape[2]),
                                     (1, 1, 1), ((1, 1), (0, 0), (0, 0)),
                                     dimension_numbers=dn)
        return jnp.maximum(y * s + b, 0.0)

    def mp(h):
        return lax.reduce_window(h, -jnp.inf, lax.max, (1, 3, 3, 3, 1),
                                 (1, 1, 1, 1, 1),
                                 ((0, 0), (1, 1), (1, 1), (1, 1), (0, 0)))

    x0 = pw(x, p["b0_w"], p["b0_s"], p["b0_b"])
    x1 = pw(x, p["b1_w0"], p["b1_s0"], p["b1_b0"])
    x1 = sp(x1, p["b1_ws"], p["b1_ss"], p["b1_bs"])
    x1 = tc(x1, p["b1_wt"], p["b1_st"], p["b1_bt"])
    x2 = pw(x, p["b2_w0"], p["b2_s0"], p["b2_b0"])
    x2 = sp(x2, p["b2_ws"], p["b2_ss"], p["b2_bs"])
    x2 = tc(x2, p["b2_wt"], p["b2_st"], p["b2_bt"])
    x3 = pw(mp(x), p["b3_w"], p["b3_s"], p["b3_b"])
    out = jnp.concatenate([x0, x1, x2, x3], axis=-1)
    return jnp.transpose(out, (0, 4, 1, 2, 3))


# ----------------------------------------------------------------------------
if __name__ == "__main__":
    key = jax.random.PRNGKey(0)
    k_x, k_p = jax.random.split(key)

    # Mixed_4c sees 512 input channels; small batch / temporal / spatial extents.
    N, C, D, H, W = 2, 512, 4, 8, 8
    x = jax.random.normal(k_x, (N, C, D, H, W), jnp.float32)
    params = init_params(k_p)
    kparams = prepare_kernel_params(params)

    out = jax.block_until_ready(mixed_4c(x, kparams))
    assert out.shape == (N, 512, D, H, W), out.shape   # 160 + 224 + 64 + 64 = 512

    ref = jax.block_until_ready(mixed_4c_reference(x, params))
    rel_err = jnp.max(jnp.abs(out - ref)) / (jnp.max(jnp.abs(ref)) + 1e-6)
    assert float(rel_err) < 2e-2, f"mismatch vs reference: rel_err={rel_err}"

    print("KERNEL_OK")
</pallas_src>

<mosaic_0001>
module attributes {stable_mosaic.version = 11 : i64} {
  func.func @pool_pw_kernel(%arg0: i32, %arg1: memref<1x6x10x10x512xbf16, #tpu.memory_space<vmem>>, %arg2: memref<512x64xbf16, #tpu.memory_space<vmem>>, %arg3: memref<1x64xf32, #tpu.memory_space<vmem>>, %arg4: memref<1x4x8x8x64xf32, #tpu.memory_space<vmem>>) attributes {dimension_semantics = [#tpu.dimension_semantics<parallel>], iteration_bounds = array<i64: 2>, scalar_prefetch = 0 : i64, scratch_operands = 0 : i64, tpu.core_type = #tpu.core_type<tc>, window_params = [{transform_indices = @transform_0, window_bounds = array<i64: 1, 6, 10, 10, 512>}, {pipeline_mode = #tpu.pipeline_mode<synchronous>, transform_indices = @transform_1, window_bounds = array<i64: 512, 64>}, {pipeline_mode = #tpu.pipeline_mode<synchronous>, transform_indices = @transform_2, window_bounds = array<i64: 1, 64>}, {transform_indices = @transform_3, window_bounds = array<i64: 1, 4, 8, 8, 64>}]} {
    %c0 = arith.constant 0 : index
    %c0_0 = arith.constant 0 : index
    %c0_1 = arith.constant 0 : index
    %c0_2 = arith.constant 0 : index
    %c0_3 = arith.constant 0 : index
    %0 = vector.load %arg1[%c0, %c0_0, %c0_1, %c0_2, %c0_3] : memref<1x6x10x10x512xbf16, #tpu.memory_space<vmem>>, vector<1x6x10x10x512xbf16>
    %1 = vector.shape_cast %0 : vector<1x6x10x10x512xbf16> to vector<6x10x10x512xbf16>
    %2 = vector.extract_strided_slice %1 {offsets = [0, 0, 0, 0], sizes = [4, 10, 10, 512], strides = [1, 1, 1, 1]} : vector<6x10x10x512xbf16> to vector<4x10x10x512xbf16>
    %3 = vector.extract_strided_slice %1 {offsets = [1, 0, 0, 0], sizes = [4, 10, 10, 512], strides = [1, 1, 1, 1]} : vector<6x10x10x512xbf16> to vector<4x10x10x512xbf16>
    %4 = arith.maximumf %2, %3 : vector<4x10x10x512xbf16>
    %5 = vector.extract_strided_slice %1 {offsets = [2, 0, 0, 0], sizes = [4, 10, 10, 512], strides = [1, 1, 1, 1]} : vector<6x10x10x512xbf16> to vector<4x10x10x512xbf16>
    %6 = arith.maximumf %4, %5 : vector<4x10x10x512xbf16>
    %7 = vector.extract_strided_slice %6 {offsets = [0, 0, 0, 0], sizes = [4, 8, 10, 512], strides = [1, 1, 1, 1]} : vector<4x10x10x512xbf16> to vector<4x8x10x512xbf16>
    %8 = vector.extract_strided_slice %6 {offsets = [0, 1, 0, 0], sizes = [4, 8, 10, 512], strides = [1, 1, 1, 1]} : vector<4x10x10x512xbf16> to vector<4x8x10x512xbf16>
    %9 = arith.maximumf %7, %8 : vector<4x8x10x512xbf16>
    %10 = vector.extract_strided_slice %6 {offsets = [0, 2, 0, 0], sizes = [4, 8, 10, 512], strides = [1, 1, 1, 1]} : vector<4x10x10x512xbf16> to vector<4x8x10x512xbf16>
    %11 = arith.maximumf %9, %10 : vector<4x8x10x512xbf16>
    %12 = vector.extract_strided_slice %11 {offsets = [0, 0, 0, 0], sizes = [4, 8, 8, 512], strides = [1, 1, 1, 1]} : vector<4x8x10x512xbf16> to vector<4x8x8x512xbf16>
    %13 = vector.extract_strided_slice %11 {offsets = [0, 0, 1, 0], sizes = [4, 8, 8, 512], strides = [1, 1, 1, 1]} : vector<4x8x10x512xbf16> to vector<4x8x8x512xbf16>
    %14 = arith.maximumf %12, %13 : vector<4x8x8x512xbf16>
    %15 = vector.extract_strided_slice %11 {offsets = [0, 0, 2, 0], sizes = [4, 8, 8, 512], strides = [1, 1, 1, 1]} : vector<4x8x10x512xbf16> to vector<4x8x8x512xbf16>
    %16 = arith.maximumf %14, %15 : vector<4x8x8x512xbf16>
    %17 = vector.shape_cast %16 : vector<4x8x8x512xbf16> to vector<256x512xbf16>
    %c0_4 = arith.constant 0 : index
    %c0_5 = arith.constant 0 : index
    %18 = vector.load %arg2[%c0_4, %c0_5] : memref<512x64xbf16, #tpu.memory_space<vmem>>, vector<512x64xbf16>
    %cst = arith.constant dense<0.000000e+00> : vector<256x64xf32>
    %19 = tpu.matmul %17, %18, %cst {dimension_numbers = #tpu.dot_dimension_numbers<[1], [0], [0], [1], [0, 0, 1, 1], [], []>} : vector<256x512xbf16>, vector<512x64xbf16>, vector<256x64xf32> -> vector<256x64xf32>
    %c0_6 = arith.constant 0 : index
    %c0_7 = arith.constant 0 : index
    %20 = vector.load %arg3[%c0_6, %c0_7] : memref<1x64xf32, #tpu.memory_space<vmem>>, vector<1x64xf32>
    %21 = vector.broadcast %20 : vector<1x64xf32> to vector<256x64xf32>
    %22 = arith.addf %19, %21 : vector<256x64xf32>
    %cst_8 = arith.constant 0.000000e+00 : f32
    %23 = vector.broadcast %cst_8 : f32 to vector<256x64xf32>
    %24 = arith.maximumf %22, %23 : vector<256x64xf32>
    %25 = vector.shape_cast %24 : vector<256x64xf32> to vector<4x8x8x64xf32>
    %c0_9 = arith.constant 0 : index
    %c0_10 = arith.constant 0 : index
    %c0_11 = arith.constant 0 : index
    %c0_12 = arith.constant 0 : index
    %c0_13 = arith.constant 0 : index
    %26 = vector.load %arg4[%c0_9, %c0_10, %c0_11, %c0_12, %c0_13] : memref<1x4x8x8x64xf32, #tpu.memory_space<vmem>>, vector<1x4x8x8x64xf32>
    %27 = vector.shape_cast %26 : vector<1x4x8x8x64xf32> to vector<4x8x8x64xf32>
    %28 = vector.shape_cast %25 : vector<4x8x8x64xf32> to vector<1x4x8x8x64xf32>
    tpu.vector_store %arg4[%c0_9, %c0_10, %c0_11, %c0_12, %c0_13], %28 {strides = array<i32>} : memref<1x4x8x8x64xf32, #tpu.memory_space<vmem>>, vector<1x4x8x8x64xf32>,
    return
  }
  func.func @transform_0(%arg0: i32) -> (i32, i32, i32, i32, i32) {
    %c0_i32 = arith.constant 0 : i32
    %c0_i32_0 = arith.constant 0 : i32
    %c0_i32_1 = arith.constant 0 : i32
    %c0_i32_2 = arith.constant 0 : i32
    %c0_i32_3 = arith.constant 0 : i32
    return %arg0, %c0_i32, %c0_i32_0, %c0_i32_1, %c0_i32_2 : i32, i32, i32, i32, i32
  }
  func.func @transform_1(%arg0: i32) -> (i32, i32) {
    %c0_i32 = arith.constant 0 : i32
    %c0_i32_0 = arith.constant 0 : i32
    %c0_i32_1 = arith.constant 0 : i32
    return %c0_i32, %c0_i32_0 : i32, i32
  }
  func.func @transform_2(%arg0: i32) -> (i32, i32) {
    %c0_i32 = arith.constant 0 : i32
    %c0_i32_0 = arith.constant 0 : i32
    %c0_i32_1 = arith.constant 0 : i32
    return %c0_i32, %c0_i32_0 : i32, i32
  }
  func.func @transform_3(%arg0: i32) -> (i32, i32, i32, i32, i32) {
    %c0_i32 = arith.constant 0 : i32
    %c0_i32_0 = arith.constant 0 : i32
    %c0_i32_1 = arith.constant 0 : i32
    %c0_i32_2 = arith.constant 0 : i32
    %c0_i32_3 = arith.constant 0 : i32
    return %arg0, %c0_i32, %c0_i32_0, %c0_i32_1, %c0_i32_2 : i32, i32, i32, i32, i32
  }
}

module attributes {stable_mosaic.version = 11 : i64} {
  func.func @fused_pw_kernel(%arg0: i32, %arg1: memref<128x512xbf16, #tpu.memory_space<vmem>>, %arg2: memref<512x296xbf16, #tpu.memory_space<vmem>>, %arg3: memref<1x296xf32, #tpu.memory_space<vmem>>, %arg4: memref<128x296xf32, #tpu.memory_space<vmem>>) attributes {dimension_semantics = [#tpu.dimension_semantics<parallel>], iteration_bounds = array<i64: 4>, scalar_prefetch = 0 : i64, scratch_operands = 0 : i64, tpu.core_type = #tpu.core_type<tc>, window_params = [{transform_indices = @transform_0, window_bounds = array<i64: 128, 512>}, {pipeline_mode = #tpu.pipeline_mode<synchronous>, transform_indices = @transform_1, window_bounds = array<i64: 512, 296>}, {pipeline_mode = #tpu.pipeline_mode<synchronous>, transform_indices = @transform_2, window_bounds = array<i64: 1, 296>}, {transform_indices = @transform_3, window_bounds = array<i64: 128, 296>}]} {
    %c0 = arith.constant 0 : index
    %c0_0 = arith.constant 0 : index
    %0 = vector.load %arg1[%c0, %c0_0] : memref<128x512xbf16, #tpu.memory_space<vmem>>, vector<128x512xbf16>
    %c0_1 = arith.constant 0 : index
    %c0_2 = arith.constant 0 : index
    %1 = vector.load %arg2[%c0_1, %c0_2] : memref<512x296xbf16, #tpu.memory_space<vmem>>, vector<512x296xbf16>
    %cst = arith.constant dense<0.000000e+00> : vector<128x296xf32>
    %2 = tpu.matmul %0, %1, %cst {dimension_numbers = #tpu.dot_dimension_numbers<[1], [0], [0], [1], [0, 0, 1, 1], [], []>} : vector<128x512xbf16>, vector<512x296xbf16>, vector<128x296xf32> -> vector<128x296xf32>
    %c0_3 = arith.constant 0 : index
    %c0_4 = arith.constant 0 : index
    %3 = vector.load %arg3[%c0_3, %c0_4] : memref<1x296xf32, #tpu.memory_space<vmem>>, vector<1x296xf32>
    %4 = vector.broadcast %3 : vector<1x296xf32> to vector<128x296xf32>
    %5 = arith.addf %2, %4 : vector<128x296xf32>
    %cst_5 = arith.constant 0.000000e+00 : f32
    %6 = vector.broadcast %cst_5 : f32 to vector<128x296xf32>
    %7 = arith.maximumf %5, %6 : vector<128x296xf32>
    %c0_6 = arith.constant 0 : index
    %c0_7 = arith.constant 0 : index
    %8 = vector.load %arg4[%c0_6, %c0_7] : memref<128x296xf32, #tpu.memory_space<vmem>>, vector<128x296xf32>
    tpu.vector_store %arg4[%c0_6, %c0_7], %7 {strides = array<i32>} : memref<128x296xf32, #tpu.memory_space<vmem>>, vector<128x296xf32>,
    return
  }
  func.func @transform_0(%arg0: i32) -> (i32, i32) {
    %c0_i32 = arith.constant 0 : i32
    %c0_i32_0 = arith.constant 0 : i32
    return %arg0, %c0_i32 : i32, i32
  }
  func.func @transform_1(%arg0: i32) -> (i32, i32) {
    %c0_i32 = arith.constant 0 : i32
    %c0_i32_0 = arith.constant 0 : i32
    %c0_i32_1 = arith.constant 0 : i32
    return %c0_i32, %c0_i32_0 : i32, i32
  }
  func.func @transform_2(%arg0: i32) -> (i32, i32) {
    %c0_i32 = arith.constant 0 : i32
    %c0_i32_0 = arith.constant 0 : i32
    %c0_i32_1 = arith.constant 0 : i32
    return %c0_i32, %c0_i32_0 : i32, i32
  }
  func.func @transform_3(%arg0: i32) -> (i32, i32) {
    %c0_i32 = arith.constant 0 : i32
    %c0_i32_0 = arith.constant 0 : i32
    return %arg0, %c0_i32 : i32, i32
  }
}

module attributes {stable_mosaic.version = 11 : i64} {
  func.func @sepconv_kernel(%arg0: i32, %arg1: memref<1x4x10x8x72xbf16, #tpu.memory_space<vmem>>, %arg2: memref<3x72x64xbf16, #tpu.memory_space<vmem>>, %arg3: memref<1x64xf32, #tpu.memory_space<vmem>>, %arg4: memref<3x64x64xbf16, #tpu.memory_space<vmem>>, %arg5: memref<1x64xf32, #tpu.memory_space<vmem>>, %arg6: memref<1x4x8x8x64xf32, #tpu.memory_space<vmem>>, %arg7: memref<6x64x64xbf16, #tpu.memory_space<vmem>>) attributes {dimension_semantics = [#tpu.dimension_semantics<parallel>], iteration_bounds = array<i64: 2>, scalar_prefetch = 0 : i64, scratch_operands = 1 : i64, tpu.core_type = #tpu.core_type<tc>, window_params = [{transform_indices = @transform_0, window_bounds = array<i64: 1, 4, 10, 8, 72>}, {pipeline_mode = #tpu.pipeline_mode<synchronous>, transform_indices = @transform_1, window_bounds = array<i64: 3, 72, 64>}, {pipeline_mode = #tpu.pipeline_mode<synchronous>, transform_indices = @transform_2, window_bounds = array<i64: 1, 64>}, {pipeline_mode = #tpu.pipeline_mode<synchronous>, transform_indices = @transform_3, window_bounds = array<i64: 3, 64, 64>}, {pipeline_mode = #tpu.pipeline_mode<synchronous>, transform_indices = @transform_4, window_bounds = array<i64: 1, 64>}, {transform_indices = @transform_5, window_bounds = array<i64: 1, 4, 8, 8, 64>}]} {
    %c0 = arith.constant 0 : index
    %c0_0 = arith.constant 0 : index
    %c0_1 = arith.constant 0 : index
    %c0_2 = arith.constant 0 : index
    %c0_3 = arith.constant 0 : index
    %0 = vector.load %arg1[%c0, %c0_0, %c0_1, %c0_2, %c0_3] : memref<1x4x10x8x72xbf16, #tpu.memory_space<vmem>>, vector<1x4x10x8x72xbf16>
    %1 = vector.shape_cast %0 : vector<1x4x10x8x72xbf16> to vector<4x10x8x72xbf16>
    %cst = arith.constant 0.000000e+00 : f32
    %2 = vector.broadcast %cst : f32 to vector<256x64xf32>
    %3 = vector.extract_strided_slice %1 {offsets = [0, 0, 0, 0], sizes = [4, 8, 8, 72], strides = [1, 1, 1, 1]} : vector<4x10x8x72xbf16> to vector<4x8x8x72xbf16>
    %4 = vector.shape_cast %3 : vector<4x8x8x72xbf16> to vector<256x72xbf16>
    %c0_4 = arith.constant 0 : index
    %c0_5 = arith.constant 0 : index
    %c0_6 = arith.constant 0 : index
    %5 = vector.load %arg2[%c0_4, %c0_5, %c0_6] : memref<3x72x64xbf16, #tpu.memory_space<vmem>>, vector<1x72x64xbf16>
    %6 = vector.shape_cast %5 : vector<1x72x64xbf16> to vector<72x64xbf16>
    %cst_7 = arith.constant dense<0.000000e+00> : vector<256x64xf32>
    %7 = tpu.matmul %4, %6, %cst_7 {dimension_numbers = #tpu.dot_dimension_numbers<[1], [0], [0], [1], [0, 0, 1, 1], [], []>} : vector<256x72xbf16>, vector<72x64xbf16>, vector<256x64xf32> -> vector<256x64xf32>
    %8 = arith.addf %2, %7 : vector<256x64xf32>
    %9 = vector.extract_strided_slice %1 {offsets = [0, 1, 0, 0], sizes = [4, 8, 8, 72], strides = [1, 1, 1, 1]} : vector<4x10x8x72xbf16> to vector<4x8x8x72xbf16>
    %10 = vector.shape_cast %9 : vector<4x8x8x72xbf16> to vector<256x72xbf16>
    %c1 = arith.constant 1 : index
    %c0_8 = arith.constant 0 : index
    %c0_9 = arith.constant 0 : index
    %11 = vector.load %arg2[%c1, %c0_8, %c0_9] : memref<3x72x64xbf16, #tpu.memory_space<vmem>>, vector<1x72x64xbf16>
    %12 = vector.shape_cast %11 : vector<1x72x64xbf16> to vector<72x64xbf16>
    %cst_10 = arith.constant dense<0.000000e+00> : vector<256x64xf32>
    %13 = tpu.matmul %10, %12, %cst_10 {dimension_numbers = #tpu.dot_dimension_numbers<[1], [0], [0], [1], [0, 0, 1, 1], [], []>} : vector<256x72xbf16>, vector<72x64xbf16>, vector<256x64xf32> -> vector<256x64xf32>
    %14 = arith.addf %8, %13 : vector<256x64xf32>
    %15 = vector.extract_strided_slice %1 {offsets = [0, 2, 0, 0], sizes = [4, 8, 8, 72], strides = [1, 1, 1, 1]} : vector<4x10x8x72xbf16> to vector<4x8x8x72xbf16>
    %16 = vector.shape_cast %15 : vector<4x8x8x72xbf16> to vector<256x72xbf16>
    %c2 = arith.constant 2 : index
    %c0_11 = arith.constant 0 : index
    %c0_12 = arith.constant 0 : index
    %17 = vector.load %arg2[%c2, %c0_11, %c0_12] : memref<3x72x64xbf16, #tpu.memory_space<vmem>>, vector<1x72x64xbf16>
    %18 = vector.shape_cast %17 : vector<1x72x64xbf16> to vector<72x64xbf16>
    %cst_13 = arith.constant dense<0.000000e+00> : vector<256x64xf32>
    %19 = tpu.matmul %16, %18, %cst_13 {dimension_numbers = #tpu.dot_dimension_numbers<[1], [0], [0], [1], [0, 0, 1, 1], [], []>} : vector<256x72xbf16>, vector<72x64xbf16>, vector<256x64xf32> -> vector<256x64xf32>
    %20 = arith.addf %14, %19 : vector<256x64xf32>
    %c0_14 = arith.constant 0 : index
    %c0_15 = arith.constant 0 : index
    %21 = vector.load %arg3[%c0_14, %c0_15] : memref<1x64xf32, #tpu.memory_space<vmem>>, vector<1x64xf32>
    %22 = vector.broadcast %21 : vector<1x64xf32> to vector<256x64xf32>
    %23 = arith.addf %20, %22 : vector<256x64xf32>
    %cst_16 = arith.constant 0.000000e+00 : f32
    %24 = vector.broadcast %cst_16 : f32 to vector<256x64xf32>
    %25 = arith.maximumf %23, %24 : vector<256x64xf32>
    %cst_17 = arith.constant 0.000000e+00 : bf16
    %26 = vector.broadcast %cst_17 : bf16 to vector<64x64xbf16>
    %c0_18 = arith.constant 0 : index
    %c0_19 = arith.constant 0 : index
    %c0_20 = arith.constant 0 : index
    %27 = vector.load %arg7[%c0_18, %c0_19, %c0_20] : memref<6x64x64xbf16, #tpu.memory_space<vmem>>, vector<1x64x64xbf16>
    %28 = vector.shape_cast %27 : vector<1x64x64xbf16> to vector<64x64xbf16>
    %29 = vector.shape_cast %26 : vector<64x64xbf16> to vector<1x64x64xbf16>
    tpu.vector_store %arg7[%c0_18, %c0_19, %c0_20], %29 {strides = array<i32>} : memref<6x64x64xbf16, #tpu.memory_space<vmem>>, vector<1x64x64xbf16>,
    %c5 = arith.constant 5 : index
    %c0_21 = arith.constant 0 : index
    %c0_22 = arith.constant 0 : index
    %30 = vector.load %arg7[%c5, %c0_21, %c0_22] : memref<6x64x64xbf16, #tpu.memory_space<vmem>>, vector<1x64x64xbf16>
    %31 = vector.shape_cast %30 : vector<1x64x64xbf16> to vector<64x64xbf16>
    %32 = vector.shape_cast %26 : vector<64x64xbf16> to vector<1x64x64xbf16>
    tpu.vector_store %arg7[%c5, %c0_21, %c0_22], %32 {strides = array<i32>} : memref<6x64x64xbf16, #tpu.memory_space<vmem>>, vector<1x64x64xbf16>,
    %33 = vector.shape_cast %25 : vector<256x64xf32> to vector<4x64x64xf32>
    %34 = arith.truncf %33 : vector<4x64x64xf32> to vector<4x64x64xbf16>
    %c1_23 = arith.constant 1 : index
    %c0_24 = arith.constant 0 : index
    %c0_25 = arith.constant 0 : index
    %35 = vector.load %arg7[%c1_23, %c0_24, %c0_25] : memref<6x64x64xbf16, #tpu.memory_space<vmem>>, vector<4x64x64xbf16>
    tpu.vector_store %arg7[%c1_23, %c0_24, %c0_25], %34 {strides = array<i32>} : memref<6x64x64xbf16, #tpu.memory_space<vmem>>, vector<4x64x64xbf16>,
    %cst_26 = arith.constant 0.000000e+00 : f32
    %36 = vector.broadcast %cst_26 : f32 to vector<256x64xf32>
    %c0_27 = arith.constant 0 : index
    %c0_28 = arith.constant 0 : index
    %c0_29 = arith.constant 0 : index
    %37 = vector.load %arg7[%c0_27, %c0_28, %c0_29] : memref<6x64x64xbf16, #tpu.memory_space<vmem>>, vector<4x64x64xbf16>
    %38 = vector.shape_cast %37 : vector<4x64x64xbf16> to vector<256x64xbf16>
    %c0_30 = arith.constant 0 : index
    %c0_31 = arith.constant 0 : index
    %c0_32 = arith.constant 0 : index
    %39 = vector.load %arg4[%c0_30, %c0_31, %c0_32] : memref<3x64x64xbf16, #tpu.memory_space<vmem>>, vector<1x64x64xbf16>
    %40 = vector.shape_cast %39 : vector<1x64x64xbf16> to vector<64x64xbf16>
    %cst_33 = arith.constant dense<0.000000e+00> : vector<256x64xf32>
    %41 = tpu.matmul %38, %40, %cst_33 {dimension_numbers = #tpu.dot_dimension_numbers<[1], [0], [0], [1], [0, 0, 1, 1], [], []>} : vector<256x64xbf16>, vector<64x64xbf16>, vector<256x64xf32> -> vector<256x64xf32>
    %42 = arith.addf %36, %41 : vector<256x64xf32>
    %c1_34 = arith.constant 1 : index
    %c0_35 = arith.constant 0 : index
    %c0_36 = arith.constant 0 : index
    %43 = vector.load %arg7[%c1_34, %c0_35, %c0_36] : memref<6x64x64xbf16, #tpu.memory_space<vmem>>, vector<4x64x64xbf16>
    %44 = vector.shape_cast %43 : vector<4x64x64xbf16> to vector<256x64xbf16>
    %c1_37 = arith.constant 1 : index
    %c0_38 = arith.constant 0 : index
    %c0_39 = arith.constant 0 : index
    %45 = vector.load %arg4[%c1_37, %c0_38, %c0_39] : memref<3x64x64xbf16, #tpu.memory_space<vmem>>, vector<1x64x64xbf16>
    %46 = vector.shape_cast %45 : vector<1x64x64xbf16> to vector<64x64xbf16>
    %cst_40 = arith.constant dense<0.000000e+00> : vector<256x64xf32>
    %47 = tpu.matmul %44, %46, %cst_40 {dimension_numbers = #tpu.dot_dimension_numbers<[1], [0], [0], [1], [0, 0, 1, 1], [], []>} : vector<256x64xbf16>, vector<64x64xbf16>, vector<256x64xf32> -> vector<256x64xf32>
    %48 = arith.addf %42, %47 : vector<256x64xf32>
    %c2_41 = arith.constant 2 : index
    %c0_42 = arith.constant 0 : index
    %c0_43 = arith.constant 0 : index
    %49 = vector.load %arg7[%c2_41, %c0_42, %c0_43] : memref<6x64x64xbf16, #tpu.memory_space<vmem>>, vector<4x64x64xbf16>
    %50 = vector.shape_cast %49 : vector<4x64x64xbf16> to vector<256x64xbf16>
    %c2_44 = arith.constant 2 : index
    %c0_45 = arith.constant 0 : index
    %c0_46 = arith.constant 0 : index
    %51 = vector.load %arg4[%c2_44, %c0_45, %c0_46] : memref<3x64x64xbf16, #tpu.memory_space<vmem>>, vector<1x64x64xbf16>
    %52 = vector.shape_cast %51 : vector<1x64x64xbf16> to vector<64x64xbf16>
    %cst_47 = arith.constant dense<0.000000e+00> : vector<256x64xf32>
    %53 = tpu.matmul %50, %52, %cst_47 {dimension_numbers = #tpu.dot_dimension_numbers<[1], [0], [0], [1], [0, 0, 1, 1], [], []>} : vector<256x64xbf16>, vector<64x64xbf16>, vector<256x64xf32> -> vector<256x64xf32>
    %54 = arith.addf %48, %53 : vector<256x64xf32>
    %c0_48 = arith.constant 0 : index
    %c0_49 = arith.constant 0 : index
    %55 = vector.load %arg5[%c0_48, %c0_49] : memref<1x64xf32, #tpu.memory_space<vmem>>, vector<1x64xf32>
    %56 = vector.broadcast %55 : vector<1x64xf32> to vector<256x64xf32>
    %57 = arith.addf %54, %56 : vector<256x64xf32>
    %cst_50 = arith.constant 0.000000e+00 : f32
    %58 = vector.broadcast %cst_50 : f32 to vector<256x64xf32>
    %59 = arith.maximumf %57, %58 : vector<256x64xf32>
    %60 = vector.shape_cast %59 : vector<256x64xf32> to vector<4x8x8x64xf32>
    %c0_51 = arith.constant 0 : index
    %c0_52 = arith.constant 0 : index
    %c0_53 = arith.constant 0 : index
    %c0_54 = arith.constant 0 : index
    %c0_55 = arith.constant 0 : index
    %61 = vector.load %arg6[%c0_51, %c0_52, %c0_53, %c0_54, %c0_55] : memref<1x4x8x8x64xf32, #tpu.memory_space<vmem>>, vector<1x4x8x8x64xf32>
    %62 = vector.shape_cast %61 : vector<1x4x8x8x64xf32> to vector<4x8x8x64xf32>
    %63 = vector.shape_cast %60 : vector<4x8x8x64xf32> to vector<1x4x8x8x64xf32>
    tpu.vector_store %arg6[%c0_51, %c0_52, %c0_53, %c0_54, %c0_55], %63 {strides = array<i32>} : memref<1x4x8x8x64xf32, #tpu.memory_space<vmem>>, vector<1x4x8x8x64xf32>,
    return
  }
  func.func @transform_0(%arg0: i32) -> (i32, i32, i32, i32, i32) {
    %c0_i32 = arith.constant 0 : i32
    %c0_i32_0 = arith.constant 0 : i32
    %c0_i32_1 = arith.constant 0 : i32
    %c0_i32_2 = arith.constant 0 : i32
    %c0_i32_3 = arith.constant 0 : i32
    return %arg0, %c0_i32, %c0_i32_0, %c0_i32_1, %c0_i32_2 : i32, i32, i32, i32, i32
  }
  func.func @transform_1(%arg0: i32) -> (i32, i32, i32) {
    %c0_i32 = arith.constant 0 : i32
    %c0_i32_0 = arith.constant 0 : i32
    %c0_i32_1 = arith.constant 0 : i32
    %c0_i32_2 = arith.constant 0 : i32
    return %c0_i32, %c0_i32_0, %c0_i32_1 : i32, i32, i32
  }
  func.func @transform_2(%arg0: i32) -> (i32, i32) {
    %c0_i32 = arith.constant 0 : i32
    %c0_i32_0 = arith.constant 0 : i32
    %c0_i32_1 = arith.constant 0 : i32
    return %c0_i32, %c0_i32_0 : i32, i32
  }
  func.func @transform_3(%arg0: i32) -> (i32, i32, i32) {
    %c0_i32 = arith.constant 0 : i32
    %c0_i32_0 = arith.constant 0 : i32
    %c0_i32_1 = arith.constant 0 : i32
    %c0_i32_2 = arith.constant 0 : i32
    return %c0_i32, %c0_i32_0, %c0_i32_1 : i32, i32, i32
  }
  func.func @transform_4(%arg0: i32) -> (i32, i32) {
    %c0_i32 = arith.constant 0 : i32
    %c0_i32_0 = arith.constant 0 : i32
    %c0_i32_1 = arith.constant 0 : i32
    return %c0_i32, %c0_i32_0 : i32, i32
  }
  func.func @transform_5(%arg0: i32) -> (i32, i32, i32, i32, i32) {
    %c0_i32 = arith.constant 0 : i32
    %c0_i32_0 = arith.constant 0 : i32
    %c0_i32_1 = arith.constant 0 : i32
    %c0_i32_2 = arith.constant 0 : i32
    %c0_i32_3 = arith.constant 0 : i32
    return %arg0, %c0_i32, %c0_i32_0, %c0_i32_1, %c0_i32_2 : i32, i32, i32, i32, i32
  }
}

module attributes {stable_mosaic.version = 11 : i64} {
  func.func @sepconv_kernel(%arg0: i32, %arg1: memref<1x4x10x8x336xbf16, #tpu.memory_space<vmem>>, %arg2: memref<3x336x224xbf16, #tpu.memory_space<vmem>>, %arg3: memref<1x224xf32, #tpu.memory_space<vmem>>, %arg4: memref<3x224x224xbf16, #tpu.memory_space<vmem>>, %arg5: memref<1x224xf32, #tpu.memory_space<vmem>>, %arg6: memref<1x4x8x8x224xf32, #tpu.memory_space<vmem>>, %arg7: memref<6x64x224xbf16, #tpu.memory_space<vmem>>) attributes {dimension_semantics = [#tpu.dimension_semantics<parallel>], iteration_bounds = array<i64: 2>, scalar_prefetch = 0 : i64, scratch_operands = 1 : i64, tpu.core_type = #tpu.core_type<tc>, window_params = [{transform_indices = @transform_0, window_bounds = array<i64: 1, 4, 10, 8, 336>}, {pipeline_mode = #tpu.pipeline_mode<synchronous>, transform_indices = @transform_1, window_bounds = array<i64: 3, 336, 224>}, {pipeline_mode = #tpu.pipeline_mode<synchronous>, transform_indices = @transform_2, window_bounds = array<i64: 1, 224>}, {pipeline_mode = #tpu.pipeline_mode<synchronous>, transform_indices = @transform_3, window_bounds = array<i64: 3, 224, 224>}, {pipeline_mode = #tpu.pipeline_mode<synchronous>, transform_indices = @transform_4, window_bounds = array<i64: 1, 224>}, {transform_indices = @transform_5, window_bounds = array<i64: 1, 4, 8, 8, 224>}]} {
    %c0 = arith.constant 0 : index
    %c0_0 = arith.constant 0 : index
    %c0_1 = arith.constant 0 : index
    %c0_2 = arith.constant 0 : index
    %c0_3 = arith.constant 0 : index
    %0 = vector.load %arg1[%c0, %c0_0, %c0_1, %c0_2, %c0_3] : memref<1x4x10x8x336xbf16, #tpu.memory_space<vmem>>, vector<1x4x10x8x336xbf16>
    %1 = vector.shape_cast %0 : vector<1x4x10x8x336xbf16> to vector<4x10x8x336xbf16>
    %cst = arith.constant 0.000000e+00 : f32
    %2 = vector.broadcast %cst : f32 to vector<256x224xf32>
    %3 = vector.extract_strided_slice %1 {offsets = [0, 0, 0, 0], sizes = [4, 8, 8, 336], strides = [1, 1, 1, 1]} : vector<4x10x8x336xbf16> to vector<4x8x8x336xbf16>
    %4 = vector.shape_cast %3 : vector<4x8x8x336xbf16> to vector<256x336xbf16>
    %c0_4 = arith.constant 0 : index
    %c0_5 = arith.constant 0 : index
    %c0_6 = arith.constant 0 : index
    %5 = vector.load %arg2[%c0_4, %c0_5, %c0_6] : memref<3x336x224xbf16, #tpu.memory_space<vmem>>, vector<1x336x224xbf16>
    %6 = vector.shape_cast %5 : vector<1x336x224xbf16> to vector<336x224xbf16>
    %cst_7 = arith.constant dense<0.000000e+00> : vector<256x224xf32>
    %7 = tpu.matmul %4, %6, %cst_7 {dimension_numbers = #tpu.dot_dimension_numbers<[1], [0], [0], [1], [0, 0, 1, 1], [], []>} : vector<256x336xbf16>, vector<336x224xbf16>, vector<256x224xf32> -> vector<256x224xf32>
    %8 = arith.addf %2, %7 : vector<256x224xf32>
    %9 = vector.extract_strided_slice %1 {offsets = [0, 1, 0, 0], sizes = [4, 8, 8, 336], strides = [1, 1, 1, 1]} : vector<4x10x8x336xbf16> to vector<4x8x8x336xbf16>
    %10 = vector.shape_cast %9 : vector<4x8x8x336xbf16> to vector<256x336xbf16>
    %c1 = arith.constant 1 : index
    %c0_8 = arith.constant 0 : index
    %c0_9 = arith.constant 0 : index
    %11 = vector.load %arg2[%c1, %c0_8, %c0_9] : memref<3x336x224xbf16, #tpu.memory_space<vmem>>, vector<1x336x224xbf16>
    %12 = vector.shape_cast %11 : vector<1x336x224xbf16> to vector<336x224xbf16>
    %cst_10 = arith.constant dense<0.000000e+00> : vector<256x224xf32>
    %13 = tpu.matmul %10, %12, %cst_10 {dimension_numbers = #tpu.dot_dimension_numbers<[1], [0], [0], [1], [0, 0, 1, 1], [], []>} : vector<256x336xbf16>, vector<336x224xbf16>, vector<256x224xf32> -> vector<256x224xf32>
    %14 = arith.addf %8, %13 : vector<256x224xf32>
    %15 = vector.extract_strided_slice %1 {offsets = [0, 2, 0, 0], sizes = [4, 8, 8, 336], strides = [1, 1, 1, 1]} : vector<4x10x8x336xbf16> to vector<4x8x8x336xbf16>
    %16 = vector.shape_cast %15 : vector<4x8x8x336xbf16> to vector<256x336xbf16>
    %c2 = arith.constant 2 : index
    %c0_11 = arith.constant 0 : index
    %c0_12 = arith.constant 0 : index
    %17 = vector.load %arg2[%c2, %c0_11, %c0_12] : memref<3x336x224xbf16, #tpu.memory_space<vmem>>, vector<1x336x224xbf16>
    %18 = vector.shape_cast %17 : vector<1x336x224xbf16> to vector<336x224xbf16>
    %cst_13 = arith.constant dense<0.000000e+00> : vector<256x224xf32>
    %19 = tpu.matmul %16, %18, %cst_13 {dimension_numbers = #tpu.dot_dimension_numbers<[1], [0], [0], [1], [0, 0, 1, 1], [], []>} : vector<256x336xbf16>, vector<336x224xbf16>, vector<256x224xf32> -> vector<256x224xf32>
    %20 = arith.addf %14, %19 : vector<256x224xf32>
    %c0_14 = arith.constant 0 : index
    %c0_15 = arith.constant 0 : index
    %21 = vector.load %arg3[%c0_14, %c0_15] : memref<1x224xf32, #tpu.memory_space<vmem>>, vector<1x224xf32>
    %22 = vector.broadcast %21 : vector<1x224xf32> to vector<256x224xf32>
    %23 = arith.addf %20, %22 : vector<256x224xf32>
    %cst_16 = arith.constant 0.000000e+00 : f32
    %24 = vector.broadcast %cst_16 : f32 to vector<256x224xf32>
    %25 = arith.maximumf %23, %24 : vector<256x224xf32>
    %cst_17 = arith.constant 0.000000e+00 : bf16
    %26 = vector.broadcast %cst_17 : bf16 to vector<64x224xbf16>
    %c0_18 = arith.constant 0 : index
    %c0_19 = arith.constant 0 : index
    %c0_20 = arith.constant 0 : index
    %27 = vector.load %arg7[%c0_18, %c0_19, %c0_20] : memref<6x64x224xbf16, #tpu.memory_space<vmem>>, vector<1x64x224xbf16>
    %28 = vector.shape_cast %27 : vector<1x64x224xbf16> to vector<64x224xbf16>
    %29 = vector.shape_cast %26 : vector<64x224xbf16> to vector<1x64x224xbf16>
    tpu.vector_store %arg7[%c0_18, %c0_19, %c0_20], %29 {strides = array<i32>} : memref<6x64x224xbf16, #tpu.memory_space<vmem>>, vector<1x64x224xbf16>,
    %c5 = arith.constant 5 : index
    %c0_21 = arith.constant 0 : index
    %c0_22 = arith.constant 0 : index
    %30 = vector.load %arg7[%c5, %c0_21, %c0_22] : memref<6x64x224xbf16, #tpu.memory_space<vmem>>, vector<1x64x224xbf16>
    %31 = vector.shape_cast %30 : vector<1x64x224xbf16> to vector<64x224xbf16>
    %32 = vector.shape_cast %26 : vector<64x224xbf16> to vector<1x64x224xbf16>
    tpu.vector_store %arg7[%c5, %c0_21, %c0_22], %32 {strides = array<i32>} : memref<6x64x224xbf16, #tpu.memory_space<vmem>>, vector<1x64x224xbf16>,
    %33 = vector.shape_cast %25 : vector<256x224xf32> to vector<4x64x224xf32>
    %34 = arith.truncf %33 : vector<4x64x224xf32> to vector<4x64x224xbf16>
    %c1_23 = arith.constant 1 : index
    %c0_24 = arith.constant 0 : index
    %c0_25 = arith.constant 0 : index
    %35 = vector.load %arg7[%c1_23, %c0_24, %c0_25] : memref<6x64x224xbf16, #tpu.memory_space<vmem>>, vector<4x64x224xbf16>
    tpu.vector_store %arg7[%c1_23, %c0_24, %c0_25], %34 {strides = array<i32>} : memref<6x64x224xbf16, #tpu.memory_space<vmem>>, vector<4x64x224xbf16>,
    %cst_26 = arith.constant 0.000000e+00 : f32
    %36 = vector.broadcast %cst_26 : f32 to vector<256x224xf32>
    %c0_27 = arith.constant 0 : index
    %c0_28 = arith.constant 0 : index
    %c0_29 = arith.constant 0 : index
    %37 = vector.load %arg7[%c0_27, %c0_28, %c0_29] : memref<6x64x224xbf16, #tpu.memory_space<vmem>>, vector<4x64x224xbf16>
    %38 = vector.shape_cast %37 : vector<4x64x224xbf16> to vector<256x224xbf16>
    %c0_30 = arith.constant 0 : index
    %c0_31 = arith.constant 0 : index
    %c0_32 = arith.constant 0 : index
    %39 = vector.load %arg4[%c0_30, %c0_31, %c0_32] : memref<3x224x224xbf16, #tpu.memory_space<vmem>>, vector<1x224x224xbf16>
    %40 = vector.shape_cast %39 : vector<1x224x224xbf16> to vector<224x224xbf16>
    %cst_33 = arith.constant dense<0.000000e+00> : vector<256x224xf32>
    %41 = tpu.matmul %38, %40, %cst_33 {dimension_numbers = #tpu.dot_dimension_numbers<[1], [0], [0], [1], [0, 0, 1, 1], [], []>} : vector<256x224xbf16>, vector<224x224xbf16>, vector<256x224xf32> -> vector<256x224xf32>
    %42 = arith.addf %36, %41 : vector<256x224xf32>
    %c1_34 = arith.constant 1 : index
    %c0_35 = arith.constant 0 : index
    %c0_36 = arith.constant 0 : index
    %43 = vector.load %arg7[%c1_34, %c0_35, %c0_36] : memref<6x64x224xbf16, #tpu.memory_space<vmem>>, vector<4x64x224xbf16>
    %44 = vector.shape_cast %43 : vector<4x64x224xbf16> to vector<256x224xbf16>
    %c1_37 = arith.constant 1 : index
    %c0_38 = arith.constant 0 : index
    %c0_39 = arith.constant 0 : index
    %45 = vector.load %arg4[%c1_37, %c0_38, %c0_39] : memref<3x224x224xbf16, #tpu.memory_space<vmem>>, vector<1x224x224xbf16>
    %46 = vector.shape_cast %45 : vector<1x224x224xbf16> to vector<224x224xbf16>
    %cst_40 = arith.constant dense<0.000000e+00> : vector<256x224xf32>
    %47 = tpu.matmul %44, %46, %cst_40 {dimension_numbers = #tpu.dot_dimension_numbers<[1], [0], [0], [1], [0, 0, 1, 1], [], []>} : vector<256x224xbf16>, vector<224x224xbf16>, vector<256x224xf32> -> vector<256x224xf32>
    %48 = arith.addf %42, %47 : vector<256x224xf32>
    %c2_41 = arith.constant 2 : index
    %c0_42 = arith.constant 0 : index
    %c0_43 = arith.constant 0 : index
    %49 = vector.load %arg7[%c2_41, %c0_42, %c0_43] : memref<6x64x224xbf16, #tpu.memory_space<vmem>>, vector<4x64x224xbf16>
    %50 = vector.shape_cast %49 : vector<4x64x224xbf16> to vector<256x224xbf16>
    %c2_44 = arith.constant 2 : index
    %c0_45 = arith.constant 0 : index
    %c0_46 = arith.constant 0 : index
    %51 = vector.load %arg4[%c2_44, %c0_45, %c0_46] : memref<3x224x224xbf16, #tpu.memory_space<vmem>>, vector<1x224x224xbf16>
    %52 = vector.shape_cast %51 : vector<1x224x224xbf16> to vector<224x224xbf16>
    %cst_47 = arith.constant dense<0.000000e+00> : vector<256x224xf32>
    %53 = tpu.matmul %50, %52, %cst_47 {dimension_numbers = #tpu.dot_dimension_numbers<[1], [0], [0], [1], [0, 0, 1, 1], [], []>} : vector<256x224xbf16>, vector<224x224xbf16>, vector<256x224xf32> -> vector<256x224xf32>
    %54 = arith.addf %48, %53 : vector<256x224xf32>
    %c0_48 = arith.constant 0 : index
    %c0_49 = arith.constant 0 : index
    %55 = vector.load %arg5[%c0_48, %c0_49] : memref<1x224xf32, #tpu.memory_space<vmem>>, vector<1x224xf32>
    %56 = vector.broadcast %55 : vector<1x224xf32> to vector<256x224xf32>
    %57 = arith.addf %54, %56 : vector<256x224xf32>
    %cst_50 = arith.constant 0.000000e+00 : f32
    %58 = vector.broadcast %cst_50 : f32 to vector<256x224xf32>
    %59 = arith.maximumf %57, %58 : vector<256x224xf32>
    %60 = vector.shape_cast %59 : vector<256x224xf32> to vector<4x8x8x224xf32>
    %c0_51 = arith.constant 0 : index
    %c0_52 = arith.constant 0 : index
    %c0_53 = arith.constant 0 : index
    %c0_54 = arith.constant 0 : index
    %c0_55 = arith.constant 0 : index
    %61 = vector.load %arg6[%c0_51, %c0_52, %c0_53, %c0_54, %c0_55] : memref<1x4x8x8x224xf32, #tpu.memory_space<vmem>>, vector<1x4x8x8x224xf32>
    %62 = vector.shape_cast %61 : vector<1x4x8x8x224xf32> to vector<4x8x8x224xf32>
    %63 = vector.shape_cast %60 : vector<4x8x8x224xf32> to vector<1x4x8x8x224xf32>
    tpu.vector_store %arg6[%c0_51, %c0_52, %c0_53, %c0_54, %c0_55], %63 {strides = array<i32>} : memref<1x4x8x8x224xf32, #tpu.memory_space<vmem>>, vector<1x4x8x8x224xf32>,
    return
  }
  func.func @transform_0(%arg0: i32) -> (i32, i32, i32, i32, i32) {
    %c0_i32 = arith.constant 0 : i32
    %c0_i32_0 = arith.constant 0 : i32
    %c0_i32_1 = arith.constant 0 : i32
    %c0_i32_2 = arith.constant 0 : i32
    %c0_i32_3 = arith.constant 0 : i32
    return %arg0, %c0_i32, %c0_i32_0, %c0_i32_1, %c0_i32_2 : i32, i32, i32, i32, i32
  }
  func.func @transform_1(%arg0: i32) -> (i32, i32, i32) {
    %c0_i32 = arith.constant 0 : i32
    %c0_i32_0 = arith.constant 0 : i32
    %c0_i32_1 = arith.constant 0 : i32
    %c0_i32_2 = arith.constant 0 : i32
    return %c0_i32, %c0_i32_0, %c0_i32_1 : i32, i32, i32
  }
  func.func @transform_2(%arg0: i32) -> (i32, i32) {
    %c0_i32 = arith.constant 0 : i32
    %c0_i32_0 = arith.constant 0 : i32
    %c0_i32_1 = arith.constant 0 : i32
    return %c0_i32, %c0_i32_0 : i32, i32
  }
  func.func @transform_3(%arg0: i32) -> (i32, i32, i32) {
    %c0_i32 = arith.constant 0 : i32
    %c0_i32_0 = arith.constant 0 : i32
    %c0_i32_1 = arith.constant 0 : i32
    %c0_i32_2 = arith.constant 0 : i32
    return %c0_i32, %c0_i32_0, %c0_i32_1 : i32, i32, i32
  }
  func.func @transform_4(%arg0: i32) -> (i32, i32) {
    %c0_i32 = arith.constant 0 : i32
    %c0_i32_0 = arith.constant 0 : i32
    %c0_i32_1 = arith.constant 0 : i32
    return %c0_i32, %c0_i32_0 : i32, i32
  }
  func.func @transform_5(%arg0: i32) -> (i32, i32, i32, i32, i32) {
    %c0_i32 = arith.constant 0 : i32
    %c0_i32_0 = arith.constant 0 : i32
    %c0_i32_1 = arith.constant 0 : i32
    %c0_i32_2 = arith.constant 0 : i32
    %c0_i32_3 = arith.constant 0 : i32
    return %arg0, %c0_i32, %c0_i32_0, %c0_i32_1, %c0_i32_2 : i32, i32, i32, i32, i32
  }
}

</mosaic_0001>

<bundles_post_ra>
// kernel: mixed_4c.7
= control target key start
LH: loop header
LB: loop body
LE: loop exit
PB: predicated region body
PF: predicated region fallthrough
CT: control target
= control target key end

     0   :  { %s4088_s12 = smov 0   ;;  %s6346_s0 = inlined_call_operand.vmem [shape: bf16[2,6,10,10,512], index: 0, kind: input, shape index: {}]   ;;  %s6347_s1 = inlined_call_operand.vmem [shape: bf16[512,64], index: 1, kind: input, shape index: {}]   ;;  %s6348_s2 = inlined_call_operand.vmem [shape: f32[1,64], index: 2, kind: input, shape index: {}]   ;;  %s6349_s3 = inlined_call_operand.vmem [shape: f32[2,4,8,8,64], index: 3, kind: output, shape index: {}]  }
   0x1 LB: > { %s3555_s13 = sadd.s32 4294967295, %s4066_s12   ;;  %p3559_p0 = scmp.ge.s32.totalorder %s4066_s12, 1  ;;  %s4066_s12 = sphi %s4088_s12, %s13_s12  }
   0x2   : > { %p137_p1 = scmp.lt.s32.totalorder %s4066_s12, 3 }
   0x4   : > { %p138_p2 = pnand %p3559_p0, %p137_p1 }
   0x6   : > { %141 = sbr.rel (%p138_p2) target bundleno = 661 (0x295), region = 32 }
   0xd   : > { %v3960_v0 = vld [vmem:[%s6347_s1 + $0x40] sm:$0xff]   ;;  %v3964_v4 = vld [vmem:[%s6347_s1 + $0x48] sm:$0xff]   ;;  %v3968_v8 = vld [vmem:[%s6347_s1 + $0x50] sm:$0xff]   ;;  %p161_p3 = scmp.lt.s32.totalorder %s3555_s13, 1  ;;  %vm2143_vm0 = vcmask 1042432   ;;  %vm2144_vm1 = vcmask 1046532  }
   0xe   : > { %v3961_v1 = vld [vmem:[%s6347_s1 + $0xc0] sm:$0xff]   ;;  %3727 = vmatprep.subr.bf16.mxu0 %v3960_v0  ;;  %v3965_v5 = vld [vmem:[%s6347_s1 + $0xc8] sm:$0xff]   ;;  %v3969_v9 = vld [vmem:[%s6347_s1 + $0xd0] sm:$0xff]   ;;  %vm988_vm2 = vsmask.f32 3328  ;;  %vm3467_vm6 = vcmask 523264  }
   0xf   : > { %v3962_v2 = vld [vmem:[%s6347_s1] sm:$0xff]   ;;  %3839 = vmatprep.subr.bf16.mxu1 %v3961_v1  ;;  %v3966_v6 = vld [vmem:[%s6347_s1 + $0x8] sm:$0xff]   ;;  %v3970_v10 = vld [vmem:[%s6347_s1 + $0x10] sm:$0xff]   ;;  %s6739_s13 = smov (!%p161_p3, %s3555_s13), 1  ;;  %vm989_vm3 = vsmask.f32 7440 }
  0x10   : > { %v3963_v3 = vld [vmem:[%s6347_s1 + $0x80] sm:$0xff]   ;;  %3728 = vmatpush3.bf16.msra.mxu0 %v3962_v2  ;;  %v3967_v7 = vld [vmem:[%s6347_s1 + $0x88] sm:$0xff]   ;;  %v3971_v11 = vld [vmem:[%s6347_s1 + $0x90] sm:$0xff]   ;;  %s3951_s16 = smul.u32 1920, %s6739_s13  ;;  %s3726_s7 = sshll.u32 %s6739_s13, 8 }
  0x11   : > { %3840 = vmatpush3.bf16.msra.mxu1 %v3963_v3  ;;  %3729 = vmatprep.subr.bf16.mxu0 %v3964_v4  ;;  %v3972_v12 = vld [vmem:[%s6347_s1 + $0x58] sm:$0xff]   ;;  %v3976_v16 = vld [vmem:[%s6347_s1 + $0x60] sm:$0xff]   ;;  %v3980_v20 = vld [vmem:[%s6347_s1 + $0x68] sm:$0xff]   ;;  %s6191_s13 = scalar_lea.vmem %s6349_s3, %s3726_s7 }
  0x12   : > { %3841 = vmatprep.subr.bf16.mxu1 %v3965_v5  ;;  %v3973_v13 = vld [vmem:[%s6347_s1 + $0xd8] sm:$0xff]   ;;  %v3977_v17 = vld [vmem:[%s6347_s1 + $0xe0] sm:$0xff]   ;;  %v3981_v21 = vld [vmem:[%s6347_s1 + $0xe8] sm:$0xff]   ;;  %s4196_s27 = scalar_lea.vmem %s6346_s0, %s3951_s16 }
  0x13   : > { %v3974_v14 = vld [vmem:[%s6347_s1 + $0x18] sm:$0xff]   ;;  %v3978_v18 = vld [vmem:[%s6347_s1 + $0x20] sm:$0xff]   ;;  %v3982_v22 = vld [vmem:[%s6347_s1 + $0x28] sm:$0xff]  }
  0x14   : > { %3730 = vmatpush3.bf16.msra.mxu0 %v3966_v6  ;;  %v3975_v15 = vld [vmem:[%s6347_s1 + $0x98] sm:$0xff]   ;;  %v3979_v19 = vld [vmem:[%s6347_s1 + $0xa0] sm:$0xff]   ;;  %v3983_v23 = vld [vmem:[%s6347_s1 + $0xa8] sm:$0xff]  }
  0x15   : > { %3842 = vmatpush3.bf16.msra.mxu1 %v3967_v7  ;;  %3731 = vmatprep.subr.bf16.mxu0 %v3968_v8  ;;  %v3984_v24 = vld [vmem:[%s6347_s1 + $0x70] sm:$0xff]   ;;  %v3988_v28 = vld [vmem:[%s6347_s1 + $0x78] sm:$0xff]   ;;  %v172_v32 = vld [vmem:[%s4196_s27] sm:$0xff] }
  0x16   : > { %3843 = vmatprep.subr.bf16.mxu1 %v3969_v9  ;;  %v3985_v25 = vld [vmem:[%s6347_s1 + $0xf0] sm:$0xff]   ;;  %v3989_v29 = vld [vmem:[%s6347_s1 + $0xf8] sm:$0xff]   ;;  %v176_v34 = vld [vmem:[%s4196_s27 + $0x20] sm:$0xff] }
  0x17   : > { %v3986_v26 = vld [vmem:[%s6347_s1 + $0x30] sm:$0xff]   ;;  %v3990_v30 = vld [vmem:[%s6347_s1 + $0x38] sm:$0xff]   ;;  %v180_v36 = vld [vmem:[%s4196_s27 + $0x40] sm:$0xff] }
  0x18   : > { %3732 = vmatpush3.bf16.msra.mxu0 %v3970_v10  ;;  %v3987_v27 = vld [vmem:[%s6347_s1 + $0xb0] sm:$0xff]   ;;  %v3991_v31 = vld [vmem:[%s6347_s1 + $0xb8] sm:$0xff]   ;;  %v184_v38 = vld [vmem:[%s4196_s27 + $0x60] sm:$0xff] }
  0x19   : > { %3844 = vmatpush3.bf16.msra.mxu1 %v3971_v11  ;;  %3733 = vmatprep.subr.bf16.mxu0 %v3972_v12  ;;  %v174_v33 = vld [vmem:[%s4196_s27 + $0x10] sm:$0x11]  ;;  %v4213_v40 = vld [vmem:[%s4196_s27 + $0x140] sm:$0xff]  ;;  %vm4398_vm4 = vmor %vm2143_vm0, %vm2144_vm1 }
  0x1a   : > { %3845 = vmatprep.subr.bf16.mxu1 %v3973_v13  ;;  %v178_v35 = vld [vmem:[%s4196_s27 + $0x30] sm:$0x11]  ;;  %v4219_v42 = vld [vmem:[%s4196_s27 + $0x160] sm:$0xff]  ;;  %v412_v44 = vmax.bf16 %v4213_v40, %v172_v32  ;;  %v4417_v11 = vld [vmem:[%s4196_s27 + $0x188] sm:$0xff] }
  0x1b   : > { %v182_v37 = vld [vmem:[%s4196_s27 + $0x50] sm:$0x11]  ;;  %v4226_v45 = vld [vmem:[%s4196_s27 + $0x180] sm:$0xff]  ;;  %v416_v49 = vmax.bf16 %v4219_v42, %v176_v34  ;;  %6468 = vst [vmem:[#allocation14_spill] sm:$0xff] %v4417_v11  ;;  %v4420_v10 = vld [vmem:[%s4196_s27 + $0x1a8] sm:$0xff] }
  0x1c   : > { %3734 = vmatpush3.bf16.msra.mxu0 %v3974_v14  ;;  %v186_v39 = vld [vmem:[%s4196_s27 + $0x70] sm:$0x11]  ;;  %v4232_v47 = vld [vmem:[%s4196_s27 + $0x1a0] sm:$0xff]  ;;  %v420_v54 = vmax.bf16 %v4226_v45, %v180_v36  ;;  %v4345_v36 = vld [vmem:[%s4196_s27 + $0x18] sm:$0x11]  ;;  %6469 = vst [vmem:[#allocation15_spill] sm:$0xff] %v4420_v10 }
  0x1d   : > { %3846 = vmatpush3.bf16.msra.mxu1 %v3975_v15  ;;  %3735 = vmatprep.subr.bf16.mxu0 %v3976_v16  ;;  %v4216_v41 = vld [vmem:[%s4196_s27 + $0x150] sm:$0x11]  ;;  %v4240_v51 = vld [vmem:[%s4196_s27 + $0x280] sm:$0xff]  ;;  %v424_v56 = vmax.bf16 %v4232_v47, %v184_v38  ;;  %vm4434_vm5 = vmor %vm988_vm2, %vm989_vm3 }
  0x1e   : > { %3847 = vmatprep.subr.bf16.mxu1 %v3977_v17  ;;  %v4222_v43 = vld [vmem:[%s4196_s27 + $0x170] sm:$0x11]  ;;  %v414_v48 = vmax.bf16 %v4216_v41, %v174_v33  ;;  %6454 = vst [vmem:[#allocation2_spill] sm:$0xff] %v4240_v51  ;;  %v4250_v57 = vld [vmem:[%s4196_s27 + $0x2a0] sm:$0xff]  ;;  %v452_v61 = vmax.bf16 %v4240_v51, %v4213_v40  ;;  %v572_v63 = vmax.bf16 %v412_v44, %v4240_v51  ;;  %v4504_v51 = vld [vmem:[%s4196_s27 + $0x408] sm:$0xff] }
  0x1f   : > { %v4229_v46 = vld [vmem:[%s4196_s27 + $0x190] sm:$0x11]  ;;  %v418_v53 = vmax.bf16 %v4222_v43, %v178_v35  ;;  %v4256_v59 = vld [vmem:[%s4196_s27 + $0x2c0] sm:$0xff]  ;;  %v576_v13 = vmax.bf16 %v416_v49, %v4250_v57  ;;  %v4342_v35 = vld [vmem:[%s4196_s27 + $0x8] sm:$0xff]  ;;  %6483 = vst [vmem:[#allocation27_spill] sm:$0xff] %v4504_v51 }
  0x20   : > { %3736 = vmatpush3.bf16.msra.mxu0 %v3978_v18  ;;  %v4237_v50 = vld [vmem:[%s4196_s27 + $0x1b0] sm:$0x11]  ;;  %v422_v55 = vmax.bf16 %v4229_v46, %v182_v37  ;;  %v4268_v1 = vld [vmem:[%s4196_s27 + $0x2e0] sm:$0xff]  ;;  %v4348_v37 = vld [vmem:[%s4196_s27 + $0x28] sm:$0xff] }
  0x21   : > { %3848 = vmatpush3.bf16.msra.mxu1 %v3979_v19  ;;  %3737 = vmatprep.subr.bf16.mxu0 %v3980_v20  ;;  %v4243_v52 = vld [vmem:[%s4196_s27 + $0x290] sm:$0x11]  ;;  %v426_v60 = vmax.bf16 %v4237_v50, %v186_v39  ;;  %v4281_v7 = vld [vmem:[%s4196_s27 + $0x3c0] sm:$0xff]  ;;  %v732_v32 = vmax.bf16 %v576_v13, %v572_v63  ;;  %v4385_v63 = vld [vmem:[%s4196_s27 + $0x178] sm:$0x11] }
  0x22   : > { %3849 = vmatprep.subr.bf16.mxu1 %v3981_v21  ;;  %6455 = vst [vmem:[#allocation3_spill] sm:$0xff] %v4243_v52  ;;  %v4253_v58 = vld [vmem:[%s4196_s27 + $0x2b0] sm:$0x11]  ;;  %v454_v62 = vmax.bf16 %v4243_v52, %v4216_v41  ;;  %v574_v6 = vmax.bf16 %v414_v48, %v4243_v52  ;;  %6456 = vst [vmem:[#allocation4_spill] sm:$0xff] %v4281_v7  ;;  %v4287_v9 = vld [vmem:[%s4196_s27 + $0x3e0] sm:$0xff]  ;;  %v4354_v40 = vmax.bf16 %v452_v61, %v4281_v7 }
  0x23   : > { %v4265_v0 = vld [vmem:[%s4196_s27 + $0x2d0] sm:$0x11]  ;;  %v4300_v15 = vld [vmem:[%s4196_s27 + $0x400] sm:$0xff]  ;;  %v578_v20 = vmax.bf16 %v418_v53, %v4253_v58  ;;  %v4367_v53 = vld [vmem:[%s4196_s27 + $0x148] sm:$0xff]  ;;  %6464 = vst [vmem:[#allocation12_spill] sm:$0xff] %v4385_v63 }
  0x24   : > { %3738 = vmatpush3.bf16.msra.mxu0 %v3982_v22  ;;  %v4271_v2 = vld [vmem:[%s4196_s27 + $0x2f0] sm:$0x11]  ;;  %6458 = vst [vmem:[#allocation6_spill] sm:$0xff] %v4300_v15  ;;  %v4313_v21 = vld [vmem:[%s4196_s27 + $0x420] sm:$0xff]  ;;  %v4379_v61 = vld [vmem:[%s4196_s27 + $0x38] sm:$0x11] }
  0x25   : > { %3850 = vmatpush3.bf16.msra.mxu1 %v3983_v23  ;;  %3739 = vmatprep.subr.bf16.mxu0 %v3984_v24  ;;  %v4284_v8 = vld [vmem:[%s4196_s27 + $0x3d0] sm:$0x11]  ;;  %6460 = vst [vmem:[#allocation8_spill] sm:$0xff] %v4313_v21  ;;  %v734_v33 = vmax.bf16 %v578_v20, %v574_v6  ;;  %v4409_v24 = vld [vmem:[%s4196_s27 + $0x78] sm:$0x11] }
  0x26   : > { %3851 = vmatprep.subr.bf16.mxu1 %v3985_v25  ;;  %6457 = vst [vmem:[#allocation5_spill] sm:$0xff] %v4284_v8  ;;  %v4297_v14 = vld [vmem:[%s4196_s27 + $0x3f0] sm:$0x11]  ;;  %v4357_v41 = vmax.bf16 %v454_v62, %v4284_v8  ;;  %v4382_v62 = vld [vmem:[%s4196_s27 + $0x48] sm:$0xff]  ;;  %v4412_v23 = vld [vmem:[%s4196_s27 + $0x198] sm:$0x11] }
  0x27   : > { %v4303_v16 = vld [vmem:[%s4196_s27 + $0x410] sm:$0x11]  ;;  %v4406_v25 = vld [vmem:[%s4196_s27 + $0x68] sm:$0xff]  ;;  %6467 = vst [vmem:[#allocation13_spill] sm:$0xff] %v4412_v23  ;;  %v4423_v39 = vld [vmem:[%s4196_s27 + $0x1b8] sm:$0x11] }
  0x28   : > { %3740 = vmatpush3.bf16.msra.mxu0 %v3986_v26  ;;  %6459 = vst [vmem:[#allocation7_spill] sm:$0xff] %v4303_v16  ;;  %v4316_v22 = vld [vmem:[%s4196_s27 + $0x430] sm:$0x11]  ;;  %v4325_v26 = vmax.bf16 %v420_v54, %v4256_v59  ;;  %v4370_v54 = vld [vmem:[%s4196_s27 + $0x158] sm:$0x11]  ;;  %6470 = vst [vmem:[#allocation16_spill] sm:$0xff] %v4423_v39 }
  0x29   : > { %3852 = vmatpush3.bf16.msra.mxu1 %v3987_v27  ;;  %3741 = vmatprep.subr.bf16.mxu0 %v3988_v28  ;;  %6461 = vst [vmem:[#allocation9_spill] sm:$0xff] %v4316_v22  ;;  %6462 = vst [vmem:[#allocation10_spill] sm:$0xff] %v4370_v54  ;;  %v4403_v27 = vld [vmem:[%s4196_s27 + $0x58] sm:$0x11] }
  0x2a   : > { %3853 = vmatprep.subr.bf16.mxu1 %v3989_v29  ;;  %v4332_v29 = vmax.bf16 %v422_v55, %v4265_v0  ;;  %v736_v34 = vmax.bf16 %v4325_v26, %v576_v13  ;;  %v4360_v44 = vmax.bf16 %v732_v32, %v4325_v26  ;;  %v4373_v55 = vld [vmem:[%s4196_s27 + $0x168] sm:$0xff]  ;;  %v4486_v15 = vld [vmem:[%s4196_s27 + $0x3d8] sm:$0x11] }
  0x2b   : > { %6463 = vst [vmem:[#allocation11_spill] sm:$0xff] %v4373_v55  ;;  %6480 = vst [vmem:[#allocation24_spill] sm:$0xff] %v4486_v15  ;;  %v4512_v7 = vld [vmem:[%s4196_s27 + $0x418] sm:$0x11] }
  0x2c   : > { %3742 = vmatpush3.bf16.msra.mxu0 %v3990_v30  ;;  %v4335_v30 = vmax.bf16 %v424_v56, %v4268_v1  ;;  %v738_v38 = vmax.bf16 %v4332_v29, %v578_v20  ;;  %v862_v48 = vmax.bf16 %v734_v33, %v4332_v29  ;;  %v992_v32 = vshrl.u32 %v4360_v44, 16  ;;  %6484 = vst [vmem:[#allocation28_spill] sm:$0xff] %v4512_v7 }
  0x2d   : > { %3854 = vmatpush3.bf16.msra.mxu1 %v3991_v31  ;;  %v4338_v31 = vmax.bf16 %v426_v60, %v4271_v2  ;;  %v995_v33 = vshll.u32 %v4360_v44, 16  ;;  %v3563_v17 = vrot.slane %v4360_v44, 9 }
  0x2e   : > { %v4364_v49 = vmax.bf16 %v736_v34, %v4335_v30  ;;  %v1001_v34 = vshll.u32 %v862_v48, 16  ;;  %v2148_v12 = vrot.slane %v862_v48, 5  ;;  %v994_v5 = vrot.slane %v992_v32, 4 }
  0x2f   : > { %v866_v60 = vmax.bf16 %v738_v38, %v4338_v31  ;;  %v997_v4 = vrot.slane %v995_v33, 5  ;;  %v419_v32 = vmax.bf16 %v4385_v63, %v4379_v61  ;;  %v421_v33 = vmax.bf16 %v4417_v11, %v4382_v62  ;;  %v4453_v62 = vld [vmem:[%s4196_s27 + $0x2a8] sm:$0xff] }
  0x30   : > { %v1020_v38 = vshrl.u32 %v4364_v49, 16  ;;  %v1023_v19 = vshll.u32 %v4364_v49, 16  ;;  %v1003_v3 = vrot.slane %v1001_v34, 5  ;;  %v2149_v6 = vsel %vm4398_vm4, %v3563_v17, %v2148_v12  ;;  %v4439_v17 = vld [vmem:[%s4196_s27 + $0x288] sm:$0xff]  ;;  %6474 = vst [vmem:[#allocation18_spill] sm:$0xff] %v4453_v62 }
  0x31   : > { %v1029_v18 = vshll.u32 %v866_v60, 16  ;;  %v3565_v48 = vrot.slane %v4364_v49, 9  ;;  %v998_v22 = vor.u32 %v997_v4, %v994_v5  ;;  %v2156_v21 = vrot.slane %v866_v60, 5  ;;  %v4442_v4 = vld [vmem:[%s4196_s27 + $0x298] sm:$0x11]  ;;  %v4459_v34 = vld [vmem:[%s4196_s27 + $0x2c8] sm:$0xff] }
  0x32   : > { %v1022_v56 = vrot.slane %v1020_v38, 4  ;;  %v1025_v20 = vrot.slane %v1023_v19, 5  ;;  %6473 = vst [vmem:[#allocation17_spill] sm:$0xff] %v4442_v4  ;;  %v423_v5 = vmax.bf16 %v4412_v23, %v4403_v27  ;;  %v425_v19 = vmax.bf16 %v4420_v10, %v4406_v25  ;;  %6476 = vst [vmem:[#allocation20_spill] sm:$0xff] %v4459_v34  ;;  %v4469_v38 = vld [vmem:[%s4196_s27 + $0x2e8] sm:$0xff] }
  0x33   : > { %v1031_v13 = vrot.slane %v1029_v18, 5  ;;  %v427_v60 = vmax.bf16 %v4423_v39, %v4409_v24  ;;  %v999_v61 = vrot.slane %v998_v22, 4  ;;  %v4466_v22 = vld [vmem:[%s4196_s27 + $0x2d8] sm:$0x11]  ;;  %6478 = vst [vmem:[#allocation22_spill] sm:$0xff] %v4469_v38  ;;  %v4483_v27 = vld [vmem:[%s4196_s27 + $0x3c8] sm:$0xff] }
  0x34   : > { %v1026_v12 = vor.u32 %v1025_v20, %v1022_v56  ;;  %v2157_v56 = vsel %vm4398_vm4, %v3565_v48, %v2156_v21  ;;  %v4456_v20 = vld [vmem:[%s4196_s27 + $0x2b8] sm:$0x11]  ;;  %6477 = vst [vmem:[#allocation21_spill] sm:$0xff] %v4466_v22  ;;  %v190_v10 = vld [vmem:[%s4196_s27 + $0x90] sm:$0x11]  ;;  %v6487_v48 = vmax.bf16 %v4367_v53, %v4342_v35  ;;  %v4553_v35 = vmax.bf16 %v421_v33, %v4459_v34  ;;  %v4574_v33 = vld [vmem:[%s4196_s27 + $0x300] sm:$0xff] }
  0x35   : > { %6475 = vst [vmem:[#allocation19_spill] sm:$0xff] %v4456_v20  ;;  %v4472_v21 = vld [vmem:[%s4196_s27 + $0x2f8] sm:$0x11]  ;;  %6494 = vst [vmem:[#allocation35_spill] sm:$0xff] %v4574_v33 }
  0x36   : > { %v1027_v24 = vrot.slane %v1026_v12, 4  ;;  %6479 = vst [vmem:[#allocation23_spill] sm:$0xff] %v4472_v21  ;;  %v1004_v12 = vsel %vm4434_vm5, %v999_v61, %v1003_v3  ;;  %v4498_v3 = vld [vmem:[%s4196_s27 + $0x3e8] sm:$0xff]  ;;  %v4501_v61 = vld [vmem:[%s4196_s27 + $0x3f8] sm:$0x11]  ;;  %v4571_v7 = vmax.bf16 %v427_v60, %v4472_v21 }
  0x37   : > { %v1951_v8 = vmax.bf16 %v1004_v12, %v4360_v44  ;;  %6481 = vst [vmem:[#allocation25_spill] sm:$0xff] %v4498_v3  ;;  %6482 = vst [vmem:[#allocation26_spill] sm:$0xff] %v4501_v61  ;;  %v4515_v44 = vld [vmem:[%s4196_s27 + $0x428] sm:$0xff]  ;;  %v192_v12 = vld [vmem:[%s4196_s27 + $0xa0] sm:$0xff] }
  0x38   : > { %v1032_v25 = vsel %vm4434_vm5, %v1027_v24, %v1031_v13  ;;  %6485 = vst [vmem:[#allocation29_spill] sm:$0xff] %v4515_v44  ;;  %v4518_v13 = vld [vmem:[%s4196_s27 + $0x438] sm:$0x11]  ;;  %v188_v24 = vld [vmem:[%s4196_s27 + $0x80] sm:$0xff]  ;;  %v4723_v3 = vld [vmem:[%s4196_s27 + $0x370] sm:$0x11] }
  0x39   : > { %v1953_v16 = vmax.bf16 %v1032_v25, %v4364_v49  ;;  %6486 = vst [vmem:[#allocation30_spill] sm:$0xff] %v4518_v13  ;;  %v2466_v52 = vmax.bf16 %v2149_v6, %v1951_v8  ;;  %v573_v8 = vmax.bf16 %v6487_v48, %v4439_v17  ;;  %v6488_v6 = vmax.bf16 %v4370_v54, %v4345_v36  ;;  %v194_v13 = vld [vmem:[%s4196_s27 + $0xb0] sm:$0x11]  ;;  %v4549_v44 = vld [vmem:[%s4196_s27 + $0x1c0] sm:$0xff] }
  0x3a   : > { %v6489_v25 = vmax.bf16 %v4373_v55, %v4348_v37  ;;  %6490 = vst [vmem:[#allocation31_spill] sm:$0xff] %v4549_v44  ;;  %v4559_v36 = vmax.bf16 %v425_v19, %v4469_v38  ;;  %v4562_v48 = vld [vmem:[%s4196_s27 + $0x1d0] sm:$0x11]  ;;  %v4565_v37 = vld [vmem:[%s4196_s27 + $0x1e0] sm:$0xff]  ;;  %v189_v55 = vld [vmem:[%s4196_s27 + $0x88] sm:$0xff] }
  0x3b   : > { %v2468_v23 = vmax.bf16 %v2157_v56, %v1953_v16  ;;  %v575_v49 = vmax.bf16 %v6488_v6, %v4442_v4  ;;  %v579_v16 = vmax.bf16 %v419_v32, %v4456_v20  ;;  %v4556_v56 = vmax.bf16 %v423_v5, %v4466_v22  ;;  %6491 = vst [vmem:[#allocation32_spill] sm:$0xff] %v4562_v48  ;;  %v4579_v38 = vld [vmem:[%s4196_s27 + $0x310] sm:$0x11] }
  0x3c   : > { %v577_v39 = vmax.bf16 %v6489_v25, %v4453_v62  ;;  %6492 = vst [vmem:[#allocation33_spill] sm:$0xff] %v4565_v37  ;;  %v4568_v25 = vld [vmem:[%s4196_s27 + $0x1f0] sm:$0x11]  ;;  %6495 = vst [vmem:[#allocation36_spill] sm:$0xff] %v4579_v38  ;;  %v428_v22 = vmax.bf16 %v4549_v44, %v188_v24  ;;  %v430_v63 = vmax.bf16 %v4562_v48, %v190_v10  ;;  %v4608_v62 = vld [vmem:[%s4196_s27 + $0x1c8] sm:$0xff] }
  0x3d   : > { %6493 = vst [vmem:[#allocation34_spill] sm:$0xff] %v4568_v25  ;;  %v3629_v6 = vcombine.high %v2466_v52, %v2468_v23  ;;  %v3628_v11 = vcombine.low %v2466_v52, %v2468_v23  ;;  %v735_v34 = vmax.bf16 %v579_v16, %v575_v49  ;;  %v739_v19 = vmax.bf16 %v4556_v56, %v579_v16 }
  0x3e   : > { %v733_v32 = vmax.bf16 %v577_v39, %v573_v8  ;;  %v737_v5 = vmax.bf16 %v4553_v35, %v577_v39  ;;  %v432_v60 = vmax.bf16 %v4565_v37, %v192_v12  ;;  %v434_v52 = vmax.bf16 %v4568_v25, %v194_v13  ;;  %6498 = vst [vmem:[#allocation39_spill] sm:$0xff] %v4608_v62 }
  0x3f   : > { %3145 = vmatprep.mubr.bf16.mxu0 %v3629_v6  ;;  %v863_v23 = vmax.bf16 %v735_v34, %v4556_v56  ;;  %v867_v49 = vmax.bf16 %v739_v19, %v4571_v7  ;;  %v4590_v24 = vmax.bf16 %v428_v22, %v4574_v33  ;;  %v4593_v10 = vmax.bf16 %v430_v63, %v4579_v38  ;;  %v4599_v22 = vld [vmem:[%s4196_s27 + $0x330] sm:$0x11] }
  0x40   : > { %v861_v51 = vmax.bf16 %v733_v32, %v4553_v35  ;;  %v865_v39 = vmax.bf16 %v737_v5, %v4559_v36  ;;  %3146 = vmatmul.mubr.bf16.vlgmr.msra.gmra.mrb[0].mxu0 %v3628_v11  ;;  %v4596_v5 = vld [vmem:[%s4196_s27 + $0x320] sm:$0xff]  ;;  %6497 = vst [vmem:[#allocation38_spill] sm:$0xff] %v4599_v22  ;;  %6515 = vst [vmem:[#allocation54_spill] sm:$0xff] %v4723_v3 }
  0x41   : > { %v1015_v12 = vshll.u32 %v863_v23, 16  ;;  %v1043_v34 = vshll.u32 %v867_v49, 16  ;;  %6496 = vst [vmem:[#allocation37_spill] sm:$0xff] %v4596_v5  ;;  %v2152_v11 = vrot.slane %v863_v23, 5  ;;  %v2160_v20 = vrot.slane %v867_v49, 5 }
  0x42   : > { %v1006_v8 = vshrl.u32 %v861_v51, 16  ;;  %v1009_v16 = vshll.u32 %v861_v51, 16  ;;  %v3564_v6 = vrot.slane %v861_v51, 9  ;;  %v1034_v32 = vshrl.u32 %v865_v39, 16 }
  0x43   : > { %v1037_v13 = vshll.u32 %v865_v39, 16  ;;  %v3566_v37 = vrot.slane %v865_v39, 9  ;;  %v1017_v48 = vrot.slane %v1015_v12, 5  ;;  %v1045_v21 = vrot.slane %v1043_v34, 5 }
  0x44   : > { %v1008_v19 = vrot.slane %v1006_v8, 4  ;;  %v1011_v25 = vrot.slane %v1009_v16, 5  ;;  %v1036_v33 = vrot.slane %v1034_v32, 4  ;;  %v2153_v38 = vsel %vm4398_vm4, %v3564_v6, %v2152_v11 }
  0x45   : > { %v1039_v44 = vrot.slane %v1037_v13, 5  ;;  %v4604_v61 = vmax.bf16 %v432_v60, %v4596_v5  ;;  %v4611_v23 = vmax.bf16 %v434_v52, %v4599_v22  ;;  %v744_v16 = vmax.bf16 %v4590_v24, %v4335_v30 }
  0x46   : > { %v1012_v63 = vor.u32 %v1011_v25, %v1008_v19  ;;  %v746_v25 = vmax.bf16 %v4593_v10, %v4338_v31  ;;  %v2161_v49 = vsel %vm4398_vm4, %v3566_v37, %v2160_v20  ;;  %v6499_v60 = vmax.bf16 %v4335_v30, %v4325_v26 }
  0x47   : > { %v1040_v8 = vor.u32 %v1039_v44, %v1036_v33  ;;  %v6500_v44 = vmax.bf16 %v4338_v31, %v4332_v29  ;;  %v872_v32 = vmax.bf16 %v744_v16, %v4604_v61  ;;  %v429_v34 = vmax.bf16 %v4608_v62, %v189_v55  ;;  %v195_v62 = vld [vmem:[%s4196_s27 + $0xb8] sm:$0x11] }
  0x48   : > { %v1013_v12 = vrot.slane %v1012_v63, 4  ;;  %v868_v6 = vmax.bf16 %v6499_v60, %v4590_v24  ;;  %v874_v13 = vmax.bf16 %v746_v25, %v4611_v23  ;;  %v191_v25 = vld [vmem:[%s4196_s27 + $0x98] sm:$0x11] }
  0x49   : > { %v870_v33 = vmax.bf16 %v6500_v44, %v4593_v10  ;;  %v1041_v52 = vrot.slane %v1040_v8, 4  ;;  %v1076_v31 = vshrl.u32 %v872_v32, 16  ;;  %v1079_v11 = vshll.u32 %v872_v32, 16 }
  0x4a   : > { %v1018_v20 = vsel %vm4434_vm5, %v1013_v12, %v1017_v48  ;;  %v1048_v37 = vshrl.u32 %v868_v6, 16  ;;  %v1051_v26 = vshll.u32 %v868_v6, 16  ;;  %v1085_v44 = vshll.u32 %v874_v13, 16 }
  0x4b   : > { %v1057_v30 = vshll.u32 %v870_v33, 16  ;;  %v1046_v19 = vsel %vm4434_vm5, %v1041_v52, %v1045_v21  ;;  %v1952_v29 = vmax.bf16 %v1018_v20, %v861_v51  ;;  %v1078_v48 = vrot.slane %v1076_v31, 4  ;;  %v193_v20 = vld [vmem:[%s4196_s27 + $0xa8] sm:$0xff] }
  0x4c   : > { %v1954_v63 = vmax.bf16 %v1046_v19, %v865_v39  ;;  %v1050_v8 = vrot.slane %v1048_v37, 4  ;;  %v1053_v16 = vrot.slane %v1051_v26, 5  ;;  %v1081_v12 = vrot.slane %v1079_v11, 5  ;;  %v4638_v39 = vld [vmem:[%s4196_s27 + $0x1d8] sm:$0x11]  ;;  %v4641_v37 = vld [vmem:[%s4196_s27 + $0x1e8] sm:$0xff] }
  0x4d   : > { %v1059_v55 = vrot.slane %v1057_v30, 5  ;;  %v2467_v60 = vmax.bf16 %v2153_v38, %v1952_v29  ;;  %v3567_v51 = vrot.slane %v868_v6, 9  ;;  %v2164_v52 = vrot.slane %v870_v33, 5  ;;  %6501 = vst [vmem:[#allocation40_spill] sm:$0xff] %v4638_v39  ;;  %6502 = vst [vmem:[#allocation41_spill] sm:$0xff] %v4641_v37  ;;  %v4647_v31 = vld [vmem:[%s4196_s27 + $0x308] sm:$0xff] }
  0x4e   : > { %v2469_v22 = vmax.bf16 %v2161_v49, %v1954_v63  ;;  %v1054_v21 = vor.u32 %v1053_v16, %v1050_v8  ;;  %v1082_v26 = vor.u32 %v1081_v12, %v1078_v48  ;;  %v1087_v38 = vrot.slane %v1085_v44, 5  ;;  %v4644_v29 = vld [vmem:[%s4196_s27 + $0x1f8] sm:$0x11]  ;;  %6504 = vst [vmem:[#allocation43_spill] sm:$0xff] %v4647_v31  ;;  %v4655_v16 = vld [vmem:[%s4196_s27 + $0x328] sm:$0xff] }
  0x4f   : > { %v3569_v30 = vrot.slane %v872_v32, 9  ;;  %v2172_v19 = vrot.slane %v874_v13, 5  ;;  %6503 = vst [vmem:[#allocation42_spill] sm:$0xff] %v4644_v29  ;;  %v2165_v33 = vsel %vm4398_vm4, %v3567_v51, %v2164_v52  ;;  %v4652_v8 = vld [vmem:[%s4196_s27 + $0x318] sm:$0x11]  ;;  %6506 = vst [vmem:[#allocation45_spill] sm:$0xff] %v4655_v16  ;;  %v431_v44 = vmax.bf16 %v4638_v39, %v191_v25 }
  0x50   : > { %v3631_v49 = vcombine.high %v2467_v60, %v2469_v22  ;;  %v3630_v11 = vcombine.low %v2467_v60, %v2469_v22  ;;  %v1055_v63 = vrot.slane %v1054_v21, 4  ;;  %6505 = vst [vmem:[#allocation44_spill] sm:$0xff] %v4652_v8  ;;  %v1083_v48 = vrot.slane %v1082_v26, 4  ;;  %v4660_v12 = vld [vmem:[%s4196_s27 + $0x338] sm:$0x11]  ;;  %v196_v26 = vld [vmem:[%s4196_s27 + $0xc0] sm:$0xff] }
  0x51   : > { %v2173_v13 = vsel %vm4398_vm4, %v3569_v30, %v2172_v19  ;;  %6507 = vst [vmem:[#allocation46_spill] sm:$0xff] %v4660_v12  ;;  %v433_v22 = vmax.bf16 %v4641_v37, %v193_v20  ;;  %v435_v21 = vmax.bf16 %v4644_v29, %v195_v62  ;;  %v4668_v51 = vmax.bf16 %v429_v34, %v4647_v31  ;;  %v4674_v30 = vld [vmem:[%s4196_s27 + $0x200] sm:$0xff]  ;;  %v198_v62 = vld [vmem:[%s4196_s27 + $0xd0] sm:$0x11] }
  0x52   : > { %3306 = vmatprep.mubr.bf16.mxu1 %v3631_v49  ;;  %v1060_v60 = vsel %vm4434_vm5, %v1055_v63, %v1059_v55  ;;  %v741_v52 = vmax.bf16 %v4559_v36, %v4553_v35  ;;  %6508 = vst [vmem:[#allocation47_spill] sm:$0xff] %v4674_v30  ;;  %v1088_v25 = vsel %vm4434_vm5, %v1083_v48, %v1087_v38  ;;  %v4686_v34 = vld [vmem:[%s4196_s27 + $0x210] sm:$0x11] }
  0x53   : > { %3307 = vmatmul.mubr.bf16.vlgmr.msra.gmra.mrb[0].mxu1 %v3630_v11  ;;  %v1955_v20 = vmax.bf16 %v1060_v60, %v868_v6  ;;  %v4679_v19 = vmax.bf16 %v431_v44, %v4652_v8  ;;  %v4682_v55 = vmax.bf16 %v433_v22, %v4655_v16  ;;  %6509 = vst [vmem:[#allocation48_spill] sm:$0xff] %v4686_v34  ;;  %v4715_v39 = vld [vmem:[%s4196_s27 + $0x350] sm:$0x11] }
  0x54   : > { %v1957_v49 = vmax.bf16 %v1088_v25, %v872_v32  ;;  %v4689_v35 = vmax.bf16 %v435_v21, %v4660_v12  ;;  %v743_v11 = vmax.bf16 %v4571_v7, %v4556_v56  ;;  %v745_v6 = vmax.bf16 %v4668_v51, %v4559_v36  ;;  %v202_v25 = vld [vmem:[%s4196_s27 + $0xf0] sm:$0x11]  ;;  %6513 = vst [vmem:[#allocation52_spill] sm:$0xff] %v4715_v39 }
  0x55   : > { %v2470_v38 = vmax.bf16 %v2165_v33, %v1955_v20  ;;  %v747_v63 = vmax.bf16 %v4679_v19, %v4571_v7  ;;  %v869_v48 = vmax.bf16 %v741_v52, %v4668_v51  ;;  %v436_v32 = vmax.bf16 %v4674_v30, %v196_v26  ;;  %v4712_v30 = vld [vmem:[%s4196_s27 + $0x340] sm:$0xff] }
  0x56   : > { %v2472_v44 = vmax.bf16 %v2173_v13, %v1957_v49  ;;  %v871_v22 = vmax.bf16 %v743_v11, %v4679_v19  ;;  %v873_v60 = vmax.bf16 %v745_v6, %v4682_v55  ;;  %v438_v56 = vmax.bf16 %v4686_v34, %v198_v62  ;;  %v200_v13 = vld [vmem:[%s4196_s27 + $0xe0] sm:$0xff]  ;;  %v4706_v49 = vld [vmem:[%s4196_s27 + $0x230] sm:$0x11]  ;;  %6512 = vst [vmem:[#allocation51_spill] sm:$0xff] %v4712_v30 }
  0x57   : > { %v875_v36 = vmax.bf16 %v747_v63, %v4689_v35  ;;  %v1062_v33 = vshrl.u32 %v869_v48, 16  ;;  %v1065_v21 = vshll.u32 %v869_v48, 16  ;;  %v3568_v7 = vrot.slane %v869_v48, 9  ;;  %6510 = vst [vmem:[#allocation49_spill] sm:$0xff] %v4706_v49  ;;  %v4709_v63 = vld [vmem:[%s4196_s27 + $0x220] sm:$0xff] }
  0x58   : > { %v3633_v20 = vcombine.high %v2470_v38, %v2472_v44  ;;  %v1071_v52 = vshll.u32 %v871_v22, 16  ;;  %v1090_v12 = vshrl.u32 %v873_v60, 16  ;;  %v1093_v26 = vshll.u32 %v873_v60, 16  ;;  %6511 = vst [vmem:[#allocation50_spill] sm:$0xff] %v4709_v63 }
  0x59   : > { %v1064_v11 = vrot.slane %v1062_v33, 4  ;;  %v1067_v6 = vrot.slane %v1065_v21, 5  ;;  %v1099_v62 = vshll.u32 %v875_v36, 16  ;;  %v2168_v34 = vrot.slane %v871_v22, 5  ;;  %v4720_v22 = vld [vmem:[%s4196_s27 + $0x360] sm:$0xff] }
  0x5a   : > { %3153 = vmatprep.mubr.bf16.mxu0 %v3633_v20  ;;  %v1073_v29 = vrot.slane %v1071_v52, 5  ;;  %v1092_v16 = vrot.slane %v1090_v12, 4  ;;  %v1095_v37 = vrot.slane %v1093_v26, 5  ;;  %v3570_v8 = vrot.slane %v873_v60, 9  ;;  %6514 = vst [vmem:[#allocation53_spill] sm:$0xff] %v4720_v22 }
  0x5b   : > { %v1068_v31 = vor.u32 %v1067_v6, %v1064_v11  ;;  %v1101_v33 = vrot.slane %v1099_v62, 5  ;;  %v2169_v21 = vsel %vm4398_vm4, %v3568_v7, %v2168_v34  ;;  %v2176_v5 = vrot.slane %v875_v36, 5  ;;  %v197_v36 = vld [vmem:[%s4196_s27 + $0xc8] sm:$0xff] }
  0x5c   : > { %v1096_v54 = vor.u32 %v1095_v37, %v1092_v16  ;;  %v3632_v20 = vcombine.low %v2470_v38, %v2472_v44  ;;  %v440_v12 = vmax.bf16 %v4709_v63, %v200_v13  ;;  %v442_v52 = vmax.bf16 %v4706_v49, %v202_v25  ;;  %v4737_v7 = vld [vmem:[%s4196_s27 + $0x208] sm:$0xff] }
  0x5d   : > { %v1069_v26 = vrot.slane %v1068_v31, 4  ;;  %v2177_v4 = vsel %vm4398_vm4, %v3570_v8, %v2176_v5  ;;  %v4730_v11 = vmax.bf16 %v436_v32, %v4712_v30  ;;  %v4733_v34 = vmax.bf16 %v438_v56, %v4715_v39  ;;  %6516 = vst [vmem:[#allocation55_spill] sm:$0xff] %v4737_v7 }
  0x5e   : > { %v1097_v6 = vrot.slane %v1096_v54, 4  ;;  %3154 = vmatmul.mubr.bf16.gmra.mrb[4].mxu0 %v3632_v20  ;;  %v4740_v37 = vmax.bf16 %v440_v12, %v4720_v22  ;;  %v4743_v16 = vmax.bf16 %v442_v52, %v4723_v3  ;;  %v748_v5 = vmax.bf16 %v4604_v61, %v4590_v24  ;;  %v4783_v22 = vld [vmem:[%s4196_s27 + $0x368] sm:$0xff] }
  0x5f   : > { %v1074_v31 = vsel %vm4434_vm5, %v1069_v26, %v1073_v29  ;;  %v750_v8 = vmax.bf16 %v4611_v23, %v4593_v10  ;;  %v752_v54 = vmax.bf16 %v4730_v11, %v4604_v61  ;;  %v754_v38 = vmax.bf16 %v4733_v34, %v4611_v23  ;;  %6522 = vst [vmem:[#allocation61_spill] sm:$0xff] %v4783_v22 }
  0x60   : > { %v1102_v32 = vsel %vm4434_vm5, %v1097_v6, %v1101_v33  ;;  %v1956_v44 = vmax.bf16 %v1074_v31, %v869_v48  ;;  %v876_v24 = vmax.bf16 %v748_v5, %v4730_v11  ;;  %v437_v29 = vmax.bf16 %v4737_v7, %v197_v36  ;;  %v199_v48 = vld [vmem:[%s4196_s27 + $0xd8] sm:$0x11]  ;;  %v4775_v7 = vld [vmem:[%s4196_s27 + $0x348] sm:$0xff] }
  0x61   : > { %v1958_v56 = vmax.bf16 %v1102_v32, %v873_v60  ;;  %v878_v25 = vmax.bf16 %v750_v8, %v4733_v34  ;;  %v880_v10 = vmax.bf16 %v752_v54, %v4740_v37  ;;  %v882_v61 = vmax.bf16 %v754_v38, %v4743_v16  ;;  %v203_v60 = vld [vmem:[%s4196_s27 + $0xf8] sm:$0x11]  ;;  %v201_v8 = vld [vmem:[%s4196_s27 + $0xe8] sm:$0xff]  ;;  %6520 = vst [vmem:[#allocation59_spill] sm:$0xff] %v4775_v7 }
  0x62   : > { %v2471_v13 = vmax.bf16 %v2169_v21, %v1956_v44  ;;  %v1104_v23 = vshrl.u32 %v876_v24, 16  ;;  %v1107_v62 = vshll.u32 %v876_v24, 16  ;;  %v3571_v33 = vrot.slane %v876_v24, 9  ;;  %v4765_v36 = vld [vmem:[%s4196_s27 + $0x218] sm:$0x11]  ;;  %v4769_v54 = vld [vmem:[%s4196_s27 + $0x228] sm:$0xff] }
  0x63   : > { %v2473_v20 = vmax.bf16 %v2177_v4, %v1958_v56  ;;  %v1113_v12 = vshll.u32 %v878_v25, 16  ;;  %v1132_v52 = vshrl.u32 %v880_v10, 16  ;;  %v1135_v26 = vshll.u32 %v880_v10, 16  ;;  %6517 = vst [vmem:[#allocation56_spill] sm:$0xff] %v4765_v36  ;;  %6518 = vst [vmem:[#allocation57_spill] sm:$0xff] %v4769_v54 }
  0x64   : > { %v1106_v6 = vrot.slane %v1104_v23, 4  ;;  %v1109_v5 = vrot.slane %v1107_v62, 5  ;;  %v1141_v31 = vshll.u32 %v882_v61, 16  ;;  %v2180_v21 = vrot.slane %v878_v25, 5  ;;  %v4772_v56 = vld [vmem:[%s4196_s27 + $0x238] sm:$0x11] }
  0x65   : > { %v3635_v38 = vcombine.high %v2471_v13, %v2473_v20  ;;  %v3634_v4 = vcombine.low %v2471_v13, %v2473_v20  ;;  %v1115_v32 = vrot.slane %v1113_v12, 5  ;;  %v1134_v44 = vrot.slane %v1132_v52, 4  ;;  %6519 = vst [vmem:[#allocation58_spill] sm:$0xff] %v4772_v56  ;;  %v4780_v25 = vld [vmem:[%s4196_s27 + $0x358] sm:$0x11] }
  0x66   : > { %v1110_v3 = vor.u32 %v1109_v5, %v1106_v6  ;;  %v1137_v49 = vrot.slane %v1135_v26, 5  ;;  %v1143_v23 = vrot.slane %v1141_v31, 5  ;;  %v2181_v62 = vsel %vm4398_vm4, %v3571_v33, %v2180_v21  ;;  %6521 = vst [vmem:[#allocation60_spill] sm:$0xff] %v4780_v25  ;;  %v4786_v12 = vld [vmem:[%s4196_s27 + $0x378] sm:$0x11]  ;;  %v204_v21 = vld [vmem:[%s4196_s27 + $0x100] sm:$0xff] }
  0x67   : > { %3314 = vmatprep.mubr.bf16.mxu1 %v3635_v38  ;;  %v3573_v13 = vrot.slane %v880_v10, 9  ;;  %v2188_v20 = vrot.slane %v882_v61, 5  ;;  %6523 = vst [vmem:[#allocation62_spill] sm:$0xff] %v4786_v12  ;;  %v439_v52 = vmax.bf16 %v4765_v36, %v199_v48  ;;  %v441_v26 = vmax.bf16 %v4769_v54, %v201_v8 }
  0x68   : > { %3315 = vmatmul.mubr.bf16.gmra.mrb[4].mxu1 %v3634_v4  ;;  %v1111_v6 = vrot.slane %v1110_v3, 4  ;;  %v1138_v5 = vor.u32 %v1137_v49, %v1134_v44  ;;  %v443_v33 = vmax.bf16 %v4772_v56, %v203_v60  ;;  %v4792_v31 = vmax.bf16 %v437_v29, %v4775_v7  ;;  %v206_v3 = vld [vmem:[%s4196_s27 + $0x110] sm:$0x11]  ;;  %v4807_v49 = vld [vmem:[%s4196_s27 + $0x240] sm:$0xff] }
  0x69   : > { %v2189_v38 = vsel %vm4398_vm4, %v3573_v13, %v2188_v20  ;;  %v4798_v61 = vmax.bf16 %v439_v52, %v4780_v25  ;;  %v4801_v63 = vmax.bf16 %v441_v26, %v4783_v22  ;;  %v749_v48 = vmax.bf16 %v4682_v55, %v4668_v51  ;;  %6524 = vst [vmem:[#allocation63_spill] sm:$0xff] %v4807_v49  ;;  %v4810_v60 = vld [vmem:[%s4196_s27 + $0x250] sm:$0x11] }
  0x6a   : > { %6525 = vst [vmem:[#allocation64_spill] sm:$0xff] %v4810_v60  ;;  %v1116_v29 = vsel %vm4434_vm5, %v1111_v6, %v1115_v32  ;;  %v1139_v8 = vrot.slane %v1138_v5, 4  ;;  %v4815_v4 = vmax.bf16 %v443_v33, %v4786_v12  ;;  %v751_v44 = vmax.bf16 %v4689_v35, %v4679_v19  ;;  %v210_v56 = vld [vmem:[%s4196_s27 + $0x130] sm:$0x11] }
  0x6b   : > { %v1959_v13 = vmax.bf16 %v1116_v29, %v876_v24  ;;  %v753_v51 = vmax.bf16 %v4792_v31, %v4682_v55  ;;  %v755_v20 = vmax.bf16 %v4798_v61, %v4689_v35  ;;  %v877_v52 = vmax.bf16 %v749_v48, %v4792_v31 }
  0x6c   : > { %v1144_v32 = vsel %vm4434_vm5, %v1139_v8, %v1143_v23  ;;  %v879_v26 = vmax.bf16 %v751_v44, %v4798_v61  ;;  %v444_v6 = vmax.bf16 %v4807_v49, %v204_v21  ;;  %v446_v19 = vmax.bf16 %v4810_v60, %v206_v3  ;;  %v208_v23 = vld [vmem:[%s4196_s27 + $0x120] sm:$0xff] }
  0x6d   : > { %v1961_v24 = vmax.bf16 %v1144_v32, %v880_v10  ;;  %v2474_v5 = vmax.bf16 %v2181_v62, %v1959_v13  ;;  %v881_v55 = vmax.bf16 %v753_v51, %v4801_v63  ;;  %v883_v33 = vmax.bf16 %v755_v20, %v4815_v4  ;;  %v4834_v3 = vld [vmem:[%s4196_s27 + $0x260] sm:$0xff]  ;;  %v4837_v20 = vld [vmem:[%s4196_s27 + $0x270] sm:$0x11] }
  0x6e   : > { %v1118_v35 = vshrl.u32 %v877_v52, 16  ;;  %v1121_v48 = vshll.u32 %v877_v52, 16  ;;  %v1127_v29 = vshll.u32 %v879_v26, 16  ;;  %v3572_v12 = vrot.slane %v877_v52, 9 }
  0x6f   : > { %v2476_v8 = vmax.bf16 %v2189_v38, %v1961_v24  ;;  %v1146_v44 = vshrl.u32 %v881_v55, 16  ;;  %v1149_v21 = vshll.u32 %v881_v55, 16  ;;  %v1155_v49 = vshll.u32 %v883_v33, 16  ;;  %v4840_v38 = vld [vmem:[%s4196_s27 + $0x380] sm:$0xff]  ;;  %v4843_v24 = vld [vmem:[%s4196_s27 + $0x390] sm:$0x11] }
  0x70   : > { %v1120_v10 = vrot.slane %v1118_v35, 4  ;;  %v1123_v62 = vrot.slane %v1121_v48, 5  ;;  %v1129_v13 = vrot.slane %v1127_v29, 5  ;;  %v2184_v51 = vrot.slane %v879_v26, 5  ;;  %v4848_v29 = vld [vmem:[%s4196_s27 + $0x3a0] sm:$0xff] }
  0x71   : > { %v3637_v32 = vcombine.high %v2474_v5, %v2476_v8  ;;  %v1148_v60 = vrot.slane %v1146_v44, 4  ;;  %v1151_v22 = vrot.slane %v1149_v21, 5  ;;  %v1157_v54 = vrot.slane %v1155_v49, 5  ;;  %v4851_v26 = vld [vmem:[%s4196_s27 + $0x3b0] sm:$0x11] }
  0x72   : > { %v1124_v25 = vor.u32 %v1123_v62, %v1120_v10  ;;  %v2185_v35 = vsel %vm4398_vm4, %v3572_v12, %v2184_v51  ;;  %v3574_v36 = vrot.slane %v881_v55, 9  ;;  %v2192_v48 = vrot.slane %v883_v33, 5  ;;  %6526 = vst [vmem:[#allocation65_spill] sm:$0xff] %v4851_v26  ;;  %v205_v33 = vld [vmem:[%s4196_s27 + $0x108] sm:$0xff] }
  0x73   : > { %3161 = vmatprep.mubr.bf16.mxu0 %v3637_v32  ;;  %v1152_v44 = vor.u32 %v1151_v22, %v1148_v60  ;;  %v3636_v21 = vcombine.low %v2474_v5, %v2476_v8  ;;  %v448_v49 = vmax.bf16 %v4834_v3, %v208_v23  ;;  %v450_v7 = vmax.bf16 %v4837_v20, %v210_v56  ;;  %v4861_v51 = vld [vmem:[%s4196_s27 + $0x248] sm:$0xff] }
  0x74   : > { %v1125_v39 = vrot.slane %v1124_v25, 4  ;;  %v2193_v10 = vsel %vm4398_vm4, %v3574_v36, %v2192_v48  ;;  %v604_v62 = vmax.bf16 %v444_v6, %v4840_v38  ;;  %v606_v12 = vmax.bf16 %v446_v19, %v4843_v24  ;;  %6527 = vst [vmem:[#allocation66_spill] sm:$0xff] %v4861_v51 }
  0x75   : > { %v1153_v30 = vrot.slane %v1152_v44, 4  ;;  %3162 = vmatmul.mubr.bf16.gmra.mrb[8].mxu0 %v3636_v21  ;;  %v608_v22 = vmax.bf16 %v448_v49, %v4848_v29  ;;  %v610_v60 = vmax.bf16 %v450_v7, %v4851_v26  ;;  %v756_v56 = vmax.bf16 %v4740_v37, %v4730_v11  ;;  %v211_v49 = vld [vmem:[%s4196_s27 + $0x138] sm:$0x11] }
  0x76   : > { %v1130_v25 = vsel %vm4434_vm5, %v1125_v39, %v1129_v13  ;;  %v758_v36 = vmax.bf16 %v4743_v16, %v4733_v34  ;;  %v760_v6 = vmax.bf16 %v604_v62, %v4740_v37  ;;  %v762_v19 = vmax.bf16 %v606_v12, %v4743_v16  ;;  %v207_v16 = vld [vmem:[%s4196_s27 + $0x118] sm:$0x11] }
  0x77   : > { %v1158_v5 = vsel %vm4434_vm5, %v1153_v30, %v1157_v54  ;;  %v1960_v23 = vmax.bf16 %v1130_v25, %v877_v52  ;;  %v884_v7 = vmax.bf16 %v756_v56, %v604_v62  ;;  %v445_v11 = vmax.bf16 %v4861_v51, %v205_v33  ;;  %v4879_v62 = vld [vmem:[%s4196_s27 + $0x258] sm:$0x11] }
  0x78   : > { %v1962_v8 = vmax.bf16 %v1158_v5, %v881_v55  ;;  %v886_v32 = vmax.bf16 %v758_v36, %v606_v12  ;;  %v888_v39 = vmax.bf16 %v760_v6, %v608_v22  ;;  %v890_v13 = vmax.bf16 %v762_v19, %v610_v60  ;;  %v209_v22 = vld [vmem:[%s4196_s27 + $0x128] sm:$0xff]  ;;  %v4886_v6 = vld [vmem:[%s4196_s27 + $0x278] sm:$0x11] }
  0x79   : > { %v2475_v48 = vmax.bf16 %v2185_v35, %v1960_v23  ;;  %v1160_v34 = vshrl.u32 %v884_v7, 16  ;;  %v1163_v37 = vshll.u32 %v884_v7, 16  ;;  %v3575_v44 = vrot.slane %v884_v7, 9  ;;  %v4883_v60 = vld [vmem:[%s4196_s27 + $0x268] sm:$0xff] }
  0x7a   : > { %v2477_v21 = vmax.bf16 %v2193_v10, %v1962_v8  ;;  %v1169_v30 = vshll.u32 %v886_v32, 16  ;;  %v1188_v54 = vshrl.u32 %v888_v39, 16  ;;  %v1191_v52 = vshll.u32 %v888_v39, 16  ;;  %v4889_v19 = vld [vmem:[%s4196_s27 + $0x388] sm:$0xff] }
  0x7b   : > { %v1162_v55 = vrot.slane %v1160_v34, 4  ;;  %v1165_v12 = vrot.slane %v1163_v37, 5  ;;  %v1197_v33 = vshll.u32 %v890_v13, 16  ;;  %v2196_v35 = vrot.slane %v886_v32, 5  ;;  %v4894_v37 = vld [vmem:[%s4196_s27 + $0x398] sm:$0x11] }
  0x7c   : > { %v3639_v56 = vcombine.high %v2475_v48, %v2477_v21  ;;  %v3638_v10 = vcombine.low %v2475_v48, %v2477_v21  ;;  %v1171_v25 = vrot.slane %v1169_v30, 5  ;;  %v1190_v36 = vrot.slane %v1188_v54, 4  ;;  %v4897_v32 = vld [vmem:[%s4196_s27 + $0x3a8] sm:$0xff]  ;;  %v4900_v48 = vld [vmem:[%s4196_s27 + $0x3b8] sm:$0x11] }
  0x7d   : > { %v1166_v5 = vor.u32 %v1165_v12, %v1162_v55  ;;  %v1193_v23 = vrot.slane %v1191_v52, 5  ;;  %v1199_v8 = vrot.slane %v1197_v33, 5  ;;  %v2197_v34 = vsel %vm4398_vm4, %v3575_v44, %v2196_v35 }
  0x7e   : > { %3322 = vmatprep.mubr.bf16.mxu1 %v3639_v56  ;;  %v3577_v51 = vrot.slane %v888_v39, 9  ;;  %v2204_v26 = vrot.slane %v890_v13, 5  ;;  %v447_v21 = vmax.bf16 %v4879_v62, %v207_v16  ;;  %v449_v30 = vmax.bf16 %v4883_v60, %v209_v22 }
  0x7f   : > { %3323 = vmatmul.mubr.bf16.gmra.mrb[8].mxu1 %v3638_v10  ;;  %v1167_v54 = vrot.slane %v1166_v5, 4  ;;  %v1194_v52 = vor.u32 %v1193_v23, %v1190_v36  ;;  %v451_v55 = vmax.bf16 %v4886_v6, %v211_v49  ;;  %v605_v44 = vmax.bf16 %v445_v11, %v4889_v19 }
  0x80   : > { %v2205_v12 = vsel %vm4398_vm4, %v3577_v51, %v2204_v26  ;;  %v607_v33 = vmax.bf16 %v447_v21, %v4894_v37  ;;  %v609_v13 = vmax.bf16 %v449_v30, %v4897_v32  ;;  %v757_v35 = vmax.bf16 %v4801_v63, %v4792_v31 }
  0x81   : > { %v1172_v16 = vsel %vm4434_vm5, %v1167_v54, %v1171_v25  ;;  %v1195_v22 = vrot.slane %v1194_v52, 4  ;;  %v611_v56 = vmax.bf16 %v451_v55, %v4900_v48  ;;  %v759_v49 = vmax.bf16 %v4815_v4, %v4798_v61 }
  0x82   : > { %v1963_v11 = vmax.bf16 %v1172_v16, %v884_v7  ;;  %v761_v10 = vmax.bf16 %v605_v44, %v4801_v63  ;;  %v763_v26 = vmax.bf16 %v607_v33, %v4815_v4  ;;  %v885_v51 = vmax.bf16 %v757_v35, %v605_v44 }
  0x83   : > { %v1200_v36 = vsel %vm4434_vm5, %v1195_v22, %v1199_v8  ;;  %v887_v5 = vmax.bf16 %v759_v49, %v607_v33  ;;  %v6528_v31 = vmax.bf16 %v4250_v57, %v4219_v42  ;;  %v6529_v23 = vmax.bf16 %v4253_v58, %v4222_v43 }
  0x84   : > { %v1965_v7 = vmax.bf16 %v1200_v36, %v888_v39  ;;  %v2478_v21 = vmax.bf16 %v2197_v34, %v1963_v11  ;;  %v889_v63 = vmax.bf16 %v761_v10, %v609_v13  ;;  %v891_v30 = vmax.bf16 %v763_v26, %v611_v56  ;;  %v3992_v36 = vld [vmem:[%s4196_s27 + $0x400] sm:$0xff] }
  0x85   : > { %v616_v25 = vmax.bf16 %v6528_v31, %v4287_v9  ;;  %v618_v61 = vmax.bf16 %v6529_v23, %v4297_v14  ;;  %v1174_v4 = vshrl.u32 %v885_v51, 16  ;;  %v1177_v54 = vshll.u32 %v885_v51, 16 }
  0x86   : > { %v1183_v52 = vshll.u32 %v887_v5, 16  ;;  %v3576_v55 = vrot.slane %v885_v51, 9  ;;  %v2480_v8 = vmax.bf16 %v2205_v12, %v1965_v7  ;;  %v1202_v44 = vshrl.u32 %v889_v63, 16  ;;  %v3993_v7 = vld [vmem:[%s4196_s27 + $0x410] sm:$0x11] }
  0x87   : > { %v1205_v33 = vshll.u32 %v889_v63, 16  ;;  %v1211_v35 = vshll.u32 %v891_v30, 16  ;;  %v1176_v42 = vrot.slane %v1174_v4, 4  ;;  %v1179_v16 = vrot.slane %v1177_v54, 5 }
  0x88   : > { %v1185_v22 = vrot.slane %v1183_v52, 5  ;;  %v2200_v49 = vrot.slane %v887_v5, 5  ;;  %v3641_v43 = vcombine.high %v2478_v21, %v2480_v8  ;;  %v1204_v31 = vrot.slane %v1202_v44, 4  ;;  %v3995_v44 = vld [vmem:[%s4196_s27 + $0x430] sm:$0x11] }
  0x89   : > { %v1207_v39 = vrot.slane %v1205_v33, 5  ;;  %v1213_v34 = vrot.slane %v1211_v35, 5  ;;  %v1180_v13 = vor.u32 %v1179_v16, %v1176_v42  ;;  %v3578_v12 = vrot.slane %v889_v63, 9 }
  0x8a   : > { %v2201_v56 = vsel %vm4398_vm4, %v3576_v55, %v2200_v49  ;;  %v2208_v11 = vrot.slane %v891_v30, 5  ;;  %3169 = vmatprep.mubr.bf16.mxu0 %v3641_v43  ;;  %v3640_v26 = vcombine.low %v2478_v21, %v2480_v8  ;;  %v6530_v23 = vmax.bf16 %v4256_v59, %v4226_v45  ;;  %v3994_v30 = vld [vmem:[%s4196_s27 + $0x420] sm:$0xff] }
  0x8b   : > { %v1208_v10 = vor.u32 %v1207_v39, %v1204_v31  ;;  %v6531_v4 = vmax.bf16 %v4265_v0, %v4229_v46  ;;  %v1181_v52 = vrot.slane %v1180_v13, 4  ;;  %v6532_v21 = vmax.bf16 %v4268_v1, %v4232_v47  ;;  %v6535_v31 = vld [vmem:[#allocation17_spill] sm:$0xff]  ;;  %v6536_v39 = vld [vmem:[#allocation10_spill] sm:$0xff] }
  0x8c   : > { %v4935_v5 = vmax.bf16 %v3992_v36, %v6530_v23  ;;  %v2209_v55 = vsel %vm4398_vm4, %v3578_v12, %v2208_v11  ;;  %v6533_v45 = vmax.bf16 %v4271_v2, %v4237_v50  ;;  %3170 = vmatmul.mubr.bf16.gmra.mrb[12].mxu0 %v3640_v26  ;;  %v764_v46 = vmax.bf16 %v616_v25, %v4354_v40  ;;  %v6539_v26 = vld [vmem:[#allocation18_spill] sm:$0xff]  ;;  %v6540_v36 = vld [vmem:[#allocation11_spill] sm:$0xff] }
  0x8d   : > { %v4941_v54 = vmax.bf16 %v3993_v7, %v6531_v4  ;;  %v4949_v8 = vmax.bf16 %v3994_v30, %v6532_v21  ;;  %v1209_v35 = vrot.slane %v1208_v10, 4  ;;  %v766_v42 = vmax.bf16 %v618_v61, %v4357_v41 }
  0x8e   : > { %v4955_v33 = vmax.bf16 %v3995_v44, %v6533_v45  ;;  %v768_v16 = vmax.bf16 %v4935_v5, %v616_v25  ;;  %v1186_v49 = vsel %vm4434_vm5, %v1181_v52, %v1185_v22  ;;  %v6534_v43 = vmax.bf16 %v4439_v17, %v4367_v53  ;;  %v6538_v53 = vld [vmem:[#allocation25_spill] sm:$0xff] }
  0x8f   : > { %v770_v47 = vmax.bf16 %v4941_v54, %v618_v61  ;;  %v6537_v13 = vmax.bf16 %v6535_v31, %v6536_v39  ;;  %v1214_v40 = vsel %vm4434_vm5, %v1209_v35, %v1213_v34  ;;  %v1964_v41 = vmax.bf16 %v1186_v49, %v885_v51 }
  0x90   : > { %v613_v50 = vmax.bf16 %v6534_v43, %v4483_v27  ;;  %v892_v25 = vmax.bf16 %v764_v46, %v4935_v5  ;;  %v894_v22 = vmax.bf16 %v766_v42, %v4941_v54  ;;  %v1966_v11 = vmax.bf16 %v1214_v40, %v889_v63 }
  0x91   : > { %v615_v12 = vmax.bf16 %v6537_v13, %v4486_v15  ;;  %v896_v61 = vmax.bf16 %v768_v16, %v4949_v8  ;;  %v898_v10 = vmax.bf16 %v770_v47, %v4955_v33  ;;  %v6541_v23 = vmax.bf16 %v6539_v26, %v6540_v36 }
  0x92   : > { %v2479_v4 = vmax.bf16 %v2201_v56, %v1964_v41  ;;  %v1216_v52 = vshrl.u32 %v892_v25, 16  ;;  %v1219_v30 = vshll.u32 %v892_v25, 16  ;;  %v1225_v21 = vshll.u32 %v894_v22, 16 }
  0x93   : > { %v617_v7 = vmax.bf16 %v6541_v23, %v6538_v53  ;;  %v2481_v34 = vmax.bf16 %v2209_v55, %v1966_v11  ;;  %v1244_v51 = vshrl.u32 %v896_v61, 16  ;;  %v1247_v44 = vshll.u32 %v896_v61, 16  ;;  %v6542_v23 = vld [vmem:[#allocation26_spill] sm:$0xff]  ;;  %v6543_v55 = vld [vmem:[#allocation19_spill] sm:$0xff]  ;;  %v6544_v11 = vld [vmem:[#allocation12_spill] sm:$0xff] }
  0x94   : > { %v1253_v45 = vshll.u32 %v898_v10, 16  ;;  %v1218_v35 = vrot.slane %v1216_v52, 4  ;;  %v1221_v46 = vrot.slane %v1219_v30, 5  ;;  %v1227_v63 = vrot.slane %v1225_v21, 5  ;;  %v6546_v52 = vld [vmem:[#allocation27_spill] sm:$0xff]  ;;  %v6547_v30 = vld [vmem:[#allocation20_spill] sm:$0xff] }
  0x95   : > { %v3579_v42 = vrot.slane %v892_v25, 9  ;;  %v3643_v16 = vcombine.high %v2479_v4, %v2481_v34  ;;  %v3642_v49 = vcombine.low %v2479_v4, %v2481_v34  ;;  %v1246_v47 = vrot.slane %v1244_v51, 4  ;;  %v6548_v21 = vld [vmem:[#allocation14_spill] sm:$0xff]  ;;  %v6550_v34 = vld [vmem:[#allocation28_spill] sm:$0xff]  ;;  %v6551_v51 = vld [vmem:[#allocation21_spill] sm:$0xff] }
  0x96   : > { %v1249_v43 = vrot.slane %v1247_v44, 5  ;;  %v1222_v39 = vor.u32 %v1221_v46, %v1218_v35  ;;  %v1255_v13 = vrot.slane %v1253_v45, 5  ;;  %v2212_v40 = vrot.slane %v894_v22, 5  ;;  %v6552_v44 = vld [vmem:[#allocation13_spill] sm:$0xff]  ;;  %v6555_v46 = vld [vmem:[#allocation22_spill] sm:$0xff] }
  0x97   : > { %v3581_v36 = vrot.slane %v896_v61, 9  ;;  %3330 = vmatprep.mubr.bf16.mxu1 %v3643_v16  ;;  %v2220_v41 = vrot.slane %v898_v10, 5  ;;  %v6545_v26 = vmax.bf16 %v6543_v55, %v6544_v11  ;;  %v6549_v31 = vmax.bf16 %v6547_v30, %v6548_v21  ;;  %v6554_v35 = vld [vmem:[#allocation29_spill] sm:$0xff]  ;;  %v6560_v11 = vld [vmem:[#allocation16_spill] sm:$0xff]  ;;  %v6572_v55 = vld [vmem:[#allocation34_spill] sm:$0xff] }
  0x98   : > { %v1250_v56 = vor.u32 %v1249_v43, %v1246_v47  ;;  %3331 = vmatmul.mubr.bf16.gmra.mrb[12].mxu1 %v3642_v49  ;;  %v1223_v4 = vrot.slane %v1222_v39, 4  ;;  %v2213_v22 = vsel %vm4398_vm4, %v3579_v42, %v2212_v40  ;;  %v6553_v10 = vmax.bf16 %v6551_v51, %v6552_v44  ;;  %v6558_v49 = vld [vmem:[#allocation30_spill] sm:$0xff]  ;;  %v6559_v39 = vld [vmem:[#allocation23_spill] sm:$0xff]  ;;  %v5037_v30 = vld [vmem:[%s4196_s27 + $0x470] sm:$0x11] }
  0x99   : > { %v619_v53 = vmax.bf16 %v6545_v26, %v6542_v23  ;;  %v4989_v15 = vmax.bf16 %v6549_v31, %v6546_v52  ;;  %v6556_v26 = vld [vmem:[#allocation15_spill] sm:$0xff]  ;;  %v2221_v31 = vsel %vm4398_vm4, %v3581_v36, %v2220_v41  ;;  %v6561_v42 = vmax.bf16 %v6559_v39, %v6560_v11  ;;  %6567 = vst [vmem:[#allocation14_spill] sm:$0xff] %v5037_v30 }
  0x9a   : > { %v4997_v45 = vmax.bf16 %v6553_v10, %v6550_v34  ;;  %v6557_v16 = vmax.bf16 %v6555_v46, %v6556_v26  ;;  %v1251_v43 = vrot.slane %v1250_v56, 4  ;;  %v765_v21 = vmax.bf16 %v617_v7, %v613_v50  ;;  %v6562_v41 = vld [vmem:[#allocation31_spill] sm:$0xff] }
  0x9b   : > { %v5011_v40 = vmax.bf16 %v6561_v42, %v6558_v49  ;;  %v1228_v44 = vsel %vm4434_vm5, %v1223_v4, %v1227_v63  ;;  %v767_v10 = vmax.bf16 %v619_v53, %v615_v12  ;;  %v769_v51 = vmax.bf16 %v4989_v15, %v617_v7  ;;  %v6563_v46 = vld [vmem:[#allocation35_spill] sm:$0xff] }
  0x9c   : > { %v5003_v47 = vmax.bf16 %v6557_v16, %v6554_v35  ;;  %v771_v26 = vmax.bf16 %v4997_v45, %v619_v53  ;;  %v1256_v56 = vsel %vm4434_vm5, %v1251_v43, %v1255_v13  ;;  %v1967_v16 = vmax.bf16 %v1228_v44, %v892_v25  ;;  %v5031_v35 = vld [vmem:[%s4196_s27 + $0x450] sm:$0x11] }
  0x9d   : > { %v893_v36 = vmax.bf16 %v765_v21, %v4989_v15  ;;  %v468_v11 = vmax.bf16 %v6563_v46, %v6562_v41  ;;  %v1969_v42 = vmax.bf16 %v1256_v56, %v896_v61  ;;  %v895_v50 = vmax.bf16 %v767_v10, %v4997_v45  ;;  %6565 = vst [vmem:[#allocation11_spill] sm:$0xff] %v5031_v35 }
  0x9e   : > { %v897_v39 = vmax.bf16 %v769_v51, %v5003_v47  ;;  %v899_v12 = vmax.bf16 %v771_v26, %v5011_v40  ;;  %v2482_v63 = vmax.bf16 %v2213_v22, %v1967_v16  ;;  %v5026_v22 = vld [vmem:[%s4196_s27 + $0x440] sm:$0xff] }
  0x9f   : > { %v1230_v7 = vshrl.u32 %v893_v36, 16  ;;  %v1233_v53 = vshll.u32 %v893_v36, 16  ;;  %v3580_v4 = vrot.slane %v893_v36, 9  ;;  %v2484_v49 = vmax.bf16 %v2221_v31, %v1969_v42  ;;  %6564 = vst [vmem:[#allocation10_spill] sm:$0xff] %v5026_v22 }
  0xa0   : > { %v1239_v13 = vshll.u32 %v895_v50, 16  ;;  %v1258_v25 = vshrl.u32 %v897_v39, 16  ;;  %v1261_v43 = vshll.u32 %v897_v39, 16  ;;  %v1267_v46 = vshll.u32 %v899_v12, 16 }
  0xa1   : > { %v1232_v21 = vrot.slane %v1230_v7, 4  ;;  %v1235_v44 = vrot.slane %v1233_v53, 5  ;;  %v2216_v61 = vrot.slane %v895_v50, 5  ;;  %v3645_v10 = vcombine.high %v2482_v63, %v2484_v49  ;;  %v5034_v50 = vld [vmem:[%s4196_s27 + $0x460] sm:$0xff] }
  0xa2   : > { %v1241_v51 = vrot.slane %v1239_v13, 5  ;;  %v1260_v56 = vrot.slane %v1258_v25, 4  ;;  %v1263_v26 = vrot.slane %v1261_v43, 5  ;;  %v1269_v41 = vrot.slane %v1267_v46, 5  ;;  %6566 = vst [vmem:[#allocation12_spill] sm:$0xff] %v5034_v50  ;;  %v6568_v13 = vld [vmem:[#allocation32_spill] sm:$0xff] }
  0xa3   : > { %v1236_v16 = vor.u32 %v1235_v44, %v1232_v21  ;;  %v2217_v31 = vsel %vm4398_vm4, %v3580_v4, %v2216_v61  ;;  %v3582_v42 = vrot.slane %v897_v39, 9  ;;  %3177 = vmatprep.mubr.bf16.mxu0 %v3645_v10  ;;  %v2224_v53 = vrot.slane %v899_v12, 5  ;;  %v6569_v25 = vld [vmem:[#allocation36_spill] sm:$0xff]  ;;  %v6570_v21 = vld [vmem:[#allocation33_spill] sm:$0xff]  ;;  %v6573_v4 = vld [vmem:[#allocation38_spill] sm:$0xff] }
  0xa4   : > { %v1264_v7 = vor.u32 %v1263_v26, %v1260_v56  ;;  %v3644_v34 = vcombine.low %v2482_v63, %v2484_v49  ;;  %v470_v43 = vmax.bf16 %v6569_v25, %v6568_v13  ;;  %v6571_v44 = vld [vmem:[#allocation37_spill] sm:$0xff]  ;;  %v474_v61 = vmax.bf16 %v6573_v4, %v6572_v55  ;;  %v6575_v13 = vld [vmem:[#allocation43_spill] sm:$0xff] }
  0xa5   : > { %v1237_v52 = vrot.slane %v1236_v16, 4  ;;  %v472_v46 = vmax.bf16 %v6571_v44, %v6570_v21  ;;  %v5046_v23 = vmax.bf16 %v468_v11, %v5026_v22  ;;  %v2225_v49 = vsel %vm4398_vm4, %v3582_v42, %v2224_v53  ;;  %v6574_v53 = vld [vmem:[#allocation39_spill] sm:$0xff]  ;;  %v6577_v21 = vld [vmem:[#allocation44_spill] sm:$0xff] }
  0xa6   : > { %v1265_v10 = vrot.slane %v1264_v7, 4  ;;  %3178 = vmatmul.mubr.bf16.gmra.mrb[16].mxu0 %v3644_v34  ;;  %v5051_v12 = vmax.bf16 %v470_v43, %v5031_v35  ;;  %v772_v63 = vmax.bf16 %v4949_v8, %v4935_v5  ;;  %v5061_v55 = vmax.bf16 %v474_v61, %v5037_v30  ;;  %v5089_v35 = vld [vmem:[%s4196_s27 + $0x478] sm:$0x11] }
  0xa7   : > { %v1242_v56 = vsel %vm4434_vm5, %v1237_v52, %v1241_v51  ;;  %v5058_v26 = vmax.bf16 %v472_v46, %v5034_v50  ;;  %v774_v11 = vmax.bf16 %v4955_v33, %v4941_v54  ;;  %v776_v42 = vmax.bf16 %v5046_v23, %v4949_v8  ;;  %v5086_v50 = vld [vmem:[%s4196_s27 + $0x468] sm:$0xff]  ;;  %6581 = vst [vmem:[#allocation31_spill] sm:$0xff] %v5089_v35 }
  0xa8   : > { %v1270_v34 = vsel %vm4434_vm5, %v1265_v10, %v1269_v41  ;;  %v1968_v16 = vmax.bf16 %v1242_v56, %v893_v36  ;;  %v778_v5 = vmax.bf16 %v5051_v12, %v4955_v33  ;;  %v900_v51 = vmax.bf16 %v772_v63, %v5046_v23  ;;  %v6576_v41 = vld [vmem:[#allocation40_spill] sm:$0xff]  ;;  %6580 = vst [vmem:[#allocation16_spill] sm:$0xff] %v5086_v50 }
  0xa9   : > { %v1970_v52 = vmax.bf16 %v1270_v34, %v897_v39  ;;  %v902_v7 = vmax.bf16 %v774_v11, %v5051_v12  ;;  %v469_v25 = vmax.bf16 %v6575_v13, %v6574_v53  ;;  %v904_v54 = vmax.bf16 %v776_v42, %v5058_v26 }
  0xaa   : > { %v2483_v43 = vmax.bf16 %v2217_v31, %v1968_v16  ;;  %v906_v36 = vmax.bf16 %v778_v5, %v5061_v55  ;;  %v471_v8 = vmax.bf16 %v6577_v21, %v6576_v41  ;;  %v1272_v46 = vshrl.u32 %v900_v51, 16  ;;  %v5080_v16 = vld [vmem:[%s4196_s27 + $0x448] sm:$0xff] }
  0xab   : > { %v2485_v44 = vmax.bf16 %v2225_v49, %v1970_v52  ;;  %v1275_v33 = vshll.u32 %v900_v51, 16  ;;  %v1281_v39 = vshll.u32 %v902_v7, 16  ;;  %v1300_v4 = vshrl.u32 %v904_v54, 16  ;;  %6578 = vst [vmem:[#allocation13_spill] sm:$0xff] %v5080_v16  ;;  %v5083_v52 = vld [vmem:[%s4196_s27 + $0x458] sm:$0x11] }
  0xac   : > { %v1303_v61 = vshll.u32 %v904_v54, 16  ;;  %v1309_v10 = vshll.u32 %v906_v36, 16  ;;  %v3583_v63 = vrot.slane %v900_v51, 9  ;;  %v1274_v11 = vrot.slane %v1272_v46, 4  ;;  %6579 = vst [vmem:[#allocation15_spill] sm:$0xff] %v5083_v52  ;;  %v6583_v46 = vld [vmem:[#allocation45_spill] sm:$0xff] }
  0xad   : > { %v3647_v56 = vcombine.high %v2483_v43, %v2485_v44  ;;  %v3646_v31 = vcombine.low %v2483_v43, %v2485_v44  ;;  %v1277_v34 = vrot.slane %v1275_v33, 5  ;;  %v1283_v42 = vrot.slane %v1281_v39, 5  ;;  %v6582_v44 = vld [vmem:[#allocation41_spill] sm:$0xff]  ;;  %v6584_v39 = vld [vmem:[#allocation42_spill] sm:$0xff] }
  0xae   : > { %v1302_v5 = vrot.slane %v1300_v4, 4  ;;  %v1305_v53 = vrot.slane %v1303_v61, 5  ;;  %v1311_v49 = vrot.slane %v1309_v10, 5  ;;  %v2228_v41 = vrot.slane %v902_v7, 5  ;;  %v6585_v4 = vld [vmem:[#allocation46_spill] sm:$0xff] }
  0xaf   : > { %3338 = vmatprep.mubr.bf16.mxu1 %v3647_v56  ;;  %v1278_v13 = vor.u32 %v1277_v34, %v1274_v11  ;;  %v3585_v21 = vrot.slane %v904_v54, 9  ;;  %v2236_v30 = vrot.slane %v906_v36, 5  ;;  %v473_v33 = vmax.bf16 %v6583_v46, %v6582_v44 }
  0xb0   : > { %3339 = vmatmul.mubr.bf16.gmra.mrb[16].mxu1 %v3646_v31  ;;  %v1306_v43 = vor.u32 %v1305_v53, %v1302_v5  ;;  %v475_v61 = vmax.bf16 %v6585_v4, %v6584_v39  ;;  %v5096_v10 = vmax.bf16 %v469_v25, %v5080_v16  ;;  %v2229_v7 = vsel %vm4398_vm4, %v3583_v63, %v2228_v41  ;;  %v6595_v16 = vld [vmem:[#allocation49_spill] sm:$0xff] }
  0xb1   : > { %v1279_v56 = vrot.slane %v1278_v13, 4  ;;  %v2237_v36 = vsel %vm4398_vm4, %v3585_v21, %v2236_v30  ;;  %v5103_v11 = vmax.bf16 %v471_v8, %v5083_v52  ;;  %v5106_v34 = vmax.bf16 %v473_v33, %v5086_v50  ;;  %v5141_v50 = vld [vmem:[%s4196_s27 + $0x4b0] sm:$0x11] }
  0xb2   : > { %v1307_v31 = vrot.slane %v1306_v43, 4  ;;  %v5109_v5 = vmax.bf16 %v475_v61, %v5089_v35  ;;  %v773_v25 = vmax.bf16 %v5003_v47, %v4989_v15  ;;  %v775_v63 = vmax.bf16 %v5011_v40, %v4997_v45  ;;  %v6586_v43 = vld [vmem:[#allocation47_spill] sm:$0xff]  ;;  %6590 = vst [vmem:[#allocation36_spill] sm:$0xff] %v5141_v50 }
  0xb3   : > { %v1284_v53 = vsel %vm4434_vm5, %v1279_v56, %v1283_v42  ;;  %v777_v30 = vmax.bf16 %v5096_v10, %v5003_v47  ;;  %v779_v8 = vmax.bf16 %v5103_v11, %v5011_v40  ;;  %v6587_v15 = vld [vmem:[#allocation51_spill] sm:$0xff] }
  0xb4   : > { %v1312_v13 = vsel %vm4434_vm5, %v1307_v31, %v1311_v49  ;;  %v1971_v41 = vmax.bf16 %v1284_v53, %v900_v51  ;;  %v901_v21 = vmax.bf16 %v773_v25, %v5096_v10  ;;  %v476_v44 = vmax.bf16 %v6587_v15, %v6586_v43 }
  0xb5   : > { %v1973_v46 = vmax.bf16 %v1312_v13, %v904_v54  ;;  %v903_v42 = vmax.bf16 %v775_v63, %v5103_v11  ;;  %v905_v45 = vmax.bf16 %v777_v30, %v5106_v34  ;;  %v907_v33 = vmax.bf16 %v779_v8, %v5109_v5 }
  0xb6   : > { %v2486_v47 = vmax.bf16 %v2229_v7, %v1971_v41  ;;  %v1286_v39 = vshrl.u32 %v901_v21, 16  ;;  %v1289_v40 = vshll.u32 %v901_v21, 16  ;;  %v3584_v4 = vrot.slane %v901_v21, 9  ;;  %v5130_v7 = vld [vmem:[%s4196_s27 + $0x480] sm:$0xff] }
  0xb7   : > { %v2488_v61 = vmax.bf16 %v2237_v36, %v1973_v46  ;;  %v1295_v49 = vshll.u32 %v903_v42, 16  ;;  %v1314_v51 = vshrl.u32 %v905_v45, 16  ;;  %v1317_v56 = vshll.u32 %v905_v45, 16  ;;  %v5135_v46 = vld [vmem:[%s4196_s27 + $0x490] sm:$0x11] }
  0xb8   : > { %v1288_v31 = vrot.slane %v1286_v39, 4  ;;  %v1291_v25 = vrot.slane %v1289_v40, 5  ;;  %v1323_v53 = vshll.u32 %v907_v33, 16  ;;  %v2232_v54 = vrot.slane %v903_v42, 5  ;;  %6588 = vst [vmem:[#allocation35_spill] sm:$0xff] %v5135_v46  ;;  %v5138_v42 = vld [vmem:[%s4196_s27 + $0x4a0] sm:$0xff] }
  0xb9   : > { %v3649_v63 = vcombine.high %v2486_v47, %v2488_v61  ;;  %v1297_v30 = vrot.slane %v1295_v49, 5  ;;  %v1316_v13 = vrot.slane %v1314_v51, 4  ;;  %v1319_v8 = vrot.slane %v1317_v56, 5  ;;  %6589 = vst [vmem:[#allocation32_spill] sm:$0xff] %v5138_v42  ;;  %v6591_v49 = vld [vmem:[#allocation48_spill] sm:$0xff] }
  0xba   : > { %v1292_v41 = vor.u32 %v1291_v25, %v1288_v31  ;;  %v1325_v43 = vrot.slane %v1323_v53, 5  ;;  %v2233_v36 = vsel %vm4398_vm4, %v3584_v4, %v2232_v54  ;;  %v3586_v15 = vrot.slane %v905_v45, 9  ;;  %v6592_v51 = vld [vmem:[#allocation52_spill] sm:$0xff]  ;;  %v6593_v31 = vld [vmem:[#allocation50_spill] sm:$0xff]  ;;  %v6594_v25 = vld [vmem:[#allocation53_spill] sm:$0xff] }
  0xbb   : > { %3185 = vmatprep.mubr.bf16.mxu0 %v3649_v63  ;;  %v1320_v39 = vor.u32 %v1319_v8, %v1316_v13  ;;  %v2240_v40 = vrot.slane %v907_v33, 5  ;;  %v3648_v35 = vcombine.low %v2486_v47, %v2488_v61  ;;  %v478_v56 = vmax.bf16 %v6592_v51, %v6591_v49  ;;  %v6596_v4 = vld [vmem:[#allocation54_spill] sm:$0xff]  ;;  %v6598_v49 = vld [vmem:[#allocation59_spill] sm:$0xff] }
  0xbc   : > { %v1293_v52 = vrot.slane %v1292_v41, 4  ;;  %v480_v53 = vmax.bf16 %v6594_v25, %v6593_v31  ;;  %v482_v54 = vmax.bf16 %v6596_v4, %v6595_v16  ;;  %v5150_v22 = vmax.bf16 %v476_v44, %v5130_v7  ;;  %v6600_v31 = vld [vmem:[#allocation60_spill] sm:$0xff] }
  0xbd   : > { %v1321_v63 = vrot.slane %v1320_v39, 4  ;;  %v2241_v33 = vsel %vm4398_vm4, %v3586_v15, %v2240_v40  ;;  %3186 = vmatmul.mubr.bf16.gmra.mrb[20].mxu0 %v3648_v35  ;;  %v5155_v47 = vmax.bf16 %v478_v56, %v5135_v46  ;;  %v780_v61 = vmax.bf16 %v5058_v26, %v5046_v23  ;;  %v6597_v40 = vld [vmem:[#allocation55_spill] sm:$0xff]  ;;  %v5193_v46 = vld [vmem:[%s4196_s27 + $0x4b8] sm:$0x11] }
  0xbe   : > { %v1298_v13 = vsel %vm4434_vm5, %v1293_v52, %v1297_v30  ;;  %v5162_v8 = vmax.bf16 %v480_v53, %v5138_v42  ;;  %v5165_v16 = vmax.bf16 %v482_v54, %v5141_v50  ;;  %v782_v44 = vmax.bf16 %v5061_v55, %v5051_v12  ;;  %v5190_v42 = vld [vmem:[%s4196_s27 + $0x4a8] sm:$0xff]  ;;  %6601 = vst [vmem:[#allocation33_spill] sm:$0xff] %v5193_v46 }
  0xbf   : > { %v1326_v35 = vsel %vm4434_vm5, %v1321_v63, %v1325_v43  ;;  %v1972_v41 = vmax.bf16 %v1298_v13, %v901_v21  ;;  %v784_v15 = vmax.bf16 %v5150_v22, %v5058_v26  ;;  %v786_v23 = vmax.bf16 %v5155_v47, %v5061_v55  ;;  %v6599_v43 = vld [vmem:[#allocation56_spill] sm:$0xff] }
  0xc0   : > { %v1974_v52 = vmax.bf16 %v1326_v35, %v905_v45  ;;  %v908_v30 = vmax.bf16 %v780_v61, %v5150_v22  ;;  %v910_v39 = vmax.bf16 %v782_v44, %v5155_v47  ;;  %v477_v51 = vmax.bf16 %v6598_v49, %v6597_v40 }
  0xc1   : > { %v2487_v56 = vmax.bf16 %v2233_v36, %v1972_v41  ;;  %v912_v12 = vmax.bf16 %v784_v15, %v5162_v8  ;;  %v914_v21 = vmax.bf16 %v786_v23, %v5165_v16  ;;  %v479_v26 = vmax.bf16 %v6600_v31, %v6599_v43  ;;  %v5184_v41 = vld [vmem:[%s4196_s27 + $0x488] sm:$0xff] }
  0xc2   : > { %v2489_v25 = vmax.bf16 %v2241_v33, %v1974_v52  ;;  %v1328_v53 = vshrl.u32 %v908_v30, 16  ;;  %v1331_v55 = vshll.u32 %v908_v30, 16  ;;  %v1337_v45 = vshll.u32 %v910_v39, 16  ;;  %v5187_v52 = vld [vmem:[%s4196_s27 + $0x498] sm:$0x11] }
  0xc3   : > { %v1356_v4 = vshrl.u32 %v912_v12, 16  ;;  %v1359_v54 = vshll.u32 %v912_v12, 16  ;;  %v1365_v63 = vshll.u32 %v914_v21, 16  ;;  %v3587_v61 = vrot.slane %v908_v30, 9 }
  0xc4   : > { %v3651_v13 = vcombine.high %v2487_v56, %v2489_v25  ;;  %v3650_v36 = vcombine.low %v2487_v56, %v2489_v25  ;;  %v1330_v44 = vrot.slane %v1328_v53, 4  ;;  %v1333_v35 = vrot.slane %v1331_v55, 5  ;;  %v6602_v25 = vld [vmem:[#allocation57_spill] sm:$0xff] }
  0xc5   : > { %v1339_v15 = vrot.slane %v1337_v45, 5  ;;  %v1358_v23 = vrot.slane %v1356_v4, 4  ;;  %v1361_v40 = vrot.slane %v1359_v54, 5  ;;  %v1367_v33 = vrot.slane %v1365_v63, 5  ;;  %v6603_v53 = vld [vmem:[#allocation61_spill] sm:$0xff]  ;;  %v6604_v45 = vld [vmem:[#allocation58_spill] sm:$0xff] }
  0xc6   : > { %3346 = vmatprep.mubr.bf16.mxu1 %v3651_v13  ;;  %v1334_v49 = vor.u32 %v1333_v35, %v1330_v44  ;;  %v2244_v43 = vrot.slane %v910_v39, 5  ;;  %v3589_v31 = vrot.slane %v912_v12, 9  ;;  %v2252_v50 = vrot.slane %v914_v21, 5  ;;  %v6605_v4 = vld [vmem:[#allocation62_spill] sm:$0xff] }
  0xc7   : > { %3347 = vmatmul.mubr.bf16.gmra.mrb[20].mxu1 %v3650_v36  ;;  %v1362_v56 = vor.u32 %v1361_v40, %v1358_v23  ;;  %v481_v55 = vmax.bf16 %v6603_v53, %v6602_v25  ;;  %v483_v54 = vmax.bf16 %v6605_v4, %v6604_v45  ;;  %v5200_v63 = vmax.bf16 %v477_v51, %v5184_v41 }
  0xc8   : > { %v1335_v13 = vrot.slane %v1334_v49, 4  ;;  %v2245_v39 = vsel %vm4398_vm4, %v3587_v61, %v2244_v43  ;;  %v2253_v21 = vsel %vm4398_vm4, %v3589_v31, %v2252_v50  ;;  %v5207_v44 = vmax.bf16 %v479_v26, %v5187_v52 }
  0xc9   : > { %v1363_v36 = vrot.slane %v1362_v56, 4  ;;  %v5210_v35 = vmax.bf16 %v481_v55, %v5190_v42  ;;  %v5213_v23 = vmax.bf16 %v483_v54, %v5193_v46  ;;  %v781_v51 = vmax.bf16 %v5106_v34, %v5096_v10  ;;  %v6606_v56 = vld [vmem:[#allocation63_spill] sm:$0xff]  ;;  %v5245_v46 = vld [vmem:[%s4196_s27 + $0x4f0] sm:$0x11] }
  0xca   : > { %v1340_v40 = vsel %vm4434_vm5, %v1335_v13, %v1339_v15  ;;  %v783_v61 = vmax.bf16 %v5109_v5, %v5103_v11  ;;  %v785_v50 = vmax.bf16 %v5200_v63, %v5106_v34  ;;  %v787_v26 = vmax.bf16 %v5207_v44, %v5109_v5 }
  0xcb   : > { %v1368_v49 = vsel %vm4434_vm5, %v1363_v36, %v1367_v33  ;;  %v1975_v43 = vmax.bf16 %v1340_v40, %v908_v30  ;;  %v909_v31 = vmax.bf16 %v781_v51, %v5200_v63  ;;  %v484_v10 = vmax.bf16 %v4840_v38, %v6606_v56  ;;  %v5239_v56 = vld [vmem:[%s4196_s27 + $0x4d0] sm:$0x11] }
  0xcc   : > { %v1977_v25 = vmax.bf16 %v1368_v49, %v912_v12  ;;  %v911_v15 = vmax.bf16 %v783_v61, %v5207_v44  ;;  %v913_v11 = vmax.bf16 %v785_v50, %v5210_v35  ;;  %v915_v53 = vmax.bf16 %v787_v26, %v5213_v23 }
  0xcd   : > { %v2490_v34 = vmax.bf16 %v2245_v39, %v1975_v43  ;;  %v1342_v55 = vshrl.u32 %v909_v31, 16  ;;  %v1345_v5 = vshll.u32 %v909_v31, 16  ;;  %v3588_v45 = vrot.slane %v909_v31, 9  ;;  %v5234_v39 = vld [vmem:[%s4196_s27 + $0x4c0] sm:$0xff] }
  0xce   : > { %v2492_v4 = vmax.bf16 %v2253_v21, %v1977_v25  ;;  %v1351_v33 = vshll.u32 %v911_v15, 16  ;;  %v1370_v30 = vshrl.u32 %v913_v11, 16  ;;  %v1373_v54 = vshll.u32 %v913_v11, 16 }
  0xcf   : > { %v1344_v13 = vrot.slane %v1342_v55, 4  ;;  %v1347_v36 = vrot.slane %v1345_v5, 5  ;;  %v1379_v38 = vshll.u32 %v915_v53, 16  ;;  %v2248_v12 = vrot.slane %v911_v15, 5  ;;  %v5242_v15 = vld [vmem:[%s4196_s27 + $0x4e0] sm:$0xff] }
  0xd0   : > { %v3653_v51 = vcombine.high %v2490_v34, %v2492_v4  ;;  %v1353_v40 = vrot.slane %v1351_v33, 5  ;;  %v1372_v61 = vrot.slane %v1370_v30, 4  ;;  %v1375_v50 = vrot.slane %v1373_v54, 5  ;;  %v6607_v33 = vld [vmem:[#allocation64_spill] sm:$0xff] }
  0xd1   : > { %v1348_v26 = vor.u32 %v1347_v36, %v1344_v13  ;;  %v1381_v49 = vrot.slane %v1379_v38, 5  ;;  %v2249_v21 = vsel %vm4398_vm4, %v3588_v45, %v2248_v12  ;;  %v3590_v43 = vrot.slane %v913_v11, 9  ;;  %v6608_v45 = vld [vmem:[#allocation65_spill] sm:$0xff] }
  0xd2   : > { %3193 = vmatprep.mubr.bf16.mxu0 %v3653_v51  ;;  %v1376_v25 = vor.u32 %v1375_v50, %v1372_v61  ;;  %v2256_v55 = vrot.slane %v915_v53, 5  ;;  %v3652_v5 = vcombine.low %v2490_v34, %v2492_v4  ;;  %v486_v30 = vmax.bf16 %v4843_v24, %v6607_v33 }
  0xd3   : > { %v1349_v54 = vrot.slane %v1348_v26, 4  ;;  %v488_v13 = vmax.bf16 %v4848_v29, %v4834_v3  ;;  %v490_v36 = vmax.bf16 %v6608_v45, %v4837_v20  ;;  %v644_v38 = vmax.bf16 %v484_v10, %v5234_v39 }
  0xd4   : > { %v1377_v12 = vrot.slane %v1376_v25, 4  ;;  %v2257_v53 = vsel %vm4398_vm4, %v3590_v43, %v2256_v55  ;;  %3194 = vmatmul.mubr.bf16.gmra.mrb[24].mxu0 %v3652_v5  ;;  %v646_v34 = vmax.bf16 %v486_v30, %v5239_v56  ;;  %v788_v4 = vmax.bf16 %v5162_v8, %v5150_v22  ;;  %v6609_v25 = vld [vmem:[#allocation66_spill] sm:$0xff] }
  0xd5   : > { %v1354_v24 = vsel %vm4434_vm5, %v1349_v54, %v1353_v40  ;;  %v648_v3 = vmax.bf16 %v488_v13, %v5242_v15  ;;  %v650_v29 = vmax.bf16 %v490_v36, %v5245_v46  ;;  %v790_v20 = vmax.bf16 %v5165_v16, %v5155_v47 }
  0xd6   : > { %v1382_v10 = vsel %vm4434_vm5, %v1377_v12, %v1381_v49  ;;  %v1976_v51 = vmax.bf16 %v1354_v24, %v909_v31  ;;  %v792_v61 = vmax.bf16 %v644_v38, %v5162_v8  ;;  %v794_v50 = vmax.bf16 %v646_v34, %v5165_v16 }
  0xd7   : > { %v1978_v26 = vmax.bf16 %v1382_v10, %v913_v11  ;;  %v916_v22 = vmax.bf16 %v788_v4, %v644_v38  ;;  %v918_v43 = vmax.bf16 %v790_v20, %v646_v34  ;;  %v485_v40 = vmax.bf16 %v4889_v19, %v6609_v25  ;;  %v5274_v38 = vld [vmem:[%s4196_s27 + $0x4c8] sm:$0xff]  ;;  %v5283_v10 = vld [vmem:[%s4196_s27 + $0x4f8] sm:$0x11] }
  0xd8   : > { %v2491_v55 = vmax.bf16 %v2249_v21, %v1976_v51  ;;  %v920_v5 = vmax.bf16 %v792_v61, %v648_v3  ;;  %v922_v33 = vmax.bf16 %v794_v50, %v650_v29  ;;  %v487_v47 = vmax.bf16 %v4894_v37, %v4879_v62  ;;  %v5280_v20 = vld [vmem:[%s4196_s27 + $0x4e8] sm:$0xff] }
  0xd9   : > { %v2493_v30 = vmax.bf16 %v2257_v53, %v1978_v26  ;;  %v1384_v49 = vshrl.u32 %v916_v22, 16  ;;  %v1387_v31 = vshll.u32 %v916_v22, 16  ;;  %v1393_v8 = vshll.u32 %v918_v43, 16  ;;  %v5277_v53 = vld [vmem:[%s4196_s27 + $0x4d8] sm:$0x11] }
  0xda   : > { %v1412_v54 = vshrl.u32 %v920_v5, 16  ;;  %v1415_v16 = vshll.u32 %v920_v5, 16  ;;  %v1421_v11 = vshll.u32 %v922_v33, 16  ;;  %v3591_v13 = vrot.slane %v916_v22, 9 }
  0xdb   : > { %v3655_v45 = vcombine.high %v2491_v55, %v2493_v30  ;;  %v3654_v19 = vcombine.low %v2491_v55, %v2493_v30  ;;  %v1386_v21 = vrot.slane %v1384_v49, 4  ;;  %v1389_v36 = vrot.slane %v1387_v31, 5  ;;  %v5296_v30 = vld [vmem:[%s4196_s27 + $0x500] sm:$0xff] }
  0xdc   : > { %v1395_v12 = vrot.slane %v1393_v8, 5  ;;  %v1414_v34 = vrot.slane %v1412_v54, 4  ;;  %v1417_v62 = vrot.slane %v1415_v16, 5  ;;  %v1423_v37 = vrot.slane %v1421_v11, 5  ;;  %v6610_v11 = vld [vmem:[#allocation4_spill] sm:$0xff] }
  0xdd   : > { %3354 = vmatprep.mubr.bf16.mxu1 %v3655_v45  ;;  %v1390_v4 = vor.u32 %v1389_v36, %v1386_v21  ;;  %v2260_v24 = vrot.slane %v918_v43, 5  ;;  %v3593_v3 = vrot.slane %v920_v5, 9  ;;  %v2268_v29 = vrot.slane %v922_v33, 5 }
  0xde   : > { %3355 = vmatmul.mubr.bf16.gmra.mrb[24].mxu1 %v3654_v19  ;;  %v1418_v51 = vor.u32 %v1417_v62, %v1414_v34  ;;  %v489_v61 = vmax.bf16 %v4897_v32, %v4883_v60  ;;  %v491_v50 = vmax.bf16 %v4900_v48, %v4886_v6  ;;  %v645_v26 = vmax.bf16 %v485_v40, %v5274_v38 }
  0xdf   : > { %v1391_v25 = vrot.slane %v1390_v4, 4  ;;  %v2261_v43 = vsel %vm4398_vm4, %v3591_v13, %v2260_v24  ;;  %v2269_v55 = vsel %vm4398_vm4, %v3593_v3, %v2268_v29  ;;  %v647_v33 = vmax.bf16 %v487_v47, %v5277_v53  ;;  %v6611_v13 = vld [vmem:[#allocation2_spill] sm:$0xff] }
  0xe0   : > { %v1419_v49 = vrot.slane %v1418_v51, 4  ;;  %v649_v31 = vmax.bf16 %v489_v61, %v5280_v20  ;;  %v651_v60 = vmax.bf16 %v491_v50, %v5283_v10  ;;  %v789_v6 = vmax.bf16 %v5210_v35, %v5200_v63  ;;  %v5315_v24 = vld [vmem:[%s4196_s27 + $0x520] sm:$0xff]  ;;  %v5318_v61 = vld [vmem:[%s4196_s27 + $0x510] sm:$0x11] }
  0xe1   : > { %v1396_v32 = vsel %vm4434_vm5, %v1391_v25, %v1395_v12  ;;  %v791_v48 = vmax.bf16 %v5213_v23, %v5207_v44  ;;  %v793_v40 = vmax.bf16 %v645_v26, %v5210_v35  ;;  %v795_v47 = vmax.bf16 %v647_v33, %v5213_v23 }
  0xe2   : > { %v1424_v8 = vsel %vm4434_vm5, %v1419_v49, %v1423_v37  ;;  %v1979_v54 = vmax.bf16 %v1396_v32, %v916_v22  ;;  %v917_v16 = vmax.bf16 %v789_v6, %v645_v26  ;;  %v6612_v63 = vmax.bf16 %v6610_v11, %v6611_v13  ;;  %v5329_v32 = vld [vmem:[%s4196_s27 + $0x550] sm:$0x11]  ;;  %v6613_v11 = vld [vmem:[#allocation5_spill] sm:$0xff]  ;;  %v6614_v13 = vld [vmem:[#allocation3_spill] sm:$0xff] }
  0xe3   : > { %v1981_v19 = vmax.bf16 %v1424_v8, %v920_v5  ;;  %v919_v21 = vmax.bf16 %v791_v48, %v647_v33  ;;  %v921_v36 = vmax.bf16 %v793_v40, %v649_v31  ;;  %v923_v44 = vmax.bf16 %v795_v47, %v651_v60  ;;  %v5321_v33 = vld [vmem:[%s4196_s27 + $0x530] sm:$0x11]  ;;  %v5332_v48 = vld [vmem:[%s4196_s27 + $0x560] sm:$0xff] }
  0xe4   : > { %v652_v45 = vmax.bf16 %v6612_v63, %v5296_v30  ;;  %v2494_v12 = vmax.bf16 %v2261_v43, %v1979_v54  ;;  %v1398_v35 = vshrl.u32 %v917_v16, 16  ;;  %v1401_v34 = vshll.u32 %v917_v16, 16  ;;  %v5335_v54 = vld [vmem:[%s4196_s27 + $0x570] sm:$0x11] }
  0xe5   : > { %v3592_v23 = vrot.slane %v917_v16, 9  ;;  %v2496_v62 = vmax.bf16 %v2269_v55, %v1981_v19  ;;  %v1407_v37 = vshll.u32 %v919_v21, 16  ;;  %v1426_v22 = vshrl.u32 %v921_v36, 16  ;;  %v5324_v55 = vld [vmem:[%s4196_s27 + $0x540] sm:$0xff] }
  0xe6   : > { %v1429_v4 = vshll.u32 %v921_v36, 16  ;;  %v1400_v3 = vrot.slane %v1398_v35, 4  ;;  %v1403_v5 = vrot.slane %v1401_v34, 5  ;;  %v1435_v29 = vshll.u32 %v923_v44, 16 }
  0xe7   : > { %v2264_v51 = vrot.slane %v919_v21, 5  ;;  %v3657_v50 = vcombine.high %v2494_v12, %v2496_v62  ;;  %v1409_v26 = vrot.slane %v1407_v37, 5  ;;  %v1428_v25 = vrot.slane %v1426_v22, 4 }
  0xe8   : > { %v1431_v43 = vrot.slane %v1429_v4, 5  ;;  %v1404_v49 = vor.u32 %v1403_v5, %v1400_v3  ;;  %v1437_v31 = vrot.slane %v1435_v29, 5  ;;  %v3594_v6 = vrot.slane %v921_v36, 9  ;;  %v6620_v3 = vld [vmem:[#allocation7_spill] sm:$0xff] }
  0xe9   : > { %v2265_v60 = vsel %vm4398_vm4, %v3592_v23, %v2264_v51  ;;  %3201 = vmatprep.mubr.bf16.mxu0 %v3657_v50  ;;  %v2272_v47 = vrot.slane %v923_v44, 5  ;;  %v3656_v8 = vcombine.low %v2494_v12, %v2496_v62  ;;  %v6615_v63 = vmax.bf16 %v6613_v11, %v6614_v13  ;;  %v6618_v12 = vld [vmem:[#allocation6_spill] sm:$0xff]  ;;  %v6624_v51 = vld [vmem:[#allocation9_spill] sm:$0xff] }
  0xea   : > { %v1432_v40 = vor.u32 %v1431_v43, %v1428_v25  ;;  %v1405_v21 = vrot.slane %v1404_v49, 4  ;;  %v6616_v35 = vmax.bf16 %v4287_v9, %v4250_v57  ;;  %v6617_v23 = vmax.bf16 %v4297_v14, %v4253_v58  ;;  %v6622_v58 = vld [vmem:[#allocation8_spill] sm:$0xff]  ;;  %v5381_v49 = vld [vmem:[%s4196_s27 + $0x518] sm:$0x11] }
  0xeb   : > { %v654_v19 = vmax.bf16 %v6615_v63, %v5318_v61  ;;  %v6619_v62 = vmax.bf16 %v6618_v12, %v4256_v59  ;;  %v2273_v4 = vsel %vm4398_vm4, %v3594_v6, %v2272_v47  ;;  %3202 = vmatmul.mubr.bf16.gmra.mrb[28].mxu0 %v3656_v8  ;;  %v6621_v57 = vmax.bf16 %v6620_v3, %v4265_v0  ;;  %v5370_v59 = vld [vmem:[%s4196_s27 + $0x508] sm:$0xff] }
  0xec   : > { %v656_v34 = vmax.bf16 %v6616_v35, %v5315_v24  ;;  %v658_v44 = vmax.bf16 %v6617_v23, %v5321_v33  ;;  %v1433_v22 = vrot.slane %v1432_v40, 4  ;;  %v6623_v14 = vmax.bf16 %v6622_v58, %v4268_v1  ;;  %v5400_v58 = vld [vmem:[%s4196_s27 + $0x528] sm:$0xff] }
  0xed   : > { %v5353_v37 = vmax.bf16 %v6619_v62, %v5324_v55  ;;  %v5361_v9 = vmax.bf16 %v6621_v57, %v5329_v32  ;;  %v1410_v29 = vsel %vm4434_vm5, %v1405_v21, %v1409_v26  ;;  %v6625_v50 = vmax.bf16 %v6624_v51, %v4271_v2  ;;  %6630 = vst [vmem:[#allocation37_spill] sm:$0xff] %v5400_v58 }
  0xee   : > { %v5367_v5 = vmax.bf16 %v6623_v14, %v5332_v48  ;;  %v796_v0 = vmax.bf16 %v656_v34, %v652_v45  ;;  %v798_v43 = vmax.bf16 %v658_v44, %v654_v19  ;;  %v1438_v1 = vsel %vm4434_vm5, %v1433_v22, %v1437_v31  ;;  %v6627_v31 = vld [vmem:[#allocation24_spill] sm:$0xff]  ;;  %v6628_v19 = vld [vmem:[#allocation17_spill] sm:$0xff] }
  0xef   : > { %v5378_v25 = vmax.bf16 %v6625_v50, %v5335_v54  ;;  %v1980_v6 = vmax.bf16 %v1410_v29, %v917_v16  ;;  %v800_v40 = vmax.bf16 %v5353_v37, %v656_v34  ;;  %v802_v47 = vmax.bf16 %v5361_v9, %v658_v44  ;;  %v5403_v14 = vld [vmem:[%s4196_s27 + $0x538] sm:$0x11]  ;;  %v5406_v29 = vld [vmem:[%s4196_s27 + $0x548] sm:$0xff] }
  0xf0   : > { %v1982_v8 = vmax.bf16 %v1438_v1, %v921_v36  ;;  %v924_v26 = vmax.bf16 %v796_v0, %v5353_v37  ;;  %v926_v11 = vmax.bf16 %v798_v43, %v5361_v9  ;;  %v6626_v2 = vmax.bf16 %v4483_v27, %v4439_v17  ;;  %6631 = vst [vmem:[#allocation34_spill] sm:$0xff] %v5403_v14  ;;  %v5409_v43 = vld [vmem:[%s4196_s27 + $0x558] sm:$0x11] }
  0xf1   : > { %v2495_v13 = vmax.bf16 %v2265_v60, %v1980_v6  ;;  %v928_v63 = vmax.bf16 %v800_v40, %v5367_v5  ;;  %v930_v16 = vmax.bf16 %v802_v47, %v5378_v25  ;;  %v6629_v36 = vmax.bf16 %v6627_v31, %v6628_v19  ;;  %6632 = vst [vmem:[#allocation38_spill] sm:$0xff] %v5406_v29  ;;  %v6636_v31 = vld [vmem:[#allocation25_spill] sm:$0xff]  ;;  %v6637_v19 = vld [vmem:[#allocation18_spill] sm:$0xff] }
  0xf2   : > { %v653_v45 = vmax.bf16 %v6626_v2, %v5370_v59  ;;  %v2497_v35 = vmax.bf16 %v2273_v4, %v1982_v8  ;;  %v1440_v34 = vshrl.u32 %v924_v26, 16  ;;  %v1443_v23 = vshll.u32 %v924_v26, 16  ;;  %6633 = vst [vmem:[#allocation39_spill] sm:$0xff] %v5409_v43  ;;  %v5412_v8 = vld [vmem:[%s4196_s27 + $0x568] sm:$0xff]  ;;  %v5415_v2 = vld [vmem:[%s4196_s27 + $0x578] sm:$0x11] }
  0xf3   : > { %v655_v21 = vmax.bf16 %v6629_v36, %v5381_v49  ;;  %v1449_v44 = vshll.u32 %v926_v11, 16  ;;  %v1468_v17 = vshrl.u32 %v928_v63, 16  ;;  %v1471_v27 = vshll.u32 %v928_v63, 16  ;;  %6634 = vst [vmem:[#allocation43_spill] sm:$0xff] %v5412_v8  ;;  %6635 = vst [vmem:[#allocation40_spill] sm:$0xff] %v5415_v2 }
  0xf4   : > { %v1477_v60 = vshll.u32 %v930_v16, 16  ;;  %v3595_v12 = vrot.slane %v924_v26, 9  ;;  %v3659_v62 = vcombine.high %v2495_v13, %v2497_v35  ;;  %v3658_v22 = vcombine.low %v2495_v13, %v2497_v35 }
  0xf5   : > { %v1442_v3 = vrot.slane %v1440_v34, 4  ;;  %v1445_v57 = vrot.slane %v1443_v23, 5  ;;  %v1451_v4 = vrot.slane %v1449_v44, 5  ;;  %v1470_v51 = vrot.slane %v1468_v17, 4  ;;  %v6639_v34 = vld [vmem:[#allocation26_spill] sm:$0xff]  ;;  %v6640_v23 = vld [vmem:[#allocation19_spill] sm:$0xff] }
  0xf6   : > { %v1473_v50 = vrot.slane %v1471_v27, 5  ;;  %v1479_v0 = vrot.slane %v1477_v60, 5  ;;  %3362 = vmatprep.mubr.bf16.mxu1 %v3659_v62  ;;  %v2276_v6 = vrot.slane %v926_v11, 5  ;;  %v3597_v40 = vrot.slane %v928_v63, 9  ;;  %v6642_v11 = vld [vmem:[#allocation27_spill] sm:$0xff]  ;;  %v6643_v27 = vld [vmem:[#allocation20_spill] sm:$0xff] }
  0xf7   : > { %v1446_v1 = vor.u32 %v1445_v57, %v1442_v3  ;;  %v2284_v47 = vrot.slane %v930_v16, 5  ;;  %3363 = vmatmul.mubr.bf16.gmra.mrb[28].mxu1 %v3658_v22  ;;  %v6638_v36 = vmax.bf16 %v6636_v31, %v6637_v19  ;;  %v6641_v44 = vmax.bf16 %v6639_v34, %v6640_v23  ;;  %v6645_v57 = vld [vmem:[#allocation28_spill] sm:$0xff]  ;;  %v6649_v34 = vld [vmem:[#allocation22_spill] sm:$0xff] }
  0xf8   : > { %v1474_v13 = vor.u32 %v1473_v50, %v1470_v51  ;;  %v6644_v16 = vmax.bf16 %v6642_v11, %v6643_v27  ;;  %v2277_v22 = vsel %vm4398_vm4, %v3595_v12, %v2276_v6  ;;  %v6646_v51 = vld [vmem:[#allocation21_spill] sm:$0xff]  ;;  %v6652_v11 = vld [vmem:[#allocation23_spill] sm:$0xff] }
  0xf9   : > { %v657_v35 = vmax.bf16 %v6638_v36, %v5400_v58  ;;  %v659_v17 = vmax.bf16 %v6641_v44, %v5403_v14  ;;  %v1447_v62 = vrot.slane %v1446_v1, 4  ;;  %v2285_v3 = vsel %vm4398_vm4, %v3597_v40, %v2284_v47  ;;  %v6648_v36 = vld [vmem:[#allocation29_spill] sm:$0xff]  ;;  %v6651_v1 = vld [vmem:[#allocation30_spill] sm:$0xff]  ;;  %v3999_v14 = vld [vmem:[%s4196_s27 + $0x330] sm:$0x11] }
  0xfa   : > { %v5429_v60 = vmax.bf16 %v6644_v16, %v5406_v29  ;;  %v6647_v50 = vmax.bf16 %v6645_v57, %v6646_v51  ;;  %v1475_v19 = vrot.slane %v1474_v13, 4  ;;  %v6650_v23 = vmax.bf16 %v6648_v36, %v6649_v34  ;;  %v3996_v36 = vld [vmem:[%s4196_s27 + $0x300] sm:$0xff] }
  0xfb   : > { %v6653_v12 = vmax.bf16 %v6651_v1, %v6652_v11  ;;  %v797_v40 = vmax.bf16 %v657_v35, %v653_v45  ;;  %v1452_v47 = vsel %vm4434_vm5, %v1447_v62, %v1451_v4  ;;  %v799_v27 = vmax.bf16 %v659_v17, %v655_v21  ;;  %v6654_v34 = vld [vmem:[#allocation10_spill] sm:$0xff] }
  0xfc   : > { %v5439_v31 = vmax.bf16 %v6647_v50, %v5409_v43  ;;  %v5445_v44 = vmax.bf16 %v6650_v23, %v5412_v8  ;;  %v801_v16 = vmax.bf16 %v5429_v60, %v657_v35  ;;  %v1480_v57 = vsel %vm4434_vm5, %v1475_v19, %v1479_v0  ;;  %v5474_v8 = vld [vmem:[%s4196_s27 + $0x5a0] sm:$0xff] }
  0xfd   : > { %v5451_v6 = vmax.bf16 %v6653_v12, %v5415_v2  ;;  %v1983_v51 = vmax.bf16 %v1452_v47, %v924_v26  ;;  %v925_v50 = vmax.bf16 %v797_v40, %v5429_v60  ;;  %v508_v23 = vmax.bf16 %v3996_v36, %v6654_v34  ;;  %6656 = vst [vmem:[#allocation41_spill] sm:$0xff] %v5474_v8 }
  0xfe   : > { %v803_v13 = vmax.bf16 %v5439_v31, %v659_v17  ;;  %v1985_v1 = vmax.bf16 %v1480_v57, %v928_v63  ;;  %v927_v45 = vmax.bf16 %v799_v27, %v5439_v31  ;;  %v929_v11 = vmax.bf16 %v801_v16, %v5445_v44  ;;  %v5466_v57 = vld [vmem:[%s4196_s27 + $0x580] sm:$0xff] }
  0xff   : > { %v2498_v4 = vmax.bf16 %v2277_v22, %v1983_v51  ;;  %v1454_v35 = vshrl.u32 %v925_v50, 16  ;;  %v1457_v17 = vshll.u32 %v925_v50, 16  ;;  %v3596_v62 = vrot.slane %v925_v50, 9 }
 0x100   : > { %v931_v21 = vmax.bf16 %v803_v13, %v5451_v6  ;;  %v2500_v12 = vmax.bf16 %v2285_v3, %v1985_v1  ;;  %v1463_v0 = vshll.u32 %v927_v45, 16  ;;  %v1482_v26 = vshrl.u32 %v929_v11, 16 }
 0x101   : > { %v1485_v19 = vshll.u32 %v929_v11, 16  ;;  %v1456_v40 = vrot.slane %v1454_v35, 4  ;;  %v1459_v47 = vrot.slane %v1457_v17, 5  ;;  %v2280_v63 = vrot.slane %v927_v45, 5  ;;  %v5471_v35 = vld [vmem:[%s4196_s27 + $0x590] sm:$0x11] }
 0x102   : > { %v1491_v36 = vshll.u32 %v931_v21, 16  ;;  %v3661_v27 = vcombine.high %v2498_v4, %v2500_v12  ;;  %v1465_v16 = vrot.slane %v1463_v0, 5  ;;  %v1484_v13 = vrot.slane %v1482_v26, 4  ;;  %6655 = vst [vmem:[#allocation44_spill] sm:$0xff] %v5471_v35  ;;  %v5477_v0 = vld [vmem:[%s4196_s27 + $0x5b0] sm:$0x11] }
 0x103   : > { %v1487_v22 = vrot.slane %v1485_v19, 5  ;;  %v1460_v51 = vor.u32 %v1459_v47, %v1456_v40  ;;  %v2281_v34 = vsel %vm4398_vm4, %v3596_v62, %v2280_v63  ;;  %v3598_v1 = vrot.slane %v929_v11, 9  ;;  %6657 = vst [vmem:[#allocation45_spill] sm:$0xff] %v5477_v0  ;;  %v3997_v26 = vld [vmem:[%s4196_s27 + $0x310] sm:$0x11]  ;;  %v6658_v19 = vld [vmem:[#allocation11_spill] sm:$0xff] }
 0x104   : > { %v1493_v3 = vrot.slane %v1491_v36, 5  ;;  %3209 = vmatprep.mubr.bf16.mxu0 %v3661_v27  ;;  %v2288_v17 = vrot.slane %v931_v21, 5  ;;  %v3660_v2 = vcombine.low %v2498_v4, %v2500_v12  ;;  %v510_v43 = vmax.bf16 %v3997_v26, %v6658_v19  ;;  %v3998_v47 = vld [vmem:[%s4196_s27 + $0x320] sm:$0xff]  ;;  %v6659_v36 = vld [vmem:[#allocation12_spill] sm:$0xff] }
 0x105   : > { %v1488_v45 = vor.u32 %v1487_v22, %v1484_v13  ;;  %v1461_v40 = vrot.slane %v1460_v51, 4  ;;  %v512_v29 = vmax.bf16 %v3998_v47, %v6659_v36  ;;  %v6660_v62 = vld [vmem:[#allocation14_spill] sm:$0xff]  ;;  %v5486_v58 = vmax.bf16 %v508_v23, %v5466_v57 }
 0x106   : > { %v514_v63 = vmax.bf16 %v3999_v14, %v6660_v62  ;;  %v2289_v21 = vsel %vm4398_vm4, %v3598_v1, %v2288_v17  ;;  %3210 = vmatmul.mubr.bf16.gmra.mrb[32].mxu0 %v3660_v2  ;;  %v5491_v4 = vmax.bf16 %v510_v43, %v5471_v35  ;;  %v804_v12 = vmax.bf16 %v5367_v5, %v5353_v37  ;;  %v6661_v17 = vld [vmem:[#allocation13_spill] sm:$0xff] }
 0x107   : > { %v1489_v27 = vrot.slane %v1488_v45, 4  ;;  %v1466_v13 = vsel %vm4434_vm5, %v1461_v40, %v1465_v16  ;;  %v5498_v14 = vmax.bf16 %v512_v29, %v5474_v8  ;;  %v806_v22 = vmax.bf16 %v5378_v25, %v5361_v9  ;;  %v4000_v45 = vld [vmem:[%s4196_s27 + $0x308] sm:$0xff]  ;;  %v4003_v35 = vld [vmem:[%s4196_s27 + $0x338] sm:$0x11] }
 0x108   : > { %v5501_v23 = vmax.bf16 %v514_v63, %v5477_v0  ;;  %v1984_v2 = vmax.bf16 %v1466_v13, %v925_v50  ;;  %v808_v37 = vmax.bf16 %v5486_v58, %v5367_v5  ;;  %v810_v16 = vmax.bf16 %v5491_v4, %v5378_v25  ;;  %v6662_v40 = vld [vmem:[#allocation15_spill] sm:$0xff] }
 0x109   : > { %v1494_v43 = vsel %vm4434_vm5, %v1489_v27, %v1493_v3  ;;  %v932_v29 = vmax.bf16 %v804_v12, %v5486_v58  ;;  %v934_v1 = vmax.bf16 %v806_v22, %v5491_v4  ;;  %v509_v26 = vmax.bf16 %v4000_v45, %v6661_v17  ;;  %v4001_v3 = vld [vmem:[%s4196_s27 + $0x318] sm:$0x11]  ;;  %v5526_v8 = vld [vmem:[%s4196_s27 + $0x5a8] sm:$0xff] }
 0x10a   : > { %v1986_v51 = vmax.bf16 %v1494_v43, %v929_v11  ;;  %v2499_v19 = vmax.bf16 %v2281_v34, %v1984_v2  ;;  %v936_v9 = vmax.bf16 %v808_v37, %v5498_v14  ;;  %v938_v50 = vmax.bf16 %v810_v16, %v5501_v23  ;;  %v5520_v2 = vld [vmem:[%s4196_s27 + $0x588] sm:$0xff]  ;;  %v5523_v45 = vld [vmem:[%s4196_s27 + $0x598] sm:$0x11]  ;;  %6665 = vst [vmem:[#allocation47_spill] sm:$0xff] %v5526_v8 }
 0x10b   : > { %v511_v5 = vmax.bf16 %v4001_v3, %v6662_v40  ;;  %v1496_v36 = vshrl.u32 %v932_v29, 16  ;;  %v1499_v25 = vshll.u32 %v932_v29, 16  ;;  %v1505_v11 = vshll.u32 %v934_v1, 16  ;;  %6663 = vst [vmem:[#allocation42_spill] sm:$0xff] %v5520_v2  ;;  %6664 = vst [vmem:[#allocation46_spill] sm:$0xff] %v5523_v45 }
 0x10c   : > { %v2501_v47 = vmax.bf16 %v2289_v21, %v1986_v51  ;;  %v1524_v62 = vshrl.u32 %v936_v9, 16  ;;  %v1527_v63 = vshll.u32 %v936_v9, 16  ;;  %v1533_v27 = vshll.u32 %v938_v50, 16 }
 0x10d   : > { %v3599_v12 = vrot.slane %v932_v29, 9  ;;  %v1498_v22 = vrot.slane %v1496_v36, 4  ;;  %v1501_v43 = vrot.slane %v1499_v25, 5  ;;  %v1507_v37 = vrot.slane %v1505_v11, 5  ;;  %v4002_v36 = vld [vmem:[%s4196_s27 + $0x328] sm:$0xff]  ;;  %v6667_v25 = vld [vmem:[#allocation16_spill] sm:$0xff] }
 0x10e   : > { %v3663_v13 = vcombine.high %v2499_v19, %v2501_v47  ;;  %v3662_v34 = vcombine.low %v2499_v19, %v2501_v47  ;;  %v1526_v21 = vrot.slane %v1524_v62, 4  ;;  %v1529_v16 = vrot.slane %v1527_v63, 5  ;;  %v5529_v19 = vld [vmem:[%s4196_s27 + $0x5b8] sm:$0x11]  ;;  %v6668_v62 = vld [vmem:[#allocation31_spill] sm:$0xff] }
 0x10f   : > { %v1535_v51 = vrot.slane %v1533_v27, 5  ;;  %v1502_v17 = vor.u32 %v1501_v43, %v1498_v22  ;;  %v2292_v3 = vrot.slane %v934_v1, 5  ;;  %v3601_v40 = vrot.slane %v936_v9, 9  ;;  %6666 = vst [vmem:[#allocation51_spill] sm:$0xff] %v5529_v19 }
 0x110   : > { %3370 = vmatprep.mubr.bf16.mxu1 %v3663_v13  ;;  %v2300_v0 = vrot.slane %v938_v50, 5  ;;  %v1530_v47 = vor.u32 %v1529_v16, %v1526_v21  ;;  %v513_v11 = vmax.bf16 %v4002_v36, %v6667_v25  ;;  %v515_v63 = vmax.bf16 %v4003_v35, %v6668_v62 }
 0x111   : > { %3371 = vmatmul.mubr.bf16.gmra.mrb[32].mxu1 %v3662_v34  ;;  %v5536_v27 = vmax.bf16 %v509_v26, %v5520_v2  ;;  %v1503_v13 = vrot.slane %v1502_v17, 4  ;;  %v2293_v1 = vsel %vm4398_vm4, %v3599_v12, %v2292_v3  ;;  %v5543_v34 = vmax.bf16 %v511_v5, %v5523_v45  ;;  %v4007_v45 = vld [vmem:[%s4196_s27 + $0x370] sm:$0x11] }
 0x112   : > { %v2301_v50 = vsel %vm4398_vm4, %v3601_v40, %v2300_v0  ;;  %v1531_v22 = vrot.slane %v1530_v47, 4  ;;  %v5546_v43 = vmax.bf16 %v513_v11, %v5526_v8  ;;  %v5549_v35 = vmax.bf16 %v515_v63, %v5529_v19  ;;  %v4004_v40 = vld [vmem:[%s4196_s27 + $0x340] sm:$0xff] }
 0x113   : > { %v805_v26 = vmax.bf16 %v5445_v44, %v5429_v60  ;;  %v1508_v21 = vsel %vm4434_vm5, %v1503_v13, %v1507_v37  ;;  %v807_v12 = vmax.bf16 %v5451_v6, %v5439_v31  ;;  %v809_v0 = vmax.bf16 %v5536_v27, %v5445_v44 }
 0x114   : > { %v811_v5 = vmax.bf16 %v5543_v34, %v5451_v6  ;;  %v1536_v16 = vsel %vm4434_vm5, %v1531_v22, %v1535_v51  ;;  %v1987_v17 = vmax.bf16 %v1508_v21, %v932_v29  ;;  %v516_v60 = vmax.bf16 %v4004_v40, %v5130_v7  ;;  %v5575_v40 = vld [vmem:[%s4196_s27 + $0x5d0] sm:$0x11] }
 0x115   : > { %v933_v3 = vmax.bf16 %v805_v26, %v5536_v27  ;;  %v1989_v47 = vmax.bf16 %v1536_v16, %v936_v9  ;;  %v935_v37 = vmax.bf16 %v807_v12, %v5543_v34  ;;  %v937_v31 = vmax.bf16 %v809_v0, %v5546_v43  ;;  %v5570_v0 = vld [vmem:[%s4196_s27 + $0x5c0] sm:$0xff] }
 0x116   : > { %v939_v36 = vmax.bf16 %v811_v5, %v5549_v35  ;;  %v2502_v44 = vmax.bf16 %v2293_v1, %v1987_v17  ;;  %v5590_v2 = vmax.bf16 %v516_v60, %v5570_v0 }
 0x117   : > { %v1510_v25 = vshrl.u32 %v933_v3, 16  ;;  %v1513_v6 = vshll.u32 %v933_v3, 16  ;;  %v3600_v11 = vrot.slane %v933_v3, 9  ;;  %v2504_v62 = vmax.bf16 %v2301_v50, %v1989_v47 }
 0x118   : > { %v1519_v51 = vshll.u32 %v935_v37, 16  ;;  %v1538_v29 = vshrl.u32 %v937_v31, 16  ;;  %v1541_v63 = vshll.u32 %v937_v31, 16  ;;  %v1547_v7 = vshll.u32 %v939_v36, 16 }
 0x119   : > { %v1512_v13 = vrot.slane %v1510_v25, 4  ;;  %v1515_v22 = vrot.slane %v1513_v6, 5  ;;  %v2296_v9 = vrot.slane %v935_v37, 5  ;;  %v3665_v26 = vcombine.high %v2502_v44, %v2504_v62  ;;  %v5578_v6 = vld [vmem:[%s4196_s27 + $0x5e0] sm:$0xff] }
 0x11a   : > { %v1521_v21 = vrot.slane %v1519_v51, 5  ;;  %v1540_v12 = vrot.slane %v1538_v29, 4  ;;  %v1543_v1 = vrot.slane %v1541_v63, 5  ;;  %v1549_v50 = vrot.slane %v1547_v7, 5  ;;  %v5581_v51 = vld [vmem:[%s4196_s27 + $0x5f0] sm:$0x11] }
 0x11b   : > { %v1516_v5 = vor.u32 %v1515_v22, %v1512_v13  ;;  %v2297_v16 = vsel %vm4398_vm4, %v3600_v11, %v2296_v9  ;;  %v3602_v17 = vrot.slane %v937_v31, 9  ;;  %3217 = vmatprep.mubr.bf16.mxu0 %v3665_v26  ;;  %v2304_v37 = vrot.slane %v939_v36, 5  ;;  %v4005_v29 = vld [vmem:[%s4196_s27 + $0x350] sm:$0x11]  ;;  %v6669_v63 = vld [vmem:[#allocation35_spill] sm:$0xff]  ;;  %v4006_v22 = vld [vmem:[%s4196_s27 + $0x360] sm:$0xff] }
 0x11c   : > { %v1544_v47 = vor.u32 %v1543_v1, %v1540_v12  ;;  %v3664_v25 = vcombine.low %v2502_v44, %v2504_v62  ;;  %v518_v19 = vmax.bf16 %v4005_v29, %v6669_v63  ;;  %v6670_v7 = vld [vmem:[#allocation32_spill] sm:$0xff]  ;;  %v812_v62 = vmax.bf16 %v5498_v14, %v5486_v58 }
 0x11d   : > { %v1517_v13 = vrot.slane %v1516_v5, 4  ;;  %v520_v8 = vmax.bf16 %v4006_v22, %v6670_v7  ;;  %v6671_v11 = vld [vmem:[#allocation36_spill] sm:$0xff]  ;;  %v2305_v36 = vsel %vm4398_vm4, %v3602_v17, %v2304_v37  ;;  %v814_v1 = vmax.bf16 %v5501_v23, %v5491_v4  ;;  %v4008_v37 = vld [vmem:[%s4196_s27 + $0x348] sm:$0xff] }
 0x11e   : > { %v522_v9 = vmax.bf16 %v4007_v45, %v6671_v11  ;;  %v1545_v26 = vrot.slane %v1544_v47, 4  ;;  %3218 = vmatmul.mubr.bf16.gmra.mrb[36].mxu0 %v3664_v25  ;;  %v5595_v44 = vmax.bf16 %v518_v19, %v5575_v40  ;;  %v816_v58 = vmax.bf16 %v5590_v2, %v5498_v14 }
 0x11f   : > { %v1522_v12 = vsel %vm4434_vm5, %v1517_v13, %v1521_v21  ;;  %v5602_v45 = vmax.bf16 %v520_v8, %v5578_v6  ;;  %v940_v8 = vmax.bf16 %v812_v62, %v5590_v2  ;;  %v517_v25 = vmax.bf16 %v4008_v37, %v5184_v41 }
 0x120   : > { %v5605_v60 = vmax.bf16 %v522_v9, %v5581_v51  ;;  %v1550_v19 = vsel %vm4434_vm5, %v1545_v26, %v1549_v50  ;;  %v1988_v5 = vmax.bf16 %v1522_v12, %v933_v3  ;;  %v818_v21 = vmax.bf16 %v5595_v44, %v5501_v23  ;;  %v4009_v50 = vld [vmem:[%s4196_s27 + $0x358] sm:$0x11]  ;;  %v5624_v12 = vld [vmem:[%s4196_s27 + $0x5c8] sm:$0xff] }
 0x121   : > { %v1990_v17 = vmax.bf16 %v1550_v19, %v937_v31  ;;  %v942_v47 = vmax.bf16 %v814_v1, %v5595_v44  ;;  %v944_v4 = vmax.bf16 %v816_v58, %v5602_v45  ;;  %v519_v14 = vmax.bf16 %v4009_v50, %v5187_v52  ;;  %v5630_v50 = vld [vmem:[%s4196_s27 + $0x5e8] sm:$0xff] }
 0x122   : > { %v2503_v29 = vmax.bf16 %v2297_v16, %v1988_v5  ;;  %v946_v3 = vmax.bf16 %v818_v21, %v5605_v60  ;;  %v1552_v13 = vshrl.u32 %v940_v8, 16  ;;  %v1555_v23 = vshll.u32 %v940_v8, 16  ;;  %v5627_v5 = vld [vmem:[%s4196_s27 + $0x5d8] sm:$0x11] }
 0x123   : > { %v2505_v63 = vmax.bf16 %v2305_v36, %v1990_v17  ;;  %v1561_v31 = vshll.u32 %v942_v47, 16  ;;  %v1580_v22 = vshrl.u32 %v944_v4, 16  ;;  %v1583_v7 = vshll.u32 %v944_v4, 16 }
 0x124   : > { %v1589_v11 = vshll.u32 %v946_v3, 16  ;;  %v3603_v9 = vrot.slane %v940_v8, 9  ;;  %v1554_v26 = vrot.slane %v1552_v13, 4  ;;  %v1557_v62 = vrot.slane %v1555_v23, 5  ;;  %v4010_v13 = vld [vmem:[%s4196_s27 + $0x368] sm:$0xff] }
 0x125   : > { %v3667_v41 = vcombine.high %v2503_v29, %v2505_v63  ;;  %v3666_v16 = vcombine.low %v2503_v29, %v2505_v63  ;;  %v1563_v1 = vrot.slane %v1561_v31, 5  ;;  %v1582_v52 = vrot.slane %v1580_v22, 4  ;;  %v5633_v29 = vld [vmem:[%s4196_s27 + $0x5f8] sm:$0x11] }
 0x126   : > { %v1585_v36 = vrot.slane %v1583_v7, 5  ;;  %v1591_v19 = vrot.slane %v1589_v11, 5  ;;  %v1558_v58 = vor.u32 %v1557_v62, %v1554_v26  ;;  %v2308_v21 = vrot.slane %v942_v47, 5  ;;  %6672 = vst [vmem:[#allocation48_spill] sm:$0xff] %v5633_v29  ;;  %v4011_v31 = vld [vmem:[%s4196_s27 + $0x378] sm:$0x11] }
 0x127   : > { %3378 = vmatprep.mubr.bf16.mxu1 %v3667_v41  ;;  %v3605_v17 = vrot.slane %v944_v4, 9  ;;  %v2316_v37 = vrot.slane %v946_v3, 5  ;;  %v521_v23 = vmax.bf16 %v4010_v13, %v5190_v42  ;;  %v6673_v22 = vld [vmem:[#allocation33_spill] sm:$0xff]  ;;  %v5640_v11 = vmax.bf16 %v517_v25, %v5624_v12 }
 0x128   : > { %3379 = vmatmul.mubr.bf16.gmra.mrb[36].mxu1 %v3666_v16  ;;  %v1586_v63 = vor.u32 %v1585_v36, %v1582_v52  ;;  %v523_v7 = vmax.bf16 %v4011_v31, %v6673_v22  ;;  %v1559_v41 = vrot.slane %v1558_v58, 4  ;;  %v2309_v47 = vsel %vm4398_vm4, %v3603_v9, %v2308_v21 }
 0x129   : > { %v2317_v3 = vsel %vm4398_vm4, %v3605_v17, %v2316_v37  ;;  %v5647_v16 = vmax.bf16 %v519_v14, %v5627_v5  ;;  %v5650_v42 = vmax.bf16 %v521_v23, %v5630_v50  ;;  %v813_v25 = vmax.bf16 %v5546_v43, %v5536_v27  ;;  %v4012_v37 = vld [vmem:[%s4196_s27 + $0x380] sm:$0xff] }
 0x12a   : > { %v1587_v26 = vrot.slane %v1586_v63, 4  ;;  %v5653_v62 = vmax.bf16 %v523_v7, %v5633_v29  ;;  %v1564_v52 = vsel %vm4434_vm5, %v1559_v41, %v1563_v1  ;;  %v815_v9 = vmax.bf16 %v5549_v35, %v5543_v34  ;;  %v4015_v29 = vld [vmem:[%s4196_s27 + $0x3b0] sm:$0x11] }
 0x12b   : > { %v817_v14 = vmax.bf16 %v5640_v11, %v5546_v43  ;;  %v819_v36 = vmax.bf16 %v5647_v16, %v5549_v35  ;;  %v1991_v21 = vmax.bf16 %v1564_v52, %v940_v8  ;;  %v941_v17 = vmax.bf16 %v813_v25, %v5640_v11 }
 0x12c   : > { %v1592_v58 = vsel %vm4434_vm5, %v1587_v26, %v1591_v19  ;;  %v524_v27 = vmax.bf16 %v4012_v37, %v5234_v39  ;;  %v943_v1 = vmax.bf16 %v815_v9, %v5647_v16  ;;  %v5679_v37 = vld [vmem:[%s4196_s27 + $0x610] sm:$0x11] }
 0x12d   : > { %v1993_v63 = vmax.bf16 %v1592_v58, %v944_v4  ;;  %v945_v34 = vmax.bf16 %v817_v14, %v5650_v42  ;;  %v947_v13 = vmax.bf16 %v819_v36, %v5653_v62  ;;  %v2506_v43 = vmax.bf16 %v2309_v47, %v1991_v21  ;;  %v5674_v14 = vld [vmem:[%s4196_s27 + $0x600] sm:$0xff] }
 0x12e   : > { %v1566_v23 = vshrl.u32 %v941_v17, 16  ;;  %v1569_v35 = vshll.u32 %v941_v17, 16  ;;  %v3604_v31 = vrot.slane %v941_v17, 9  ;;  %v1575_v19 = vshll.u32 %v943_v1, 16 }
 0x12f   : > { %v2508_v22 = vmax.bf16 %v2317_v3, %v1993_v63  ;;  %v1594_v8 = vshrl.u32 %v945_v34, 16  ;;  %v1597_v7 = vshll.u32 %v945_v34, 16  ;;  %v1603_v39 = vshll.u32 %v947_v13, 16 }
 0x130   : > { %v1568_v41 = vrot.slane %v1566_v23, 4  ;;  %v1571_v26 = vrot.slane %v1569_v35, 5  ;;  %v2312_v4 = vrot.slane %v943_v1, 5  ;;  %v1577_v52 = vrot.slane %v1575_v19, 5  ;;  %v5682_v35 = vld [vmem:[%s4196_s27 + $0x620] sm:$0xff] }
 0x131   : > { %v3669_v25 = vcombine.high %v2506_v43, %v2508_v22  ;;  %v1596_v9 = vrot.slane %v1594_v8, 4  ;;  %v1599_v47 = vrot.slane %v1597_v7, 5  ;;  %v1605_v3 = vrot.slane %v1603_v39, 5  ;;  %v5685_v19 = vld [vmem:[%s4196_s27 + $0x630] sm:$0x11] }
 0x132   : > { %v1572_v36 = vor.u32 %v1571_v26, %v1568_v41  ;;  %v2313_v58 = vsel %vm4398_vm4, %v3604_v31, %v2312_v4  ;;  %v3606_v21 = vrot.slane %v945_v34, 9  ;;  %v2320_v1 = vrot.slane %v947_v13, 5  ;;  %v4013_v8 = vld [vmem:[%s4196_s27 + $0x390] sm:$0x11]  ;;  %v4014_v26 = vld [vmem:[%s4196_s27 + $0x3a0] sm:$0xff] }
 0x133   : > { %3225 = vmatprep.mubr.bf16.mxu0 %v3669_v25  ;;  %v1600_v63 = vor.u32 %v1599_v47, %v1596_v9  ;;  %v3668_v23 = vcombine.low %v2506_v43, %v2508_v22  ;;  %v526_v7 = vmax.bf16 %v4013_v8, %v5239_v56  ;;  %v528_v39 = vmax.bf16 %v4014_v26, %v5242_v15 }
 0x134   : > { %v1573_v41 = vrot.slane %v1572_v36, 4  ;;  %v530_v31 = vmax.bf16 %v4015_v29, %v5245_v46  ;;  %v684_v4 = vmax.bf16 %v524_v27, %v5674_v14  ;;  %v2321_v13 = vsel %vm4398_vm4, %v3606_v21, %v2320_v1  ;;  %v5711_v21 = vpop.f32.mrb[0].mxu1 }
 0x135   : > { %v1601_v25 = vrot.slane %v1600_v63, 4  ;;  %3226 = vmatmul.mubr.bf16.gmra.mrb[40].mxu0 %v3668_v23  ;;  %v686_v43 = vmax.bf16 %v526_v7, %v5679_v37  ;;  %v820_v56 = vmax.bf16 %v5602_v45, %v5590_v2  ;;  %v688_v15 = vmax.bf16 %v528_v39, %v5682_v35  ;;  %v5709_v2 = vpop.f32.mrb[0].mxu0  ;;  %6674 = vst [vmem:[#allocation52_spill] sm:$0xff] %v5711_v21  ;;  %v4016_v23 = vld [vmem:[%s4196_s27 + $0x388] sm:$0xff] }
 0x136   : > { %v1578_v22 = vsel %vm4434_vm5, %v1573_v41, %v1577_v52  ;;  %v690_v46 = vmax.bf16 %v530_v31, %v5685_v19  ;;  %v822_v29 = vmax.bf16 %v5605_v60, %v5595_v44  ;;  %v824_v47 = vmax.bf16 %v684_v4, %v5602_v45  ;;  %v5717_v8 = vpop.f32.mrb[1].mxu0  ;;  %v4017_v41 = vld [vmem:[%s4196_s27 + $0x398] sm:$0x11] }
 0x137   : > { %v1606_v27 = vsel %vm4434_vm5, %v1601_v25, %v1605_v3  ;;  %v1992_v9 = vmax.bf16 %v1578_v22, %v941_v17  ;;  %v826_v36 = vmax.bf16 %v686_v43, %v5605_v60  ;;  %v5713_v63 = vmax.bf16 %v820_v56, %v684_v4  ;;  %v5719_v3 = vpop.f32.mrb[1].mxu1  ;;  %v5723_v26 = vpop.f32.mrb[2].mxu0 }
 0x138   : > { %v1994_v52 = vmax.bf16 %v1606_v27, %v945_v34  ;;  %v950_v1 = vmax.bf16 %v822_v29, %v686_v43  ;;  %v525_v44 = vmax.bf16 %v4016_v23, %v5274_v38  ;;  %6675 = vst [vmem:[#allocation50_spill] sm:$0xff] %v5719_v3  ;;  %v952_v7 = vmax.bf16 %v824_v47, %v688_v15  ;;  %v5725_v39 = vpop.f32.mrb[2].mxu1  ;;  %v5729_v25 = vpop.f32.mrb[3].mxu0  ;;  %v5740_v47 = vld [vmem:[%s4196_s27 + $0x618] sm:$0x11] }
 0x139   : > { %v2507_v17 = vmax.bf16 %v2313_v58, %v1992_v9  ;;  %v954_v45 = vmax.bf16 %v826_v36, %v690_v46  ;;  %v527_v60 = vmax.bf16 %v4017_v41, %v5277_v53  ;;  %6676 = vst [vmem:[#allocation53_spill] sm:$0xff] %v5723_v26  ;;  %6677 = vst [vmem:[#allocation49_spill] sm:$0xff] %v5725_v39  ;;  %v1608_v31 = vshrl.u32 %v5713_v63, 16  ;;  %v5731_v58 = vpop.f32.mrb[3].mxu1  ;;  %v5734_v15 = vpop.f32.mrb[4].mxu0  ;;  %v5737_v9 = vld [vmem:[%s4196_s27 + $0x608] sm:$0xff] }
 0x13a   : > { %v2509_v34 = vmax.bf16 %v2321_v13, %v1994_v52  ;;  %v1611_v38 = vshll.u32 %v5713_v63, 16  ;;  %v1617_v4 = vshll.u32 %v950_v1, 16  ;;  %6678 = vst [vmem:[#allocation54_spill] sm:$0xff] %v5729_v25  ;;  %6679 = vst [vmem:[#allocation55_spill] sm:$0xff] %v5731_v58  ;;  %v1636_v43 = vshrl.u32 %v952_v7, 16  ;;  %v5742_v36 = vpop.f32.mrb[5].mxu0 }
 0x13b   : > { %v1639_v56 = vshll.u32 %v952_v7, 16  ;;  %v1645_v53 = vshll.u32 %v954_v45, 16  ;;  %v3607_v22 = vrot.slane %v5713_v63, 9  ;;  %6680 = vst [vmem:[#allocation59_spill] sm:$0xff] %v5734_v15  ;;  %v1610_v29 = vrot.slane %v1608_v31, 4  ;;  %6681 = vst [vmem:[#allocation56_spill] sm:$0xff] %v5742_v36 }
 0x13c   : > { %v3671_v46 = vcombine.high %v2507_v17, %v2509_v34  ;;  %v3670_v13 = vcombine.low %v2507_v17, %v2509_v34  ;;  %v1613_v27 = vrot.slane %v1611_v38, 5  ;;  %v1619_v52 = vrot.slane %v1617_v4, 5  ;;  %v5745_v39 = vld [vmem:[%s4196_s27 + $0x628] sm:$0xff]  ;;  %v5747_v15 = vpop.f32.mrb[6].mxu0  ;;  %v5750_v25 = vld [vmem:[%s4196_s27 + $0x638] sm:$0x11] }
 0x13d   : > { %v1638_v23 = vrot.slane %v1636_v43, 4  ;;  %v1641_v41 = vrot.slane %v1639_v56, 5  ;;  %v1647_v58 = vrot.slane %v1645_v53, 5  ;;  %6682 = vst [vmem:[#allocation60_spill] sm:$0xff] %v5747_v15  ;;  %v2324_v34 = vrot.slane %v950_v1, 5  ;;  %v5752_v26 = vpop.f32.mrb[7].mxu0 }
 0x13e   : > { %3386 = vmatprep.mubr.bf16.mxu1 %v3671_v46  ;;  %v1614_v17 = vor.u32 %v1613_v27, %v1610_v29  ;;  %v3609_v31 = vrot.slane %v952_v7, 9  ;;  %v2332_v38 = vrot.slane %v954_v45, 5  ;;  %6683 = vst [vmem:[#allocation57_spill] sm:$0xff] %v5752_v26  ;;  %v4018_v4 = vld [vmem:[%s4196_s27 + $0x3a8] sm:$0xff]  ;;  %v4019_v56 = vld [vmem:[%s4196_s27 + $0x3b8] sm:$0x11]  ;;  %v685_v3 = vmax.bf16 %v525_v44, %v5737_v9 }
 0x13f   : > { %3387 = vmatmul.mubr.bf16.gmra.mrb[40].mxu1 %v3670_v13  ;;  %v1642_v36 = vor.u32 %v1641_v41, %v1638_v23  ;;  %v529_v43 = vmax.bf16 %v4018_v4, %v5280_v20  ;;  %v531_v53 = vmax.bf16 %v4019_v56, %v5283_v10  ;;  %v2325_v1 = vsel %vm4398_vm4, %v3607_v22, %v2324_v34  ;;  %v4020_v34 = vld [vmem:[%s4196_s27 + $0x3c0] sm:$0xff]  ;;  %v6697_v26 = vld [vmem:[#allocation40_spill] sm:$0xff] }
 0x140   : > { %v1615_v46 = vrot.slane %v1614_v17, 4  ;;  %v2333_v45 = vsel %vm4398_vm4, %v3609_v31, %v2332_v38  ;;  %v687_v29 = vmax.bf16 %v527_v60, %v5740_v47  ;;  %v821_v10 = vmax.bf16 %v5650_v42, %v5640_v11 }
 0x141   : > { %v1643_v13 = vrot.slane %v1642_v36, 4  ;;  %v689_v27 = vmax.bf16 %v529_v43, %v5745_v39  ;;  %v691_v20 = vmax.bf16 %v531_v53, %v5750_v25  ;;  %v823_v23 = vmax.bf16 %v5653_v62, %v5647_v16  ;;  %v5783_v16 = vpop.f32.mrb[4].mxu1 }
 0x142   : > { %v1620_v44 = vsel %vm4434_vm5, %v1615_v46, %v1619_v52  ;;  %v825_v22 = vmax.bf16 %v685_v3, %v5650_v42  ;;  %v827_v41 = vmax.bf16 %v687_v29, %v5653_v62  ;;  %v5777_v17 = vmax.bf16 %v821_v10, %v685_v3  ;;  %6684 = vst [vmem:[#allocation61_spill] sm:$0xff] %v5783_v16 }
 0x143   : > { %v1648_v60 = vsel %vm4434_vm5, %v1643_v13, %v1647_v58  ;;  %v1995_v36 = vmax.bf16 %v1620_v44, %v5713_v63  ;;  %v532_v11 = vmax.bf16 %v4020_v34, %v5296_v30  ;;  %v951_v38 = vmax.bf16 %v823_v23, %v687_v29  ;;  %v5788_v63 = vpop.f32.mrb[5].mxu1 }
 0x144   : > { %v1997_v31 = vmax.bf16 %v1648_v60, %v952_v7  ;;  %v5781_v52 = vmax.bf16 %v825_v22, %v689_v27  ;;  %v955_v4 = vmax.bf16 %v827_v41, %v691_v20  ;;  %v1622_v62 = vshrl.u32 %v5777_v17, 16  ;;  %6685 = vst [vmem:[#allocation58_spill] sm:$0xff] %v5788_v63  ;;  %v5792_v53 = vpop.f32.mrb[6].mxu1 }
 0x145   : > { %v2510_v42 = vmax.bf16 %v2325_v1, %v1995_v36  ;;  %v1625_v43 = vshll.u32 %v5777_v17, 16  ;;  %v3608_v58 = vrot.slane %v5777_v17, 9  ;;  %v1631_v56 = vshll.u32 %v951_v38, 16  ;;  %6686 = vst [vmem:[#allocation62_spill] sm:$0xff] %v5792_v53  ;;  %v5794_v27 = vpop.f32.mrb[7].mxu1  ;;  %v4034_v53 = vld [vmem:[%s4196_s27 + $0x428] sm:$0xff] }
 0x146   : > { %v2512_v3 = vmax.bf16 %v2333_v45, %v1997_v31  ;;  %v1650_v30 = vshrl.u32 %v5781_v52, 16  ;;  %v1653_v7 = vshll.u32 %v5781_v52, 16  ;;  %v1624_v46 = vrot.slane %v1622_v62, 4  ;;  %6687 = vst [vmem:[#allocation63_spill] sm:$0xff] %v5794_v27  ;;  %v374_v62 = vld [vmem:[%s4196_s27 + $0x650] sm:$0x11] }
 0x147   : > { %v1627_v29 = vrot.slane %v1625_v43, 5  ;;  %v1659_v1 = vshll.u32 %v955_v4, 16  ;;  %v2328_v13 = vrot.slane %v951_v38, 5  ;;  %v1633_v10 = vrot.slane %v1631_v56, 5  ;;  %v372_v38 = vld [vmem:[%s4196_s27 + $0x640] sm:$0xff] }
 0x148   : > { %v3673_v20 = vcombine.high %v2510_v42, %v2512_v3  ;;  %v1652_v45 = vrot.slane %v1650_v30, 4  ;;  %v1655_v44 = vrot.slane %v1653_v7, 5  ;;  %v3610_v60 = vrot.slane %v5781_v52, 9  ;;  %v4021_v43 = vld [vmem:[%s4196_s27 + $0x3d0] sm:$0x11]  ;;  %v376_v7 = vld [vmem:[%s4196_s27 + $0x660] sm:$0xff] }
 0x149   : > { %v1628_v23 = vor.u32 %v1627_v29, %v1624_v46  ;;  %v1661_v22 = vrot.slane %v1659_v1, 5  ;;  %v2329_v41 = vsel %vm4398_vm4, %v3608_v58, %v2328_v13  ;;  %v2336_v34 = vrot.slane %v955_v4, 5  ;;  %v378_v58 = vld [vmem:[%s4196_s27 + $0x670] sm:$0x11]  ;;  %v4022_v46 = vld [vmem:[%s4196_s27 + $0x3e0] sm:$0xff] }
 0x14a   : > { %3233 = vmatprep.mubr.bf16.mxu0 %v3673_v20  ;;  %v1656_v36 = vor.u32 %v1655_v44, %v1652_v45  ;;  %v3672_v31 = vcombine.low %v2510_v42, %v2512_v3  ;;  %v534_v56 = vmax.bf16 %v4021_v43, %v5318_v61  ;;  %v536_v29 = vmax.bf16 %v4022_v46, %v5315_v24  ;;  %v4023_v1 = vld [vmem:[%s4196_s27 + $0x3f0] sm:$0x11]  ;;  %v4024_v42 = vld [vmem:[%s4196_s27 + $0x400] sm:$0xff] }
 0x14b   : > { %v1629_v30 = vrot.slane %v1628_v23, 4  ;;  %v538_v4 = vmax.bf16 %v4023_v1, %v5321_v33  ;;  %v540_v3 = vmax.bf16 %v4024_v42, %v5324_v55  ;;  %v2337_v61 = vsel %vm4398_vm4, %v3610_v60, %v2336_v34  ;;  %v380_v20 = vld [vmem:[%s4196_s27 + $0x680] sm:$0xff]  ;;  %v382_v45 = vld [vmem:[%s4196_s27 + $0x690] sm:$0x11] }
 0x14c   : > { %v1657_v13 = vrot.slane %v1656_v36, 4  ;;  %3234 = vmatmul.mubr.bf16.gmra.mrb[44].mxu0 %v3672_v31  ;;  %v384_v44 = vld [vmem:[%s4196_s27 + $0x6a0] sm:$0xff]  ;;  %v4025_v23 = vld [vmem:[%s4196_s27 + $0x410] sm:$0x11]  ;;  %v692_v36 = vmax.bf16 %v532_v11, %v372_v38  ;;  %v694_v42 = vmax.bf16 %v534_v56, %v374_v62  ;;  %v696_v31 = vmax.bf16 %v536_v29, %v376_v7  ;;  %v4028_v56 = vld [vmem:[%s4196_s27 + $0x3c8] sm:$0xff]  ;;  %v5841_v7 = vpop.f32.mrb[8].mxu0 }
 0x14d   : > { %v542_v43 = vmax.bf16 %v4025_v23, %v5329_v32  ;;  %v4026_v24 = vld [vmem:[%s4196_s27 + $0x420] sm:$0xff]  ;;  %v1634_v33 = vsel %vm4434_vm5, %v1629_v30, %v1633_v10  ;;  %v386_v1 = vld [vmem:[%s4196_s27 + $0x6b0] sm:$0x11]  ;;  %v698_v32 = vmax.bf16 %v538_v4, %v378_v58  ;;  %6688 = vst [vmem:[#allocation64_spill] sm:$0xff] %v5841_v7 }
 0x14e   : > { %v544_v46 = vmax.bf16 %v4026_v24, %v5332_v48  ;;  %v4027_v27 = vld [vmem:[%s4196_s27 + $0x430] sm:$0x11]  ;;  %v1662_v60 = vsel %vm4434_vm5, %v1657_v13, %v1661_v22  ;;  %v1996_v34 = vmax.bf16 %v1634_v33, %v5777_v17  ;;  %v5829_v48 = vmax.bf16 %v540_v3, %v380_v20  ;;  %v4030_v3 = vld [vmem:[%s4196_s27 + $0x3e8] sm:$0xff]  ;;  %v6689_v13 = vld [vmem:[#allocation37_spill] sm:$0xff]  ;;  %v5851_v20 = vpop.f32.mrb[9].mxu0 }
 0x14f   : > { %v546_v55 = vmax.bf16 %v4027_v27, %v5335_v54  ;;  %v1998_v23 = vmax.bf16 %v1662_v60, %v5781_v52  ;;  %v5831_v10 = vmax.bf16 %v542_v43, %v382_v45  ;;  %v828_v27 = vmax.bf16 %v696_v31, %v692_v36  ;;  %6690 = vst [vmem:[#allocation65_spill] sm:$0xff] %v5851_v20  ;;  %v5855_v24 = vpop.f32.mrb[10].mxu0  ;;  %v6695_v20 = vld [vmem:[#allocation39_spill] sm:$0xff] }
 0x150   : > { %v5833_v30 = vmax.bf16 %v544_v46, %v384_v44  ;;  %v2511_v54 = vmax.bf16 %v2329_v41, %v1996_v34  ;;  %v830_v38 = vmax.bf16 %v698_v32, %v694_v42  ;;  %v832_v17 = vmax.bf16 %v5829_v48, %v696_v31  ;;  %v4029_v41 = vld [vmem:[%s4196_s27 + $0x3d8] sm:$0x11]  ;;  %6691 = vst [vmem:[#allocation66_spill] sm:$0xff] %v5855_v24  ;;  %v385_v24 = vld [vmem:[%s4196_s27 + $0x6a8] sm:$0xff] }
 0x151   : > { %v5835_v11 = vmax.bf16 %v546_v55, %v386_v1  ;;  %v2513_v22 = vmax.bf16 %v2337_v61, %v1998_v23  ;;  %v834_v62 = vmax.bf16 %v5831_v10, %v698_v32  ;;  %v533_v52 = vmax.bf16 %v4028_v56, %v5370_v59  ;;  %v5860_v55 = vpop.f32.mrb[11].mxu0  ;;  %v375_v56 = vld [vmem:[%s4196_s27 + $0x658] sm:$0x11] }
 0x152   : > { %v5844_v58 = vmax.bf16 %v828_v27, %v5829_v48  ;;  %v958_v29 = vmax.bf16 %v830_v38, %v5831_v10  ;;  %v535_v4 = vmax.bf16 %v4029_v41, %v5381_v49  ;;  %v537_v61 = vmax.bf16 %v4030_v3, %v6689_v13  ;;  %6692 = vst [vmem:[#allocation4_spill] sm:$0xff] %v5860_v55  ;;  %v377_v3 = vld [vmem:[%s4196_s27 + $0x668] sm:$0xff]  ;;  %v379_v13 = vld [vmem:[%s4196_s27 + $0x678] sm:$0x11]  ;;  %v5886_v21 = vpop.f32.mrb[8].mxu1 }
 0x153   : > { %v3675_v45 = vcombine.high %v2511_v54, %v2513_v22  ;;  %v3674_v44 = vcombine.low %v2511_v54, %v2513_v22  ;;  %v960_v43 = vmax.bf16 %v832_v17, %v5833_v30  ;;  %v962_v59 = vmax.bf16 %v834_v62, %v5835_v11  ;;  %v373_v62 = vld [vmem:[%s4196_s27 + $0x648] sm:$0xff]  ;;  %v383_v55 = vld [vmem:[%s4196_s27 + $0x698] sm:$0x11] }
 0x154   : > { %v1664_v46 = vshrl.u32 %v5844_v58, 16  ;;  %v1667_v33 = vshll.u32 %v5844_v58, 16  ;;  %v1673_v1 = vshll.u32 %v958_v29, 16  ;;  %v3611_v49 = vrot.slane %v5844_v58, 9 }
 0x155   : > { %3394 = vmatprep.mubr.bf16.mxu1 %v3675_v45  ;;  %v1692_v36 = vshrl.u32 %v960_v43, 16  ;;  %v1695_v42 = vshll.u32 %v960_v43, 16  ;;  %v1701_v60 = vshll.u32 %v962_v59, 16  ;;  %v2340_v34 = vrot.slane %v958_v29, 5  ;;  %v381_v45 = vld [vmem:[%s4196_s27 + $0x688] sm:$0xff] }
 0x156   : > { %3395 = vmatmul.mubr.bf16.gmra.mrb[44].mxu1 %v3674_v44  ;;  %v1666_v31 = vrot.slane %v1664_v46, 4  ;;  %v1669_v32 = vrot.slane %v1667_v33, 5  ;;  %v1675_v23 = vrot.slane %v1673_v1, 5  ;;  %v3613_v54 = vrot.slane %v960_v43, 9  ;;  %v4031_v44 = vld [vmem:[%s4196_s27 + $0x3f8] sm:$0x11] }
 0x157   : > { %v1694_v27 = vrot.slane %v1692_v36, 4  ;;  %v1697_v38 = vrot.slane %v1695_v42, 5  ;;  %v1703_v22 = vrot.slane %v1701_v60, 5  ;;  %v2341_v17 = vsel %vm4398_vm4, %v3611_v49, %v2340_v34  ;;  %v6693_v46 = vld [vmem:[#allocation34_spill] sm:$0xff]  ;;  %v4032_v1 = vld [vmem:[%s4196_s27 + $0x408] sm:$0xff] }
 0x158   : > { %v1670_v29 = vor.u32 %v1669_v32, %v1666_v31  ;;  %v2348_v41 = vrot.slane %v962_v59, 5  ;;  %v539_v33 = vmax.bf16 %v4031_v44, %v6693_v46  ;;  %v6694_v36 = vld [vmem:[#allocation38_spill] sm:$0xff]  ;;  %v387_v49 = vld [vmem:[%s4196_s27 + $0x6b8] sm:$0x11]  ;;  %v6696_v31 = vld [vmem:[#allocation43_spill] sm:$0xff]  ;;  %v693_v46 = vmax.bf16 %v533_v52, %v373_v62  ;;  %v5896_v52 = vpop.f32.mrb[9].mxu1 }
 0x159   : > { %v541_v42 = vmax.bf16 %v4032_v1, %v6694_v36  ;;  %v1698_v60 = vor.u32 %v1697_v38, %v1694_v27  ;;  %v4033_v34 = vld [vmem:[%s4196_s27 + $0x418] sm:$0x11]  ;;  %v545_v59 = vmax.bf16 %v4034_v53, %v6696_v31  ;;  %v695_v16 = vmax.bf16 %v535_v4, %v375_v56  ;;  %v5901_v56 = vpop.f32.mrb[10].mxu1 }
 0x15a   : > { %v543_v7 = vmax.bf16 %v4033_v34, %v6695_v20  ;;  %v4035_v32 = vld [vmem:[%s4196_s27 + $0x438] sm:$0x11]  ;;  %v1671_v63 = vrot.slane %v1670_v29, 4  ;;  %v2349_v44 = vsel %vm4398_vm4, %v3613_v54, %v2348_v41  ;;  %v697_v27 = vmax.bf16 %v537_v61, %v377_v3  ;;  %6698 = vst [vmem:[#allocation2_spill] sm:$0xff] %v5901_v56  ;;  %v6700_v3 = vld [vmem:[#allocation44_spill] sm:$0xff] }
 0x15b   : > { %v547_v15 = vmax.bf16 %v4035_v32, %v6697_v26  ;;  %v1699_v1 = vrot.slane %v1698_v60, 4  ;;  %v699_v38 = vmax.bf16 %v539_v33, %v379_v13  ;;  %v5884_v36 = vmax.bf16 %v541_v42, %v381_v45  ;;  %v4038_v42 = vld [vmem:[%s4196_s27 + $0x460] sm:$0xff]  ;;  %v6701_v60 = vld [vmem:[#allocation41_spill] sm:$0xff] }
 0x15c   : > { %v1676_v53 = vsel %vm4434_vm5, %v1671_v63, %v1675_v23  ;;  %v5890_v20 = vmax.bf16 %v543_v7, %v383_v55  ;;  %v5892_v26 = vmax.bf16 %v545_v59, %v385_v24  ;;  %v829_v54 = vmax.bf16 %v697_v27, %v693_v46  ;;  %v5907_v23 = vpop.f32.mrb[11].mxu1 }
 0x15d   : > { %v5894_v29 = vmax.bf16 %v547_v15, %v387_v49  ;;  %v1704_v4 = vsel %vm4434_vm5, %v1699_v1, %v1703_v22  ;;  %v1999_v61 = vmax.bf16 %v1676_v53, %v5844_v58  ;;  %v831_v62 = vmax.bf16 %v699_v38, %v695_v16  ;;  %v4036_v15 = vld [vmem:[%s4196_s27 + $0x440] sm:$0xff]  ;;  %6699 = vst [vmem:[#allocation5_spill] sm:$0xff] %v5907_v23  ;;  %v4037_v16 = vld [vmem:[%s4196_s27 + $0x450] sm:$0x11] }
 0x15e   : > { %v2001_v63 = vmax.bf16 %v1704_v4, %v960_v43  ;;  %v833_v7 = vmax.bf16 %v5884_v36, %v697_v27  ;;  %v835_v24 = vmax.bf16 %v5890_v20, %v699_v38  ;;  %v548_v55 = vmax.bf16 %v4036_v15, %v5466_v57  ;;  %v388_v27 = vld [vmem:[%s4196_s27 + $0x6c0] sm:$0xff] }
 0x15f   : > { %v2514_v41 = vmax.bf16 %v2341_v17, %v1999_v61  ;;  %v957_v22 = vmax.bf16 %v829_v54, %v5884_v36  ;;  %v959_v58 = vmax.bf16 %v831_v62, %v5890_v20  ;;  %v550_v13 = vmax.bf16 %v4037_v16, %v6700_v3  ;;  %v390_v61 = vld [vmem:[%s4196_s27 + $0x6d0] sm:$0x11] }
 0x160   : > { %v2516_v45 = vmax.bf16 %v2349_v44, %v2001_v63  ;;  %v961_v43 = vmax.bf16 %v833_v7, %v5892_v26  ;;  %v963_v33 = vmax.bf16 %v835_v24, %v5894_v29  ;;  %v552_v57 = vmax.bf16 %v4038_v42, %v6701_v60  ;;  %v392_v24 = vld [vmem:[%s4196_s27 + $0x6e0] sm:$0xff]  ;;  %v394_v60 = vld [vmem:[%s4196_s27 + $0x6f0] sm:$0x11] }
 0x161   : > { %v1678_v49 = vshrl.u32 %v957_v22, 16  ;;  %v1681_v34 = vshll.u32 %v957_v22, 16  ;;  %v1687_v17 = vshll.u32 %v959_v58, 16  ;;  %v3612_v31 = vrot.slane %v957_v22, 9 }
 0x162   : > { %v3677_v59 = vcombine.high %v2514_v41, %v2516_v45  ;;  %v1706_v32 = vshrl.u32 %v961_v43, 16  ;;  %v1709_v46 = vshll.u32 %v961_v43, 16  ;;  %v1715_v1 = vshll.u32 %v963_v33, 16 }
 0x163   : > { %v1680_v44 = vrot.slane %v1678_v49, 4  ;;  %v1683_v38 = vrot.slane %v1681_v34, 5  ;;  %v1689_v53 = vrot.slane %v1687_v17, 5  ;;  %v2344_v4 = vrot.slane %v959_v58, 5  ;;  %v4039_v49 = vld [vmem:[%s4196_s27 + $0x470] sm:$0x11] }
 0x164   : > { %3241 = vmatprep.mubr.bf16.mxu0 %v3677_v59  ;;  %v1708_v54 = vrot.slane %v1706_v32, 4  ;;  %v1711_v62 = vrot.slane %v1709_v46, 5  ;;  %v1717_v63 = vrot.slane %v1715_v1, 5  ;;  %v3614_v7 = vrot.slane %v961_v43, 9  ;;  %v6702_v34 = vld [vmem:[#allocation45_spill] sm:$0xff] }
 0x165   : > { %v1684_v15 = vor.u32 %v1683_v38, %v1680_v44  ;;  %v2345_v16 = vsel %vm4398_vm4, %v3612_v31, %v2344_v4  ;;  %v2352_v3 = vrot.slane %v963_v33, 5  ;;  %v3676_v42 = vcombine.low %v2514_v41, %v2516_v45 }
 0x166   : > { %v1712_v23 = vor.u32 %v1711_v62, %v1708_v54  ;;  %v554_v56 = vmax.bf16 %v4039_v49, %v6702_v34  ;;  %v5925_v58 = vmax.bf16 %v548_v55, %v388_v27  ;;  %v5927_v17 = vmax.bf16 %v550_v13, %v390_v61  ;;  %v5941_v13 = vpop.f32.mrb[12].mxu0 }
 0x167   : > { %v1685_v59 = vrot.slane %v1684_v15, 4  ;;  %v2353_v32 = vsel %vm4398_vm4, %v3614_v7, %v2352_v3  ;;  %3242 = vmatmul.mubr.bf16.gmra.mrb[48].mxu0 %v3676_v42  ;;  %v5931_v46 = vmax.bf16 %v552_v57, %v392_v24  ;;  %v836_v41 = vmax.bf16 %v5833_v30, %v5829_v48  ;;  %v4040_v48 = vld [vmem:[%s4196_s27 + $0x448] sm:$0xff]  ;;  %v5950_v44 = vpop.f32.mrb[13].mxu0 }
 0x168   : > { %v1713_v45 = vrot.slane %v1712_v23, 4  ;;  %v5935_v33 = vmax.bf16 %v554_v56, %v394_v60  ;;  %v838_v31 = vmax.bf16 %v5835_v11, %v5831_v10  ;;  %v840_v55 = vmax.bf16 %v5925_v58, %v5833_v30  ;;  %v6703_v23 = vld [vmem:[#allocation42_spill] sm:$0xff]  ;;  %v5956_v61 = vpop.f32.mrb[14].mxu0 }
 0x169   : > { %v1690_v1 = vsel %vm4434_vm5, %v1685_v59, %v1689_v53  ;;  %v842_v57 = vmax.bf16 %v5927_v17, %v5835_v11  ;;  %v964_v27 = vmax.bf16 %v836_v41, %v5925_v58  ;;  %v549_v56 = vmax.bf16 %v4040_v48, %v6703_v23  ;;  %6704 = vst [vmem:[#allocation3_spill] sm:$0xff] %v5956_v61  ;;  %v5959_v7 = vpop.f32.mrb[15].mxu0 }
 0x16a   : > { %v1718_v10 = vsel %vm4434_vm5, %v1713_v45, %v1717_v63  ;;  %v2000_v38 = vmax.bf16 %v1690_v1, %v957_v22  ;;  %v966_v30 = vmax.bf16 %v838_v31, %v5927_v17  ;;  %v968_v4 = vmax.bf16 %v840_v55, %v5931_v46  ;;  %6705 = vst [vmem:[#allocation6_spill] sm:$0xff] %v5959_v7  ;;  %v389_v1 = vld [vmem:[%s4196_s27 + $0x6c8] sm:$0xff] }
 0x16b   : > { %v2002_v53 = vmax.bf16 %v1718_v10, %v961_v43  ;;  %v970_v11 = vmax.bf16 %v842_v57, %v5935_v33  ;;  %v1720_v54 = vshrl.u32 %v964_v27, 16  ;;  %v1723_v62 = vshll.u32 %v964_v27, 16  ;;  %v391_v57 = vld [vmem:[%s4196_s27 + $0x6d8] sm:$0x11]  ;;  %v6707_v7 = vld [vmem:[#allocation47_spill] sm:$0xff] }
 0x16c   : > { %v2515_v24 = vmax.bf16 %v2345_v16, %v2000_v38  ;;  %v1729_v15 = vshll.u32 %v966_v30, 16  ;;  %v1748_v3 = vshrl.u32 %v968_v4, 16  ;;  %v1751_v63 = vshll.u32 %v968_v4, 16  ;;  %v393_v38 = vld [vmem:[%s4196_s27 + $0x6e8] sm:$0xff] }
 0x16d   : > { %v2517_v22 = vmax.bf16 %v2353_v32, %v2002_v53  ;;  %v1722_v42 = vrot.slane %v1720_v54, 4  ;;  %v1725_v60 = vrot.slane %v1723_v62, 5  ;;  %v1757_v49 = vshll.u32 %v970_v11, 16  ;;  %v395_v53 = vld [vmem:[%s4196_s27 + $0x6f8] sm:$0x11] }
 0x16e   : > { %v1731_v34 = vrot.slane %v1729_v15, 5  ;;  %v1750_v43 = vrot.slane %v1748_v3, 4  ;;  %v1753_v59 = vrot.slane %v1751_v63, 5  ;;  %v3615_v41 = vrot.slane %v964_v27, 9  ;;  %v4041_v62 = vld [vmem:[%s4196_s27 + $0x458] sm:$0x11] }
 0x16f   : > { %v3679_v45 = vcombine.high %v2515_v24, %v2517_v22  ;;  %v3678_v31 = vcombine.low %v2515_v24, %v2517_v22  ;;  %v1726_v16 = vor.u32 %v1725_v60, %v1722_v42  ;;  %v1759_v55 = vrot.slane %v1757_v49, 5  ;;  %v6706_v15 = vld [vmem:[#allocation46_spill] sm:$0xff]  ;;  %v4042_v63 = vld [vmem:[%s4196_s27 + $0x468] sm:$0xff]  ;;  %v4043_v24 = vld [vmem:[%s4196_s27 + $0x478] sm:$0x11] }
 0x170   : > { %v1754_v48 = vor.u32 %v1753_v59, %v1750_v43  ;;  %v2356_v32 = vrot.slane %v966_v30, 5  ;;  %v3617_v23 = vrot.slane %v968_v4, 9  ;;  %v2364_v10 = vrot.slane %v970_v11, 5  ;;  %v6708_v22 = vld [vmem:[#allocation51_spill] sm:$0xff]  ;;  %v5977_v43 = vpop.f32.mrb[12].mxu1 }
 0x171   : > { %3402 = vmatprep.mubr.bf16.mxu1 %v3679_v45  ;;  %v1727_v54 = vrot.slane %v1726_v16, 4  ;;  %v551_v3 = vmax.bf16 %v4041_v62, %v6706_v15  ;;  %v553_v61 = vmax.bf16 %v4042_v63, %v6707_v7  ;;  %v555_v42 = vmax.bf16 %v4043_v24, %v6708_v22  ;;  %v5987_v16 = vpop.f32.mrb[13].mxu1 }
 0x172   : > { %3403 = vmatmul.mubr.bf16.gmra.mrb[48].mxu1 %v3678_v31  ;;  %v1755_v60 = vrot.slane %v1754_v48, 4  ;;  %v2357_v30 = vsel %vm4398_vm4, %v3615_v41, %v2356_v32  ;;  %v2365_v11 = vsel %vm4398_vm4, %v3617_v23, %v2364_v10  ;;  %v5975_v49 = vmax.bf16 %v549_v56, %v389_v1  ;;  %v4044_v23 = vld [vmem:[%s4196_s27 + $0x480] sm:$0xff] }
 0x173   : > { %v1732_v59 = vsel %vm4434_vm5, %v1727_v54, %v1731_v34  ;;  %v5981_v7 = vmax.bf16 %v551_v3, %v391_v57  ;;  %v5983_v45 = vmax.bf16 %v553_v61, %v393_v38  ;;  %v5985_v31 = vmax.bf16 %v555_v42, %v395_v53  ;;  %v5995_v34 = vpop.f32.mrb[14].mxu1  ;;  %v4045_v38 = vld [vmem:[%s4196_s27 + $0x490] sm:$0x11] }
 0x174   : > { %v1760_v41 = vsel %vm4434_vm5, %v1755_v60, %v1759_v55  ;;  %v2003_v48 = vmax.bf16 %v1732_v59, %v964_v27  ;;  %v837_v56 = vmax.bf16 %v5892_v26, %v5884_v36  ;;  %v839_v1 = vmax.bf16 %v5894_v29, %v5890_v20  ;;  %6709 = vst [vmem:[#allocation7_spill] sm:$0xff] %v5995_v34  ;;  %v6003_v27 = vpop.f32.mrb[15].mxu1 }
 0x175   : > { %v2005_v61 = vmax.bf16 %v1760_v41, %v968_v4  ;;  %v841_v57 = vmax.bf16 %v5975_v49, %v5892_v26  ;;  %v843_v32 = vmax.bf16 %v5981_v7, %v5894_v29  ;;  %v556_v55 = vmax.bf16 %v4044_v23, %v5570_v0  ;;  %6710 = vst [vmem:[#allocation8_spill] sm:$0xff] %v6003_v27  ;;  %v4046_v29 = vld [vmem:[%s4196_s27 + $0x4a0] sm:$0xff]  ;;  %v402_v27 = vld [vmem:[%s4196_s27 + $0x730] sm:$0x11] }
 0x176   : > { %v2518_v10 = vmax.bf16 %v2357_v30, %v2003_v48  ;;  %v965_v36 = vmax.bf16 %v837_v56, %v5975_v49  ;;  %v967_v20 = vmax.bf16 %v839_v1, %v5981_v7  ;;  %v558_v4 = vmax.bf16 %v4045_v38, %v5575_v40  ;;  %v396_v30 = vld [vmem:[%s4196_s27 + $0x700] sm:$0xff]  ;;  %v398_v48 = vld [vmem:[%s4196_s27 + $0x710] sm:$0x11] }
 0x177   : > { %v2520_v53 = vmax.bf16 %v2365_v11, %v2005_v61  ;;  %v969_v26 = vmax.bf16 %v841_v57, %v5983_v45  ;;  %v971_v54 = vmax.bf16 %v843_v32, %v5985_v31  ;;  %v560_v0 = vmax.bf16 %v4046_v29, %v5578_v6  ;;  %v400_v57 = vld [vmem:[%s4196_s27 + $0x720] sm:$0xff] }
 0x178   : > { %v1734_v62 = vshrl.u32 %v965_v36, 16  ;;  %v1737_v15 = vshll.u32 %v965_v36, 16  ;;  %v1743_v3 = vshll.u32 %v967_v20, 16  ;;  %v3616_v63 = vrot.slane %v965_v36, 9 }
 0x179   : > { %v3681_v24 = vcombine.high %v2518_v10, %v2520_v53  ;;  %v1762_v22 = vshrl.u32 %v969_v26, 16  ;;  %v1765_v42 = vshll.u32 %v969_v26, 16  ;;  %v1771_v60 = vshll.u32 %v971_v54, 16 }
 0x17a   : > { %v1736_v40 = vrot.slane %v1734_v62, 4  ;;  %v1739_v11 = vrot.slane %v1737_v15, 5  ;;  %v1745_v59 = vrot.slane %v1743_v3, 5  ;;  %v2360_v41 = vrot.slane %v967_v20, 5  ;;  %v4047_v62 = vld [vmem:[%s4196_s27 + $0x4b0] sm:$0x11] }
 0x17b   : > { %3249 = vmatprep.mubr.bf16.mxu0 %v3681_v24  ;;  %v1764_v56 = vrot.slane %v1762_v22, 4  ;;  %v1767_v6 = vrot.slane %v1765_v42, 5  ;;  %v1773_v1 = vrot.slane %v1771_v60, 5  ;;  %v3618_v61 = vrot.slane %v969_v26, 9 }
 0x17c   : > { %v1740_v32 = vor.u32 %v1739_v11, %v1736_v40  ;;  %v2361_v23 = vsel %vm4398_vm4, %v3616_v63, %v2360_v41  ;;  %v2368_v38 = vrot.slane %v971_v54, 5  ;;  %v3680_v29 = vcombine.low %v2518_v10, %v2520_v53  ;;  %v6031_v53 = vpop.f32.mrb[16].mxu0 }
 0x17d   : > { %v1768_v34 = vor.u32 %v1767_v6, %v1764_v56  ;;  %v562_v15 = vmax.bf16 %v4047_v62, %v5581_v51  ;;  %v6021_v3 = vmax.bf16 %v556_v55, %v396_v30  ;;  %v6023_v20 = vmax.bf16 %v558_v4, %v398_v48  ;;  %v6039_v4 = vpop.f32.mrb[17].mxu0  ;;  %v4048_v30 = vld [vmem:[%s4196_s27 + $0x488] sm:$0xff] }
 0x17e   : > { %v1741_v24 = vrot.slane %v1740_v32, 4  ;;  %v2369_v22 = vsel %vm4398_vm4, %v3618_v61, %v2368_v38  ;;  %3250 = vmatmul.mubr.bf16.gmra.mrb[52].mxu0 %v3680_v29  ;;  %v6027_v42 = vmax.bf16 %v560_v0, %v400_v57  ;;  %v844_v10 = vmax.bf16 %v5931_v46, %v5925_v58 }
 0x17f   : > { %v1769_v54 = vrot.slane %v1768_v34, 4  ;;  %v6033_v63 = vmax.bf16 %v562_v15, %v402_v27  ;;  %v846_v51 = vmax.bf16 %v5935_v33, %v5927_v17  ;;  %v848_v55 = vmax.bf16 %v6021_v3, %v5931_v46  ;;  %v6048_v27 = vpop.f32.mrb[18].mxu0 }
 0x180   : > { %v1746_v0 = vsel %vm4434_vm5, %v1741_v24, %v1745_v59  ;;  %v850_v60 = vmax.bf16 %v6023_v20, %v5935_v33  ;;  %v972_v58 = vmax.bf16 %v844_v10, %v6021_v3  ;;  %v557_v34 = vmax.bf16 %v4048_v30, %v5624_v12  ;;  %v6054_v41 = vpop.f32.mrb[19].mxu0 }
 0x181   : > { %v1774_v17 = vsel %vm4434_vm5, %v1769_v54, %v1773_v1  ;;  %v2004_v40 = vmax.bf16 %v1746_v0, %v965_v36  ;;  %v974_v46 = vmax.bf16 %v846_v51, %v6023_v20  ;;  %v976_v11 = vmax.bf16 %v848_v55, %v6027_v42  ;;  %v397_v51 = vld [vmem:[%s4196_s27 + $0x708] sm:$0xff]  ;;  %v399_v55 = vld [vmem:[%s4196_s27 + $0x718] sm:$0x11] }
 0x182   : > { %v2006_v59 = vmax.bf16 %v1774_v17, %v969_v26  ;;  %v978_v33 = vmax.bf16 %v850_v60, %v6033_v63  ;;  %v1776_v48 = vshrl.u32 %v972_v58, 16  ;;  %v1779_v56 = vshll.u32 %v972_v58, 16  ;;  %v401_v17 = vld [vmem:[%s4196_s27 + $0x728] sm:$0xff] }
 0x183   : > { %v2519_v6 = vmax.bf16 %v2361_v23, %v2004_v40  ;;  %v1785_v12 = vshll.u32 %v974_v46, 16  ;;  %v1804_v61 = vshrl.u32 %v976_v11, 16  ;;  %v1807_v57 = vshll.u32 %v976_v11, 16  ;;  %v403_v40 = vld [vmem:[%s4196_s27 + $0x738] sm:$0x11] }
 0x184   : > { %v2521_v32 = vmax.bf16 %v2369_v22, %v2006_v59  ;;  %v1778_v1 = vrot.slane %v1776_v48, 4  ;;  %v1781_v36 = vrot.slane %v1779_v56, 5  ;;  %v1813_v38 = vshll.u32 %v978_v33, 16  ;;  %v4049_v48 = vld [vmem:[%s4196_s27 + $0x498] sm:$0x11] }
 0x185   : > { %v1787_v29 = vrot.slane %v1785_v12, 5  ;;  %v1806_v62 = vrot.slane %v1804_v61, 4  ;;  %v1809_v15 = vrot.slane %v1807_v57, 5  ;;  %v3619_v26 = vrot.slane %v972_v58, 9  ;;  %v4050_v12 = vld [vmem:[%s4196_s27 + $0x4a8] sm:$0xff]  ;;  %v6711_v57 = vld [vmem:[#allocation48_spill] sm:$0xff] }
 0x186   : > { %v3683_v24 = vcombine.high %v2519_v6, %v2521_v32  ;;  %v3682_v10 = vcombine.low %v2519_v6, %v2521_v32  ;;  %v1782_v23 = vor.u32 %v1781_v36, %v1778_v1  ;;  %v1815_v54 = vrot.slane %v1813_v38, 5  ;;  %v4051_v6 = vld [vmem:[%s4196_s27 + $0x4b8] sm:$0x11]  ;;  %v6067_v1 = vpop.f32.mrb[16].mxu1 }
 0x187   : > { %v1810_v0 = vor.u32 %v1809_v15, %v1806_v62  ;;  %v2372_v22 = vrot.slane %v974_v46, 5  ;;  %v3621_v60 = vrot.slane %v976_v11, 9  ;;  %v2380_v30 = vrot.slane %v978_v33, 5 }
 0x188   : > { %3410 = vmatprep.mubr.bf16.mxu1 %v3683_v24  ;;  %v1783_v59 = vrot.slane %v1782_v23, 4  ;;  %v559_v56 = vmax.bf16 %v4049_v48, %v5627_v5  ;;  %v561_v61 = vmax.bf16 %v4050_v12, %v5630_v50  ;;  %v563_v32 = vmax.bf16 %v4051_v6, %v6711_v57  ;;  %v6075_v5 = vpop.f32.mrb[17].mxu1 }
 0x189   : > { %3411 = vmatmul.mubr.bf16.gmra.mrb[52].mxu1 %v3682_v10  ;;  %v1811_v36 = vrot.slane %v1810_v0, 4  ;;  %v2373_v46 = vsel %vm4398_vm4, %v3619_v26, %v2372_v22  ;;  %v2381_v33 = vsel %vm4398_vm4, %v3621_v60, %v2380_v30  ;;  %v6073_v38 = vmax.bf16 %v557_v34, %v397_v51  ;;  %v6085_v10 = vpop.f32.mrb[18].mxu1  ;;  %v4052_v60 = vld [vmem:[%s4196_s27 + $0x4c0] sm:$0xff] }
 0x18a   : > { %v1788_v50 = vsel %vm4434_vm5, %v1783_v59, %v1787_v29  ;;  %v6079_v62 = vmax.bf16 %v559_v56, %v399_v55  ;;  %v6081_v15 = vmax.bf16 %v561_v61, %v401_v17  ;;  %v6083_v24 = vmax.bf16 %v563_v32, %v403_v40  ;;  %v6093_v51 = vpop.f32.mrb[19].mxu1  ;;  %v4053_v17 = vld [vmem:[%s4196_s27 + $0x4d0] sm:$0x11]  ;;  %v4054_v59 = vld [vmem:[%s4196_s27 + $0x4e0] sm:$0xff] }
 0x18b   : > { %v1816_v26 = vsel %vm4434_vm5, %v1811_v36, %v1815_v54  ;;  %v2007_v23 = vmax.bf16 %v1788_v50, %v972_v58  ;;  %v845_v34 = vmax.bf16 %v5983_v45, %v5975_v49  ;;  %v847_v29 = vmax.bf16 %v5985_v31, %v5981_v7  ;;  %6712 = vst [vmem:[#allocation9_spill] sm:$0xff] %v6093_v51  ;;  %v404_v36 = vld [vmem:[%s4196_s27 + $0x740] sm:$0xff] }
 0x18c   : > { %v2009_v55 = vmax.bf16 %v1816_v26, %v976_v11  ;;  %v849_v0 = vmax.bf16 %v6073_v38, %v5983_v45  ;;  %v851_v22 = vmax.bf16 %v6079_v62, %v5985_v31  ;;  %v564_v54 = vmax.bf16 %v4052_v60, %v5674_v14  ;;  %v406_v26 = vld [vmem:[%s4196_s27 + $0x750] sm:$0x11] }
 0x18d   : > { %v2522_v58 = vmax.bf16 %v2373_v46, %v2007_v23  ;;  %v973_v30 = vmax.bf16 %v845_v34, %v6073_v38  ;;  %v975_v49 = vmax.bf16 %v847_v29, %v6079_v62  ;;  %v566_v7 = vmax.bf16 %v4053_v17, %v5679_v37 }
 0x18e   : > { %v2524_v40 = vmax.bf16 %v2381_v33, %v2009_v55  ;;  %v977_v11 = vmax.bf16 %v849_v0, %v6081_v15  ;;  %v979_v45 = vmax.bf16 %v851_v22, %v6083_v24  ;;  %v568_v31 = vmax.bf16 %v4054_v59, %v5682_v35  ;;  %v408_v55 = vld [vmem:[%s4196_s27 + $0x760] sm:$0xff]  ;;  %v410_v59 = vld [vmem:[%s4196_s27 + $0x770] sm:$0x11] }
 0x18f   : > { %v1790_v48 = vshrl.u32 %v973_v30, 16  ;;  %v1793_v14 = vshll.u32 %v973_v30, 16  ;;  %v1799_v56 = vshll.u32 %v975_v49, 16  ;;  %v3620_v12 = vrot.slane %v973_v30, 9 }
 0x190   : > { %v3685_v61 = vcombine.high %v2522_v58, %v2524_v40  ;;  %v1818_v6 = vshrl.u32 %v977_v11, 16  ;;  %v1821_v57 = vshll.u32 %v977_v11, 16  ;;  %v1827_v32 = vshll.u32 %v979_v45, 16 }
 0x191   : > { %v1792_v37 = vrot.slane %v1790_v48, 4  ;;  %v1795_v46 = vrot.slane %v1793_v14, 5  ;;  %v1801_v33 = vrot.slane %v1799_v56, 5  ;;  %v2376_v50 = vrot.slane %v975_v49, 5  ;;  %v4055_v48 = vld [vmem:[%s4196_s27 + $0x4f0] sm:$0x11] }
 0x192   : > { %3257 = vmatprep.mubr.bf16.mxu0 %v3685_v61  ;;  %v1820_v23 = vrot.slane %v1818_v6, 4  ;;  %v1823_v35 = vrot.slane %v1821_v57, 5  ;;  %v1829_v34 = vrot.slane %v1827_v32, 5  ;;  %v3622_v29 = vrot.slane %v977_v11, 9 }
 0x193   : > { %v1796_v0 = vor.u32 %v1795_v46, %v1792_v37  ;;  %v2377_v22 = vsel %vm4398_vm4, %v3620_v12, %v2376_v50  ;;  %v2384_v60 = vrot.slane %v979_v45, 5  ;;  %v3684_v17 = vcombine.low %v2522_v58, %v2524_v40  ;;  %v6121_v12 = vpop.f32.mrb[20].mxu0  ;;  %v4056_v37 = vld [vmem:[%s4196_s27 + $0x4c8] sm:$0xff] }
 0x194   : > { %v1824_v51 = vor.u32 %v1823_v35, %v1820_v23  ;;  %v570_v14 = vmax.bf16 %v4055_v48, %v5685_v19  ;;  %v724_v56 = vmax.bf16 %v564_v54, %v404_v36  ;;  %v726_v49 = vmax.bf16 %v566_v7, %v406_v26  ;;  %v6126_v54 = vpop.f32.mrb[21].mxu0 }
 0x195   : > { %v1797_v61 = vrot.slane %v1796_v0, 4  ;;  %v2385_v6 = vsel %vm4398_vm4, %v3622_v29, %v2384_v60  ;;  %3258 = vmatmul.mubr.bf16.gmra.mrb[56].mxu0 %v3684_v17  ;;  %v728_v57 = vmax.bf16 %v568_v31, %v408_v55  ;;  %v852_v32 = vmax.bf16 %v6027_v42, %v6021_v3  ;;  %v6133_v46 = vpop.f32.mrb[22].mxu0 }
 0x196   : > { %v1825_v58 = vrot.slane %v1824_v51, 4  ;;  %v730_v40 = vmax.bf16 %v570_v14, %v410_v59  ;;  %v854_v45 = vmax.bf16 %v6033_v63, %v6023_v20  ;;  %v856_v19 = vmax.bf16 %v724_v56, %v6027_v42  ;;  %v6137_v42 = vpop.f32.mrb[23].mxu0 }
 0x197   : > { %v1802_v7 = vsel %vm4434_vm5, %v1797_v61, %v1801_v33  ;;  %v858_v36 = vmax.bf16 %v726_v49, %v6033_v63  ;;  %v980_v31 = vmax.bf16 %v852_v32, %v724_v56  ;;  %v565_v3 = vmax.bf16 %v4056_v37, %v5737_v9  ;;  %v407_v32 = vld [vmem:[%s4196_s27 + $0x758] sm:$0x11] }
 0x198   : > { %v1830_v51 = vsel %vm4434_vm5, %v1825_v58, %v1829_v34  ;;  %v2008_v50 = vmax.bf16 %v1802_v7, %v973_v30  ;;  %v982_v20 = vmax.bf16 %v854_v45, %v726_v49  ;;  %v984_v26 = vmax.bf16 %v856_v19, %v728_v57  ;;  %v405_v57 = vld [vmem:[%s4196_s27 + $0x748] sm:$0xff]  ;;  %v411_v7 = vld [vmem:[%s4196_s27 + $0x778] sm:$0x11] }
 0x199   : > { %v2010_v23 = vmax.bf16 %v1830_v51, %v977_v11  ;;  %v986_v35 = vmax.bf16 %v858_v36, %v730_v40  ;;  %v1832_v29 = vshrl.u32 %v980_v31, 16  ;;  %v1835_v33 = vshll.u32 %v980_v31, 16  ;;  %v409_v19 = vld [vmem:[%s4196_s27 + $0x768] sm:$0xff]  ;;  %v4057_v37 = vld [vmem:[%s4196_s27 + $0x4d8] sm:$0x11] }
 0x19a   : > { %v2523_v55 = vmax.bf16 %v2377_v22, %v2008_v50  ;;  %v1841_v63 = vshll.u32 %v982_v20, 16  ;;  %v1860_v0 = vshrl.u32 %v984_v26, 16  ;;  %v1863_v9 = vshll.u32 %v984_v26, 16  ;;  %v4058_v50 = vld [vmem:[%s4196_s27 + $0x4e8] sm:$0xff] }
 0x19b   : > { %v2525_v60 = vmax.bf16 %v2385_v6, %v2010_v23  ;;  %v1834_v17 = vrot.slane %v1832_v29, 4  ;;  %v1837_v59 = vrot.slane %v1835_v33, 5  ;;  %v1869_v34 = vshll.u32 %v986_v35, 16  ;;  %v4059_v29 = vld [vmem:[%s4196_s27 + $0x4f8] sm:$0x11] }
 0x19c   : > { %v1843_v30 = vrot.slane %v1841_v63, 5  ;;  %v1862_v48 = vrot.slane %v1860_v0, 4  ;;  %v1865_v14 = vrot.slane %v1863_v9, 5  ;;  %v3623_v11 = vrot.slane %v980_v31, 9 }
 0x19d   : > { %v3687_v56 = vcombine.high %v2523_v55, %v2525_v60  ;;  %v3686_v49 = vcombine.low %v2523_v55, %v2525_v60  ;;  %v1838_v22 = vor.u32 %v1837_v59, %v1834_v17  ;;  %v1871_v61 = vrot.slane %v1869_v34, 5  ;;  %v6149_v55 = vpop.f32.mrb[20].mxu1 }
 0x19e   : > { %v1866_v58 = vor.u32 %v1865_v14, %v1862_v48  ;;  %v2388_v6 = vrot.slane %v982_v20, 5  ;;  %v3625_v40 = vrot.slane %v984_v26, 9  ;;  %v2396_v45 = vrot.slane %v986_v35, 5  ;;  %v6155_v9 = vpop.f32.mrb[21].mxu1  ;;  %v6170_v14 = vld [vmem:[%s6348_s2] ss:$0 sm:$0xff] }
 0x19f   : > { %3418 = vmatprep.mubr.bf16.mxu1 %v3687_v56  ;;  %v1839_v36 = vrot.slane %v1838_v22, 4  ;;  %v567_v51 = vmax.bf16 %v4057_v37, %v5740_v47  ;;  %v569_v23 = vmax.bf16 %v4058_v50, %v5745_v39  ;;  %v571_v33 = vmax.bf16 %v4059_v29, %v5750_v25  ;;  %v6159_v25 = vpop.f32.mrb[22].mxu1 }
 0x1a0   : > { %3419 = vmatmul.mubr.bf16.gmra.mrb[56].mxu1 %v3686_v49  ;;  %v1867_v63 = vrot.slane %v1866_v58, 4  ;;  %v2389_v20 = vsel %vm4398_vm4, %v3623_v11, %v2388_v6  ;;  %v2397_v35 = vsel %vm4398_vm4, %v3625_v40, %v2396_v45  ;;  %v725_v0 = vmax.bf16 %v565_v3, %v405_v57  ;;  %v6713_v57 = vld [vmem:[#allocation52_spill] sm:$0xff] }
 0x1a1   : > { %v1844_v47 = vsel %vm4434_vm5, %v1839_v36, %v1843_v30  ;;  %v727_v39 = vmax.bf16 %v567_v51, %v407_v32  ;;  %v729_v60 = vmax.bf16 %v569_v23, %v409_v19  ;;  %v731_v17 = vmax.bf16 %v571_v33, %v411_v7  ;;  %v6172_v30 = vpop.f32.mrb[23].mxu1 }
 0x1a2   : > { %v1872_v59 = vsel %vm4434_vm5, %v1867_v63, %v1871_v61  ;;  %v2011_v34 = vmax.bf16 %v1844_v47, %v980_v31  ;;  %v853_v48 = vmax.bf16 %v6081_v15, %v6073_v38  ;;  %v855_v3 = vmax.bf16 %v6083_v24, %v6079_v62  ;;  %v6714_v62 = vld [vmem:[#allocation50_spill] sm:$0xff] }
 0x1a3   : > { %v2013_v11 = vmax.bf16 %v1872_v59, %v984_v26  ;;  %v857_v56 = vmax.bf16 %v725_v0, %v6081_v15  ;;  %v859_v49 = vmax.bf16 %v727_v39, %v6083_v24  ;;  %v3745_v31 = vadd.f32 %v5717_v8, %v5709_v2  ;;  %v6715_v59 = vld [vmem:[#allocation53_spill] sm:$0xff] }
 0x1a4   : > { %v2526_v22 = vmax.bf16 %v2389_v20, %v2011_v34  ;;  %v981_v38 = vmax.bf16 %v853_v48, %v725_v0  ;;  %v983_v61 = vmax.bf16 %v855_v3, %v727_v39  ;;  %v3857_v32 = vadd.f32 %v6714_v62, %v6713_v57  ;;  %v6716_v34 = vld [vmem:[#allocation54_spill] sm:$0xff] }
 0x1a5   : > { %v2528_v58 = vmax.bf16 %v2397_v35, %v2013_v11  ;;  %v985_v6 = vmax.bf16 %v857_v56, %v729_v60  ;;  %v987_v40 = vmax.bf16 %v859_v49, %v731_v17  ;;  %v3148_v45 = vadd.f32 %v3745_v31, %v6170_v14  ;;  %v6717_v56 = vld [vmem:[#allocation49_spill] sm:$0xff]  ;;  %v6718_v49 = vld [vmem:[#allocation55_spill] sm:$0xff] }
 0x1a6   : > { %v1846_v19 = vshrl.u32 %v981_v38, 16  ;;  %v1849_v26 = vshll.u32 %v981_v38, 16  ;;  %v1855_v15 = vshll.u32 %v983_v61, 16  ;;  %v3624_v7 = vrot.slane %v981_v38, 9 }
 0x1a7   : > { %v3689_v24 = vcombine.high %v2526_v22, %v2528_v58  ;;  %v1874_v36 = vshrl.u32 %v985_v6, 16  ;;  %v1877_v37 = vshll.u32 %v985_v6, 16  ;;  %v1883_v2 = vshll.u32 %v987_v40, 16  ;;  %v6197_v62 = vpop.f32.mrb[24].mxu0 }
 0x1a8   : > { %v1848_v8 = vrot.slane %v1846_v19, 4  ;;  %v1851_v51 = vrot.slane %v1849_v26, 5  ;;  %v1857_v50 = vrot.slane %v1855_v15, 5  ;;  %v2392_v23 = vrot.slane %v983_v61, 5  ;;  %v6720_v61 = vld [vmem:[#allocation56_spill] sm:$0xff]  ;;  %v6202_v26 = vpop.f32.mrb[25].mxu0 }
 0x1a9   : > { %3265 = vmatprep.mubr.bf16.mxu0 %v3689_v24  ;;  %v1876_v29 = vrot.slane %v1874_v36, 4  ;;  %v1879_v33 = vrot.slane %v1877_v37, 5  ;;  %v1885_v63 = vrot.slane %v1883_v2, 5  ;;  %v3626_v20 = vrot.slane %v985_v6, 9  ;;  %v6723_v24 = vld [vmem:[#allocation60_spill] sm:$0xff]  ;;  %v6724_v36 = vld [vmem:[#allocation57_spill] sm:$0xff] }
 0x1aa   : > { %v1852_v35 = vor.u32 %v1851_v51, %v1848_v8  ;;  %v2393_v0 = vsel %vm4398_vm4, %v3624_v7, %v2392_v23  ;;  %v2400_v47 = vrot.slane %v987_v40, 5  ;;  %v3688_v39 = vcombine.low %v2526_v22, %v2528_v58  ;;  %v6719_v22 = vld [vmem:[#allocation59_spill] sm:$0xff]  ;;  %v6721_v40 = vld [vmem:[#allocation61_spill] sm:$0xff]  ;;  %v6725_v2 = vld [vmem:[#allocation62_spill] sm:$0xff]  ;;  %v6211_v23 = vpop.f32.mrb[26].mxu0 }
 0x1ab   : > { %v1880_v60 = vor.u32 %v1879_v33, %v1876_v29  ;;  %v3309_v17 = vadd.f32 %v3857_v32, %v3148_v45  ;;  %v3748_v48 = vadd.f32 %v6716_v34, %v6715_v59  ;;  %v3860_v31 = vadd.f32 %v6718_v49, %v6717_v56  ;;  %v6722_v45 = vld [vmem:[#allocation58_spill] sm:$0xff]  ;;  %v6726_v8 = vld [vmem:[#allocation63_spill] sm:$0xff] }
 0x1ac   : > { %v1853_v3 = vrot.slane %v1852_v35, 4  ;;  %v2401_v11 = vsel %vm4398_vm4, %v3626_v20, %v2400_v47  ;;  %3266 = vmatmul.mubr.bf16.gmra.mrb[60].mxu0 %v3688_v39  ;;  %v3751_v57 = vadd.f32 %v6720_v61, %v6719_v22  ;;  %v3863_v19 = vadd.f32 %v6722_v45, %v6721_v40  ;;  %v6727_v35 = vld [vmem:[#allocation64_spill] sm:$0xff]  ;;  %v3783_v39 = vpop.f32.mrb[27].mxu0  ;;  %v6731_v61 = vld [vmem:[#allocation2_spill] sm:$0xff]  ;;  %v6733_v40 = vld [vmem:[#allocation3_spill] sm:$0xff] }
 0x1ad   : > { %v1881_v32 = vrot.slane %v1880_v60, 4  ;;  %v3435_v58 = vmax.f32 %v3309_v17, 0.0  ;;  %v3151_v28 = vadd.f32 %v3748_v48, %v6170_v14  ;;  %v3754_v37 = vadd.f32 %v6724_v36, %v6723_v24  ;;  %v6734_v45 = vld [vmem:[#allocation6_spill] sm:$0xff]  ;;  %v6735_v36 = vld [vmem:[#allocation7_spill] sm:$0xff] }
 0x1ae   : > { %v1858_v15 = vsel %vm4434_vm5, %v1853_v3, %v1857_v50  ;;  %v3156_v7 = vadd.f32 %v3751_v57, %v6170_v14  ;;  %v3866_v51 = vadd.f32 %v6726_v8, %v6725_v2  ;;  %v6728_v50 = vld [vmem:[#allocation65_spill] sm:$0xff]  ;;  %v3869_v34 = vadd.f32 %v5896_v52, %v5886_v21  ;;  %v6730_v3 = vld [vmem:[#allocation4_spill] sm:$0xff] }
 0x1af   : > { %v1886_v29 = vsel %vm4434_vm5, %v1881_v32, %v1885_v63  ;;  %v2012_v33 = vmax.bf16 %v1858_v15, %v981_v38  ;;  %3468 = vst.msk [vmem:[%s6191_s13] sm:$0xff] %vm3467_vm6, %v3435_v58  ;;  %v3312_v20 = vadd.f32 %v3860_v31, %v3151_v28  ;;  %v3757_v47 = vadd.f32 %v6728_v50, %v6727_v35  ;;  %v6729_v63 = vld [vmem:[#allocation66_spill] sm:$0xff]  ;;  %v6732_v57 = vld [vmem:[#allocation5_spill] sm:$0xff] }
 0x1b0   : > { %v2014_v60 = vmax.bf16 %v1886_v29, %v985_v6  ;;  %v3317_v17 = vadd.f32 %v3863_v19, %v3156_v7  ;;  %v3159_v59 = vadd.f32 %v3754_v37, %v6170_v14  ;;  %v3760_v56 = vadd.f32 %v6730_v3, %v6729_v63  ;;  %v6736_v37 = vld [vmem:[#allocation8_spill] sm:$0xff] }
 0x1b1   : > { %v2527_v48 = vmax.bf16 %v2393_v0, %v2012_v33  ;;  %v3436_v18 = vmax.f32 %v3312_v20, 0.0  ;;  %v3164_v38 = vadd.f32 %v3757_v47, %v6170_v14  ;;  %v3872_v6 = vadd.f32 %v6732_v57, %v6731_v61  ;;  %v3891_v8 = vpop.f32.mrb[24].mxu1  ;;  %v6737_v33 = vld [vmem:[#allocation9_spill] sm:$0xff] }
 0x1b2   : > { %v2529_v49 = vmax.bf16 %v2401_v11, %v2014_v60  ;;  %v3437_v31 = vmax.f32 %v3317_v17, 0.0  ;;  %v3320_v22 = vadd.f32 %v3866_v51, %v3159_v59  ;;  %v3167_v21 = vadd.f32 %v3760_v56, %v6170_v14 }
 0x1b3   : > { %3469 = vst.msk [vmem:[%s6191_s13 + $0x8] sm:$0xff] %vm3467_vm6, %v3436_v18  ;;  %v3325_v32 = vadd.f32 %v3869_v34, %v3164_v38  ;;  %v3763_v52 = vadd.f32 %v5950_v44, %v5941_v13  ;;  %v3875_v0 = vadd.f32 %v5987_v16, %v5977_v43  ;;  %v3766_v19 = vadd.f32 %v6734_v45, %v6733_v40 }
 0x1b4   : > { %v3691_v58 = vcombine.high %v2527_v48, %v2529_v49  ;;  %v3690_v28 = vcombine.low %v2527_v48, %v2529_v49  ;;  %3470 = vst.msk [vmem:[%s6191_s13 + $0x10] sm:$0xff] %vm3467_vm6, %v3437_v31  ;;  %v3438_v11 = vmax.f32 %v3320_v22, 0.0  ;;  %v3328_v7 = vadd.f32 %v3872_v6, %v3167_v21 }
 0x1b5   : > { %v3439_v15 = vmax.f32 %v3325_v32, 0.0  ;;  %v3172_v24 = vadd.f32 %v3763_v52, %v6170_v14  ;;  %v3878_v2 = vadd.f32 %v6736_v37, %v6735_v36  ;;  %v3175_v13 = vadd.f32 %v3766_v19, %v6170_v14 }
 0x1b6   : > { %3426 = vmatprep.mubr.bf16.mxu1 %v3691_v58  ;;  %3471 = vst.msk [vmem:[%s6191_s13 + $0x18] sm:$0xff] %vm3467_vm6, %v3438_v11  ;;  %v3769_v44 = vadd.f32 %v6039_v4, %v6031_v53  ;;  %v3881_v43 = vadd.f32 %v6075_v5, %v6067_v1  ;;  %v3772_v16 = vadd.f32 %v6054_v41, %v6048_v27  ;;  %v3440_v51 = vmax.f32 %v3328_v7, 0.0  ;;  %v3892_v53 = vpop.f32.mrb[25].mxu1 }
 0x1b7   : > { %3427 = vmatmul.mubr.bf16.gmra.mrb[60].mxu1 %v3690_v28  ;;  %3472 = vst.msk [vmem:[%s6191_s13 + $0x20] sm:$0xff] %vm3467_vm6, %v3439_v15  ;;  %v3333_v29 = vadd.f32 %v3875_v0, %v3172_v24  ;;  %v3884_v20 = vadd.f32 %v6737_v33, %v6085_v10  ;;  %v3775_v35 = vadd.f32 %v6126_v54, %v6121_v12  ;;  %v3894_v41 = vpop.f32.mrb[26].mxu1 }
 0x1b8   : > { %v3336_v4 = vadd.f32 %v3878_v2, %v3175_v13  ;;  %v3180_v1 = vadd.f32 %v3769_v44, %v6170_v14  ;;  %v3183_v5 = vadd.f32 %v3772_v16, %v6170_v14  ;;  %v3887_v27 = vadd.f32 %v6155_v9, %v6149_v55  ;;  %3473 = vst.msk [vmem:[%s6191_s13 + $0x28] sm:$0xff] %vm3467_vm6, %v3440_v51  ;;  %v3895_v47 = vpop.f32.mrb[27].mxu1 }
 0x1b9   : > { %v3441_v50 = vmax.f32 %v3333_v29, 0.0  ;;  %v3188_v10 = vadd.f32 %v3775_v35, %v6170_v14  ;;  %v3778_v12 = vadd.f32 %v6137_v42, %v6133_v46  ;;  %v3890_v54 = vadd.f32 %v6172_v30, %v6159_v25 }
 0x1ba   : > { %v3442_v60 = vmax.f32 %v3336_v4, 0.0  ;;  %v3341_v17 = vadd.f32 %v3881_v43, %v3180_v1  ;;  %v3344_v59 = vadd.f32 %v3884_v20, %v3183_v5  ;;  %v3781_v55 = vadd.f32 %v6202_v26, %v6197_v62 }
 0x1bb   : > { %3474 = vst.msk [vmem:[%s6191_s13 + $0x30] sm:$0xff] %vm3467_vm6, %v3441_v50  ;;  %v3349_v9 = vadd.f32 %v3887_v27, %v3188_v10  ;;  %v3191_v34 = vadd.f32 %v3778_v12, %v6170_v14  ;;  %v3893_v48 = vadd.f32 %v3892_v53, %v3891_v8  ;;  %v3784_v46 = vadd.f32 %v3783_v39, %v6211_v23 }
 0x1bc   : > { %3475 = vst.msk [vmem:[%s6191_s13 + $0x38] sm:$0xff] %vm3467_vm6, %v3442_v60  ;;  %v3443_v42 = vmax.f32 %v3341_v17, 0.0  ;;  %v3444_v25 = vmax.f32 %v3344_v59, 0.0  ;;  %v3196_v30 = vadd.f32 %v3781_v55, %v6170_v14  ;;  %v3896_v18 = vadd.f32 %v3895_v47, %v3894_v41 }
 0x1bd   : > { %v3445_v62 = vmax.f32 %v3349_v9, 0.0  ;;  %v3352_v26 = vadd.f32 %v3890_v54, %v3191_v34  ;;  %v3199_v38 = vadd.f32 %v3784_v46, %v6170_v14 }
 0x1be   : > { %3476 = vst.msk [vmem:[%s6191_s13 + $0x40] sm:$0xff] %vm3467_vm6, %v3443_v42  ;;  %3477 = vst.msk [vmem:[%s6191_s13 + $0x48] sm:$0xff] %vm3467_vm6, %v3444_v25  ;;  %v3357_v63 = vadd.f32 %v3893_v48, %v3196_v30  ;;  %v3785_v49 = vpop.f32.mrb[28].mxu0 }
 0x1bf   : > { %3478 = vst.msk [vmem:[%s6191_s13 + $0x50] sm:$0xff] %vm3467_vm6, %v3445_v62  ;;  %v3446_v23 = vmax.f32 %v3352_v26, 0.0  ;;  %v3360_v39 = vadd.f32 %v3896_v18, %v3199_v38  ;;  %v3786_v31 = vpop.f32.mrb[29].mxu0 }
 0x1c0   : > { %v3447_v3 = vmax.f32 %v3357_v63, 0.0  ;;  %v3787_v22 = vadd.f32 %v3786_v31, %v3785_v49  ;;  %v3788_v61 = vpop.f32.mrb[30].mxu0 }
 0x1c1   : > { %3479 = vst.msk [vmem:[%s6191_s13 + $0x58] sm:$0xff] %vm3467_vm6, %v3446_v23  ;;  %v3448_v56 = vmax.f32 %v3360_v39, 0.0  ;;  %v3789_v57 = vpop.f32.mrb[31].mxu0 }
 0x1c2   : > { %3480 = vst.msk [vmem:[%s6191_s13 + $0x60] sm:$0xff] %vm3467_vm6, %v3447_v3  ;;  %v3790_v6 = vadd.f32 %v3789_v57, %v3788_v61  ;;  %v3204_v21 = vadd.f32 %v3787_v22, %v6170_v14 }
 0x1c3   : > { %3481 = vst.msk [vmem:[%s6191_s13 + $0x68] sm:$0xff] %vm3467_vm6, %v3448_v56 }
 0x1c4   : > { %v3207_v28 = vadd.f32 %v3790_v6, %v6170_v14 }
 0x1ca   : > { %v3897_v32 = vpop.f32.mrb[28].mxu1 }
 0x1cb   : > { %v3898_v52 = vpop.f32.mrb[29].mxu1 }
 0x1cc   : > { %v3899_v0 = vadd.f32 %v3898_v52, %v3897_v32  ;;  %v3900_v58 = vpop.f32.mrb[30].mxu1 }
 0x1cd   : > { %v3901_v11 = vpop.f32.mrb[31].mxu1 }
 0x1ce   : > { %v3365_v40 = vadd.f32 %v3899_v0, %v3204_v21  ;;  %v3902_v45 = vadd.f32 %v3901_v11, %v3900_v58 }
 0x1d0   : > { %v3449_v19 = vmax.f32 %v3365_v40, 0.0  ;;  %v3368_v15 = vadd.f32 %v3902_v45, %v3207_v28 }
 0x1d2   : > { %3482 = vst.msk [vmem:[%s6191_s13 + $0x70] sm:$0xff] %vm3467_vm6, %v3449_v19  ;;  %v3450_v7 = vmax.f32 %v3368_v15, 0.0 }
 0x1d4   : > { %3483 = vst.msk [vmem:[%s6191_s13 + $0x78] sm:$0xff] %vm3467_vm6, %v3450_v7 }
 0x1d9   : > { %v3791_v24 = vpop.f32.mrb[32].mxu0 }
 0x1da   : > { %v3792_v36 = vpop.f32.mrb[33].mxu0 }
 0x1db   : > { %v3793_v37 = vadd.f32 %v3792_v36, %v3791_v24  ;;  %v3794_v2 = vpop.f32.mrb[34].mxu0 }
 0x1dc   : > { %v3795_v13 = vpop.f32.mrb[35].mxu0 }
 0x1dd   : > { %v3796_v44 = vadd.f32 %v3795_v13, %v3794_v2  ;;  %v3212_v16 = vadd.f32 %v3793_v37, %v6170_v14 }
 0x1df   : > { %v3215_v33 = vadd.f32 %v3796_v44, %v6170_v14 }
 0x1e4   : > { %v3903_v43 = vpop.f32.mrb[32].mxu1 }
 0x1e5   : > { %v3904_v8 = vpop.f32.mrb[33].mxu1 }
 0x1e6   : > { %v3905_v51 = vadd.f32 %v3904_v8, %v3903_v43  ;;  %v3906_v29 = vpop.f32.mrb[34].mxu1 }
 0x1e7   : > { %v3907_v20 = vpop.f32.mrb[35].mxu1 }
 0x1e8   : > { %v3373_v35 = vadd.f32 %v3905_v51, %v3212_v16  ;;  %v3908_v53 = vadd.f32 %v3907_v20, %v3906_v29 }
 0x1ea   : > { %v3451_v4 = vmax.f32 %v3373_v35, 0.0  ;;  %v3376_v1 = vadd.f32 %v3908_v53, %v3215_v33 }
 0x1ec   : > { %3484 = vst.msk [vmem:[%s6191_s13 + $0x80] sm:$0xff] %vm3467_vm6, %v3451_v4  ;;  %v3452_v5 = vmax.f32 %v3376_v1, 0.0 }
 0x1ee   : > { %3485 = vst.msk [vmem:[%s6191_s13 + $0x88] sm:$0xff] %vm3467_vm6, %v3452_v5 }
 0x1f1   : > { %v3797_v27 = vpop.f32.mrb[36].mxu0 }
 0x1f2   : > { %v3798_v41 = vpop.f32.mrb[37].mxu0 }
 0x1f3   : > { %v3799_v50 = vadd.f32 %v3798_v41, %v3797_v27  ;;  %v3800_v10 = vpop.f32.mrb[38].mxu0 }
 0x1f4   : > { %v3801_v12 = vpop.f32.mrb[39].mxu0 }
 0x1f5   : > { %v3802_v54 = vadd.f32 %v3801_v12, %v3800_v10  ;;  %v3220_v60 = vadd.f32 %v3799_v50, %v6170_v14 }
 0x1f7   : > { %v3223_v9 = vadd.f32 %v3802_v54, %v6170_v14 }
 0x1fb   : > { %v3909_v47 = vpop.f32.mrb[36].mxu1 }
 0x1fc   : > { %v3910_v17 = vpop.f32.mrb[37].mxu1 }
 0x1fd   : > { %v3911_v59 = vadd.f32 %v3910_v17, %v3909_v47  ;;  %v3912_v55 = vpop.f32.mrb[38].mxu1 }
 0x1fe   : > { %v3913_v34 = vpop.f32.mrb[39].mxu1 }
 0x1ff   : > { %v3381_v48 = vadd.f32 %v3911_v59, %v3220_v60  ;;  %v3914_v46 = vadd.f32 %v3913_v34, %v3912_v55 }
 0x201   : > { %v3453_v42 = vmax.f32 %v3381_v48, 0.0  ;;  %v3384_v25 = vadd.f32 %v3914_v46, %v3223_v9 }
 0x203   : > { %3486 = vst.msk [vmem:[%s6191_s13 + $0x90] sm:$0xff] %vm3467_vm6, %v3453_v42  ;;  %v3454_v30 = vmax.f32 %v3384_v25, 0.0 }
 0x205   : > { %3487 = vst.msk [vmem:[%s6191_s13 + $0x98] sm:$0xff] %vm3467_vm6, %v3454_v30 }
 0x208   : > { %v3803_v18 = vpop.f32.mrb[40].mxu0 }
 0x209   : > { %v3804_v62 = vpop.f32.mrb[41].mxu0 }
 0x20a   : > { %v3805_v26 = vadd.f32 %v3804_v62, %v3803_v18  ;;  %v3806_v38 = vpop.f32.mrb[42].mxu0 }
 0x20b   : > { %v3807_v63 = vpop.f32.mrb[43].mxu0 }
 0x20c   : > { %v3808_v23 = vadd.f32 %v3807_v63, %v3806_v38  ;;  %v3228_v3 = vadd.f32 %v3805_v26, %v6170_v14 }
 0x20e   : > { %v3231_v22 = vadd.f32 %v3808_v23, %v6170_v14 }
 0x212   : > { %v3915_v39 = vpop.f32.mrb[40].mxu1 }
 0x213   : > { %v3916_v56 = vpop.f32.mrb[41].mxu1 }
 0x214   : > { %v3917_v49 = vadd.f32 %v3916_v56, %v3915_v39  ;;  %v3918_v31 = vpop.f32.mrb[42].mxu1 }
 0x215   : > { %v3919_v61 = vpop.f32.mrb[43].mxu1 }
 0x216   : > { %v3389_v57 = vadd.f32 %v3917_v49, %v3228_v3  ;;  %v3920_v6 = vadd.f32 %v3919_v61, %v3918_v31 }
 0x218   : > { %v3455_v32 = vmax.f32 %v3389_v57, 0.0  ;;  %v3392_v21 = vadd.f32 %v3920_v6, %v3231_v22 }
 0x21a   : > { %3488 = vst.msk [vmem:[%s6191_s13 + $0xa0] sm:$0xff] %vm3467_vm6, %v3455_v32  ;;  %v3456_v52 = vmax.f32 %v3392_v21, 0.0 }
 0x21c   : > { %3489 = vst.msk [vmem:[%s6191_s13 + $0xa8] sm:$0xff] %vm3467_vm6, %v3456_v52 }
 0x21f   : > { %v3809_v0 = vpop.f32.mrb[44].mxu0 }
 0x220   : > { %v3810_v58 = vpop.f32.mrb[45].mxu0 }
 0x221   : > { %v3811_v28 = vadd.f32 %v3810_v58, %v3809_v0  ;;  %v3812_v11 = vpop.f32.mrb[46].mxu0 }
 0x222   : > { %v3813_v40 = vpop.f32.mrb[47].mxu0 }
 0x223   : > { %v3814_v45 = vadd.f32 %v3813_v40, %v3812_v11  ;;  %v3236_v15 = vadd.f32 %v3811_v28, %v6170_v14 }
 0x225   : > { %v3239_v37 = vadd.f32 %v3814_v45, %v6170_v14 }
 0x229   : > { %v3921_v19 = vpop.f32.mrb[44].mxu1 }
 0x22a   : > { %v3922_v7 = vpop.f32.mrb[45].mxu1 }
 0x22b   : > { %v3923_v24 = vadd.f32 %v3922_v7, %v3921_v19  ;;  %v3924_v36 = vpop.f32.mrb[46].mxu1 }
 0x22c   : > { %v3925_v2 = vpop.f32.mrb[47].mxu1 }
 0x22d   : > { %v3397_v13 = vadd.f32 %v3923_v24, %v3236_v15  ;;  %v3926_v44 = vadd.f32 %v3925_v2, %v3924_v36 }
 0x22f   : > { %v3457_v43 = vmax.f32 %v3397_v13, 0.0  ;;  %v3400_v16 = vadd.f32 %v3926_v44, %v3239_v37 }
 0x231   : > { %3490 = vst.msk [vmem:[%s6191_s13 + $0xb0] sm:$0xff] %vm3467_vm6, %v3457_v43  ;;  %v3458_v8 = vmax.f32 %v3400_v16, 0.0 }
 0x233   : > { %3491 = vst.msk [vmem:[%s6191_s13 + $0xb8] sm:$0xff] %vm3467_vm6, %v3458_v8 }
 0x23a   : > { %v3815_v51 = vpop.f32.mrb[48].mxu0 }
 0x23b   : > { %v3816_v29 = vpop.f32.mrb[49].mxu0 }
 0x23c   : > { %v3817_v33 = vadd.f32 %v3816_v29, %v3815_v51  ;;  %v3818_v20 = vpop.f32.mrb[50].mxu0 }
 0x23d   : > { %v3819_v35 = vpop.f32.mrb[51].mxu0 }
 0x23e   : > { %v3820_v53 = vadd.f32 %v3819_v35, %v3818_v20  ;;  %v3244_v1 = vadd.f32 %v3817_v33, %v6170_v14 }
 0x240   : > { %v3247_v50 = vadd.f32 %v3820_v53, %v6170_v14 }
 0x245   : > { %v3927_v4 = vpop.f32.mrb[48].mxu1 }
 0x246   : > { %v3928_v5 = vpop.f32.mrb[49].mxu1 }
 0x247   : > { %v3929_v27 = vadd.f32 %v3928_v5, %v3927_v4  ;;  %v3930_v41 = vpop.f32.mrb[50].mxu1 }
 0x248   : > { %v3931_v10 = vpop.f32.mrb[51].mxu1 }
 0x249   : > { %v3405_v12 = vadd.f32 %v3929_v27, %v3244_v1  ;;  %v3932_v54 = vadd.f32 %v3931_v10, %v3930_v41 }
 0x24b   : > { %v3459_v47 = vmax.f32 %v3405_v12, 0.0  ;;  %v3408_v60 = vadd.f32 %v3932_v54, %v3247_v50 }
 0x24d   : > { %3492 = vst.msk [vmem:[%s6191_s13 + $0xc0] sm:$0xff] %vm3467_vm6, %v3459_v47  ;;  %v3460_v17 = vmax.f32 %v3408_v60, 0.0 }
 0x24f   : > { %3493 = vst.msk [vmem:[%s6191_s13 + $0xc8] sm:$0xff] %vm3467_vm6, %v3460_v17 }
 0x251   : > { %v3821_v59 = vpop.f32.mrb[52].mxu0 }
 0x252   : > { %v3822_v55 = vpop.f32.mrb[53].mxu0 }
 0x253   : > { %v3823_v9 = vadd.f32 %v3822_v55, %v3821_v59  ;;  %v3824_v34 = vpop.f32.mrb[54].mxu0 }
 0x254   : > { %v3825_v48 = vpop.f32.mrb[55].mxu0 }
 0x255   : > { %v3826_v46 = vadd.f32 %v3825_v48, %v3824_v34  ;;  %v3252_v25 = vadd.f32 %v3823_v9, %v6170_v14 }
 0x257   : > { %v3255_v26 = vadd.f32 %v3826_v46, %v6170_v14 }
 0x25c   : > { %v3933_v42 = vpop.f32.mrb[52].mxu1 }
 0x25d   : > { %v3934_v30 = vpop.f32.mrb[53].mxu1 }
 0x25e   : > { %v3935_v18 = vadd.f32 %v3934_v30, %v3933_v42  ;;  %v3936_v62 = vpop.f32.mrb[54].mxu1 }
 0x25f   : > { %v3937_v38 = vpop.f32.mrb[55].mxu1 }
 0x260   : > { %v3413_v63 = vadd.f32 %v3935_v18, %v3252_v25  ;;  %v3938_v23 = vadd.f32 %v3937_v38, %v3936_v62 }
 0x262   : > { %v3461_v39 = vmax.f32 %v3413_v63, 0.0  ;;  %v3416_v3 = vadd.f32 %v3938_v23, %v3255_v26 }
 0x264   : > { %3494 = vst.msk [vmem:[%s6191_s13 + $0xd0] sm:$0xff] %vm3467_vm6, %v3461_v39  ;;  %v3462_v56 = vmax.f32 %v3416_v3, 0.0 }
 0x266   : > { %3495 = vst.msk [vmem:[%s6191_s13 + $0xd8] sm:$0xff] %vm3467_vm6, %v3462_v56 }
 0x268   : > { %v3827_v49 = vpop.f32.mrb[56].mxu0 }
 0x269   : > { %v3828_v31 = vpop.f32.mrb[57].mxu0 }
 0x26a   : > { %v3829_v22 = vadd.f32 %v3828_v31, %v3827_v49  ;;  %v3830_v61 = vpop.f32.mrb[58].mxu0 }
 0x26b   : > { %v3831_v57 = vpop.f32.mrb[59].mxu0 }
 0x26c   : > { %v3832_v6 = vadd.f32 %v3831_v57, %v3830_v61  ;;  %v3260_v21 = vadd.f32 %v3829_v22, %v6170_v14 }
 0x26e   : > { %v3263_v28 = vadd.f32 %v3832_v6, %v6170_v14 }
 0x273   : > { %v3939_v32 = vpop.f32.mrb[56].mxu1 }
 0x274   : > { %v3940_v52 = vpop.f32.mrb[57].mxu1 }
 0x275   : > { %v3941_v0 = vadd.f32 %v3940_v52, %v3939_v32  ;;  %v3942_v58 = vpop.f32.mrb[58].mxu1 }
 0x276   : > { %v3943_v11 = vpop.f32.mrb[59].mxu1 }
 0x277   : > { %v3421_v40 = vadd.f32 %v3941_v0, %v3260_v21  ;;  %v3944_v45 = vadd.f32 %v3943_v11, %v3942_v58 }
 0x279   : > { %v3463_v19 = vmax.f32 %v3421_v40, 0.0  ;;  %v3424_v15 = vadd.f32 %v3944_v45, %v3263_v28 }
 0x27b   : > { %3496 = vst.msk [vmem:[%s6191_s13 + $0xe0] sm:$0xff] %vm3467_vm6, %v3463_v19  ;;  %v3464_v7 = vmax.f32 %v3424_v15, 0.0 }
 0x27d   : > { %3497 = vst.msk [vmem:[%s6191_s13 + $0xe8] sm:$0xff] %vm3467_vm6, %v3464_v7 }
 0x27f   : > { %v3833_v24 = vpop.f32.mrb[60].mxu0 }
 0x280   : > { %v3834_v36 = vpop.f32.mrb[61].mxu0 }
 0x281   : > { %v3835_v37 = vadd.f32 %v3834_v36, %v3833_v24  ;;  %v3836_v2 = vpop.f32.mrb[62].mxu0 }
 0x282   : > { %v3837_v13 = vpop.f32.mrb[63].mxu0 }
 0x283   : > { %v3838_v44 = vadd.f32 %v3837_v13, %v3836_v2  ;;  %v3268_v16 = vadd.f32 %v3835_v37, %v6170_v14 }
 0x285   : > { %v3271_v33 = vadd.f32 %v3838_v44, %v6170_v14 }
 0x28a   : > { %v3945_v43 = vpop.f32.mrb[60].mxu1 }
 0x28b   : > { %v3946_v8 = vpop.f32.mrb[61].mxu1 }
 0x28c   : > { %v3947_v51 = vadd.f32 %v3946_v8, %v3945_v43  ;;  %v3948_v29 = vpop.f32.mrb[62].mxu1 }
 0x28d   : > { %v3949_v20 = vpop.f32.mrb[63].mxu1 }
 0x28e   : > { %v3429_v35 = vadd.f32 %v3947_v51, %v3268_v16  ;;  %v3950_v53 = vadd.f32 %v3949_v20, %v3948_v29 }
 0x290   : > { %v3465_v4 = vmax.f32 %v3429_v35, 0.0  ;;  %v3432_v1 = vadd.f32 %v3950_v53, %v3271_v33 }
 0x292   : > { %3498 = vst.msk [vmem:[%s6191_s13 + $0xf0] sm:$0xff] %vm3467_vm6, %v3465_v4  ;;  %v3466_v5 = vmax.f32 %v3432_v1, 0.0 }
 0x294   : > { %3499 = vst.msk [vmem:[%s6191_s13 + $0xf8] sm:$0xff] %vm3467_vm6, %v3466_v5 }
 0x295 PF: > { %s13_s12 = sadd.s32 1, %s4066_s12  }
 0x296   : > { %p10_p4 = scmp.ge.s32.totalorder %s13_s12, 4  }
 0x298   :  { %12 = sbr.rel (!%p10_p4) target bundleno = 1 (0x1), region = 62 }

// kernel: mixed_4c.4
= control target key start
LH: loop header
LB: loop body
LE: loop exit
PB: predicated region body
PF: predicated region fallthrough
CT: control target
= control target key end

     0   :  { %s2150_s12 = smov 0   ;;  %s2711_s0 = inlined_call_operand.vmem [shape: bf16[512,512], index: 0, kind: input, shape index: {}]   ;;  %s2712_s1 = inlined_call_operand.vmem [shape: bf16[512,296], index: 1, kind: input, shape index: {}]   ;;  %s2713_s2 = inlined_call_operand.vmem [shape: f32[1,296], index: 2, kind: input, shape index: {}]   ;;  %s2714_s3 = inlined_call_operand.vmem [shape: f32[512,296], index: 3, kind: output, shape index: {}]  }
   0x1 LB: > { %s1604_s13 = sadd.s32 4294967295, %s2128_s12   ;;  %p1608_p0 = scmp.ge.s32.totalorder %s2128_s12, 1  ;;  %s2128_s12 = sphi %s2150_s12, %s13_s12  }
   0x2   : > { %p139_p1 = scmp.lt.s32.totalorder %s2128_s12, 5 }
   0x4   : > { %p140_p2 = pnand %p1608_p0, %p139_p1 }
   0x5   : > { %v1946_v0 = vld [vmem:[%s2712_s1 + $0x4] ss:$12 sps:$4 sm:$0xff] (!%p140_p2)   ;;  %v1948_v1 = vld [vmem:[%s2712_s1 + $0xc8] ss:$12 sps:$4 sm:$0xff] (!%p140_p2)   ;;  %v1949_v2 = vld [vmem:[%s2712_s1] ss:$12 sps:$4 sm:$0xff] (!%p140_p2)  }
   0x6   : > { %143 = sbr.rel (%p140_p2) target bundleno = 410 (0x19a), region = 32  ;;  %1029 = vmatprep.subr.bf16.mxu0 (!%p140_p2), %v1946_v0  ;;  %1745 = vmatprep.subr.bf16.mxu1 (!%p140_p2), %v1948_v1  ;;  %v1950_v3 = vld [vmem:[%s2712_s1 + $0x8] ss:$12 sps:$4 sm:$0xff] (!%p140_p2)   ;;  %v1953_v5 = vld [vmem:[%s2712_s1 + $0xe0] ss:$12 sps:$4 sm:$0xff] (!%p140_p2)   ;;  %s1609_s5 = sshll.u32 (!%p140_p2), %s1604_s13, 4 }
   0x7   : > { %1030 = vmatpush1.bf16.msra.mxu0 (!%p140_p2), %v1949_v2  ;;  %v1951_v4 = vld [vmem:[%s2712_s1 + $0x1c] ss:$12 sps:$4 sm:$0xff] (!%p140_p2)   ;;  %1746 = vmatpush3.bf16.msra.mxu1 (!%p140_p2), %v1950_v3  ;;  %v1954_v6 = vld [vmem:[%s2712_s1 + $0x18] ss:$12 sps:$4 sm:$0xff] (!%p140_p2)   ;;  %v1955_v7 = vld [vmem:[%s2712_s1 + $0x20] ss:$12 sps:$4 sm:$0xff] (!%p140_p2)  }
   0x8   : > { %1031 = vmatprep.subr.bf16.mxu0 (!%p140_p2), %v1951_v4  ;;  %1747 = vmatprep.subr.bf16.mxu1 (!%p140_p2), %v1953_v5  ;;  %v1956_v8 = vld [vmem:[%s2712_s1 + $0x34] ss:$12 sps:$4 sm:$0xff] (!%p140_p2)   ;;  %v1958_v9 = vld [vmem:[%s2712_s1 + $0xf8] ss:$12 sps:$4 sm:$0xff] (!%p140_p2)   ;;  %v1959_v10 = vld [vmem:[%s2712_s1 + $0x30] ss:$12 sps:$4 sm:$0xff] (!%p140_p2)  }
   0x9   : > { %v1960_v11 = vld [vmem:[%s2712_s1 + $0x38] ss:$12 sps:$4 sm:$0xff] (!%p140_p2)   ;;  %p166_p3 = scmp.lt.s32.totalorder (!%p140_p2), %s1609_s5, 63  ;;  %v1963_v13 = vld [vmem:[%s2712_s1 + $0x110] ss:$12 sps:$4 sm:$0xff] (!%p140_p2)   ;;  %vm1499_vm0 = vcmask (!%p140_p2), 326656  }
   0xa   : > { %v1961_v12 = vld [vmem:[%s2712_s1 + $0x4c] ss:$12 sps:$4 sm:$0xff] (!%p140_p2)   ;;  %v1964_v14 = vld [vmem:[%s2712_s1 + $0x48] ss:$12 sps:$4 sm:$0xff] (!%p140_p2)   ;;  %v1965_v15 = vld [vmem:[%s2712_s1 + $0x50] ss:$12 sps:$4 sm:$0xff] (!%p140_p2)  }
   0xb   : > { %1032 = vmatpush1.bf16.msra.mxu0 (!%p140_p2), %v1954_v6  ;;  %1748 = vmatpush3.bf16.msra.mxu1 (!%p140_p2), %v1955_v7  ;;  %v1966_v16 = vld [vmem:[%s2712_s1 + $0x64] ss:$12 sps:$4 sm:$0xff] (!%p140_p2)   ;;  %v1968_v17 = vld [vmem:[%s2712_s1 + $0x128] ss:$12 sps:$4 sm:$0xff] (!%p140_p2)   ;;  %v1969_v18 = vld [vmem:[%s2712_s1 + $0x60] ss:$12 sps:$4 sm:$0xff] (!%p140_p2)  }
   0xc   : > { %1033 = vmatprep.subr.bf16.mxu0 (!%p140_p2), %v1956_v8  ;;  %1749 = vmatprep.subr.bf16.mxu1 (!%p140_p2), %v1958_v9  ;;  %v1970_v19 = vld [vmem:[%s2712_s1 + $0x68] ss:$12 sps:$4 sm:$0xff] (!%p140_p2)   ;;  %v1973_v21 = vld [vmem:[%s2712_s1 + $0x140] ss:$12 sps:$4 sm:$0xff] (!%p140_p2)   ;;  %v1974_v22 = vld [vmem:[%s2712_s1 + $0x78] ss:$12 sps:$4 sm:$0xff] (!%p140_p2)  }
   0xd   : > { %s2716_s5 = smov (!%p166_p3, %s1609_s5), 63  ;;  %v1971_v20 = vld [vmem:[%s2712_s1 + $0x7c] ss:$12 sps:$4 sm:$0xff]   ;;  %v1975_v23 = vld [vmem:[%s2712_s1 + $0x80] ss:$12 sps:$4 sm:$0xff]  }
   0xe   : > { %s1744_s11 = sshll.u32 %s2716_s5, 4  ;;  %v1976_v24 = vld [vmem:[%s2712_s1 + $0x94] ss:$12 sps:$4 sm:$0xff]   ;;  %v1978_v25 = vld [vmem:[%s2712_s1 + $0x158] ss:$12 sps:$4 sm:$0xff]   ;;  %s1937_s16 = smul.u32 24, %s2716_s5 }
   0xf   : > { %1034 = vmatpush1.bf16.msra.mxu0 %v1959_v10  ;;  %1750 = vmatpush3.bf16.msra.mxu1 %v1960_v11  ;;  %v1979_v26 = vld [vmem:[%s2712_s1 + $0x90] ss:$12 sps:$4 sm:$0xff]   ;;  %s2245_s21 = scalar_lea.vmem %s2711_s0, %s1744_s11  ;;  %v1980_v27 = vld [vmem:[%s2712_s1 + $0x98] ss:$12 sps:$4 sm:$0xff]   ;;  %v1984_v30 = vld [vmem:[%s2712_s1 + $0xa8] ss:$12 sps:$4 sm:$0xff]  }
  0x10   : > { %1035 = vmatprep.subr.bf16.mxu0 %v1961_v12  ;;  %1751 = vmatprep.subr.bf16.mxu1 %v1963_v13  ;;  %v1981_v28 = vld [vmem:[%s2712_s1 + $0xac] ss:$12 sps:$4 sm:$0xff]   ;;  %v1983_v29 = vld [vmem:[%s2712_s1 + $0x170] ss:$12 sps:$4 sm:$0xff]   ;;  %v1988_v31 = vld [vmem:[%s2245_s21 + $0x4] ss:$16 sps:$4 sm:$0xff]   ;;  %s2576_s19 = scalar_lea.vmem %s2714_s3, %s1937_s16 }
  0x11   : > { %v1985_v32 = vld [vmem:[%s2712_s1 + $0xb0] ss:$12 sps:$4 sm:$0xff]   ;;  %1287 = vmatprep.mubr.bf16.mxu1 %v1988_v31  ;;  %1061 = vmatprep.mubr.bf16.mxu0 %v1988_v31  ;;  %v1991_v35 = vld [vmem:[%s2712_s1 + $0xc0] ss:$12 sps:$4 sm:$0xff]   ;;  %v2276_v37 = vld [vmem:[%s2245_s21 + $0x24] ss:$16 sps:$4 sm:$0xff]  }
  0x12   : > { %v1989_v33 = vld [vmem:[%s2712_s1 + $0xc4] ss:$12 sps:$4 sm:$0xff]   ;;  %v1992_v36 = vld [vmem:[%s2712_s1 + $0xdc] ss:$12 sps:$4 sm:$0xff]   ;;  %v1997_v39 = vld [vmem:[%s2712_s1 + $0xf4] ss:$12 sps:$4 sm:$0xff]  }
  0x13   : > { %1036 = vmatpush1.bf16.msra.mxu0 %v1964_v14  ;;  %1752 = vmatpush3.bf16.msra.mxu1 %v1965_v15  ;;  %v2267_v34 = vld [vmem:[%s2245_s21] ss:$16 sps:$4 sm:$0xff]   ;;  %v1994_v38 = vld [vmem:[%s2712_s1 + $0xd8] ss:$12 sps:$4 sm:$0xff]   ;;  %v2003_v44 = vld [vmem:[%s2712_s1 + $0x108] ss:$12 sps:$4 sm:$0xff]  }
  0x14   : > { %1037 = vmatprep.subr.bf16.mxu0 %v1966_v16  ;;  %1753 = vmatprep.subr.bf16.mxu1 %v1968_v17  ;;  %v2287_v40 = vld [vmem:[%s2245_s21 + $0x20] ss:$16 sps:$4 sm:$0xff]   ;;  %v2001_v42 = vld [vmem:[%s2712_s1 + $0x10c] ss:$12 sps:$4 sm:$0xff]   ;;  %v2296_v43 = vld [vmem:[%s2245_s21 + $0x44] ss:$16 sps:$4 sm:$0xff]  }
  0x15   : > { %v2000_v41 = vld [vmem:[%s2712_s1 + $0xf0] ss:$12 sps:$4 sm:$0xff]   ;;  %v2022_v45 = vld [vmem:[%s2712_s1 + $0x248] ss:$12 sps:$4 sm:$0xff]   ;;  %v2009_v49 = vld [vmem:[%s2712_s1 + $0x120] ss:$12 sps:$4 sm:$0xff]  }
  0x16   : > { %v2006_v46 = vld [vmem:[%s2712_s1 + $0x124] ss:$12 sps:$4 sm:$0xff]   ;;  %v2025_v47 = vld [vmem:[%s2712_s1 + $0x188] ss:$12 sps:$4 sm:$0xff]   ;;  %v2033_v52 = vld [vmem:[%s2712_s1 + $0x260] ss:$12 sps:$4 sm:$0xff]  }
  0x17   : > { %1038 = vmatpush1.bf16.msra.mxu0 %v1969_v18  ;;  %1754 = vmatpush3.bf16.msra.mxu1 %v1970_v19  ;;  %v2313_v48 = vld [vmem:[%s2245_s21 + $0x40] ss:$16 sps:$4 sm:$0xff]   ;;  %v2010_v50 = vld [vmem:[%s2712_s1 + $0x13c] ss:$12 sps:$4 sm:$0xff]   ;;  %v2322_v51 = vld [vmem:[%s2245_s21 + $0x64] ss:$16 sps:$4 sm:$0xff]  }
  0x18   : > { %1039 = vmatprep.subr.bf16.mxu0 %v1971_v20  ;;  %1755 = vmatprep.subr.bf16.mxu1 %v1973_v21  ;;  %v2034_v53 = vld [vmem:[%s2712_s1 + $0x1a0] ss:$12 sps:$4 sm:$0xff]   ;;  %v2012_v54 = vld [vmem:[%s2712_s1 + $0x138] ss:$12 sps:$4 sm:$0xff]   ;;  %v2018_v57 = vld [vmem:[%s2712_s1 + $0x150] ss:$12 sps:$4 sm:$0xff]  }
  0x19   : > { %v2015_v55 = vld [vmem:[%s2712_s1 + $0x154] ss:$12 sps:$4 sm:$0xff]   ;;  %v2041_v58 = vld [vmem:[%s2712_s1 + $0x278] ss:$12 sps:$4 sm:$0xff]   ;;  %v2046_v62 = vld [vmem:[%s2712_s1 + $0x290] ss:$12 sps:$4 sm:$0xff]  }
  0x1a   : > { %v2339_v56 = vld [vmem:[%s2245_s21 + $0x60] ss:$16 sps:$4 sm:$0xff]   ;;  %v2042_v59 = vld [vmem:[%s2712_s1 + $0x1b8] ss:$12 sps:$4 sm:$0xff]   ;;  %v2021_v0 = vld [vmem:[%s2712_s1 + $0x168] ss:$12 sps:$4 sm:$0xff]  }
  0x1b   : > { %1040 = vmatpush1.bf16.msra.mxu0 %v1974_v22  ;;  %1756 = vmatpush3.bf16.msra.mxu1 %v1975_v23  ;;  %v2019_v60 = vld [vmem:[%s2712_s1 + $0x16c] ss:$12 sps:$4 sm:$0xff]   ;;  %v2354_v61 = vld [vmem:[%s2245_s21 + $0x84] ss:$16 sps:$4 sm:$0xff]   ;;  %v2047_v63 = vld [vmem:[%s2712_s1 + $0x1d0] ss:$12 sps:$4 sm:$0xff]  }
  0x1c   : > { %1041 = vmatprep.subr.bf16.mxu0 %v1976_v24  ;;  %1757 = vmatprep.subr.bf16.mxu1 %v1978_v25  ;;  %v2028_v1 = vld [vmem:[%s2712_s1 + $0x184] ss:$12 sps:$4 sm:$0xff]   ;;  %v2026_v2 = vld [vmem:[%s2712_s1 + $0x180] ss:$12 sps:$4 sm:$0xff]   ;;  %v2054_v4 = vld [vmem:[%s2712_s1 + $0x2a8] ss:$12 sps:$4 sm:$0xff]  }
  0x1d   : > { %v2374_v3 = vld [vmem:[%s2245_s21 + $0x80] ss:$16 sps:$4 sm:$0xff]   ;;  %v2055_v5 = vld [vmem:[%s2712_s1 + $0x1e8] ss:$12 sps:$4 sm:$0xff]   ;;  %v2030_v10 = vld [vmem:[%s2712_s1 + $0x198] ss:$12 sps:$4 sm:$0xff]  }
  0x1e   : > { %v2032_v6 = vld [vmem:[%s2712_s1 + $0x19c] ss:$12 sps:$4 sm:$0xff]   ;;  %v2386_v7 = vld [vmem:[%s2245_s21 + $0xa4] ss:$16 sps:$4 sm:$0xff]   ;;  %v2059_v8 = vld [vmem:[%s2712_s1 + $0x2c0] ss:$12 sps:$4 sm:$0xff]  }
  0x1f   : > { %1042 = vmatpush1.bf16.msra.mxu0 %v1979_v26  ;;  %1758 = vmatpush3.bf16.msra.mxu1 %v1980_v27  ;;  %v2060_v9 = vld [vmem:[%s2712_s1 + $0x200] ss:$12 sps:$4 sm:$0xff]   ;;  %v2037_v12 = vld [vmem:[%s2712_s1 + $0x1b0] ss:$12 sps:$4 sm:$0xff]   ;;  %v2067_v14 = vld [vmem:[%s2712_s1 + $0x2d8] ss:$12 sps:$4 sm:$0xff]  }
  0x20   : > { %1043 = vmatprep.subr.bf16.mxu0 %v1981_v28  ;;  %1759 = vmatprep.subr.bf16.mxu1 %v1983_v29  ;;  %v2039_v11 = vld [vmem:[%s2712_s1 + $0x1b4] ss:$12 sps:$4 sm:$0xff]   ;;  %v2068_v15 = vld [vmem:[%s2712_s1 + $0x218] ss:$12 sps:$4 sm:$0xff]   ;;  %v2072_v18 = vld [vmem:[%s2712_s1 + $0x2f0] ss:$12 sps:$4 sm:$0xff]  }
  0x21   : > { %v2408_v13 = vld [vmem:[%s2245_s21 + $0xa0] ss:$16 sps:$4 sm:$0xff]   ;;  %v2045_v16 = vld [vmem:[%s2712_s1 + $0x1cc] ss:$12 sps:$4 sm:$0xff]   ;;  %v2420_v17 = vld [vmem:[%s2245_s21 + $0xc4] ss:$16 sps:$4 sm:$0xff]  }
  0x22   : > { %v2073_v19 = vld [vmem:[%s2712_s1 + $0x230] ss:$12 sps:$4 sm:$0xff]   ;;  %v2043_v20 = vld [vmem:[%s2712_s1 + $0x1c8] ss:$12 sps:$4 sm:$0xff]   ;;  %v2050_v22 = vld [vmem:[%s2712_s1 + $0x1e0] ss:$12 sps:$4 sm:$0xff]  }
  0x23   : > { %1044 = vmatpush1.bf16.msra.mxu0 %v1984_v30  ;;  %1760 = vmatpush3.bf16.msra.mxu1 %v1985_v32  ;;  %v2052_v21 = vld [vmem:[%s2712_s1 + $0x1e4] ss:$12 sps:$4 sm:$0xff]   ;;  %v2058_v24 = vld [vmem:[%s2712_s1 + $0x1fc] ss:$12 sps:$4 sm:$0xff]   ;;  %v2065_v27 = vld [vmem:[%s2712_s1 + $0x214] ss:$12 sps:$4 sm:$0xff]  }
  0x24   : > { %1045 = vmatprep.subr.bf16.mxu0 %v1989_v33  ;;  %1809 = vmatprep.subr.bf16.mxu1 %v2022_v45  ;;  %v2053_v23 = vld [vmem:[%s2245_s21 + $0xc0] ss:$16 sps:$4 sm:$0xff]   ;;  %v2061_v25 = vld [vmem:[%s2245_s21 + $0xe4] ss:$16 sps:$4 sm:$0xff]   ;;  %v2071_v30 = vld [vmem:[%s2712_s1 + $0x22c] ss:$12 sps:$4 sm:$0xff]  }
  0x25   : > { %v2056_v26 = vld [vmem:[%s2712_s1 + $0x1f8] ss:$12 sps:$4 sm:$0xff]   ;;  %v2063_v28 = vld [vmem:[%s2712_s1 + $0x210] ss:$12 sps:$4 sm:$0xff]   ;;  %v2069_v32 = vld [vmem:[%s2712_s1 + $0x228] ss:$12 sps:$4 sm:$0xff]  }
  0x26   : > { %1288 = vmatmul.mubr.bf16.vlgmr.msra.gmra.mrb[0].mxu1 %v2267_v34  ;;  %v2066_v29 = vld [vmem:[%s2245_s21 + $0xe0] ss:$16 sps:$4 sm:$0xff]   ;;  %v2076_v31 = vld [vmem:[%s2245_s21 + $0xc] ss:$16 sps:$4 sm:$0xff]  }
  0x27   : > { %1046 = vmatpush1.bf16.msra.mxu0 %v1991_v35  ;;  %1295 = vmatprep.mubr.bf16.mxu1 %v2276_v37  ;;  %v2079_v33 = vld [vmem:[%s2712_s1 + $0x244] ss:$12 sps:$4 sm:$0xff]   ;;  %v2077_v35 = vld [vmem:[%s2712_s1 + $0x240] ss:$12 sps:$4 sm:$0xff]  }
  0x28   : > { %1047 = vmatprep.subr.bf16.mxu0 %v1992_v36  ;;  %1810 = vmatpush3.bf16.msra.mxu1 %v2025_v47  ;;  %v2082_v36 = vld [vmem:[%s2712_s1 + $0x25c] ss:$12 sps:$4 sm:$0xff]   ;;  %v2096_v45 = vld [vmem:[%s2712_s1 + $0x2a4] ss:$12 sps:$4 sm:$0xff]  }
  0x29   : > { %1811 = vmatprep.subr.bf16.mxu1 %v2033_v52  ;;  %v2097_v47 = vld [vmem:[%s2245_s21 + $0x48] ss:$16 sps:$4 sm:$0xff]   ;;  %v2103_v52 = vld [vmem:[%s2712_s1 + $0x2d0] ss:$12 sps:$4 sm:$0xff]  }
  0x2b   : > { %1048 = vmatpush1.bf16.msra.mxu0 %v1994_v38  ;;  %v2080_v38 = vld [vmem:[%s2712_s1 + $0x258] ss:$12 sps:$4 sm:$0xff]  }
  0x2c   : > { %1049 = vmatprep.subr.bf16.mxu0 %v1997_v39  ;;  %1812 = vmatpush3.bf16.msra.mxu1 %v2034_v53  ;;  %v2087_v39 = vld [vmem:[%s2712_s1 + $0x274] ss:$12 sps:$4 sm:$0xff]   ;;  %v2106_v53 = vld [vmem:[%s2245_s21 + $0x68] ss:$16 sps:$4 sm:$0xff]  }
  0x2d   : > { %1813 = vmatprep.subr.bf16.mxu1 %v2041_v58  ;;  %v2113_v58 = vld [vmem:[%s2245_s21 + $0xac] ss:$16 sps:$4 sm:$0xff]  }
  0x2e   : > { %1296 = vmatmul.mubr.bf16.gmra.mrb[4].mxu1 %v2287_v40 }
  0x2f   : > { %1050 = vmatpush1.bf16.msra.mxu0 %v2000_v41  ;;  %1303 = vmatprep.mubr.bf16.mxu1 %v2296_v43  ;;  %v2088_v41 = vld [vmem:[%s2245_s21 + $0x28] ss:$16 sps:$4 sm:$0xff]  }
  0x30   : > { %1051 = vmatprep.subr.bf16.mxu0 %v2001_v42  ;;  %1814 = vmatpush3.bf16.msra.mxu1 %v2042_v59  ;;  %v2091_v42 = vld [vmem:[%s2712_s1 + $0x28c] ss:$12 sps:$4 sm:$0xff]  }
  0x31   : > { %1815 = vmatprep.subr.bf16.mxu1 %v2046_v62  ;;  %v2115_v59 = vld [vmem:[%s2245_s21 + $0xa8] ss:$16 sps:$4 sm:$0xff]   ;;  %v2119_v62 = vld [vmem:[%s2245_s21 + $0xec] ss:$16 sps:$4 sm:$0xff]  }
  0x33   : > { %1052 = vmatpush1.bf16.msra.mxu0 %v2003_v44  ;;  %v2089_v44 = vld [vmem:[%s2712_s1 + $0x288] ss:$12 sps:$4 sm:$0xff]  }
  0x34   : > { %1053 = vmatprep.subr.bf16.mxu0 %v2006_v46  ;;  %1816 = vmatpush3.bf16.msra.mxu1 %v2047_v63  ;;  %v2094_v46 = vld [vmem:[%s2712_s1 + $0x2a0] ss:$12 sps:$4 sm:$0xff]   ;;  %v2121_v63 = vld [vmem:[%s2245_s21 + $0xe8] ss:$16 sps:$4 sm:$0xff]  }
  0x35   : > { %1817 = vmatprep.subr.bf16.mxu1 %v2054_v4 }
  0x36   : > { %1304 = vmatmul.mubr.bf16.gmra.mrb[8].mxu1 %v2313_v48 }
  0x37   : > { %1054 = vmatpush1.bf16.msra.mxu0 %v2009_v49  ;;  %1311 = vmatprep.mubr.bf16.mxu1 %v2322_v51  ;;  %v2101_v49 = vld [vmem:[%s2245_s21 + $0x6c] ss:$16 sps:$4 sm:$0xff]  }
  0x38   : > { %1055 = vmatprep.subr.bf16.mxu0 %v2010_v50  ;;  %1818 = vmatpush3.bf16.msra.mxu1 %v2055_v5  ;;  %v2098_v50 = vld [vmem:[%s2712_s1 + $0x2b8] ss:$12 sps:$4 sm:$0xff]  }
  0x39   : > { %1819 = vmatprep.subr.bf16.mxu1 %v2059_v8 }
  0x3b   : > { %1056 = vmatpush1.bf16.msra.mxu0 %v2012_v54  ;;  %v2109_v54 = vld [vmem:[%s2712_s1 + $0x2ec] ss:$12 sps:$4 sm:$0xff]  }
  0x3c   : > { %1057 = vmatprep.subr.bf16.mxu0 %v2015_v55  ;;  %1820 = vmatpush3.bf16.msra.mxu1 %v2060_v9  ;;  %v2110_v55 = vld [vmem:[%s2245_s21 + $0x8c] ss:$16 sps:$4 sm:$0xff]  }
  0x3d   : > { %1821 = vmatprep.subr.bf16.mxu1 %v2067_v14 }
  0x3e   : > { %1312 = vmatmul.mubr.bf16.gmra.mrb[12].mxu1 %v2339_v56 }
  0x3f   : > { %1058 = vmatpush1.bf16.msra.mxu0 %v2018_v57  ;;  %1319 = vmatprep.mubr.bf16.mxu1 %v2354_v61  ;;  %v2112_v57 = vld [vmem:[%s2245_s21 + $0x88] ss:$16 sps:$4 sm:$0xff]  }
  0x40   : > { %1059 = vmatprep.subr.bf16.mxu0 %v2019_v60  ;;  %1822 = vmatpush3.bf16.msra.mxu1 %v2068_v15  ;;  %v2116_v60 = vld [vmem:[%s2245_s21 + $0xcc] ss:$16 sps:$4 sm:$0xff]  }
  0x41   : > { %1823 = vmatprep.subr.bf16.mxu1 %v2072_v18 }
  0x43   : > { %1060 = vmatpush1.bf16.msra.mxu0 %v2021_v0 }
  0x44   : > { %1142 = vmatprep.subr.bf16.mxu0 %v2028_v1  ;;  %1824 = vmatpush3.bf16.msra.mxu1 %v2073_v19 }
  0x46   : > { %1062 = vmatmul.mubr.bf16.vlgmr.msra.gmra.mrb[0].mxu0 %v2267_v34  ;;  %1320 = vmatmul.mubr.bf16.gmra.mrb[16].mxu1 %v2374_v3  ;;  %v2074_v34 = vld [vmem:[%s2245_s21 + $0x8] ss:$16 sps:$4 sm:$0xff]  }
  0x47   : > { %1143 = vmatpush1.bf16.msra.mxu0 %v2026_v2  ;;  %1071 = vmatprep.mubr.bf16.mxu0 %v2276_v37  ;;  %v2083_v37 = vld [vmem:[%s2245_s21 + $0x2c] ss:$16 sps:$4 sm:$0xff]  }
  0x48   : > { %1144 = vmatprep.subr.bf16.mxu0 %v2032_v6  ;;  %1327 = vmatprep.mubr.bf16.mxu1 %v2386_v7 }
  0x4b   : > { %1145 = vmatpush1.bf16.msra.mxu0 %v2030_v10 }
  0x4c   : > { %1146 = vmatprep.subr.bf16.mxu0 %v2039_v11 }
  0x4e   : > { %1072 = vmatmul.mubr.bf16.gmra.mrb[4].mxu0 %v2287_v40  ;;  %1328 = vmatmul.mubr.bf16.gmra.mrb[20].mxu1 %v2408_v13  ;;  %v2085_v40 = vld [vmem:[%s2712_s1 + $0x270] ss:$12 sps:$4 sm:$0xff]  }
  0x4f   : > { %1147 = vmatpush1.bf16.msra.mxu0 %v2037_v12  ;;  %1081 = vmatprep.mubr.bf16.mxu0 %v2296_v43  ;;  %v2092_v43 = vld [vmem:[%s2245_s21 + $0x4c] ss:$16 sps:$4 sm:$0xff]  }
  0x50   : > { %1148 = vmatprep.subr.bf16.mxu0 %v2045_v16  ;;  %1335 = vmatprep.mubr.bf16.mxu1 %v2420_v17 }
  0x53   : > { %1149 = vmatpush1.bf16.msra.mxu0 %v2043_v20 }
  0x54   : > { %1150 = vmatprep.subr.bf16.mxu0 %v2052_v21 }
  0x56   : > { %1082 = vmatmul.mubr.bf16.gmra.mrb[8].mxu0 %v2313_v48  ;;  %1336 = vmatmul.mubr.bf16.gmra.mrb[24].mxu1 %v2053_v23  ;;  %v2100_v48 = vld [vmem:[%s2712_s1 + $0x2bc] ss:$12 sps:$4 sm:$0xff]  }
  0x57   : > { %1151 = vmatpush1.bf16.msra.mxu0 %v2050_v22  ;;  %1091 = vmatprep.mubr.bf16.mxu0 %v2322_v51  ;;  %v2105_v51 = vld [vmem:[%s2712_s1 + $0x2d4] ss:$12 sps:$4 sm:$0xff]  }
  0x58   : > { %1152 = vmatprep.subr.bf16.mxu0 %v2058_v24  ;;  %1343 = vmatprep.mubr.bf16.mxu1 %v2061_v25 }
  0x5b   : > { %1153 = vmatpush1.bf16.msra.mxu0 %v2056_v26 }
  0x5c   : > { %1154 = vmatprep.subr.bf16.mxu0 %v2065_v27 }
  0x5e   : > { %1092 = vmatmul.mubr.bf16.gmra.mrb[12].mxu0 %v2339_v56  ;;  %1344 = vmatmul.mubr.bf16.gmra.mrb[28].mxu1 %v2066_v29  ;;  %v2107_v56 = vld [vmem:[%s2712_s1 + $0x2e8] ss:$12 sps:$4 sm:$0xff]  }
  0x5f   : > { %1155 = vmatpush1.bf16.msra.mxu0 %v2063_v28  ;;  %1101 = vmatprep.mubr.bf16.mxu0 %v2354_v61  ;;  %v2118_v61 = vld [vmem:[%s2245_s21 + $0xc8] ss:$16 sps:$4 sm:$0xff]  }
  0x60   : > { %1156 = vmatprep.subr.bf16.mxu0 %v2071_v30  ;;  %1384 = vmatprep.mubr.bf16.mxu1 %v2076_v31 }
  0x63   : > { %1157 = vmatpush1.bf16.msra.mxu0 %v2069_v32 }
  0x64   : > { %1158 = vmatprep.subr.bf16.mxu0 %v2079_v33 }
  0x66   : > { %1102 = vmatmul.mubr.bf16.gmra.mrb[16].mxu0 %v2374_v3  ;;  %1385 = vmatmul.mubr.bf16.vlgmr.msra.gmra.mrb[32].mxu1 %v2074_v34 }
  0x67   : > { %1159 = vmatpush1.bf16.msra.mxu0 %v2077_v35  ;;  %1111 = vmatprep.mubr.bf16.mxu0 %v2386_v7 }
  0x68   : > { %1160 = vmatprep.subr.bf16.mxu0 %v2082_v36  ;;  %1392 = vmatprep.mubr.bf16.mxu1 %v2083_v37 }
  0x6b   : > { %1161 = vmatpush1.bf16.msra.mxu0 %v2080_v38  ;;  %v342_v38 = vlaneseq }
  0x6c   : > { %1162 = vmatprep.subr.bf16.mxu0 %v2087_v39 }
  0x6e   : > { %1112 = vmatmul.mubr.bf16.gmra.mrb[20].mxu0 %v2408_v13  ;;  %1393 = vmatmul.mubr.bf16.gmra.mrb[36].mxu1 %v2088_v41 }
  0x6f   : > { %1163 = vmatpush1.bf16.msra.mxu0 %v2085_v40  ;;  %1121 = vmatprep.mubr.bf16.mxu0 %v2420_v17 }
  0x70   : > { %1164 = vmatprep.subr.bf16.mxu0 %v2091_v42  ;;  %1400 = vmatprep.mubr.bf16.mxu1 %v2092_v43 }
  0x73   : > { %1165 = vmatpush1.bf16.msra.mxu0 %v2089_v44 }
  0x74   : > { %1166 = vmatprep.subr.bf16.mxu0 %v2096_v45 }
  0x76   : > { %1122 = vmatmul.mubr.bf16.gmra.mrb[24].mxu0 %v2053_v23  ;;  %1401 = vmatmul.mubr.bf16.gmra.mrb[40].mxu1 %v2097_v47 }
  0x77   : > { %1167 = vmatpush1.bf16.msra.mxu0 %v2094_v46  ;;  %1131 = vmatprep.mubr.bf16.mxu0 %v2061_v25 }
  0x78   : > { %1168 = vmatprep.subr.bf16.mxu0 %v2100_v48  ;;  %1408 = vmatprep.mubr.bf16.mxu1 %v2101_v49 }
  0x7b   : > { %1169 = vmatpush1.bf16.msra.mxu0 %v2098_v50 }
  0x7c   : > { %1170 = vmatprep.subr.bf16.mxu0 %v2105_v51 }
  0x7e   : > { %1132 = vmatmul.mubr.bf16.gmra.mrb[28].mxu0 %v2066_v29  ;;  %1409 = vmatmul.mubr.bf16.gmra.mrb[44].mxu1 %v2106_v53 }
  0x7f   : > { %1171 = vmatpush1.bf16.msra.mxu0 %v2103_v52  ;;  %1174 = vmatprep.mubr.bf16.mxu0 %v2076_v31 }
  0x80   : > { %1172 = vmatprep.subr.bf16.mxu0 %v2109_v54  ;;  %1416 = vmatprep.mubr.bf16.mxu1 %v2110_v55 }
  0x83   : > { %1173 = vmatpush1.bf16.msra.mxu0 %v2107_v56 }
  0x86   : > { %1175 = vmatmul.mubr.bf16.vlgmr.msra.gmra.mrb[0].mxu0 %v2074_v34  ;;  %1417 = vmatmul.mubr.bf16.gmra.mrb[48].mxu1 %v2112_v57 }
  0x87   : > { %1184 = vmatprep.mubr.bf16.mxu0 %v2083_v37  ;;  %1424 = vmatprep.mubr.bf16.mxu1 %v2113_v58 }
  0x8e   : > { %1185 = vmatmul.mubr.bf16.gmra.mrb[4].mxu0 %v2088_v41  ;;  %1425 = vmatmul.mubr.bf16.gmra.mrb[52].mxu1 %v2115_v59 }
  0x8f   : > { %1194 = vmatprep.mubr.bf16.mxu0 %v2092_v43  ;;  %1432 = vmatprep.mubr.bf16.mxu1 %v2116_v60  ;;  %v2558_v43 = vshrl.u32 %v342_v38, 7 }
  0x91   : > { %v352_v46 = vsub.s32 2, %v2558_v43 }
  0x96   : > { %1195 = vmatmul.mubr.bf16.gmra.mrb[8].mxu0 %v2097_v47  ;;  %1433 = vmatmul.mubr.bf16.gmra.mrb[56].mxu1 %v2118_v61 }
  0x97   : > { %1204 = vmatprep.mubr.bf16.mxu0 %v2101_v49  ;;  %1440 = vmatprep.mubr.bf16.mxu1 %v2119_v62  ;;  %v340_v49 = vld [vmem:[%s2713_s2] sm:$0x7] }
  0x98   : > { %v2568_v52 = vrot.slane %v340_v49, %v352_v46 }
  0x9e   : > { %1205 = vmatmul.mubr.bf16.gmra.mrb[12].mxu0 %v2106_v53  ;;  %1441 = vmatmul.mubr.bf16.gmra.mrb[60].mxu1 %v2121_v63 }
  0x9f   : > { %1214 = vmatprep.mubr.bf16.mxu0 %v2110_v55 }
  0xa6   : > { %1215 = vmatmul.mubr.bf16.gmra.mrb[16].mxu0 %v2112_v57 }
  0xa7   : > { %1224 = vmatprep.mubr.bf16.mxu0 %v2113_v58 }
  0xae   : > { %1225 = vmatmul.mubr.bf16.gmra.mrb[20].mxu0 %v2115_v59 }
  0xaf   : > { %1234 = vmatprep.mubr.bf16.mxu0 %v2116_v60 }
  0xb6   : > { %1235 = vmatmul.mubr.bf16.gmra.mrb[24].mxu0 %v2118_v61 }
  0xb7   : > { %1244 = vmatprep.mubr.bf16.mxu0 %v2119_v62 }
  0xbe   : > { %1245 = vmatmul.mubr.bf16.gmra.mrb[28].mxu0 %v2121_v63 }
  0xf9   : > { %v1761_v0 = vpop.f32.mrb[0].mxu1 }
  0xfa   : > { %v1762_v1 = vpop.f32.mrb[1].mxu1 }
  0xfb   : > { %v1763_v2 = vadd.f32 %v1762_v1, %v1761_v0  ;;  %v1764_v3 = vpop.f32.mrb[2].mxu1 }
  0xfc   : > { %v1765_v4 = vpop.f32.mrb[3].mxu1 }
  0xfd   : > { %v1766_v5 = vadd.f32 %v1765_v4, %v1764_v3  ;;  %v1290_v55 = vadd.f32 %v1763_v2, %v2568_v52 }
  0xff   : > { %v1293_v59 = vadd.f32 %v1766_v5, %v2568_v52 }
 0x101   : > { %v1767_v6 = vpop.f32.mrb[4].mxu1 }
 0x102   : > { %v1768_v7 = vpop.f32.mrb[5].mxu1 }
 0x103   : > { %v2534_v8 = vadd.f32 %v1768_v7, %v1767_v6  ;;  %v1770_v9 = vpop.f32.mrb[6].mxu1 }
 0x104   : > { %v1771_v10 = vpop.f32.mrb[7].mxu1 }
 0x105   : > { %v2536_v11 = vadd.f32 %v1771_v10, %v1770_v9  ;;  %v1298_v3 = vadd.f32 %v2534_v8, %v2568_v52 }
 0x107   : > { %v1301_v7 = vadd.f32 %v2536_v11, %v2568_v52 }
 0x109   : > { %v1773_v12 = vpop.f32.mrb[8].mxu1 }
 0x10a   : > { %v1774_v13 = vpop.f32.mrb[9].mxu1 }
 0x10b   : > { %v2538_v14 = vadd.f32 %v1774_v13, %v1773_v12  ;;  %v1776_v15 = vpop.f32.mrb[10].mxu1 }
 0x10c   : > { %v1777_v16 = vpop.f32.mrb[11].mxu1 }
 0x10d   : > { %v2540_v17 = vadd.f32 %v1777_v16, %v1776_v15  ;;  %v1306_v8 = vadd.f32 %v2538_v14, %v2568_v52 }
 0x10f   : > { %v1309_v11 = vadd.f32 %v2540_v17, %v2568_v52 }
 0x111   : > { %v1779_v18 = vpop.f32.mrb[12].mxu1 }
 0x112   : > { %v1780_v19 = vpop.f32.mrb[13].mxu1 }
 0x113   : > { %v2542_v20 = vadd.f32 %v1780_v19, %v1779_v18  ;;  %v1782_v21 = vpop.f32.mrb[14].mxu1 }
 0x114   : > { %v1783_v22 = vpop.f32.mrb[15].mxu1 }
 0x115   : > { %v2544_v23 = vadd.f32 %v1783_v22, %v1782_v21 }
 0x119   : > { %v1785_v24 = vpop.f32.mrb[16].mxu1 }
 0x11a   : > { %v1786_v25 = vpop.f32.mrb[17].mxu1 }
 0x11b   : > { %v2546_v26 = vadd.f32 %v1786_v25, %v1785_v24  ;;  %v1788_v27 = vpop.f32.mrb[18].mxu1 }
 0x11c   : > { %v1789_v28 = vpop.f32.mrb[19].mxu1 }
 0x11d   : > { %v2548_v29 = vadd.f32 %v1789_v28, %v1788_v27 }
 0x121   : > { %v1791_v30 = vpop.f32.mrb[20].mxu1 }
 0x122   : > { %v1792_v31 = vpop.f32.mrb[21].mxu1 }
 0x123   : > { %v2550_v32 = vadd.f32 %v1792_v31, %v1791_v30  ;;  %v1794_v33 = vpop.f32.mrb[22].mxu1 }
 0x124   : > { %v1795_v34 = vpop.f32.mrb[23].mxu1 }
 0x125   : > { %v2552_v35 = vadd.f32 %v1795_v34, %v1794_v33  ;;  %v344_v33 = vsub.s32 0, %v2558_v43  ;;  %v348_v34 = vsub.s32 1, %v2558_v43 }
 0x127   : > { %v2606_v46 = vrot.slane %v340_v49, %v348_v34 }
 0x129   : > { %v1797_v36 = vpop.f32.mrb[24].mxu1 }
 0x12a   : > { %v1798_v37 = vpop.f32.mrb[25].mxu1 }
 0x12b   : > { %v2554_v39 = vadd.f32 %v1798_v37, %v1797_v36  ;;  %v1800_v40 = vpop.f32.mrb[26].mxu1  ;;  %v1314_v36 = vadd.f32 %v2542_v20, %v2568_v52 }
 0x12c   : > { %v1801_v41 = vpop.f32.mrb[27].mxu1 }
 0x12d   : > { %v2556_v42 = vadd.f32 %v1801_v41, %v1800_v40  ;;  %v1317_v40 = vadd.f32 %v2544_v23, %v2568_v52 }
 0x131   : > { %v1803_v44 = vpop.f32.mrb[28].mxu1 }
 0x132   : > { %v1804_v45 = vpop.f32.mrb[29].mxu1 }
 0x133   : > { %v2561_v47 = vadd.f32 %v1804_v45, %v1803_v44  ;;  %v1806_v48 = vpop.f32.mrb[30].mxu1  ;;  %v2604_v45 = vrot.slane %v340_v49, %v344_v33  ;;  %v1322_v49 = vadd.f32 %v2546_v26, %v2568_v52 }
 0x134   : > { %v1807_v50 = vpop.f32.mrb[31].mxu1 }
 0x135   : > { %v2566_v51 = vadd.f32 %v1807_v50, %v1806_v48 }
 0x139   : > { %v1825_v53 = vpop.f32.mrb[32].mxu1 }
 0x13a   : > { %v1826_v54 = vpop.f32.mrb[33].mxu1 }
 0x13b   : > { %v1827_v56 = vadd.f32 %v1826_v54, %v1825_v53  ;;  %v1828_v57 = vpop.f32.mrb[34].mxu1 }
 0x13c   : > { %v1829_v58 = vpop.f32.mrb[35].mxu1 }
 0x13d   : > { %v1387_v60 = vadd.f32 %v1827_v56, %v1290_v55  ;;  %v1830_v61 = vadd.f32 %v1829_v58, %v1828_v57 }
 0x13f   : > { %v1451_v62 = vmax.f32 %v1387_v60, 0.0  ;;  %v1390_v63 = vadd.f32 %v1830_v61, %v1293_v59 }
 0x141   : > { %1500 = vst.msk [vmem:[%s2576_s19 + $0x10] sm:$0xff] %vm1499_vm0, %v1451_v62  ;;  %v1454_v0 = vmax.f32 %v1390_v63, 0.0  ;;  %v1831_v1 = vpop.f32.mrb[36].mxu1 }
 0x142   : > { %v1832_v2 = vpop.f32.mrb[37].mxu1 }
 0x143   : > { %1503 = vst.msk [vmem:[%s2576_s19 + $0x28] sm:$0xff] %vm1499_vm0, %v1454_v0  ;;  %v1833_v4 = vadd.f32 %v1832_v2, %v1831_v1  ;;  %v1834_v5 = vpop.f32.mrb[38].mxu1  ;;  %v1325_v2 = vadd.f32 %v2548_v29, %v2568_v52 }
 0x144   : > { %v1835_v6 = vpop.f32.mrb[39].mxu1 }
 0x145   : > { %v1395_v9 = vadd.f32 %v1833_v4, %v1298_v3  ;;  %v1836_v10 = vadd.f32 %v1835_v6, %v1834_v5 }
 0x147   : > { %v1457_v12 = vmax.f32 %v1395_v9, 0.0  ;;  %v1398_v13 = vadd.f32 %v1836_v10, %v1301_v7 }
 0x149   : > { %1506 = vst.msk [vmem:[%s2576_s19 + $0x40] sm:$0xff] %vm1499_vm0, %v1457_v12  ;;  %v1460_v15 = vmax.f32 %v1398_v13, 0.0  ;;  %v1837_v16 = vpop.f32.mrb[40].mxu1 }
 0x14a   : > { %v1838_v18 = vpop.f32.mrb[41].mxu1 }
 0x14b   : > { %1509 = vst.msk [vmem:[%s2576_s19 + $0x58] sm:$0xff] %vm1499_vm0, %v1460_v15  ;;  %v1839_v19 = vadd.f32 %v1838_v18, %v1837_v16  ;;  %v1840_v21 = vpop.f32.mrb[42].mxu1 }
 0x14c   : > { %v1841_v22 = vpop.f32.mrb[43].mxu1 }
 0x14d   : > { %v1403_v24 = vadd.f32 %v1839_v19, %v1306_v8  ;;  %v1842_v25 = vadd.f32 %v1841_v22, %v1840_v21  ;;  %v1330_v8 = vadd.f32 %v2550_v32, %v2568_v52 }
 0x14f   : > { %v1463_v27 = vmax.f32 %v1403_v24, 0.0  ;;  %v1406_v28 = vadd.f32 %v1842_v25, %v1309_v11 }
 0x151   : > { %1512 = vst.msk [vmem:[%s2576_s19 + $0x70] sm:$0xff] %vm1499_vm0, %v1463_v27  ;;  %v1466_v30 = vmax.f32 %v1406_v28, 0.0  ;;  %v1843_v31 = vpop.f32.mrb[44].mxu1 }
 0x152   : > { %v1844_v14 = vpop.f32.mrb[45].mxu1 }
 0x153   : > { %1515 = vst.msk [vmem:[%s2576_s19 + $0x88] sm:$0xff] %vm1499_vm0, %v1466_v30  ;;  %v1845_v17 = vadd.f32 %v1844_v14, %v1843_v31  ;;  %v1846_v37 = vpop.f32.mrb[46].mxu1  ;;  %v1333_v30 = vadd.f32 %v2552_v35, %v2568_v52 }
 0x154   : > { %v1847_v38 = vpop.f32.mrb[47].mxu1 }
 0x155   : > { %v1411_v41 = vadd.f32 %v1845_v17, %v1314_v36  ;;  %v1848_v44 = vadd.f32 %v1847_v38, %v1846_v37 }
 0x157   : > { %v1469_v48 = vmax.f32 %v1411_v41, 0.0  ;;  %v1414_v43 = vadd.f32 %v1848_v44, %v1317_v40 }
 0x159   : > { %v1176_v50 = vpop.f32.mrb[0].mxu0  ;;  %1518 = vst.msk [vmem:[%s2576_s19 + $0xa0] sm:$0xff] %vm1499_vm0, %v1469_v48  ;;  %v1472_v20 = vmax.f32 %v1414_v43, 0.0  ;;  %v1849_v54 = vpop.f32.mrb[48].mxu1  ;;  %v1338_v43 = vadd.f32 %v2554_v39, %v2568_v52 }
 0x15a   : > { %v1873_v53 = vadd.f32 %v1176_v50, %v2604_v45  ;;  %v1178_v55 = vpop.f32.mrb[1].mxu0  ;;  %v1850_v56 = vpop.f32.mrb[49].mxu1 }
 0x15b   : > { %v1874_v23 = vadd.f32 %v1178_v55, %v2606_v46  ;;  %v1180_v57 = vpop.f32.mrb[2].mxu0  ;;  %1521 = vst.msk [vmem:[%s2576_s19 + $0xb8] sm:$0xff] %vm1499_vm0, %v1472_v20  ;;  %v1851_v59 = vadd.f32 %v1850_v56, %v1849_v54  ;;  %v1852_v61 = vpop.f32.mrb[50].mxu1 }
 0x15c   : > { %v1449_v58 = vmax.f32 %v1873_v53, 0.0  ;;  %v1875_v60 = vadd.f32 %v1180_v57, %v2604_v45  ;;  %v1182_v62 = vpop.f32.mrb[3].mxu0  ;;  %v1853_v1 = vpop.f32.mrb[51].mxu1 }
 0x15d   : > { %v1450_v63 = vmax.f32 %v1874_v23, 0.0  ;;  %v1876_v0 = vadd.f32 %v1182_v62, %v2606_v46  ;;  %v1419_v26 = vadd.f32 %v1851_v59, %v1322_v49  ;;  %v1854_v4 = vadd.f32 %v1853_v1, %v1852_v61 }
 0x15e   : > { %1497 = vst [vmem:[%s2576_s19] sm:$0xff] %v1449_v58  ;;  %v1452_v3 = vmax.f32 %v1875_v60, 0.0  ;;  %v1341_v49 = vadd.f32 %v2556_v42, %v2568_v52 }
 0x15f   : > { %1498 = vst [vmem:[%s2576_s19 + $0x8] sm:$0xff] %v1450_v63  ;;  %v1453_v5 = vmax.f32 %v1876_v0, 0.0  ;;  %v1475_v6 = vmax.f32 %v1419_v26, 0.0  ;;  %v1422_v7 = vadd.f32 %v1854_v4, %v1325_v2 }
 0x160   : > { %1501 = vst [vmem:[%s2576_s19 + $0x18] sm:$0xff] %v1452_v3 }
 0x161   : > { %1502 = vst [vmem:[%s2576_s19 + $0x20] sm:$0xff] %v1453_v5  ;;  %v1186_v9 = vpop.f32.mrb[4].mxu0  ;;  %1524 = vst.msk [vmem:[%s2576_s19 + $0xd0] sm:$0xff] %vm1499_vm0, %v1475_v6  ;;  %v1478_v10 = vmax.f32 %v1422_v7, 0.0  ;;  %v1855_v13 = vpop.f32.mrb[52].mxu1  ;;  %v1346_v5 = vadd.f32 %v2561_v47, %v2568_v52 }
 0x162   : > { %v1877_v12 = vadd.f32 %v1186_v9, %v2604_v45  ;;  %v1188_v29 = vpop.f32.mrb[5].mxu0  ;;  %v1856_v16 = vpop.f32.mrb[53].mxu1 }
 0x163   : > { %v1878_v15 = vadd.f32 %v1188_v29, %v2606_v46  ;;  %v1190_v18 = vpop.f32.mrb[6].mxu0  ;;  %1527 = vst.msk [vmem:[%s2576_s19 + $0xe8] sm:$0xff] %vm1499_vm0, %v1478_v10  ;;  %v1857_v21 = vadd.f32 %v1856_v16, %v1855_v13  ;;  %v1858_v11 = vpop.f32.mrb[54].mxu1  ;;  %v1349_v16 = vadd.f32 %v2566_v51, %v2568_v52 }
 0x164   : > { %v1455_v19 = vmax.f32 %v1877_v12, 0.0  ;;  %v1879_v22 = vadd.f32 %v1190_v18, %v2604_v45  ;;  %v1192_v24 = vpop.f32.mrb[7].mxu0  ;;  %v1859_v28 = vpop.f32.mrb[55].mxu1 }
 0x165   : > { %v1456_v25 = vmax.f32 %v1878_v15, 0.0  ;;  %v1880_v27 = vadd.f32 %v1192_v24, %v2606_v46  ;;  %v1427_v32 = vadd.f32 %v1857_v21, %v1330_v8  ;;  %v1860_v33 = vadd.f32 %v1859_v28, %v1858_v11 }
 0x166   : > { %1504 = vst [vmem:[%s2576_s19 + $0x30] sm:$0xff] %v1455_v19  ;;  %v1458_v31 = vmax.f32 %v1879_v22, 0.0 }
 0x167   : > { %1505 = vst [vmem:[%s2576_s19 + $0x38] sm:$0xff] %v1456_v25  ;;  %v1459_v14 = vmax.f32 %v1880_v27, 0.0  ;;  %v1481_v34 = vmax.f32 %v1427_v32, 0.0  ;;  %v1430_v36 = vadd.f32 %v1860_v33, %v1333_v30 }
 0x168   : > { %1507 = vst [vmem:[%s2576_s19 + $0x48] sm:$0xff] %v1458_v31 }
 0x169   : > { %1508 = vst [vmem:[%s2576_s19 + $0x50] sm:$0xff] %v1459_v14  ;;  %v1196_v17 = vpop.f32.mrb[8].mxu0  ;;  %1530 = vst.msk [vmem:[%s2576_s19 + $0x100] sm:$0xff] %vm1499_vm0, %v1481_v34  ;;  %v1484_v37 = vmax.f32 %v1430_v36, 0.0  ;;  %v1861_v40 = vpop.f32.mrb[56].mxu1 }
 0x16a   : > { %v1881_v38 = vadd.f32 %v1196_v17, %v2604_v45  ;;  %v1198_v35 = vpop.f32.mrb[9].mxu0  ;;  %v1862_v44 = vpop.f32.mrb[57].mxu1 }
 0x16b   : > { %v1882_v41 = vadd.f32 %v1198_v35, %v2606_v46  ;;  %v1200_v48 = vpop.f32.mrb[10].mxu0  ;;  %1533 = vst.msk [vmem:[%s2576_s19 + $0x118] sm:$0xff] %vm1499_vm0, %v1484_v37  ;;  %v1863_v20 = vadd.f32 %v1862_v44, %v1861_v40  ;;  %v1864_v54 = vpop.f32.mrb[58].mxu1 }
 0x16c   : > { %v1461_v50 = vmax.f32 %v1881_v38, 0.0  ;;  %v1883_v53 = vadd.f32 %v1200_v48, %v2604_v45  ;;  %v1202_v55 = vpop.f32.mrb[11].mxu0  ;;  %v1865_v57 = vpop.f32.mrb[59].mxu1 }
 0x16d   : > { %v1462_v23 = vmax.f32 %v1882_v41, 0.0  ;;  %v1884_v56 = vadd.f32 %v1202_v55, %v2606_v46  ;;  %v1435_v39 = vadd.f32 %v1863_v20, %v1338_v43  ;;  %v1866_v59 = vadd.f32 %v1865_v57, %v1864_v54 }
 0x16e   : > { %1510 = vst [vmem:[%s2576_s19 + $0x60] sm:$0xff] %v1461_v50  ;;  %v1464_v58 = vmax.f32 %v1883_v53, 0.0 }
 0x16f   : > { %1511 = vst [vmem:[%s2576_s19 + $0x68] sm:$0xff] %v1462_v23  ;;  %v1465_v60 = vmax.f32 %v1884_v56, 0.0  ;;  %v1487_v61 = vmax.f32 %v1435_v39, 0.0  ;;  %v1438_v62 = vadd.f32 %v1866_v59, %v1341_v49 }
 0x170   : > { %1513 = vst [vmem:[%s2576_s19 + $0x78] sm:$0xff] %v1464_v58 }
 0x171   : > { %1514 = vst [vmem:[%s2576_s19 + $0x80] sm:$0xff] %v1465_v60  ;;  %v1206_v63 = vpop.f32.mrb[12].mxu0  ;;  %1536 = vst.msk [vmem:[%s2576_s19 + $0x130] sm:$0xff] %vm1499_vm0, %v1487_v61  ;;  %v1490_v0 = vmax.f32 %v1438_v62, 0.0  ;;  %v1867_v2 = vpop.f32.mrb[60].mxu1 }
 0x172   : > { %v1885_v1 = vadd.f32 %v1206_v63, %v2604_v45  ;;  %v1208_v42 = vpop.f32.mrb[13].mxu0  ;;  %v1868_v3 = vpop.f32.mrb[61].mxu1 }
 0x173   : > { %v1886_v26 = vadd.f32 %v1208_v42, %v2606_v46  ;;  %v1210_v4 = vpop.f32.mrb[14].mxu0  ;;  %1539 = vst.msk [vmem:[%s2576_s19 + $0x148] sm:$0xff] %vm1499_vm0, %v1490_v0  ;;  %v1869_v7 = vadd.f32 %v1868_v3, %v1867_v2  ;;  %v1870_v10 = vpop.f32.mrb[62].mxu1 }
 0x174   : > { %v1467_v6 = vmax.f32 %v1885_v1, 0.0  ;;  %v1887_v9 = vadd.f32 %v1210_v4, %v2604_v45  ;;  %v1212_v12 = vpop.f32.mrb[15].mxu0  ;;  %v1871_v15 = vpop.f32.mrb[63].mxu1 }
 0x175   : > { %v1468_v13 = vmax.f32 %v1886_v26, 0.0  ;;  %v1888_v29 = vadd.f32 %v1212_v12, %v2606_v46  ;;  %v1443_v47 = vadd.f32 %v1869_v7, %v1346_v5  ;;  %v1872_v8 = vadd.f32 %v1871_v15, %v1870_v10 }
 0x176   : > { %1516 = vst [vmem:[%s2576_s19 + $0x90] sm:$0xff] %v1467_v6  ;;  %v1470_v18 = vmax.f32 %v1887_v9, 0.0 }
 0x177   : > { %1517 = vst [vmem:[%s2576_s19 + $0x98] sm:$0xff] %v1468_v13  ;;  %v1471_v19 = vmax.f32 %v1888_v29, 0.0  ;;  %v1493_v21 = vmax.f32 %v1443_v47, 0.0  ;;  %v1446_v22 = vadd.f32 %v1872_v8, %v1349_v16 }
 0x178   : > { %1519 = vst [vmem:[%s2576_s19 + $0xa8] sm:$0xff] %v1470_v18 }
 0x179   : > { %1520 = vst [vmem:[%s2576_s19 + $0xb0] sm:$0xff] %v1471_v19  ;;  %v1216_v11 = vpop.f32.mrb[16].mxu0  ;;  %1542 = vst.msk [vmem:[%s2576_s19 + $0x160] sm:$0xff] %vm1499_vm0, %v1493_v21  ;;  %v1496_v24 = vmax.f32 %v1446_v22, 0.0 }
 0x17a   : > { %v1889_v51 = vadd.f32 %v1216_v11, %v2604_v45  ;;  %v1218_v52 = vpop.f32.mrb[17].mxu0 }
 0x17b   : > { %v1890_v25 = vadd.f32 %v1218_v52, %v2606_v46  ;;  %v1220_v27 = vpop.f32.mrb[18].mxu0  ;;  %1545 = vst.msk [vmem:[%s2576_s19 + $0x178] sm:$0xff] %vm1499_vm0, %v1496_v24 }
 0x17c   : > { %v1473_v28 = vmax.f32 %v1889_v51, 0.0  ;;  %v1891_v30 = vadd.f32 %v1220_v27, %v2604_v45  ;;  %v1222_v32 = vpop.f32.mrb[19].mxu0 }
 0x17d   : > { %v1474_v31 = vmax.f32 %v1890_v25, 0.0  ;;  %v1892_v33 = vadd.f32 %v1222_v32, %v2606_v46 }
 0x17e   : > { %1522 = vst [vmem:[%s2576_s19 + $0xc0] sm:$0xff] %v1473_v28  ;;  %v1476_v14 = vmax.f32 %v1891_v30, 0.0 }
 0x17f   : > { %1523 = vst [vmem:[%s2576_s19 + $0xc8] sm:$0xff] %v1474_v31  ;;  %v1477_v34 = vmax.f32 %v1892_v33, 0.0 }
 0x180   : > { %1525 = vst [vmem:[%s2576_s19 + $0xd8] sm:$0xff] %v1476_v14 }
 0x181   : > { %1526 = vst [vmem:[%s2576_s19 + $0xe0] sm:$0xff] %v1477_v34  ;;  %v1226_v36 = vpop.f32.mrb[20].mxu0 }
 0x182   : > { %v1893_v17 = vadd.f32 %v1226_v36, %v2604_v45  ;;  %v1228_v37 = vpop.f32.mrb[21].mxu0 }
 0x183   : > { %v1894_v38 = vadd.f32 %v1228_v37, %v2606_v46  ;;  %v1230_v40 = vpop.f32.mrb[22].mxu0 }
 0x184   : > { %v1479_v35 = vmax.f32 %v1893_v17, 0.0  ;;  %v1895_v41 = vadd.f32 %v1230_v40, %v2604_v45  ;;  %v1232_v44 = vpop.f32.mrb[23].mxu0 }
 0x185   : > { %v1480_v48 = vmax.f32 %v1894_v38, 0.0  ;;  %v1896_v43 = vadd.f32 %v1232_v44, %v2606_v46 }
 0x186   : > { %1528 = vst [vmem:[%s2576_s19 + $0xf0] sm:$0xff] %v1479_v35  ;;  %v1482_v50 = vmax.f32 %v1895_v41, 0.0 }
 0x187   : > { %1529 = vst [vmem:[%s2576_s19 + $0xf8] sm:$0xff] %v1480_v48  ;;  %v1483_v20 = vmax.f32 %v1896_v43, 0.0 }
 0x188   : > { %1531 = vst [vmem:[%s2576_s19 + $0x108] sm:$0xff] %v1482_v50 }
 0x189   : > { %1532 = vst [vmem:[%s2576_s19 + $0x110] sm:$0xff] %v1483_v20  ;;  %v1236_v53 = vpop.f32.mrb[24].mxu0 }
 0x18a   : > { %v1897_v54 = vadd.f32 %v1236_v53, %v2604_v45  ;;  %v1238_v55 = vpop.f32.mrb[25].mxu0 }
 0x18b   : > { %v1898_v23 = vadd.f32 %v1238_v55, %v2606_v46  ;;  %v1240_v56 = vpop.f32.mrb[26].mxu0 }
 0x18c   : > { %v1485_v57 = vmax.f32 %v1897_v54, 0.0  ;;  %v1899_v49 = vadd.f32 %v1240_v56, %v2604_v45  ;;  %v1242_v39 = vpop.f32.mrb[27].mxu0 }
 0x18d   : > { %v1486_v58 = vmax.f32 %v1898_v23, 0.0  ;;  %v1900_v59 = vadd.f32 %v1242_v39, %v2606_v46 }
 0x18e   : > { %1534 = vst [vmem:[%s2576_s19 + $0x120] sm:$0xff] %v1485_v57  ;;  %v1488_v60 = vmax.f32 %v1899_v49, 0.0 }
 0x18f   : > { %1535 = vst [vmem:[%s2576_s19 + $0x128] sm:$0xff] %v1486_v58  ;;  %v1489_v61 = vmax.f32 %v1900_v59, 0.0 }
 0x190   : > { %1537 = vst [vmem:[%s2576_s19 + $0x138] sm:$0xff] %v1488_v60 }
 0x191   : > { %1538 = vst [vmem:[%s2576_s19 + $0x140] sm:$0xff] %v1489_v61  ;;  %v1246_v62 = vpop.f32.mrb[28].mxu0 }
 0x192   : > { %v1901_v63 = vadd.f32 %v1246_v62, %v2604_v45  ;;  %v1248_v0 = vpop.f32.mrb[29].mxu0 }
 0x193   : > { %v1902_v1 = vadd.f32 %v1248_v0, %v2606_v46  ;;  %v1250_v2 = vpop.f32.mrb[30].mxu0 }
 0x194   : > { %v1491_v42 = vmax.f32 %v1901_v63, 0.0  ;;  %v1903_v26 = vadd.f32 %v1250_v2, %v2604_v45  ;;  %v1252_v3 = vpop.f32.mrb[31].mxu0 }
 0x195   : > { %v1492_v4 = vmax.f32 %v1902_v1, 0.0  ;;  %v1904_v5 = vadd.f32 %v1252_v3, %v2606_v46 }
 0x196   : > { %1540 = vst [vmem:[%s2576_s19 + $0x150] sm:$0xff] %v1491_v42  ;;  %v1494_v6 = vmax.f32 %v1903_v26, 0.0 }
 0x197   : > { %1541 = vst [vmem:[%s2576_s19 + $0x158] sm:$0xff] %v1492_v4  ;;  %v1495_v7 = vmax.f32 %v1904_v5, 0.0 }
 0x198   : > { %1543 = vst [vmem:[%s2576_s19 + $0x168] sm:$0xff] %v1494_v6 }
 0x199   : > { %1544 = vst [vmem:[%s2576_s19 + $0x170] sm:$0xff] %v1495_v7 }
 0x19a PF: > { %s13_s12 = sadd.s32 1, %s2128_s12  }
 0x19b   : > { %p10_p4 = scmp.ge.s32.totalorder %s13_s12, 6  }
 0x19d   :  { %12 = sbr.rel (!%p10_p4) target bundleno = 1 (0x1), region = 62 }

// kernel: mixed_4c.6
= control target key start
LH: loop header
LB: loop body
LE: loop exit
PB: predicated region body
PF: predicated region fallthrough
CT: control target
= control target key end

     0   :  { %s3022_s18 = smov 0   ;;  %s3663_s0 = inlined_call_operand.vmem [shape: bf16[2,4,10,8,72], index: 0, kind: input, shape index: {}]   ;;  %s3664_s1 = inlined_call_operand.vmem [shape: bf16[3,72,64], index: 1, kind: input, shape index: {}]   ;;  %s3665_s2 = inlined_call_operand.vmem [shape: f32[1,64], index: 2, kind: input, shape index: {}]   ;;  %s3666_s3 = inlined_call_operand.vmem [shape: bf16[3,64,64], index: 3, kind: input, shape index: {}]   ;;  %s3667_s4 = inlined_call_operand.vmem [shape: f32[1,64], index: 4, kind: input, shape index: {}]   ;;  %s3668_s5 = inlined_call_operand.vmem [shape: f32[2,4,8,8,64], index: 5, kind: output, shape index: {}]  }
   0x1 LB: > { %s2204_s19 = sadd.s32 4294967295, %s2989_s18   ;;  %p2208_p0 = scmp.ge.s32.totalorder %s2989_s18, 1  ;;  %s2989_s18 = sphi %s3022_s18, %s15_s18  }
   0x2   : > { %p187_p1 = scmp.lt.s32.totalorder %s2989_s18, 3 }
   0x4   : > { %p188_p2 = pnand %p2208_p0, %p187_p1 }
   0x5   : > { %v2920_v0 = vld [vmem:[%s3664_s1 + $0x24] sm:$0xff] (!%p188_p2)   ;;  %v2921_v1 = vld [vmem:[%s3664_s1 + $0x2c] sm:$0xff] (!%p188_p2)   ;;  %p215_p3 = scmp.lt.s32.totalorder (!%p188_p2), %s2204_s19, 1  ;;  %v2922_v2 = vld [vmem:[%s3664_s1 + $0x34] sm:$0xff] (!%p188_p2)   ;;  %vm392_vm0 = vcmask (!%p188_p2), 588800   ;;  %vm441_vm1 = vcmask (!%p188_p2), 1043456  }
   0x6   : > { %191 = sbr.rel (%p188_p2) target bundleno = 788 (0x314), region = 40  ;;  %2533 = vmatprep.subr.bf16.mxu0 (!%p188_p2), %v2920_v0  ;;  %v2923_v3 = vld [vmem:[%s3664_s1 + $0x3c] sm:$0xff] (!%p188_p2)   ;;  %v2924_v19 = vld [vmem:[%s3664_s1 + $0x44] ss:$0 sps:$4 sm:$0xff] (!%p188_p2)   ;;  %v2932_v47 = vld [vmem:[%s3664_s1 + $0x8] sm:$0xff] (!%p188_p2)   ;;  %vm1197_vm2 = vcmask (!%p188_p2), 523264  }
   0x7   : > { %2534 = vmatpush3.bf16.msra.mxu0 (!%p188_p2), %v2920_v0  ;;  %v443_v32 = vsel (!%p188_p2), %vm441_vm1, %v2924_v19, 0  ;;  %v2929_v33 = vld [vmem:[%s3664_s1] sm:$0xff] (!%p188_p2)   ;;  %v2937_v56 = vld [vmem:[%s3664_s1 + $0x10] sm:$0xff] (!%p188_p2)   ;;  %v2941_v0 = vld [vmem:[%s3664_s1 + $0x18] sm:$0xff] (!%p188_p2)  }
   0x8   : > { %2535 = vmatprep.subr.bf16.mxu0 (!%p188_p2), %v2921_v1 }
   0xb   : > { %2536 = vmatpush3.bf16.msra.mxu0 (!%p188_p2), %v2921_v1 }
   0xc   : > { %2537 = vmatprep.subr.bf16.mxu0 (!%p188_p2), %v2922_v2 }
   0xd   : > { %s3670_s19 = smov (!%p215_p3, %s2204_s19), 1 }
   0xe   : > { %s2910_s26 = smul.u32 160, %s3670_s19  ;;  %s2409_s11 = sshll.u32 %s3670_s19, 8 }
   0xf   : > { %2538 = vmatpush3.bf16.msra.mxu0 %v2922_v2  ;;  %v2945_v2 = vld [vmem:[%s3664_s1 + $0x20] ss:$0 sps:$4 sm:$0xff]   ;;  %s3563_s14 = scalar_lea.vmem %s3668_s5, %s2409_s11 }
  0x10   : > { %s3048_s6 = scalar_lea.vmem %s3663_s0, %s2910_s26  ;;  %2539 = vmatprep.subr.bf16.mxu0 %v2923_v3 }
  0x11   : > { %v3051_v4 = vld [vmem:[%s3048_s6] sm:$0xf]  ;;  %v3054_v5 = vld [vmem:[%s3048_s6 + $0x4] sm:$0xf]  ;;  %v228_v6 = vld [vmem:[%s3048_s6 + $0x8] sm:$0xf] }
  0x12   : > { %v229_v7 = vld [vmem:[%s3048_s6 + $0xc] sm:$0xf]  ;;  %v230_v8 = vld [vmem:[%s3048_s6 + $0x10] sm:$0xf]  ;;  %v2221_v9 = vcombine.low %v3054_v5, %v228_v6  ;;  %v2258_v10 = vcombine.low %v3051_v4, %v3054_v5  ;;  %v231_v11 = vld [vmem:[%s3048_s6 + $0x14] sm:$0xf] }
  0x13   : > { %v3063_v12 = vcombine.low %v228_v6, %v229_v7  ;;  %v232_v13 = vld [vmem:[%s3048_s6 + $0x18] sm:$0xf]  ;;  %v3067_v14 = vld [vmem:[%s3048_s6 + $0x1c] sm:$0xf]  ;;  %v3069_v15 = vcombine.low %v230_v8, %v231_v11  ;;  %v3073_v16 = vld [vmem:[%s3048_s6 + $0x30] sm:$0xf]  ;;  %2540 = vmatpush3.bf16.msra.mxu0 %v2923_v3  ;;  %v2222_v40 = vcombine.low %v229_v7, %v230_v8 }
  0x14   : > { %2543 = vmatprep.mubr.msk.bf16.mxu0 %vm392_vm0, %v2221_v9  ;;  %v3076_v17 = vld [vmem:[%s3048_s6 + $0x34] sm:$0xf]  ;;  %v3079_v18 = vcombine.low %v232_v13, %v3067_v14  ;;  %v3085_v20 = vld [vmem:[%s3048_s6 + $0x38] sm:$0xf]  ;;  %v3088_v21 = vld [vmem:[%s3048_s6 + $0x3c] sm:$0xf]  ;;  %2907 = vmatprep.subr.msk.bf16.mxu0 %vm441_vm1, %v2924_v19  ;;  %v2223_v43 = vcombine.low %v231_v11, %v232_v13 }
  0x15   : > { %v3092_v22 = vcombine.low %v3073_v16, %v3076_v17  ;;  %v3095_v23 = vld [vmem:[%s3048_s6 + $0x40] sm:$0xf]  ;;  %v3098_v24 = vld [vmem:[%s3048_s6 + $0x44] sm:$0xf]  ;;  %v3102_v25 = vcombine.low %v3085_v20, %v3088_v21  ;;  %v3105_v26 = vld [vmem:[%s3048_s6 + $0x58] sm:$0xf]  ;;  %v2226_v3 = vcombine.low %v3076_v17, %v3085_v20 }
  0x16   : > { %v3108_v27 = vld [vmem:[%s3048_s6 + $0x5c] sm:$0xf]  ;;  %v3112_v28 = vcombine.low %v3095_v23, %v3098_v24  ;;  %v3115_v29 = vld [vmem:[%s3048_s6 + $0x60] sm:$0xf]  ;;  %v3118_v30 = vld [vmem:[%s3048_s6 + $0x64] sm:$0xf]  ;;  %v2227_v6 = vcombine.low %v3088_v21, %v3095_v23 }
  0x17   : > { %v3122_v31 = vcombine.low %v3105_v26, %v3108_v27  ;;  %v3130_v34 = vld [vmem:[%s3048_s6 + $0x68] sm:$0xf]  ;;  %v3133_v35 = vld [vmem:[%s3048_s6 + $0x6c] sm:$0xf]  ;;  %v3137_v36 = vcombine.low %v3115_v29, %v3118_v30  ;;  %v3140_v37 = vld [vmem:[%s3048_s6 + $0x80] sm:$0xf]  ;;  %2542 = vmatpush3.bf16.msra.mxu0 %v443_v32  ;;  %v2230_v17 = vcombine.low %v3108_v27, %v3115_v29 }
  0x18   : > { %v3143_v38 = vld [vmem:[%s3048_s6 + $0x84] sm:$0xf]  ;;  %v3147_v39 = vcombine.low %v3130_v34, %v3133_v35  ;;  %v3150_v41 = vld [vmem:[%s3048_s6 + $0x88] sm:$0xf]  ;;  %v3157_v44 = vld [vmem:[%s3048_s6 + $0x8c] sm:$0xf]  ;;  %2575 = vmatprep.subr.bf16.mxu0 %v2929_v33  ;;  %v2231_v19 = vcombine.low %v3118_v30, %v3130_v34 }
  0x19   : > { %v3154_v42 = vcombine.low %v3140_v37, %v3143_v38  ;;  %v3160_v45 = vld [vmem:[%s3048_s6 + $0x90] sm:$0xf]  ;;  %v3163_v46 = vld [vmem:[%s3048_s6 + $0x94] sm:$0xf]  ;;  %v3170_v48 = vcombine.low %v3150_v41, %v3157_v44  ;;  %v3177_v50 = vld [vmem:[%s3048_s6 + $0x20] sm:$0xf]  ;;  %v2234_v27 = vcombine.low %v3143_v38, %v3150_v41 }
  0x1a   : > { %v3174_v49 = vcombine.low %v3160_v45, %v3163_v46  ;;  %2544 = vmatmul.mubr.msk.bf16.vlgmr.msra.gmra.mrb[0].mxu0 %vm392_vm0, %v2222_v40  ;;  %v3181_v51 = vld [vmem:[%s3048_s6 + $0x2c] sm:$0xf]  ;;  %v3184_v52 = vld [vmem:[%s3048_s6 + $0x28] sm:$0xf]  ;;  %v3188_v53 = vld [vmem:[%s3048_s6 + $0x54] sm:$0xf]  ;;  %v2224_v60 = vcombine.low %v3067_v14, %v3177_v50  ;;  %v2235_v29 = vcombine.low %v3157_v44, %v3160_v45 }
  0x1b   : > { %2576 = vmatpush3.bf16.msra.mxu0 %v2929_v33  ;;  %2547 = vmatprep.mubr.msk.bf16.mxu0 %vm392_vm0, %v2223_v43  ;;  %v2262_v54 = vcombine.low %v3184_v52, %v3181_v51  ;;  %v3193_v55 = vld [vmem:[%s3048_s6 + $0x50] sm:$0xf]  ;;  %v3201_v58 = vld [vmem:[%s3048_s6 + $0x7c] sm:$0xf]  ;;  %v3204_v59 = vld [vmem:[%s3048_s6 + $0x78] sm:$0xf]  ;;  %v2225_v63 = vcombine.low %v3181_v51, %v3073_v16  ;;  %v2229_v16 = vcombine.low %v3188_v53, %v3105_v26 }
  0x1c   : > { %2577 = vmatprep.subr.bf16.mxu0 %v2932_v47  ;;  %v2266_v57 = vcombine.low %v3193_v55, %v3188_v53  ;;  %v2270_v61 = vcombine.low %v3204_v59, %v3201_v58  ;;  %v3211_v62 = vld [vmem:[%s3048_s6 + $0x24] sm:$0xf]  ;;  %v706_v7 = vsel %vm441_vm1, %v2945_v2, 0  ;;  %v2948_v8 = vld [vmem:[%s3664_s1 + $0x48] sm:$0xff]   ;;  %v254_v20 = vld [vmem:[%s3048_s6 + $0x70] sm:$0xf]  ;;  %v2233_v26 = vcombine.low %v3201_v58, %v3140_v37 }
  0x1d   : > { %v2304_v1 = vcombine.low %v3177_v50, %v3211_v62  ;;  %v3237_v9 = vld [vmem:[%s3048_s6 + $0x48] sm:$0xf]  ;;  %v3240_v11 = vld [vmem:[%s3048_s6 + $0x4c] sm:$0xf]  ;;  %v255_v21 = vld [vmem:[%s3048_s6 + $0x74] sm:$0xf] }
  0x1e   : > { %v2305_v13 = vcombine.low %v3237_v9, %v3240_v11  ;;  %v2228_v14 = vcombine.low %v3098_v24, %v3237_v9  ;;  %v2306_v23 = vcombine.low %v254_v20, %v255_v21  ;;  %v2232_v24 = vcombine.low %v3133_v35, %v254_v20  ;;  %v264_v30 = vld [vmem:[%s3048_s6 + $0x98] sm:$0xf]  ;;  %v265_v32 = vld [vmem:[%s3048_s6 + $0x9c] sm:$0xf]  ;;  %v2951_v35 = vld [vmem:[%s3664_s1 + $0x50] sm:$0xff]  }
  0x1f   : > { %2578 = vmatpush3.bf16.msra.mxu0 %v2932_v47  ;;  %v2307_v33 = vcombine.low %v264_v30, %v265_v32  ;;  %v2236_v34 = vcombine.low %v3163_v46, %v264_v30  ;;  %v2956_v37 = vld [vmem:[%s3664_s1 + $0x58] sm:$0xff]   ;;  %v2960_v4 = vld [vmem:[%s3664_s1 + $0x60] sm:$0xff]   ;;  %v2964_v5 = vld [vmem:[%s3664_s1 + $0x68] ss:$0 sps:$4 sm:$0xff]  }
  0x20   : > { %2579 = vmatprep.subr.bf16.mxu0 %v2937_v56  ;;  %v2977_v20 = vld [vmem:[%s3666_s3 + $0x10] sm:$0xff]  }
  0x22   : > { %2548 = vmatmul.mubr.msk.bf16.gmra.mrb[4].mxu0 %vm392_vm0, %v2224_v60 }
  0x23   : > { %2551 = vmatprep.mubr.msk.bf16.mxu0 %vm392_vm0, %v2225_v63  ;;  %2580 = vmatpush3.bf16.msra.mxu0 %v2937_v56 }
  0x24   : > { %2581 = vmatprep.subr.bf16.mxu0 %v2941_v0 }
  0x27   : > { %2582 = vmatpush3.bf16.msra.mxu0 %v2941_v0 }
  0x28   : > { %2908 = vmatprep.subr.msk.bf16.mxu0 %vm441_vm1, %v2945_v2 }
  0x2a   : > { %2552 = vmatmul.mubr.msk.bf16.gmra.mrb[8].mxu0 %vm392_vm0, %v2226_v3 }
  0x2b   : > { %2555 = vmatprep.mubr.msk.bf16.mxu0 %vm392_vm0, %v2227_v6  ;;  %2584 = vmatpush3.bf16.msra.mxu0 %v706_v7  ;;  %v2976_v7 = vld [vmem:[%s3666_s3 + $0x8] sm:$0xff]  }
  0x2c   : > { %2617 = vmatprep.subr.bf16.mxu0 %v2948_v8 }
  0x32   : > { %2556 = vmatmul.mubr.msk.bf16.gmra.mrb[12].mxu0 %vm392_vm0, %v2228_v14 }
  0x33   : > { %2559 = vmatprep.mubr.msk.bf16.mxu0 %vm392_vm0, %v2229_v16 }
  0x3a   : > { %2560 = vmatmul.mubr.msk.bf16.gmra.mrb[16].mxu0 %vm392_vm0, %v2230_v17 }
  0x3b   : > { %2563 = vmatprep.mubr.msk.bf16.mxu0 %vm392_vm0, %v2231_v19 }
  0x42   : > { %2564 = vmatmul.mubr.msk.bf16.gmra.mrb[20].mxu0 %vm392_vm0, %v2232_v24 }
  0x43   : > { %2567 = vmatprep.mubr.msk.bf16.mxu0 %vm392_vm0, %v2233_v26 }
  0x4a   : > { %2568 = vmatmul.mubr.msk.bf16.gmra.mrb[24].mxu0 %vm392_vm0, %v2234_v27 }
  0x4b   : > { %2571 = vmatprep.mubr.msk.bf16.mxu0 %vm392_vm0, %v2235_v29 }
  0x52   : > { %2572 = vmatmul.mubr.msk.bf16.gmra.mrb[28].mxu0 %vm392_vm0, %v2236_v34 }
  0x53   : > { %2585 = vmatprep.mubr.msk.bf16.mxu0 %vm392_vm0, %v2258_v10  ;;  %v931_v10 = vsel %vm441_vm1, %v2964_v5, 0 }
  0x5a   : > { %2586 = vmatmul.mubr.msk.bf16.vlgmr.msra.gmra.mrb[0].mxu0 %vm392_vm0, %v3063_v12 }
  0x5b   : > { %2618 = vmatpush3.bf16.msra.mxu0 %v2948_v8  ;;  %2589 = vmatprep.mubr.msk.bf16.mxu0 %vm392_vm0, %v3069_v15 }
  0x5c   : > { %2619 = vmatprep.subr.bf16.mxu0 %v2951_v35 }
  0x5f   : > { %2620 = vmatpush3.bf16.msra.mxu0 %v2951_v35 }
  0x60   : > { %2621 = vmatprep.subr.bf16.mxu0 %v2956_v37 }
  0x62   : > { %2590 = vmatmul.mubr.msk.bf16.gmra.mrb[4].mxu0 %vm392_vm0, %v3079_v18 }
  0x63   : > { %2593 = vmatprep.mubr.msk.bf16.mxu0 %vm392_vm0, %v2262_v54  ;;  %2622 = vmatpush3.bf16.msra.mxu0 %v2956_v37 }
  0x64   : > { %2623 = vmatprep.subr.bf16.mxu0 %v2960_v4 }
  0x67   : > { %2624 = vmatpush3.bf16.msra.mxu0 %v2960_v4 }
  0x68   : > { %2909 = vmatprep.subr.msk.bf16.mxu0 %vm441_vm1, %v2964_v5 }
  0x6a   : > { %2594 = vmatmul.mubr.msk.bf16.gmra.mrb[8].mxu0 %vm392_vm0, %v3092_v22 }
  0x6b   : > { %2597 = vmatprep.mubr.msk.bf16.mxu0 %vm392_vm0, %v3102_v25  ;;  %2626 = vmatpush3.bf16.msra.mxu0 %v931_v10 }
  0x72   : > { %2598 = vmatmul.mubr.msk.bf16.gmra.mrb[12].mxu0 %vm392_vm0, %v3112_v28 }
  0x73   : > { %2601 = vmatprep.mubr.msk.bf16.mxu0 %vm392_vm0, %v2266_v57 }
  0x7a   : > { %2602 = vmatmul.mubr.msk.bf16.gmra.mrb[16].mxu0 %vm392_vm0, %v3122_v31 }
  0x7b   : > { %2605 = vmatprep.mubr.msk.bf16.mxu0 %vm392_vm0, %v3137_v36 }
  0x82   : > { %2606 = vmatmul.mubr.msk.bf16.gmra.mrb[20].mxu0 %vm392_vm0, %v3147_v39 }
  0x83   : > { %2609 = vmatprep.mubr.msk.bf16.mxu0 %vm392_vm0, %v2270_v61 }
  0x8a   : > { %2610 = vmatmul.mubr.msk.bf16.gmra.mrb[24].mxu0 %vm392_vm0, %v3154_v42 }
  0x8b   : > { %2613 = vmatprep.mubr.msk.bf16.mxu0 %vm392_vm0, %v3170_v48 }
  0x92   : > { %2614 = vmatmul.mubr.msk.bf16.gmra.mrb[28].mxu0 %vm392_vm0, %v3174_v49 }
  0x93   : > { %2627 = vmatprep.mubr.msk.bf16.mxu0 %vm392_vm0, %v3063_v12  ;;  %v2971_v12 = vld [vmem:[%s3666_s3 + $0x20] sm:$0xff]  }
  0x94   : > { %2659 = vmatprep.subr.bf16.mxu1 %v2971_v12 }
  0x95   : > { %2660 = vmatpush3.bf16.msra.mxu1 %v2971_v12 }
  0x9a   : > { %2628 = vmatmul.mubr.msk.bf16.vlgmr.msra.gmra.mrb[0].mxu0 %vm392_vm0, %v3069_v15  ;;  %v2972_v15 = vld [vmem:[%s3666_s3 + $0x28] sm:$0xff]  }
  0x9b   : > { %2631 = vmatprep.mubr.msk.bf16.mxu0 %vm392_vm0, %v3079_v18  ;;  %2661 = vmatprep.subr.bf16.mxu1 %v2972_v15  ;;  %v2973_v18 = vld [vmem:[%s3666_s3 + $0x30] sm:$0xff]  }
  0x9c   : > { %2662 = vmatpush3.bf16.msra.mxu1 %v2972_v15 }
  0x9d   : > { %2663 = vmatprep.subr.bf16.mxu1 %v2973_v18 }
  0xa0   : > { %2664 = vmatpush3.bf16.msra.mxu1 %v2973_v18  ;;  %v3436_v18 = vld [vmem:[%s3666_s3 + $0x40] sm:$0xff]  }
  0xa2   : > { %2632 = vmatmul.mubr.msk.bf16.gmra.mrb[4].mxu0 %vm392_vm0, %v2304_v1 }
  0xa3   : > { %2635 = vmatprep.mubr.msk.bf16.mxu0 %vm392_vm0, %v3092_v22  ;;  %v2974_v22 = vld [vmem:[%s3666_s3 + $0x38] sm:$0xff]  }
  0xa4   : > { %2665 = vmatprep.subr.bf16.mxu1 %v2974_v22 }
  0xa5   : > { %2666 = vmatpush3.bf16.msra.mxu1 %v2974_v22 }
  0xaa   : > { %2636 = vmatmul.mubr.msk.bf16.gmra.mrb[8].mxu0 %vm392_vm0, %v3102_v25  ;;  %v2975_v25 = vld [vmem:[%s3666_s3] sm:$0xff]  }
  0xab   : > { %2639 = vmatprep.mubr.msk.bf16.mxu0 %vm392_vm0, %v3112_v28  ;;  %2699 = vmatprep.subr.bf16.mxu1 %v2975_v25  ;;  %v2991_v28 = vmov 0  }
  0xac   : > { %1198 = vst.msk [vmem:[#allocation2] sm:$0xff] %vm1197_vm2, %v2991_v28  ;;  %1199 = vst.msk [vmem:[#allocation2 + $0x8] sm:$0xff] %vm1197_vm2, %v2991_v28 }
  0xad   : > { %1200 = vst.msk [vmem:[#allocation2 + $0x10] sm:$0xff] %vm1197_vm2, %v2991_v28  ;;  %1201 = vst.msk [vmem:[#allocation2 + $0x18] sm:$0xff] %vm1197_vm2, %v2991_v28 }
  0xae   : > { %1203 = vst.msk [vmem:[#allocation2 + $0xa0] sm:$0xff] %vm1197_vm2, %v2991_v28  ;;  %1204 = vst.msk [vmem:[#allocation2 + $0xa8] sm:$0xff] %vm1197_vm2, %v2991_v28 }
  0xaf   : > { %1205 = vst.msk [vmem:[#allocation2 + $0xb0] sm:$0xff] %vm1197_vm2, %v2991_v28  ;;  %1206 = vst.msk [vmem:[#allocation2 + $0xb8] sm:$0xff] %vm1197_vm2, %v2991_v28 }
  0xb2   : > { %2640 = vmatmul.mubr.msk.bf16.gmra.mrb[12].mxu0 %vm392_vm0, %v2305_v13 }
  0xb3   : > { %2643 = vmatprep.mubr.msk.bf16.mxu0 %vm392_vm0, %v3122_v31  ;;  %v3384_v31 = vld [vmem:[%s3665_s2] ss:$0 sm:$0xff] }
  0xba   : > { %2644 = vmatmul.mubr.msk.bf16.gmra.mrb[16].mxu0 %vm392_vm0, %v3137_v36 }
  0xbb   : > { %2647 = vmatprep.mubr.msk.bf16.mxu0 %vm392_vm0, %v3147_v39 }
  0xc2   : > { %2648 = vmatmul.mubr.msk.bf16.gmra.mrb[20].mxu0 %vm392_vm0, %v2306_v23 }
  0xc3   : > { %2651 = vmatprep.mubr.msk.bf16.mxu0 %vm392_vm0, %v3154_v42 }
  0xca   : > { %2652 = vmatmul.mubr.msk.bf16.gmra.mrb[24].mxu0 %vm392_vm0, %v3170_v48 }
  0xcb   : > { %2655 = vmatprep.mubr.msk.bf16.mxu0 %vm392_vm0, %v3174_v49 }
  0xd2   : > { %2656 = vmatmul.mubr.msk.bf16.gmra.mrb[28].mxu0 %vm392_vm0, %v2307_v33  ;;  %v2978_v33 = vld [vmem:[%s3666_s3 + $0x18] sm:$0xff]  }
 0x16d   : > { %v2629_v36 = vpop.f32.mrb[0].mxu0 }
 0x16e   : > { %v1135_v38 = vadd.f32 %v2629_v36, %v3384_v31  ;;  %v967_v39 = vpop.f32.mrb[1].mxu0 }
 0x16f   : > { %v1133_v40 = vadd.f32 %v3384_v31, %v967_v39  ;;  %v2630_v41 = vpop.f32.mrb[2].mxu0 }
 0x170   : > { %v1136_v42 = vadd.f32 %v2630_v41, %v3384_v31  ;;  %v970_v43 = vpop.f32.mrb[3].mxu0  ;;  %v1167_v45 = vmax.f32 %v1135_v38, 0.0 }
 0x171   : > { %v1134_v44 = vadd.f32 %v3384_v31, %v970_v43  ;;  %v1165_v47 = vmax.f32 %v1133_v40, 0.0 }
 0x172   : > { %v1168_v46 = vmax.f32 %v1136_v42, 0.0 }
 0x173   : > { %v1166_v48 = vmax.f32 %v1134_v44, 0.0 }
 0x174   : > { %v1208_v49 = vpack.c.bf16 %v1168_v46, %v1167_v45 }
 0x175   : > { %v1207_v50 = vpack.c.bf16 %v1166_v48, %v1165_v47  ;;  %v2633_v51 = vpop.f32.mrb[4].mxu0 }
 0x176   : > { %1225 = vst.msk [vmem:[#allocation2 + $0x28] sm:$0xff] %vm1197_vm2, %v1208_v49  ;;  %v1139_v52 = vadd.f32 %v2633_v51, %v3384_v31  ;;  %v983_v53 = vpop.f32.mrb[5].mxu0 }
 0x177   : > { %1224 = vst.msk [vmem:[#allocation2 + $0x20] sm:$0xff] %vm1197_vm2, %v1207_v50  ;;  %v1137_v54 = vadd.f32 %v3384_v31, %v983_v53  ;;  %v2634_v55 = vpop.f32.mrb[6].mxu0 }
 0x178   : > { %v1140_v56 = vadd.f32 %v2634_v55, %v3384_v31  ;;  %v986_v57 = vpop.f32.mrb[7].mxu0  ;;  %v1171_v59 = vmax.f32 %v1139_v52, 0.0 }
 0x179   : > { %v1138_v58 = vadd.f32 %v3384_v31, %v986_v57  ;;  %v1169_v61 = vmax.f32 %v1137_v54, 0.0 }
 0x17a   : > { %v1172_v60 = vmax.f32 %v1140_v56, 0.0 }
 0x17b   : > { %v1170_v62 = vmax.f32 %v1138_v58, 0.0 }
 0x17c   : > { %v1210_v63 = vpack.c.bf16 %v1172_v60, %v1171_v59 }
 0x17d   : > { %v1209_v0 = vpack.c.bf16 %v1170_v62, %v1169_v61  ;;  %v2637_v1 = vpop.f32.mrb[8].mxu0  ;;  %v3407_v11 = vld [vmem:[#allocation2 + $0x28] sm:$0xff] }
 0x17e   : > { %1227 = vst.msk [vmem:[#allocation2 + $0x38] sm:$0xff] %vm1197_vm2, %v1210_v63  ;;  %v1143_v2 = vadd.f32 %v2637_v1, %v3384_v31  ;;  %v999_v3 = vpop.f32.mrb[9].mxu0  ;;  %v3398_v6 = vld [vmem:[#allocation2 + $0x20] sm:$0xff] }
 0x17f   : > { %1226 = vst.msk [vmem:[#allocation2 + $0x30] sm:$0xff] %vm1197_vm2, %v1209_v0  ;;  %v1141_v8 = vadd.f32 %v3384_v31, %v999_v3  ;;  %v2638_v9 = vpop.f32.mrb[10].mxu0  ;;  %2667 = vmatprep.mubr.msk.bf16.mxu1 %vm1197_vm2, %v3398_v6 }
 0x180   : > { %v1144_v13 = vadd.f32 %v2638_v9, %v3384_v31  ;;  %v1002_v14 = vpop.f32.mrb[11].mxu0  ;;  %2668 = vmatmul.mubr.msk.bf16.vlgmr.msra.gmra.mrb[0].mxu1 %vm1197_vm2, %v3407_v11  ;;  %v1175_v17 = vmax.f32 %v1143_v2, 0.0 }
 0x181   : > { %v1142_v16 = vadd.f32 %v3384_v31, %v1002_v14  ;;  %2700 = vmatpush3.bf16.msra.mxu1 %v2975_v25  ;;  %v1173_v21 = vmax.f32 %v1141_v8, 0.0 }
 0x182   : > { %v1176_v19 = vmax.f32 %v1144_v13, 0.0  ;;  %2701 = vmatprep.subr.bf16.mxu1 %v2976_v7 }
 0x183   : > { %v1174_v23 = vmax.f32 %v1142_v16, 0.0 }
 0x184   : > { %v1212_v24 = vpack.c.bf16 %v1176_v19, %v1175_v17 }
 0x185   : > { %v1211_v26 = vpack.c.bf16 %v1174_v23, %v1173_v21  ;;  %v2641_v27 = vpop.f32.mrb[12].mxu0  ;;  %2702 = vmatpush3.bf16.msra.mxu1 %v2976_v7  ;;  %v3427_v37 = vld [vmem:[#allocation2 + $0x38] sm:$0xff] }
 0x186   : > { %1229 = vst.msk [vmem:[#allocation2 + $0x48] sm:$0xff] %vm1197_vm2, %v1212_v24  ;;  %v1147_v29 = vadd.f32 %v2641_v27, %v3384_v31  ;;  %v1015_v30 = vpop.f32.mrb[13].mxu0  ;;  %v3418_v32 = vld [vmem:[#allocation2 + $0x30] sm:$0xff]  ;;  %2703 = vmatprep.subr.bf16.mxu1 %v2977_v20 }
 0x187   : > { %1228 = vst.msk [vmem:[#allocation2 + $0x40] sm:$0xff] %vm1197_vm2, %v1211_v26  ;;  %v1145_v34 = vadd.f32 %v3384_v31, %v1015_v30  ;;  %v2642_v35 = vpop.f32.mrb[14].mxu0  ;;  %2671 = vmatprep.mubr.msk.bf16.mxu1 %vm1197_vm2, %v3418_v32 }
 0x188   : > { %v1148_v4 = vadd.f32 %v2642_v35, %v3384_v31  ;;  %v1018_v5 = vpop.f32.mrb[15].mxu0  ;;  %2672 = vmatmul.mubr.msk.bf16.gmra.mrb[4].mxu1 %vm1197_vm2, %v3427_v37  ;;  %v1179_v12 = vmax.f32 %v1147_v29, 0.0 }
 0x189   : > { %v1146_v10 = vadd.f32 %v3384_v31, %v1018_v5  ;;  %2704 = vmatpush3.bf16.msra.mxu1 %v2977_v20  ;;  %v1177_v22 = vmax.f32 %v1145_v34, 0.0 }
 0x18a   : > { %v1180_v15 = vmax.f32 %v1148_v4, 0.0  ;;  %2705 = vmatprep.subr.bf16.mxu1 %v2978_v33 }
 0x18b   : > { %v1178_v25 = vmax.f32 %v1146_v10, 0.0 }
 0x18c   : > { %v1214_v28 = vpack.c.bf16 %v1180_v15, %v1179_v12 }
 0x18d   : > { %v1213_v36 = vpack.c.bf16 %v1178_v25, %v1177_v22  ;;  %v2645_v38 = vpop.f32.mrb[16].mxu0  ;;  %2706 = vmatpush3.bf16.msra.mxu1 %v2978_v33  ;;  %v3447_v44 = vld [vmem:[#allocation2 + $0x48] sm:$0xff] }
 0x18e   : > { %1231 = vst.msk [vmem:[#allocation2 + $0x58] sm:$0xff] %vm1197_vm2, %v1214_v28  ;;  %v1151_v39 = vadd.f32 %v2645_v38, %v3384_v31  ;;  %v1031_v40 = vpop.f32.mrb[17].mxu0  ;;  %v3440_v41 = vld [vmem:[#allocation2 + $0x40] sm:$0xff]  ;;  %2739 = vmatprep.subr.bf16.mxu1 %v3436_v18 }
 0x18f   : > { %1230 = vst.msk [vmem:[#allocation2 + $0x50] sm:$0xff] %vm1197_vm2, %v1213_v36  ;;  %v1149_v42 = vadd.f32 %v3384_v31, %v1031_v40  ;;  %v2646_v43 = vpop.f32.mrb[18].mxu0  ;;  %2675 = vmatprep.mubr.msk.bf16.mxu1 %vm1197_vm2, %v3440_v41 }
 0x190   : > { %v1152_v45 = vadd.f32 %v2646_v43, %v3384_v31  ;;  %v1034_v46 = vpop.f32.mrb[19].mxu0  ;;  %2676 = vmatmul.mubr.msk.bf16.gmra.mrb[8].mxu1 %vm1197_vm2, %v3447_v44  ;;  %v1183_v48 = vmax.f32 %v1151_v39, 0.0 }
 0x191   : > { %v1150_v47 = vadd.f32 %v3384_v31, %v1034_v46  ;;  %v1181_v50 = vmax.f32 %v1149_v42, 0.0 }
 0x192   : > { %v1184_v49 = vmax.f32 %v1152_v45, 0.0 }
 0x193   : > { %v1182_v51 = vmax.f32 %v1150_v47, 0.0 }
 0x194   : > { %v1216_v52 = vpack.c.bf16 %v1184_v49, %v1183_v48  ;;  %v1240_v49 = vld [vmem:[#allocation2] sm:$0xff] }
 0x195   : > { %v1215_v53 = vpack.c.bf16 %v1182_v51, %v1181_v50  ;;  %v2649_v54 = vpop.f32.mrb[20].mxu0  ;;  %v3461_v60 = vld [vmem:[#allocation2 + $0x58] sm:$0xff]  ;;  %v1241_v50 = vld [vmem:[#allocation2 + $0x8] sm:$0xff]  ;;  %v1242_v51 = vld [vmem:[#allocation2 + $0x10] sm:$0xff] }
 0x196   : > { %1233 = vst.msk [vmem:[#allocation2 + $0x68] sm:$0xff] %vm1197_vm2, %v1216_v52  ;;  %v1155_v55 = vadd.f32 %v2649_v54, %v3384_v31  ;;  %v1047_v56 = vpop.f32.mrb[21].mxu0  ;;  %v3455_v57 = vld [vmem:[#allocation2 + $0x50] sm:$0xff]  ;;  %v2980_v52 = vld [vmem:[%s3666_s3 + $0x48] sm:$0xff]   ;;  %v1243_v54 = vld [vmem:[#allocation2 + $0x18] sm:$0xff] }
 0x197   : > { %1232 = vst.msk [vmem:[#allocation2 + $0x60] sm:$0xff] %vm1197_vm2, %v1215_v53  ;;  %v1153_v58 = vadd.f32 %v3384_v31, %v1047_v56  ;;  %v2650_v59 = vpop.f32.mrb[22].mxu0  ;;  %2679 = vmatprep.mubr.msk.bf16.mxu1 %vm1197_vm2, %v3455_v57  ;;  %v2981_v53 = vld [vmem:[%s3666_s3 + $0x50] sm:$0xff]  }
 0x198   : > { %v1156_v61 = vadd.f32 %v2650_v59, %v3384_v31  ;;  %v1050_v62 = vpop.f32.mrb[23].mxu0  ;;  %2680 = vmatmul.mubr.msk.bf16.gmra.mrb[12].mxu1 %vm1197_vm2, %v3461_v60  ;;  %v1187_v0 = vmax.f32 %v1155_v55, 0.0  ;;  %v2982_v55 = vld [vmem:[%s3666_s3 + $0x58] sm:$0xff]  }
 0x199   : > { %v1154_v63 = vadd.f32 %v3384_v31, %v1050_v62  ;;  %v1185_v2 = vmax.f32 %v1153_v58, 0.0 }
 0x19a   : > { %v1188_v1 = vmax.f32 %v1156_v61, 0.0 }
 0x19b   : > { %v1186_v3 = vmax.f32 %v1154_v63, 0.0 }
 0x19c   : > { %v1218_v7 = vpack.c.bf16 %v1188_v1, %v1187_v0 }
 0x19d   : > { %v1217_v8 = vpack.c.bf16 %v1186_v3, %v1185_v2  ;;  %v2653_v9 = vpop.f32.mrb[24].mxu0  ;;  %v3475_v20 = vld [vmem:[#allocation2 + $0x68] sm:$0xff] }
 0x19e   : > { %1235 = vst.msk [vmem:[#allocation2 + $0x78] sm:$0xff] %vm1197_vm2, %v1218_v7  ;;  %v1159_v13 = vadd.f32 %v2653_v9, %v3384_v31  ;;  %v1063_v14 = vpop.f32.mrb[25].mxu0  ;;  %v3469_v16 = vld [vmem:[#allocation2 + $0x60] sm:$0xff] }
 0x19f   : > { %1234 = vst.msk [vmem:[#allocation2 + $0x70] sm:$0xff] %vm1197_vm2, %v1217_v8  ;;  %v1157_v17 = vadd.f32 %v3384_v31, %v1063_v14  ;;  %v2654_v19 = vpop.f32.mrb[26].mxu0  ;;  %2683 = vmatprep.mubr.msk.bf16.mxu1 %vm1197_vm2, %v3469_v16 }
 0x1a0   : > { %v1160_v21 = vadd.f32 %v2654_v19, %v3384_v31  ;;  %v1066_v23 = vpop.f32.mrb[27].mxu0  ;;  %2684 = vmatmul.mubr.msk.bf16.gmra.mrb[16].mxu1 %vm1197_vm2, %v3475_v20  ;;  %v1191_v26 = vmax.f32 %v1159_v13, 0.0 }
 0x1a1   : > { %v1158_v24 = vadd.f32 %v3384_v31, %v1066_v23  ;;  %v1189_v29 = vmax.f32 %v1157_v17, 0.0 }
 0x1a2   : > { %v1192_v27 = vmax.f32 %v1160_v21, 0.0 }
 0x1a3   : > { %v1190_v30 = vmax.f32 %v1158_v24, 0.0 }
 0x1a4   : > { %v1220_v33 = vpack.c.bf16 %v1192_v27, %v1191_v26 }
 0x1a5   : > { %v1219_v34 = vpack.c.bf16 %v1190_v30, %v1189_v29  ;;  %v2657_v35 = vpop.f32.mrb[28].mxu0  ;;  %v1275_v22 = vld [vmem:[#allocation2 + $0x78] sm:$0xff] }
 0x1a6   : > { %1237 = vst.msk [vmem:[#allocation2 + $0x88] sm:$0xff] %vm1197_vm2, %v1220_v33  ;;  %v1163_v4 = vadd.f32 %v2657_v35, %v3384_v31  ;;  %v1079_v5 = vpop.f32.mrb[29].mxu0  ;;  %v1274_v10 = vld [vmem:[#allocation2 + $0x70] sm:$0xff] }
 0x1a7   : > { %1236 = vst.msk [vmem:[#allocation2 + $0x80] sm:$0xff] %vm1197_vm2, %v1219_v34  ;;  %v1161_v12 = vadd.f32 %v3384_v31, %v1079_v5  ;;  %v2658_v15 = vpop.f32.mrb[30].mxu0  ;;  %2687 = vmatprep.mubr.msk.bf16.mxu1 %vm1197_vm2, %v1274_v10 }
 0x1a8   : > { %v1164_v25 = vadd.f32 %v2658_v15, %v3384_v31  ;;  %v1082_v28 = vpop.f32.mrb[31].mxu0  ;;  %2688 = vmatmul.mubr.msk.bf16.gmra.mrb[20].mxu1 %vm1197_vm2, %v1275_v22  ;;  %v1195_v38 = vmax.f32 %v1163_v4, 0.0 }
 0x1a9   : > { %v1162_v36 = vadd.f32 %v3384_v31, %v1082_v28  ;;  %v1193_v40 = vmax.f32 %v1161_v12, 0.0 }
 0x1aa   : > { %v1196_v39 = vmax.f32 %v1164_v25, 0.0 }
 0x1ab   : > { %v1194_v42 = vmax.f32 %v1162_v36, 0.0 }
 0x1ac   : > { %v1222_v43 = vpack.c.bf16 %v1196_v39, %v1195_v38 }
 0x1ad   : > { %v1221_v45 = vpack.c.bf16 %v1194_v42, %v1193_v40  ;;  %v1277_v47 = vld [vmem:[#allocation2 + $0x88] sm:$0xff] }
 0x1ae   : > { %1239 = vst.msk [vmem:[#allocation2 + $0x98] sm:$0xff] %vm1197_vm2, %v1222_v43  ;;  %v1276_v46 = vld [vmem:[#allocation2 + $0x80] sm:$0xff] }
 0x1af   : > { %1238 = vst.msk [vmem:[#allocation2 + $0x90] sm:$0xff] %vm1197_vm2, %v1221_v45  ;;  %2691 = vmatprep.mubr.msk.bf16.mxu1 %vm1197_vm2, %v1276_v46 }
 0x1b0   : > { %2692 = vmatmul.mubr.msk.bf16.gmra.mrb[24].mxu1 %vm1197_vm2, %v1277_v47 }
 0x1b5   : > { %v1279_v31 = vld [vmem:[#allocation2 + $0x98] sm:$0xff] }
 0x1b6   : > { %v1278_v48 = vld [vmem:[#allocation2 + $0x90] sm:$0xff] }
 0x1b7   : > { %2695 = vmatprep.mubr.msk.bf16.mxu1 %vm1197_vm2, %v1278_v48 }
 0x1b8   : > { %2696 = vmatmul.mubr.msk.bf16.gmra.mrb[28].mxu1 %vm1197_vm2, %v1279_v31 }
 0x1b9   : > { %2707 = vmatprep.mubr.msk.bf16.mxu1 %vm1197_vm2, %v1240_v49 }
 0x1c0   : > { %2708 = vmatmul.mubr.msk.bf16.vlgmr.msra.gmra.mrb[0].mxu1 %vm1197_vm2, %v1241_v50 }
 0x1c1   : > { %2740 = vmatpush3.bf16.msra.mxu1 %v3436_v18  ;;  %2711 = vmatprep.mubr.msk.bf16.mxu1 %vm1197_vm2, %v1242_v51  ;;  %v3556_v18 = vld [vmem:[%s3667_s4] ss:$0 sm:$0xff] }
 0x1c2   : > { %2741 = vmatprep.subr.bf16.mxu1 %v2980_v52 }
 0x1c5   : > { %2742 = vmatpush3.bf16.msra.mxu1 %v2980_v52 }
 0x1c6   : > { %2743 = vmatprep.subr.bf16.mxu1 %v2981_v53 }
 0x1c8   : > { %2712 = vmatmul.mubr.msk.bf16.gmra.mrb[4].mxu1 %vm1197_vm2, %v1243_v54 }
 0x1c9   : > { %2715 = vmatprep.mubr.msk.bf16.mxu1 %vm1197_vm2, %v3398_v6  ;;  %2744 = vmatpush3.bf16.msra.mxu1 %v2981_v53  ;;  %v1768_v6 = vld [vmem:[#allocation2 + $0xa0] sm:$0xff] }
 0x1ca   : > { %2745 = vmatprep.subr.bf16.mxu1 %v2982_v55 }
 0x1cd   : > { %2746 = vmatpush3.bf16.msra.mxu1 %v2982_v55 }
 0x1d0   : > { %2716 = vmatmul.mubr.msk.bf16.gmra.mrb[8].mxu1 %vm1197_vm2, %v3407_v11  ;;  %v1769_v11 = vld [vmem:[#allocation2 + $0xa8] sm:$0xff] }
 0x1d1   : > { %2719 = vmatprep.mubr.msk.bf16.mxu1 %vm1197_vm2, %v3418_v32  ;;  %v1770_v32 = vld [vmem:[#allocation2 + $0xb0] sm:$0xff] }
 0x1d8   : > { %2720 = vmatmul.mubr.msk.bf16.gmra.mrb[12].mxu1 %vm1197_vm2, %v3427_v37  ;;  %v1771_v37 = vld [vmem:[#allocation2 + $0xb8] sm:$0xff] }
 0x1d9   : > { %2723 = vmatprep.mubr.msk.bf16.mxu1 %vm1197_vm2, %v3440_v41 }
 0x1e0   : > { %2724 = vmatmul.mubr.msk.bf16.gmra.mrb[16].mxu1 %vm1197_vm2, %v3447_v44 }
 0x1e1   : > { %2727 = vmatprep.mubr.msk.bf16.mxu1 %vm1197_vm2, %v3455_v57 }
 0x1e8   : > { %2728 = vmatmul.mubr.msk.bf16.gmra.mrb[20].mxu1 %vm1197_vm2, %v3461_v60 }
 0x1e9   : > { %2731 = vmatprep.mubr.msk.bf16.mxu1 %vm1197_vm2, %v3469_v16 }
 0x1f0   : > { %2732 = vmatmul.mubr.msk.bf16.gmra.mrb[24].mxu1 %vm1197_vm2, %v3475_v20 }
 0x1f1   : > { %2735 = vmatprep.mubr.msk.bf16.mxu1 %vm1197_vm2, %v1274_v10 }
 0x1f8   : > { %2736 = vmatmul.mubr.msk.bf16.gmra.mrb[28].mxu1 %vm1197_vm2, %v1275_v22 }
 0x1f9   : > { %2747 = vmatprep.mubr.msk.bf16.mxu1 %vm1197_vm2, %v3440_v41 }
 0x200   : > { %2748 = vmatmul.mubr.msk.bf16.vlgmr.msra.gmra.mrb[0].mxu1 %vm1197_vm2, %v3447_v44 }
 0x201   : > { %2751 = vmatprep.mubr.msk.bf16.mxu1 %vm1197_vm2, %v3455_v57 }
 0x208   : > { %2752 = vmatmul.mubr.msk.bf16.gmra.mrb[4].mxu1 %vm1197_vm2, %v3461_v60 }
 0x209   : > { %2755 = vmatprep.mubr.msk.bf16.mxu1 %vm1197_vm2, %v3469_v16 }
 0x210   : > { %2756 = vmatmul.mubr.msk.bf16.gmra.mrb[8].mxu1 %vm1197_vm2, %v3475_v20 }
 0x211   : > { %2759 = vmatprep.mubr.msk.bf16.mxu1 %vm1197_vm2, %v1274_v10 }
 0x218   : > { %2760 = vmatmul.mubr.msk.bf16.gmra.mrb[12].mxu1 %vm1197_vm2, %v1275_v22 }
 0x219   : > { %2763 = vmatprep.mubr.msk.bf16.mxu1 %vm1197_vm2, %v1276_v46 }
 0x220   : > { %2764 = vmatmul.mubr.msk.bf16.gmra.mrb[16].mxu1 %vm1197_vm2, %v1277_v47 }
 0x221   : > { %2767 = vmatprep.mubr.msk.bf16.mxu1 %vm1197_vm2, %v1278_v48 }
 0x228   : > { %2768 = vmatmul.mubr.msk.bf16.gmra.mrb[20].mxu1 %vm1197_vm2, %v1279_v31 }
 0x229   : > { %2771 = vmatprep.mubr.msk.bf16.mxu1 %vm1197_vm2, %v1768_v6 }
 0x230   : > { %2772 = vmatmul.mubr.msk.bf16.gmra.mrb[24].mxu1 %vm1197_vm2, %v1769_v11 }
 0x231   : > { %2775 = vmatprep.mubr.msk.bf16.mxu1 %vm1197_vm2, %v1770_v32 }
 0x238   : > { %2776 = vmatmul.mubr.msk.bf16.gmra.mrb[28].mxu1 %vm1197_vm2, %v1771_v37 }
 0x2d3   : > { %v2749_v41 = vpop.f32.mrb[0].mxu1 }
 0x2d4   : > { %v2055_v44 = vadd.f32 %v2749_v41, %v3556_v18  ;;  %v1887_v56 = vpop.f32.mrb[1].mxu1 }
 0x2d5   : > { %v2053_v57 = vadd.f32 %v3556_v18, %v1887_v56  ;;  %v2750_v58 = vpop.f32.mrb[2].mxu1 }
 0x2d6   : > { %v2087_v59 = vmax.f32 %v2055_v44, 0.0  ;;  %v2056_v60 = vadd.f32 %v2750_v58, %v3556_v18  ;;  %v1890_v61 = vpop.f32.mrb[3].mxu1 }
 0x2d7   : > { %v2085_v62 = vmax.f32 %v2053_v57, 0.0  ;;  %v2054_v63 = vadd.f32 %v3556_v18, %v1890_v61 }
 0x2d8   : > { %2119 = vst.msk [vmem:[%s3563_s14 + $0x10] sm:$0xff] %vm1197_vm2, %v2087_v59  ;;  %v2088_v0 = vmax.f32 %v2056_v60, 0.0 }
 0x2d9   : > { %2117 = vst.msk [vmem:[%s3563_s14] sm:$0xff] %vm1197_vm2, %v2085_v62  ;;  %v2086_v1 = vmax.f32 %v2054_v63, 0.0 }
 0x2da   : > { %2120 = vst.msk [vmem:[%s3563_s14 + $0x18] sm:$0xff] %vm1197_vm2, %v2088_v0 }
 0x2db   : > { %2118 = vst.msk [vmem:[%s3563_s14 + $0x8] sm:$0xff] %vm1197_vm2, %v2086_v1  ;;  %v2753_v2 = vpop.f32.mrb[4].mxu1 }
 0x2dc   : > { %v2059_v3 = vadd.f32 %v2753_v2, %v3556_v18  ;;  %v1903_v7 = vpop.f32.mrb[5].mxu1 }
 0x2dd   : > { %v2057_v8 = vadd.f32 %v3556_v18, %v1903_v7  ;;  %v2754_v9 = vpop.f32.mrb[6].mxu1 }
 0x2de   : > { %v2091_v13 = vmax.f32 %v2059_v3, 0.0  ;;  %v2060_v14 = vadd.f32 %v2754_v9, %v3556_v18  ;;  %v1906_v16 = vpop.f32.mrb[7].mxu1 }
 0x2df   : > { %v2089_v17 = vmax.f32 %v2057_v8, 0.0  ;;  %v2058_v19 = vadd.f32 %v3556_v18, %v1906_v16 }
 0x2e0   : > { %2123 = vst.msk [vmem:[%s3563_s14 + $0x30] sm:$0xff] %vm1197_vm2, %v2091_v13  ;;  %v2092_v20 = vmax.f32 %v2060_v14, 0.0 }
 0x2e1   : > { %2121 = vst.msk [vmem:[%s3563_s14 + $0x20] sm:$0xff] %vm1197_vm2, %v2089_v17  ;;  %v2090_v21 = vmax.f32 %v2058_v19, 0.0 }
 0x2e2   : > { %2124 = vst.msk [vmem:[%s3563_s14 + $0x38] sm:$0xff] %vm1197_vm2, %v2092_v20 }
 0x2e3   : > { %2122 = vst.msk [vmem:[%s3563_s14 + $0x28] sm:$0xff] %vm1197_vm2, %v2090_v21  ;;  %v2757_v23 = vpop.f32.mrb[8].mxu1 }
 0x2e4   : > { %v2063_v24 = vadd.f32 %v2757_v23, %v3556_v18  ;;  %v1919_v26 = vpop.f32.mrb[9].mxu1 }
 0x2e5   : > { %v2061_v27 = vadd.f32 %v3556_v18, %v1919_v26  ;;  %v2758_v29 = vpop.f32.mrb[10].mxu1 }
 0x2e6   : > { %v2095_v30 = vmax.f32 %v2063_v24, 0.0  ;;  %v2064_v33 = vadd.f32 %v2758_v29, %v3556_v18  ;;  %v1922_v34 = vpop.f32.mrb[11].mxu1 }
 0x2e7   : > { %v2093_v35 = vmax.f32 %v2061_v27, 0.0  ;;  %v2062_v4 = vadd.f32 %v3556_v18, %v1922_v34 }
 0x2e8   : > { %2127 = vst.msk [vmem:[%s3563_s14 + $0x50] sm:$0xff] %vm1197_vm2, %v2095_v30  ;;  %v2096_v5 = vmax.f32 %v2064_v33, 0.0 }
 0x2e9   : > { %2125 = vst.msk [vmem:[%s3563_s14 + $0x40] sm:$0xff] %vm1197_vm2, %v2093_v35  ;;  %v2094_v10 = vmax.f32 %v2062_v4, 0.0 }
 0x2ea   : > { %2128 = vst.msk [vmem:[%s3563_s14 + $0x58] sm:$0xff] %vm1197_vm2, %v2096_v5 }
 0x2eb   : > { %2126 = vst.msk [vmem:[%s3563_s14 + $0x48] sm:$0xff] %vm1197_vm2, %v2094_v10  ;;  %v2761_v12 = vpop.f32.mrb[12].mxu1 }
 0x2ec   : > { %v2067_v15 = vadd.f32 %v2761_v12, %v3556_v18  ;;  %v1935_v22 = vpop.f32.mrb[13].mxu1 }
 0x2ed   : > { %v2065_v25 = vadd.f32 %v3556_v18, %v1935_v22  ;;  %v2762_v28 = vpop.f32.mrb[14].mxu1 }
 0x2ee   : > { %v2099_v36 = vmax.f32 %v2067_v15, 0.0  ;;  %v2068_v38 = vadd.f32 %v2762_v28, %v3556_v18  ;;  %v1938_v39 = vpop.f32.mrb[15].mxu1 }
 0x2ef   : > { %v2097_v40 = vmax.f32 %v2065_v25, 0.0  ;;  %v2066_v42 = vadd.f32 %v3556_v18, %v1938_v39 }
 0x2f0   : > { %2131 = vst.msk [vmem:[%s3563_s14 + $0x70] sm:$0xff] %vm1197_vm2, %v2099_v36  ;;  %v2100_v43 = vmax.f32 %v2068_v38, 0.0 }
 0x2f1   : > { %2129 = vst.msk [vmem:[%s3563_s14 + $0x60] sm:$0xff] %vm1197_vm2, %v2097_v40  ;;  %v2098_v45 = vmax.f32 %v2066_v42, 0.0 }
 0x2f2   : > { %2132 = vst.msk [vmem:[%s3563_s14 + $0x78] sm:$0xff] %vm1197_vm2, %v2100_v43 }
 0x2f3   : > { %2130 = vst.msk [vmem:[%s3563_s14 + $0x68] sm:$0xff] %vm1197_vm2, %v2098_v45  ;;  %v2765_v46 = vpop.f32.mrb[16].mxu1 }
 0x2f4   : > { %v2071_v47 = vadd.f32 %v2765_v46, %v3556_v18  ;;  %v1951_v48 = vpop.f32.mrb[17].mxu1 }
 0x2f5   : > { %v2069_v49 = vadd.f32 %v3556_v18, %v1951_v48  ;;  %v2766_v31 = vpop.f32.mrb[18].mxu1 }
 0x2f6   : > { %v2103_v50 = vmax.f32 %v2071_v47, 0.0  ;;  %v2072_v51 = vadd.f32 %v2766_v31, %v3556_v18  ;;  %v1954_v52 = vpop.f32.mrb[19].mxu1 }
 0x2f7   : > { %v2101_v53 = vmax.f32 %v2069_v49, 0.0  ;;  %v2070_v54 = vadd.f32 %v3556_v18, %v1954_v52 }
 0x2f8   : > { %2135 = vst.msk [vmem:[%s3563_s14 + $0x90] sm:$0xff] %vm1197_vm2, %v2103_v50  ;;  %v2104_v55 = vmax.f32 %v2072_v51, 0.0 }
 0x2f9   : > { %2133 = vst.msk [vmem:[%s3563_s14 + $0x80] sm:$0xff] %vm1197_vm2, %v2101_v53  ;;  %v2102_v6 = vmax.f32 %v2070_v54, 0.0 }
 0x2fa   : > { %2136 = vst.msk [vmem:[%s3563_s14 + $0x98] sm:$0xff] %vm1197_vm2, %v2104_v55 }
 0x2fb   : > { %2134 = vst.msk [vmem:[%s3563_s14 + $0x88] sm:$0xff] %vm1197_vm2, %v2102_v6  ;;  %v2769_v11 = vpop.f32.mrb[20].mxu1 }
 0x2fc   : > { %v2075_v32 = vadd.f32 %v2769_v11, %v3556_v18  ;;  %v1967_v37 = vpop.f32.mrb[21].mxu1 }
 0x2fd   : > { %v2073_v41 = vadd.f32 %v3556_v18, %v1967_v37  ;;  %v2770_v44 = vpop.f32.mrb[22].mxu1 }
 0x2fe   : > { %v2107_v56 = vmax.f32 %v2075_v32, 0.0  ;;  %v2076_v57 = vadd.f32 %v2770_v44, %v3556_v18  ;;  %v1970_v58 = vpop.f32.mrb[23].mxu1 }
 0x2ff   : > { %v2105_v59 = vmax.f32 %v2073_v41, 0.0  ;;  %v2074_v60 = vadd.f32 %v3556_v18, %v1970_v58 }
 0x300   : > { %2139 = vst.msk [vmem:[%s3563_s14 + $0xb0] sm:$0xff] %vm1197_vm2, %v2107_v56  ;;  %v2108_v61 = vmax.f32 %v2076_v57, 0.0 }
 0x301   : > { %2137 = vst.msk [vmem:[%s3563_s14 + $0xa0] sm:$0xff] %vm1197_vm2, %v2105_v59  ;;  %v2106_v62 = vmax.f32 %v2074_v60, 0.0 }
 0x302   : > { %2140 = vst.msk [vmem:[%s3563_s14 + $0xb8] sm:$0xff] %vm1197_vm2, %v2108_v61 }
 0x303   : > { %2138 = vst.msk [vmem:[%s3563_s14 + $0xa8] sm:$0xff] %vm1197_vm2, %v2106_v62  ;;  %v2773_v63 = vpop.f32.mrb[24].mxu1 }
 0x304   : > { %v2079_v0 = vadd.f32 %v2773_v63, %v3556_v18  ;;  %v1983_v1 = vpop.f32.mrb[25].mxu1 }
 0x305   : > { %v2077_v2 = vadd.f32 %v3556_v18, %v1983_v1  ;;  %v2774_v3 = vpop.f32.mrb[26].mxu1 }
 0x306   : > { %v2111_v7 = vmax.f32 %v2079_v0, 0.0  ;;  %v2080_v8 = vadd.f32 %v2774_v3, %v3556_v18  ;;  %v1986_v9 = vpop.f32.mrb[27].mxu1 }
 0x307   : > { %v2109_v13 = vmax.f32 %v2077_v2, 0.0  ;;  %v2078_v14 = vadd.f32 %v3556_v18, %v1986_v9 }
 0x308   : > { %2143 = vst.msk [vmem:[%s3563_s14 + $0xd0] sm:$0xff] %vm1197_vm2, %v2111_v7  ;;  %v2112_v16 = vmax.f32 %v2080_v8, 0.0 }
 0x309   : > { %2141 = vst.msk [vmem:[%s3563_s14 + $0xc0] sm:$0xff] %vm1197_vm2, %v2109_v13  ;;  %v2110_v17 = vmax.f32 %v2078_v14, 0.0 }
 0x30a   : > { %2144 = vst.msk [vmem:[%s3563_s14 + $0xd8] sm:$0xff] %vm1197_vm2, %v2112_v16 }
 0x30b   : > { %2142 = vst.msk [vmem:[%s3563_s14 + $0xc8] sm:$0xff] %vm1197_vm2, %v2110_v17  ;;  %v2777_v19 = vpop.f32.mrb[28].mxu1 }
 0x30c   : > { %v2083_v20 = vadd.f32 %v2777_v19, %v3556_v18  ;;  %v1999_v21 = vpop.f32.mrb[29].mxu1 }
 0x30d   : > { %v2081_v23 = vadd.f32 %v3556_v18, %v1999_v21  ;;  %v2778_v24 = vpop.f32.mrb[30].mxu1 }
 0x30e   : > { %v2115_v26 = vmax.f32 %v2083_v20, 0.0  ;;  %v2084_v27 = vadd.f32 %v2778_v24, %v3556_v18  ;;  %v2002_v29 = vpop.f32.mrb[31].mxu1 }
 0x30f   : > { %v2113_v30 = vmax.f32 %v2081_v23, 0.0  ;;  %v2082_v33 = vadd.f32 %v3556_v18, %v2002_v29 }
 0x310   : > { %2147 = vst.msk [vmem:[%s3563_s14 + $0xf0] sm:$0xff] %vm1197_vm2, %v2115_v26  ;;  %v2116_v34 = vmax.f32 %v2084_v27, 0.0 }
 0x311   : > { %2145 = vst.msk [vmem:[%s3563_s14 + $0xe0] sm:$0xff] %vm1197_vm2, %v2113_v30  ;;  %v2114_v35 = vmax.f32 %v2082_v33, 0.0 }
 0x312   : > { %2148 = vst.msk [vmem:[%s3563_s14 + $0xf8] sm:$0xff] %vm1197_vm2, %v2116_v34 }
 0x313   : > { %2146 = vst.msk [vmem:[%s3563_s14 + $0xe8] sm:$0xff] %vm1197_vm2, %v2114_v35 }
 0x314 PF: > { %s15_s18 = sadd.s32 1, %s2989_s18  }
 0x315   : > { %p12_p4 = scmp.ge.s32.totalorder %s15_s18, 4  }
 0x317   :  { %14 = sbr.rel (!%p12_p4) target bundleno = 1 (0x1), region = 77 }

// kernel: mixed_4c.5
= control target key start
LH: loop header
LB: loop body
LE: loop exit
PB: predicated region body
PF: predicated region fallthrough
CT: control target
= control target key end

     0   :  { %s6184_s18 = smov 0   ;;  %s8189_s0 = inlined_call_operand.vmem [shape: bf16[2,4,10,8,336], index: 0, kind: input, shape index: {}]   ;;  %s8190_s1 = inlined_call_operand.vmem [shape: bf16[3,336,224], index: 1, kind: input, shape index: {}]   ;;  %s8191_s2 = inlined_call_operand.vmem [shape: f32[1,224], index: 2, kind: input, shape index: {}]   ;;  %s8192_s3 = inlined_call_operand.vmem [shape: bf16[3,224,224], index: 3, kind: input, shape index: {}]   ;;  %s8193_s4 = inlined_call_operand.vmem [shape: f32[1,224], index: 4, kind: input, shape index: {}]   ;;  %s8194_s5 = inlined_call_operand.vmem [shape: f32[2,4,8,8,224], index: 5, kind: output, shape index: {}]  }
   0x1 LB: > { %s4647_s19 = sadd.s32 4294967295, %s6151_s18   ;;  %p4651_p0 = scmp.ge.s32.totalorder %s6151_s18, 1  ;;  %s6151_s18 = sphi %s6184_s18, %s15_s18  }
   0x2   : > { %p187_p1 = scmp.lt.s32.totalorder %s6151_s18, 3 }
   0x4   : > { %p188_p2 = pnand %p4651_p0, %p187_p1 }
   0x6   : > { %191 = sbr.rel (%p188_p2) target bundleno = 1310 (0x51e), region = 40 }
   0xd   : > { %v5708_v0 = vld [vmem:[%s8190_s1 + $0x254] ss:$8 sps:$4 sm:$0xff]   ;;  %p215_p3 = scmp.lt.s32.totalorder %s4647_s19, 1  ;;  %v5710_v1 = vld [vmem:[%s8190_s1 + $0x250] ss:$8 sps:$4 sm:$0xff]   ;;  %v6153_v2 = vmov 0  }
   0xe   : > { %1115 = vmatprep.mubr.bf16.mxu0 %v6153_v2  ;;  %2915 = vst [vmem:[#allocation2] sm:$0xff] %v6153_v2  ;;  %1083 = vmatprep.subr.bf16.mxu0 %v5708_v0  ;;  %v5711_v3 = vld [vmem:[%s8190_s1 + $0x264] ss:$8 sps:$4 sm:$0xff]   ;;  %v5713_v4 = vld [vmem:[%s8190_s1 + $0x260] ss:$8 sps:$4 sm:$0xff]   ;;  %vm841_vm0 = vcmask 654336  }
   0xf   : > { %1084 = vmatpush1.bf16.msra.mxu0 %v5710_v1  ;;  %v5714_v5 = vld [vmem:[%s8190_s1 + $0x274] ss:$8 sps:$4 sm:$0xff]   ;;  %s8273_s19 = smov (!%p215_p3, %s4647_s19), 1  ;;  %v5716_v6 = vld [vmem:[%s8190_s1 + $0x270] ss:$8 sps:$4 sm:$0xff]   ;;  %vm2916_vm1 = vcmask 785408  }
  0x10   : > { %1085 = vmatprep.subr.bf16.mxu0 %v5711_v3  ;;  %v5717_v7 = vld [vmem:[%s8190_s1 + $0x284] ss:$8 sps:$4 sm:$0xff]   ;;  %s5698_s9 = smul.u32 480, %s8273_s19  ;;  %v5719_v8 = vld [vmem:[%s8190_s1 + $0x280] ss:$8 sps:$4 sm:$0xff]  }
  0x11   : > { %v5720_v9 = vld [vmem:[%s8190_s1 + $0x294] ss:$8 sps:$4 sm:$0xff]   ;;  %v5722_v10 = vld [vmem:[%s8190_s1 + $0x290] ss:$8 sps:$4 sm:$0xff]   ;;  %v5727_v13 = vld [vmem:[%s8190_s1 + $0x4] ss:$8 sps:$4 sm:$0xff]  }
  0x12   : > { %s6227_s16 = scalar_lea.vmem %s8189_s0, %s5698_s9  ;;  %v5725_v15 = vld [vmem:[%s8190_s1] ss:$8 sps:$4 sm:$0xff]   ;;  %v5730_v16 = vld [vmem:[%s8190_s1 + $0x14] ss:$8 sps:$4 sm:$0xff]   ;;  %v5728_v17 = vld [vmem:[%s8190_s1 + $0x10] ss:$8 sps:$4 sm:$0xff]  }
  0x13   : > { %1086 = vmatpush1.bf16.msra.mxu0 %v5713_v4  ;;  %v6233_v11 = vld [vmem:[%s6227_s16 + $0x14] sm:$0xf]  ;;  %v6236_v12 = vld [vmem:[%s6227_s16 + $0x20] sm:$0xf]  ;;  %v6255_v18 = vld [vmem:[%s6227_s16 + $0x2c] sm:$0xf] }
  0x14   : > { %1087 = vmatprep.subr.bf16.mxu0 %v5714_v5  ;;  %v4699_v14 = vcombine.low %v6233_v11, %v6236_v12  ;;  %v6258_v19 = vld [vmem:[%s6227_s16 + $0x38] sm:$0xf]  ;;  %v5734_v20 = vld [vmem:[%s8190_s1 + $0x24] ss:$8 sps:$4 sm:$0xff]   ;;  %v5732_v22 = vld [vmem:[%s8190_s1 + $0x20] ss:$8 sps:$4 sm:$0xff]  }
  0x15   : > { %v4702_v21 = vcombine.low %v6255_v18, %v6258_v19  ;;  %v5737_v23 = vld [vmem:[%s8190_s1 + $0x34] ss:$8 sps:$4 sm:$0xff]   ;;  %v5735_v24 = vld [vmem:[%s8190_s1 + $0x30] ss:$8 sps:$4 sm:$0xff]   ;;  %v6276_v25 = vld [vmem:[%s6227_s16 + $0x44] sm:$0xf] }
  0x16   : > { %v6280_v26 = vld [vmem:[%s6227_s16 + $0x50] sm:$0xf]  ;;  %v5741_v27 = vld [vmem:[%s8190_s1 + $0x44] ss:$8 sps:$4 sm:$0xff]   ;;  %v5739_v29 = vld [vmem:[%s8190_s1 + $0x40] ss:$8 sps:$4 sm:$0xff]  }
  0x17   : > { %1088 = vmatpush1.bf16.msra.mxu0 %v5716_v6  ;;  %v4705_v28 = vcombine.low %v6276_v25, %v6280_v26  ;;  %v5744_v30 = vld [vmem:[%s8190_s1 + $0x54] ss:$8 sps:$4 sm:$0xff]   ;;  %v5742_v31 = vld [vmem:[%s8190_s1 + $0x50] ss:$8 sps:$4 sm:$0xff]   ;;  %v243_v33 = vld [vmem:[%s6227_s16 + $0x68] sm:$0xf] }
  0x18   : > { %1089 = vmatprep.subr.bf16.mxu0 %v5717_v7  ;;  %v6299_v32 = vld [vmem:[%s6227_s16 + $0x5c] sm:$0xf]  ;;  %v5748_v34 = vld [vmem:[%s8190_s1 + $0x64] ss:$8 sps:$4 sm:$0xff]   ;;  %v5746_v36 = vld [vmem:[%s8190_s1 + $0x60] ss:$8 sps:$4 sm:$0xff]  }
  0x19   : > { %v4708_v35 = vcombine.low %v6299_v32, %v243_v33  ;;  %v5751_v37 = vld [vmem:[%s8190_s1 + $0x74] ss:$8 sps:$4 sm:$0xff]   ;;  %v5749_v38 = vld [vmem:[%s8190_s1 + $0x70] ss:$8 sps:$4 sm:$0xff]   ;;  %v6317_v39 = vld [vmem:[%s6227_s16 + $0x8c] sm:$0xf] }
  0x1a   : > { %v6321_v40 = vld [vmem:[%s6227_s16 + $0x98] sm:$0xf]  ;;  %v5755_v41 = vld [vmem:[%s8190_s1 + $0x84] ss:$8 sps:$4 sm:$0xff]   ;;  %v5753_v42 = vld [vmem:[%s8190_s1 + $0x80] ss:$8 sps:$4 sm:$0xff]  }
  0x1b   : > { %1090 = vmatpush1.bf16.msra.mxu0 %v5719_v8  ;;  %v4711_v43 = vcombine.low %v6317_v39, %v6321_v40  ;;  %v5758_v44 = vld [vmem:[%s8190_s1 + $0x94] ss:$8 sps:$4 sm:$0xff]   ;;  %v5756_v45 = vld [vmem:[%s8190_s1 + $0x90] ss:$8 sps:$4 sm:$0xff]   ;;  %v6339_v46 = vld [vmem:[%s6227_s16 + $0xa4] sm:$0xf] }
  0x1c   : > { %1091 = vmatprep.subr.bf16.mxu0 %v5720_v9  ;;  %v6343_v47 = vld [vmem:[%s6227_s16 + $0xb0] sm:$0xf]  ;;  %v5762_v48 = vld [vmem:[%s8190_s1 + $0xa4] ss:$8 sps:$4 sm:$0xff]   ;;  %v5760_v49 = vld [vmem:[%s8190_s1 + $0xa0] ss:$8 sps:$4 sm:$0xff]  }
  0x1d   : > { %v4714_v50 = vcombine.low %v6339_v46, %v6343_v47  ;;  %v5765_v51 = vld [vmem:[%s8190_s1 + $0xb4] ss:$8 sps:$4 sm:$0xff]   ;;  %v5763_v52 = vld [vmem:[%s8190_s1 + $0xb0] ss:$8 sps:$4 sm:$0xff]   ;;  %v6364_v54 = vld [vmem:[%s6227_s16 + $0xc8] sm:$0xf] }
  0x1e   : > { %v6360_v53 = vld [vmem:[%s6227_s16 + $0xbc] sm:$0xf]  ;;  %v5769_v55 = vld [vmem:[%s8190_s1 + $0xc4] ss:$8 sps:$4 sm:$0xff]   ;;  %v5767_v56 = vld [vmem:[%s8190_s1 + $0xc0] ss:$8 sps:$4 sm:$0xff]  }
  0x1f   : > { %1092 = vmatpush1.bf16.msra.mxu0 %v5722_v10  ;;  %v4717_v57 = vcombine.low %v6360_v53, %v6364_v54  ;;  %v5772_v58 = vld [vmem:[%s8190_s1 + $0xd4] ss:$8 sps:$4 sm:$0xff]   ;;  %v5770_v59 = vld [vmem:[%s8190_s1 + $0xd0] ss:$8 sps:$4 sm:$0xff]   ;;  %v263_v61 = vld [vmem:[%s6227_s16 + $0xe0] sm:$0xf] }
  0x20   : > { %1634 = vmatprep.subr.bf16.mxu0 %v5727_v13  ;;  %v6382_v60 = vld [vmem:[%s6227_s16 + $0xd4] sm:$0xf]  ;;  %v5776_v62 = vld [vmem:[%s8190_s1 + $0xe4] ss:$8 sps:$4 sm:$0xff]   ;;  %v5774_v1 = vld [vmem:[%s8190_s1 + $0xe0] ss:$8 sps:$4 sm:$0xff]  }
  0x21   : > { %v226_v63 = vld [vmem:[%s6227_s16] sm:$0xff]  ;;  %v6391_v0 = vld [vmem:[%s6227_s16 + $0xc] sm:$0xff]  ;;  %v4720_v3 = vcombine.low %v6382_v60, %v263_v61  ;;  %v5779_v4 = vld [vmem:[%s8190_s1 + $0xf4] ss:$8 sps:$4 sm:$0xff]  }
  0x22   : > { %4787 = vmatmul.mubr.msk.bf16.vlgmr.msra.gmra.mrb[0].mxu0 %vm841_vm0, %v4699_v14  ;;  %v4804_v5 = vcombine.high %v226_v63, %v6391_v0  ;;  %v5784_v6 = vld [vmem:[%s8190_s1 + $0x104] ss:$8 sps:$4 sm:$0xff]   ;;  %v6410_v7 = vld [vmem:[%s6227_s16 + $0x18] sm:$0xff]  ;;  %v5782_v9 = vld [vmem:[%s8190_s1 + $0x100] ss:$8 sps:$4 sm:$0xff]   ;;  %v4803_v10 = vcombine.low %v226_v63, %v6391_v0 }
  0x23   : > { %1635 = vmatpush1.bf16.msra.mxu0 %v5725_v15  ;;  %1125 = vmatprep.mubr.bf16.mxu0 %v6153_v2  ;;  %v6413_v8 = vld [vmem:[%s6227_s16 + $0x24] sm:$0xff]  ;;  %v5793_v13 = vld [vmem:[%s8190_s1 + $0x114] ss:$8 sps:$4 sm:$0xff]  }
  0x24   : > { %1636 = vmatprep.subr.bf16.mxu0 %v5730_v16  ;;  %v6424_v14 = vcombine.high %v6410_v7, %v6413_v8  ;;  %v6427_v15 = vld [vmem:[%s6227_s16 + $0x30] sm:$0xff]  ;;  %v6430_v16 = vld [vmem:[%s6227_s16 + $0x3c] sm:$0xff] }
  0x25   : > { %v6472_v33 = vcombine.low %v6427_v15, %v6430_v16  ;;  %v5858_v63 = vld [vmem:[%s8190_s1 + $0x154] ss:$8 sps:$4 sm:$0xff]  }
  0x26   : > { %890 = vmatprep.subr.bf16.mxu1 %v5858_v63  ;;  %v5888_v63 = vld [vmem:[%s8190_s1 + $0x1a0] ss:$8 sps:$4 sm:$0xff]  }
  0x27   : > { %1637 = vmatpush1.bf16.msra.mxu0 %v5728_v17  ;;  %v5791_v17 = vld [vmem:[%s8190_s1 + $0x110] ss:$8 sps:$4 sm:$0xff]  }
  0x28   : > { %1638 = vmatprep.subr.bf16.mxu0 %v5734_v20  ;;  %v5802_v20 = vld [vmem:[%s8190_s1 + $0x124] ss:$8 sps:$4 sm:$0xff]  }
  0x2a   : > { %4788 = vmatmul.mubr.msk.bf16.gmra.mrb[4].mxu0 %vm841_vm0, %v4702_v21  ;;  %v5800_v21 = vld [vmem:[%s8190_s1 + $0x120] ss:$8 sps:$4 sm:$0xff]  }
  0x2b   : > { %1639 = vmatpush1.bf16.msra.mxu0 %v5732_v22  ;;  %1135 = vmatprep.mubr.bf16.mxu0 %v6153_v2  ;;  %v6444_v22 = vcombine.low %v6410_v7, %v6413_v8 }
  0x2c   : > { %1640 = vmatprep.subr.bf16.mxu0 %v5737_v23  ;;  %v5811_v23 = vld [vmem:[%s8190_s1 + $0x134] ss:$8 sps:$4 sm:$0xff]  }
  0x2f   : > { %1641 = vmatpush1.bf16.msra.mxu0 %v5735_v24  ;;  %v6451_v24 = vcombine.high %v6427_v15, %v6430_v16 }
  0x30   : > { %1642 = vmatprep.subr.bf16.mxu0 %v5741_v27  ;;  %v6455_v27 = vld [vmem:[%s6227_s16 + $0x48] sm:$0xff] }
  0x32   : > { %4789 = vmatmul.mubr.msk.bf16.gmra.mrb[8].mxu0 %vm841_vm0, %v4705_v28  ;;  %v6458_v28 = vld [vmem:[%s6227_s16 + $0x54] sm:$0xff] }
  0x33   : > { %1643 = vmatpush1.bf16.msra.mxu0 %v5739_v29  ;;  %1145 = vmatprep.mubr.bf16.mxu0 %v6153_v2  ;;  %v5809_v29 = vld [vmem:[%s8190_s1 + $0x130] ss:$8 sps:$4 sm:$0xff]  }
  0x34   : > { %1644 = vmatprep.subr.bf16.mxu0 %v5744_v30  ;;  %v5821_v30 = vld [vmem:[%s8190_s1 + $0x144] ss:$8 sps:$4 sm:$0xff]  }
  0x37   : > { %1645 = vmatpush1.bf16.msra.mxu0 %v5742_v31  ;;  %v5819_v31 = vld [vmem:[%s8190_s1 + $0x140] ss:$8 sps:$4 sm:$0xff]  }
  0x38   : > { %1646 = vmatprep.subr.bf16.mxu0 %v5748_v34  ;;  %v5829_v34 = vld [vmem:[%s8190_s1 + $0x2a4] ss:$8 sps:$4 sm:$0xff]  }
  0x3a   : > { %4790 = vmatmul.mubr.msk.bf16.gmra.mrb[12].mxu0 %vm841_vm0, %v4708_v35  ;;  %v6479_v35 = vcombine.high %v6455_v27, %v6458_v28 }
  0x3b   : > { %1647 = vmatpush1.bf16.msra.mxu0 %v5746_v36  ;;  %1155 = vmatprep.mubr.bf16.mxu0 %v6153_v2  ;;  %v246_v36 = vld [vmem:[%s6227_s16 + $0x78] sm:$0xff] }
  0x3c   : > { %1648 = vmatprep.subr.bf16.mxu0 %v5751_v37  ;;  %v6484_v37 = vld [vmem:[%s6227_s16 + $0x84] sm:$0xff] }
  0x3f   : > { %1649 = vmatpush1.bf16.msra.mxu0 %v5749_v38  ;;  %v6489_v38 = vcombine.low %v6455_v27, %v6458_v28 }
  0x40   : > { %1650 = vmatprep.subr.bf16.mxu0 %v5755_v41  ;;  %v4816_v41 = vcombine.high %v246_v36, %v6484_v37 }
  0x42   : > { %4791 = vmatmul.mubr.msk.bf16.gmra.mrb[16].mxu0 %vm841_vm0, %v4711_v43  ;;  %v6497_v43 = vld [vmem:[%s6227_s16 + $0x9c] sm:$0xff] }
  0x43   : > { %1651 = vmatpush1.bf16.msra.mxu0 %v5753_v42  ;;  %1165 = vmatprep.mubr.bf16.mxu0 %v6153_v2  ;;  %v6494_v42 = vld [vmem:[%s6227_s16 + $0x90] sm:$0xff] }
  0x44   : > { %1652 = vmatprep.subr.bf16.mxu0 %v5758_v44  ;;  %v4815_v44 = vcombine.low %v246_v36, %v6484_v37  ;;  %v6606_v36 = vld [vmem:[%s6227_s16 + $0x144] sm:$0xff] }
  0x47   : > { %1653 = vmatpush1.bf16.msra.mxu0 %v5756_v45  ;;  %v6502_v45 = vcombine.high %v6494_v42, %v6497_v43 }
  0x48   : > { %1654 = vmatprep.subr.bf16.mxu0 %v5762_v48  ;;  %v6506_v48 = vld [vmem:[%s6227_s16 + $0xa8] sm:$0xff] }
  0x4a   : > { %4792 = vmatmul.mubr.msk.bf16.gmra.mrb[20].mxu0 %vm841_vm0, %v4714_v50  ;;  %v6513_v50 = vcombine.low %v6494_v42, %v6497_v43 }
  0x4b   : > { %1655 = vmatpush1.bf16.msra.mxu0 %v5760_v49  ;;  %1175 = vmatprep.mubr.bf16.mxu0 %v6153_v2  ;;  %v6509_v49 = vld [vmem:[%s6227_s16 + $0xb4] sm:$0xff] }
  0x4c   : > { %1656 = vmatprep.subr.bf16.mxu0 %v5765_v51  ;;  %v6517_v51 = vcombine.high %v6506_v48, %v6509_v49 }
  0x4f   : > { %1657 = vmatpush1.bf16.msra.mxu0 %v5763_v52  ;;  %v6522_v52 = vld [vmem:[%s6227_s16 + $0xc0] sm:$0xff] }
  0x50   : > { %1658 = vmatprep.subr.bf16.mxu0 %v5769_v55  ;;  %v6525_v55 = vld [vmem:[%s6227_s16 + $0xcc] sm:$0xff] }
  0x51   : > { %v6543_v61 = vcombine.low %v6522_v52, %v6525_v55 }
  0x52   : > { %4793 = vmatmul.mubr.msk.bf16.gmra.mrb[24].mxu0 %vm841_vm0, %v4717_v57  ;;  %v6533_v57 = vcombine.high %v6522_v52, %v6525_v55 }
  0x53   : > { %1659 = vmatpush1.bf16.msra.mxu0 %v5767_v56  ;;  %1185 = vmatprep.mubr.bf16.mxu0 %v6153_v2  ;;  %v5777_v2 = vld [vmem:[%s8190_s1 + $0xf0] ss:$8 sps:$4 sm:$0xff]   ;;  %v6529_v56 = vcombine.low %v6506_v48, %v6509_v49 }
  0x54   : > { %1660 = vmatprep.subr.bf16.mxu0 %v5772_v58  ;;  %v266_v58 = vld [vmem:[%s6227_s16 + $0xf0] sm:$0xff] }
  0x57   : > { %1661 = vmatpush1.bf16.msra.mxu0 %v5770_v59  ;;  %v6539_v59 = vld [vmem:[%s6227_s16 + $0xfc] sm:$0xff] }
  0x58   : > { %1662 = vmatprep.subr.bf16.mxu0 %v5776_v62  ;;  %v4828_v62 = vcombine.high %v266_v58, %v6539_v59 }
  0x5a   : > { %4794 = vmatmul.mubr.msk.bf16.gmra.mrb[28].mxu0 %vm841_vm0, %v4720_v3  ;;  %v6554_v3 = vld [vmem:[%s6227_s16 + $0x108] sm:$0xff] }
  0x5b   : > { %1663 = vmatpush1.bf16.msra.mxu0 %v5774_v1  ;;  %1666 = vmatprep.mubr.bf16.mxu0 %v4804_v5  ;;  %v5860_v1 = vld [vmem:[%s8190_s1 + $0x150] ss:$8 sps:$4 sm:$0xff]   ;;  %v4827_v5 = vcombine.low %v266_v58, %v6539_v59 }
  0x5c   : > { %1664 = vmatprep.subr.bf16.mxu0 %v5779_v4  ;;  %v6557_v4 = vld [vmem:[%s6227_s16 + $0x114] sm:$0xff]  ;;  %891 = vmatpush1.bf16.msra.mxu1 %v5860_v1 }
  0x5d   : > { %v5889_v1 = vld [vmem:[%s8190_s1 + $0x1b4] ss:$8 sps:$4 sm:$0xff]  }
  0x5f   : > { %1665 = vmatpush1.bf16.msra.mxu0 %v5777_v2  ;;  %v6562_v2 = vcombine.high %v6554_v3, %v6557_v4 }
  0x60   : > { %1827 = vmatprep.subr.bf16.mxu0 %v5784_v6  ;;  %v5865_v6 = vld [vmem:[%s8190_s1 + $0x164] ss:$8 sps:$4 sm:$0xff]  }
  0x61   : > { %892 = vmatprep.subr.bf16.mxu1 %v5865_v6  ;;  %v6632_v6 = vld [vmem:[%s6227_s16 + $0x174] sm:$0xff] }
  0x62   : > { %1667 = vmatmul.mubr.bf16.vlgmr.msra.gmra.mrb[0].mxu0 %v4803_v10  ;;  %v5868_v10 = vld [vmem:[%s8190_s1 + $0x174] ss:$8 sps:$4 sm:$0xff]  }
  0x63   : > { %1828 = vmatpush1.bf16.msra.mxu0 %v5782_v9  ;;  %1676 = vmatprep.mubr.bf16.mxu0 %v6424_v14  ;;  %v5867_v9 = vld [vmem:[%s8190_s1 + $0x160] ss:$8 sps:$4 sm:$0xff]  }
  0x64   : > { %1829 = vmatprep.subr.bf16.mxu0 %v5793_v13  ;;  %v6575_v13 = vld [vmem:[%s6227_s16 + $0x120] sm:$0xff]  ;;  %893 = vmatpush1.bf16.msra.mxu1 %v5867_v9  ;;  %v5891_v9 = vld [vmem:[%s8190_s1 + $0x1b0] ss:$8 sps:$4 sm:$0xff]  }
  0x65   : > { %894 = vmatprep.subr.bf16.mxu1 %v5868_v10 }
  0x67   : > { %1830 = vmatpush1.bf16.msra.mxu0 %v5791_v17  ;;  %v6578_v17 = vld [vmem:[%s6227_s16 + $0x12c] sm:$0xff] }
  0x68   : > { %1831 = vmatprep.subr.bf16.mxu0 %v5802_v20  ;;  %v5870_v20 = vld [vmem:[%s8190_s1 + $0x170] ss:$8 sps:$4 sm:$0xff]  }
  0x69   : > { %895 = vmatpush1.bf16.msra.mxu1 %v5870_v20 }
  0x6a   : > { %1677 = vmatmul.mubr.bf16.gmra.mrb[4].mxu0 %v6444_v22 }
  0x6b   : > { %1686 = vmatprep.mubr.bf16.mxu0 %v6451_v24  ;;  %1832 = vmatpush1.bf16.msra.mxu0 %v5800_v21  ;;  %v6585_v21 = vcombine.low %v6554_v3, %v6557_v4 }
  0x6c   : > { %1833 = vmatprep.subr.bf16.mxu0 %v5811_v23  ;;  %v6589_v23 = vcombine.high %v6575_v13, %v6578_v17 }
  0x6d   : > { %8210 = vst [vmem:[#allocation3_spill] sm:$0xff] %v6585_v21 }
  0x6e   : > { %8211 = vst [vmem:[#allocation4_spill] sm:$0xff] %v6589_v23 }
  0x6f   : > { %1834 = vmatpush1.bf16.msra.mxu0 %v5809_v29  ;;  %v5876_v29 = vld [vmem:[%s8190_s1 + $0x184] ss:$8 sps:$4 sm:$0xff]  }
  0x70   : > { %1835 = vmatprep.subr.bf16.mxu0 %v5821_v30  ;;  %v5878_v30 = vld [vmem:[%s8190_s1 + $0x180] ss:$8 sps:$4 sm:$0xff]   ;;  %896 = vmatprep.subr.bf16.mxu1 %v5876_v29  ;;  %v5896_v29 = vld [vmem:[%s8190_s1 + $0x1c4] ss:$8 sps:$4 sm:$0xff]  }
  0x71   : > { %897 = vmatpush1.bf16.msra.mxu1 %v5878_v30  ;;  %v5898_v30 = vld [vmem:[%s8190_s1 + $0x1c0] ss:$8 sps:$4 sm:$0xff]  }
  0x72   : > { %1687 = vmatmul.mubr.bf16.gmra.mrb[8].mxu0 %v6472_v33 }
  0x73   : > { %1696 = vmatprep.mubr.bf16.mxu0 %v6479_v35  ;;  %1836 = vmatpush1.bf16.msra.mxu0 %v5819_v31  ;;  %v5879_v31 = vld [vmem:[%s8190_s1 + $0x194] ss:$8 sps:$4 sm:$0xff]  }
  0x74   : > { %2325 = vmatprep.subr.bf16.mxu0 %v5829_v34  ;;  %v6603_v34 = vld [vmem:[%s6227_s16 + $0x138] sm:$0xff]  ;;  %898 = vmatprep.subr.bf16.mxu1 %v5879_v31 }
  0x75   : > { %v6617_v58 = vcombine.high %v6603_v34, %v6606_v36  ;;  %v6639_v10 = vcombine.low %v6603_v34, %v6606_v36  ;;  %v5899_v31 = vld [vmem:[%s8190_s1 + $0x1d4] ss:$8 sps:$4 sm:$0xff]  }
  0x77   : > { %8213 = vst [vmem:[#allocation6_spill] sm:$0xff] %v6617_v58  ;;  %8214 = vst [vmem:[#allocation7_spill] sm:$0xff] %v6639_v10 }
  0x7a   : > { %1697 = vmatmul.mubr.bf16.gmra.mrb[12].mxu0 %v6489_v38 }
  0x7b   : > { %1706 = vmatprep.mubr.bf16.mxu0 %v4816_v41  ;;  %v5881_v41 = vld [vmem:[%s8190_s1 + $0x190] ss:$8 sps:$4 sm:$0xff]  }
  0x7c   : > { %899 = vmatpush1.bf16.msra.mxu1 %v5881_v41  ;;  %v6653_v41 = vld [vmem:[%s6227_s16 + $0x180] sm:$0xff] }
  0x82   : > { %1707 = vmatmul.mubr.bf16.gmra.mrb[16].mxu0 %v4815_v44  ;;  %v6613_v44 = vcombine.low %v6575_v13, %v6578_v17 }
  0x83   : > { %1716 = vmatprep.mubr.bf16.mxu0 %v6502_v45 }
  0x84   : > { %8212 = vst [vmem:[#allocation5_spill] sm:$0xff] %v6613_v44 }
  0x8a   : > { %1717 = vmatmul.mubr.bf16.gmra.mrb[20].mxu0 %v6513_v50 }
  0x8b   : > { %1726 = vmatprep.mubr.bf16.mxu0 %v6517_v51 }
  0x92   : > { %1727 = vmatmul.mubr.bf16.gmra.mrb[24].mxu0 %v6529_v56 }
  0x93   : > { %1736 = vmatprep.mubr.bf16.mxu0 %v6533_v57 }
  0x9a   : > { %1737 = vmatmul.mubr.bf16.gmra.mrb[28].mxu0 %v6543_v61 }
  0x9b   : > { %1746 = vmatprep.mubr.bf16.mxu0 %v4828_v62  ;;  %v5886_v62 = vld [vmem:[%s8190_s1 + $0x1a4] ss:$8 sps:$4 sm:$0xff]  }
  0x9c   : > { %900 = vmatprep.subr.bf16.mxu1 %v5886_v62  ;;  %v6656_v62 = vld [vmem:[%s6227_s16 + $0x18c] sm:$0xff] }
  0x9d   : > { %901 = vmatpush1.bf16.msra.mxu1 %v5888_v63  ;;  %v5901_v63 = vld [vmem:[%s8190_s1 + $0x1d0] ss:$8 sps:$4 sm:$0xff]  }
  0x9e   : > { %902 = vmatprep.subr.bf16.mxu1 %v5889_v1 }
  0xa1   : > { %903 = vmatpush1.bf16.msra.mxu1 %v5891_v9  ;;  %v6664_v9 = vcombine.high %v6653_v41, %v6656_v62 }
  0xa2   : > { %1747 = vmatmul.mubr.bf16.gmra.mrb[32].mxu0 %v4827_v5  ;;  %v286_v5 = vld [vmem:[%s6227_s16 + $0x168] sm:$0xff]  ;;  %904 = vmatprep.subr.bf16.mxu1 %v5896_v29 }
  0xa3   : > { %1756 = vmatprep.mubr.bf16.mxu0 %v6562_v2  ;;  %v4840_v20 = vcombine.high %v286_v5, %v6632_v6  ;;  %v4839_v1 = vcombine.low %v286_v5, %v6632_v6  ;;  %8215 = vst [vmem:[#allocation8_spill] sm:$0xff] %v6664_v9  ;;  %v5908_v29 = vld [vmem:[%s8190_s1 + $0x1e0] ss:$8 sps:$4 sm:$0xff]   ;;  %v5909_v5 = vld [vmem:[%s8190_s1 + $0x1f4] ss:$8 sps:$4 sm:$0xff]  }
  0xa5   : > { %905 = vmatpush1.bf16.msra.mxu1 %v5898_v30  ;;  %v6677_v30 = vld [vmem:[%s6227_s16 + $0x198] sm:$0xff] }
  0xa6   : > { %906 = vmatprep.subr.bf16.mxu1 %v5899_v31  ;;  %v6680_v31 = vld [vmem:[%s6227_s16 + $0x1a4] sm:$0xff] }
  0xa9   : > { %907 = vmatpush1.bf16.msra.mxu1 %v5901_v63  ;;  %v5911_v63 = vld [vmem:[%s8190_s1 + $0x1f0] ss:$8 sps:$4 sm:$0xff]  }
  0xaa   : > { %1757 = vmatmul.mubr.bf16.gmra.mrb[36].mxu0 %v6585_v21  ;;  %v5827_v21 = vld [vmem:[%s8190_s1 + $0x2a0] ss:$8 sps:$4 sm:$0xff]  }
  0xab   : > { %1766 = vmatprep.mubr.bf16.mxu0 %v6589_v23 }
  0xb2   : > { %1767 = vmatmul.mubr.bf16.gmra.mrb[40].mxu0 %v6613_v44  ;;  %v227_v44 = vld [vmem:[%s6227_s16 + $0x8] sm:$0xf] }
  0xb3   : > { %1776 = vmatprep.mubr.bf16.mxu0 %v6617_v58  ;;  %v6715_v58 = vcombine.low %v6677_v30, %v6680_v31  ;;  %v4805_v23 = vcombine.low %v227_v44, %v6233_v11  ;;  %v5831_v11 = vld [vmem:[%s8190_s1 + $0x2b0] ss:$8 sps:$4 sm:$0xff]   ;;  %v4701_v44 = vcombine.high %v6413_v8, %v6427_v15 }
  0xb5   : > { %8218 = vst [vmem:[#allocation11_spill] sm:$0xff] %v6715_v58 }
  0xba   : > { %1777 = vmatmul.mubr.bf16.gmra.mrb[44].mxu0 %v6639_v10  ;;  %v6705_v10 = vld [vmem:[%s6227_s16 + $0x1b0] sm:$0xff] }
  0xbb   : > { %1786 = vmatprep.mubr.bf16.mxu0 %v4840_v20  ;;  %v5906_v20 = vld [vmem:[%s8190_s1 + $0x1e4] ss:$8 sps:$4 sm:$0xff]  }
  0xbc   : > { %908 = vmatprep.subr.bf16.mxu1 %v5906_v20  ;;  %v6691_v20 = vcombine.high %v6677_v30, %v6680_v31 }
  0xbd   : > { %909 = vmatpush1.bf16.msra.mxu1 %v5908_v29  ;;  %v5918_v29 = vld [vmem:[%s8190_s1 + $0x200] ss:$8 sps:$4 sm:$0xff]  }
  0xbe   : > { %910 = vmatprep.subr.bf16.mxu1 %v5909_v5  ;;  %8217 = vst [vmem:[#allocation10_spill] sm:$0xff] %v6691_v20  ;;  %v5919_v5 = vld [vmem:[%s8190_s1 + $0x214] ss:$8 sps:$4 sm:$0xff]  }
  0xc1   : > { %911 = vmatpush1.bf16.msra.mxu1 %v5911_v63  ;;  %v6708_v63 = vld [vmem:[%s6227_s16 + $0x1bc] sm:$0xff] }
  0xc2   : > { %1787 = vmatmul.mubr.bf16.gmra.mrb[48].mxu0 %v4839_v1  ;;  %v6687_v1 = vcombine.low %v6653_v41, %v6656_v62 }
  0xc3   : > { %1796 = vmatprep.mubr.bf16.mxu0 %v6664_v9  ;;  %v5916_v9 = vld [vmem:[%s8190_s1 + $0x204] ss:$8 sps:$4 sm:$0xff]  }
  0xc4   : > { %8216 = vst [vmem:[#allocation9_spill] sm:$0xff] %v6687_v1  ;;  %912 = vmatprep.subr.bf16.mxu1 %v5916_v9  ;;  %v6719_v9 = vcombine.high %v6705_v10, %v6708_v63 }
  0xc5   : > { %913 = vmatpush1.bf16.msra.mxu1 %v5918_v29  ;;  %v5928_v29 = vld [vmem:[%s8190_s1 + $0x220] ss:$8 sps:$4 sm:$0xff]  }
  0xc6   : > { %914 = vmatprep.subr.bf16.mxu1 %v5919_v5  ;;  %8219 = vst [vmem:[#allocation12_spill] sm:$0xff] %v6719_v9  ;;  %v5929_v5 = vld [vmem:[%s8190_s1 + $0x234] ss:$8 sps:$4 sm:$0xff]  }
  0xca   : > { %1797 = vmatmul.mubr.bf16.gmra.mrb[52].mxu0 %v6687_v1  ;;  %v5921_v1 = vld [vmem:[%s8190_s1 + $0x210] ss:$8 sps:$4 sm:$0xff]  }
  0xcb   : > { %1806 = vmatprep.mubr.bf16.mxu0 %v6691_v20  ;;  %915 = vmatpush1.bf16.msra.mxu1 %v5921_v1  ;;  %v5926_v20 = vld [vmem:[%s8190_s1 + $0x224] ss:$8 sps:$4 sm:$0xff]   ;;  %v5931_v1 = vld [vmem:[%s8190_s1 + $0x230] ss:$8 sps:$4 sm:$0xff]  }
  0xcc   : > { %916 = vmatprep.subr.bf16.mxu1 %v5926_v20  ;;  %v5938_v20 = vld [vmem:[%s8190_s1 + $0x240] ss:$8 sps:$4 sm:$0xff]  }
  0xcf   : > { %917 = vmatpush1.bf16.msra.mxu1 %v5928_v29  ;;  %v4698_v29 = vcombine.high %v6391_v0, %v6410_v7 }
  0xd0   : > { %918 = vmatprep.subr.bf16.mxu1 %v5929_v5  ;;  %v6749_v5 = vld [vmem:[#allocation2] sm:$0xff] }
  0xd1   : > { %922 = vmatprep.mubr.bf16.mxu1 %v4698_v29  ;;  %v6790_v29 = vcombine.low %v6236_v12, %v6255_v18  ;;  %v6138_v12 = vld [vmem:[%s8190_s1 + $0x284] ss:$8 sps:$4 sm:$0xff]   ;;  %v4704_v18 = vcombine.high %v6430_v16, %v6455_v27  ;;  %2917 = vst.msk [vmem:[#allocation2 + $0x8] sm:$0xff] %vm2916_vm1, %v6749_v5  ;;  %2919 = vst.msk [vmem:[#allocation2 + $0x18] sm:$0xff] %vm2916_vm1, %v6749_v5 }
  0xd2   : > { %1807 = vmatmul.mubr.bf16.gmra.mrb[56].mxu0 %v6715_v58  ;;  %v6737_v58 = vcombine.low %v6705_v10, %v6708_v63  ;;  %2921 = vst.msk [vmem:[#allocation2 + $0x28] sm:$0xff] %vm2916_vm1, %v6749_v5  ;;  %2923 = vst.msk [vmem:[#allocation2 + $0x38] sm:$0xff] %vm2916_vm1, %v6749_v5 }
  0xd3   : > { %1816 = vmatprep.mubr.bf16.mxu0 %v6719_v9  ;;  %919 = vmatpush1.bf16.msra.mxu1 %v5931_v1  ;;  %v5936_v9 = vld [vmem:[%s8190_s1 + $0x244] ss:$8 sps:$4 sm:$0xff]   ;;  %v4697_v1 = vcombine.low %v6391_v0, %v6410_v7  ;;  %v6133_v0 = vld [vmem:[%s8190_s1 + $0x250] ss:$8 sps:$4 sm:$0xff]   ;;  %2926 = vst.msk [vmem:[#allocation2 + $0x148] sm:$0xff] %vm2916_vm1, %v6749_v5  ;;  %2928 = vst.msk [vmem:[#allocation2 + $0x158] sm:$0xff] %vm2916_vm1, %v6749_v5 }
  0xd4   : > { %8220 = vst [vmem:[#allocation13_spill] sm:$0xff] %v6737_v58  ;;  %920 = vmatprep.subr.bf16.mxu1 %v5936_v9  ;;  %v5833_v9 = vld [vmem:[%s8190_s1 + $0x2b4] ss:$8 sps:$4 sm:$0xff]   ;;  %v6134_v7 = vld [vmem:[%s8190_s1 + $0x264] ss:$8 sps:$4 sm:$0xff]   ;;  %2930 = vst.msk [vmem:[#allocation2 + $0x168] sm:$0xff] %vm2916_vm1, %v6749_v5 }
  0xd5   : > { %2932 = vst.msk [vmem:[#allocation2 + $0x178] sm:$0xff] %vm2916_vm1, %v6749_v5 }
  0xd7   : > { %921 = vmatpush1.bf16.msra.mxu1 %v5938_v20  ;;  %v5837_v20 = vld [vmem:[%s8190_s1 + $0x2c4] ss:$8 sps:$4 sm:$0xff]  }
  0xda   : > { %1817 = vmatmul.mubr.bf16.gmra.mrb[60].mxu0 %v6737_v58  ;;  %v6132_v58 = vld [vmem:[%s8190_s1 + $0x254] ss:$8 sps:$4 sm:$0xff]   ;;  %923 = vmatmul.mubr.bf16.vlgmr.msra.gmra.mrb[0].mxu1 %v4697_v1  ;;  %v6137_v1 = vld [vmem:[%s8190_s1 + $0x270] ss:$8 sps:$4 sm:$0xff]  }
  0xdb   : > { %1859 = vmatprep.mubr.bf16.mxu0 %v6749_v5  ;;  %5212 = vmatprep.subr.bf16.mxu1 %v6132_v58  ;;  %v4700_v58 = vcombine.low %v6413_v8, %v6427_v15  ;;  %v5835_v8 = vld [vmem:[%s8190_s1 + $0x2c0] ss:$8 sps:$4 sm:$0xff]   ;;  %v5841_v15 = vld [vmem:[%s8190_s1 + $0x2d4] ss:$8 sps:$4 sm:$0xff]  }
  0xdc   : > { %5217 = vmatpush1.bf16.msra.mxu1 %v6133_v0  ;;  %932 = vmatprep.mubr.bf16.mxu1 %v4701_v44  ;;  %v4703_v0 = vcombine.low %v6430_v16, %v6455_v27  ;;  %v6822_v44 = vcombine.low %v6258_v19, %v6276_v25  ;;  %v6140_v16 = vld [vmem:[%s8190_s1 + $0x294] ss:$8 sps:$4 sm:$0xff]   ;;  %v5843_v27 = vld [vmem:[%s8190_s1 + $0x2e0] ss:$8 sps:$4 sm:$0xff]   ;;  %v6141_v19 = vld [vmem:[%s8190_s1 + $0x290] ss:$8 sps:$4 sm:$0xff]  }
  0xdd   : > { %5213 = vmatprep.subr.bf16.mxu1 %v6134_v7  ;;  %v5845_v7 = vld [vmem:[%s8190_s1 + $0x2e4] ss:$8 sps:$4 sm:$0xff]  }
  0xde   : > { %v6839_v25 = vld [vmem:[%s6227_s16 + $0x60] sm:$0xff] }
  0xe2   : > { %4893 = vmatmul.mubr.msk.bf16.vlgmr.msra.gmra.mrb[0].mxu0 %vm841_vm0, %v4805_v23  ;;  %v6136_v23 = vld [vmem:[%s8190_s1 + $0x274] ss:$8 sps:$4 sm:$0xff]   ;;  %933 = vmatmul.mubr.bf16.gmra.mrb[4].mxu1 %v4700_v58 }
  0xe3   : > { %2326 = vmatpush1.bf16.msra.mxu0 %v5827_v21  ;;  %1869 = vmatprep.mubr.bf16.mxu0 %v6749_v5  ;;  %v6135_v21 = vld [vmem:[%s8190_s1 + $0x260] ss:$8 sps:$4 sm:$0xff]   ;;  %v5849_v58 = vld [vmem:[%s8190_s1 + $0x2f4] ss:$8 sps:$4 sm:$0xff]  }
  0xe4   : > { %2327 = vmatprep.subr.bf16.mxu0 %v5833_v9  ;;  %5218 = vmatpush1.bf16.msra.mxu1 %v6135_v21  ;;  %v5839_v9 = vld [vmem:[%s8190_s1 + $0x2d0] ss:$8 sps:$4 sm:$0xff]   ;;  %v4707_v21 = vcombine.high %v6458_v28, %v6839_v25 }
  0xe5   : > { %5214 = vmatprep.subr.bf16.mxu1 %v6136_v23  ;;  %942 = vmatprep.mubr.bf16.mxu1 %v4704_v18  ;;  %v4706_v23 = vcombine.low %v6458_v28, %v6839_v25  ;;  %v5857_v28 = vld [vmem:[%s8190_s1 + $0x314] ss:$8 sps:$4 sm:$0xff]   ;;  %v4709_v18 = vcombine.low %v6484_v37, %v6494_v42 }
  0xe7   : > { %2328 = vmatpush1.bf16.msra.mxu0 %v5831_v11  ;;  %v6139_v11 = vld [vmem:[%s8190_s1 + $0x280] ss:$8 sps:$4 sm:$0xff]  }
  0xe8   : > { %2329 = vmatprep.subr.bf16.mxu0 %v5837_v20  ;;  %5219 = vmatpush1.bf16.msra.mxu1 %v6137_v1  ;;  %v5847_v20 = vld [vmem:[%s8190_s1 + $0x2f0] ss:$8 sps:$4 sm:$0xff]   ;;  %v5851_v1 = vld [vmem:[%s8190_s1 + $0x300] ss:$8 sps:$4 sm:$0xff]  }
  0xe9   : > { %5215 = vmatprep.subr.bf16.mxu1 %v6138_v12  ;;  %v4710_v12 = vcombine.high %v6484_v37, %v6494_v42  ;;  %v4713_v37 = vcombine.high %v6497_v43, %v6506_v48  ;;  %v4712_v42 = vcombine.low %v6497_v43, %v6506_v48  ;;  %v5895_v43 = vld [vmem:[%s8190_s1 + $0x354] ss:$8 sps:$4 sm:$0xff]   ;;  %v4716_v48 = vcombine.high %v6509_v49, %v6522_v52 }
  0xea   : > { %4894 = vmatmul.mubr.msk.bf16.gmra.mrb[4].mxu0 %vm841_vm0, %v6790_v29  ;;  %943 = vmatmul.mubr.bf16.gmra.mrb[8].mxu1 %v4703_v0 }
  0xeb   : > { %1879 = vmatprep.mubr.bf16.mxu0 %v6749_v5  ;;  %2330 = vmatpush1.bf16.msra.mxu0 %v5835_v8  ;;  %v5853_v8 = vld [vmem:[%s8190_s1 + $0x304] ss:$8 sps:$4 sm:$0xff]  }
  0xec   : > { %2331 = vmatprep.subr.bf16.mxu0 %v5841_v15  ;;  %5220 = vmatpush1.bf16.msra.mxu1 %v6139_v11  ;;  %v6854_v15 = vcombine.low %v6280_v26, %v6299_v32  ;;  %v247_v26 = vld [vmem:[%s6227_s16 + $0x80] sm:$0xf]  ;;  %v5855_v32 = vld [vmem:[%s8190_s1 + $0x310] ss:$8 sps:$4 sm:$0xff]   ;;  %v5875_v11 = vld [vmem:[%s8190_s1 + $0x334] ss:$8 sps:$4 sm:$0xff]  }
  0xed   : > { %5216 = vmatprep.subr.bf16.mxu1 %v6140_v16  ;;  %952 = vmatprep.mubr.bf16.mxu1 %v4707_v21  ;;  %v4817_v0 = vcombine.low %v247_v26, %v6317_v39  ;;  %v5873_v39 = vld [vmem:[%s8190_s1 + $0x330] ss:$8 sps:$4 sm:$0xff]   ;;  %v5885_v16 = vld [vmem:[%s8190_s1 + $0x344] ss:$8 sps:$4 sm:$0xff]   ;;  %v5903_v21 = vld [vmem:[%s8190_s1 + $0x360] ss:$8 sps:$4 sm:$0xff]  }
  0xee   : > { %v5933_v26 = vld [vmem:[%s8190_s1 + $0x390] ss:$8 sps:$4 sm:$0xff]  }
  0xef   : > { %2332 = vmatpush1.bf16.msra.mxu0 %v5839_v9  ;;  %v5864_v9 = vld [vmem:[%s8190_s1 + $0x324] ss:$8 sps:$4 sm:$0xff]  }
  0xf0   : > { %2333 = vmatprep.subr.bf16.mxu0 %v5845_v7  ;;  %5221 = vmatpush1.bf16.msra.mxu1 %v6141_v19  ;;  %v5862_v7 = vld [vmem:[%s8190_s1 + $0x320] ss:$8 sps:$4 sm:$0xff]   ;;  %v5905_v19 = vld [vmem:[%s8190_s1 + $0x364] ss:$8 sps:$4 sm:$0xff]  }
  0xf2   : > { %4895 = vmatmul.mubr.msk.bf16.gmra.mrb[8].mxu0 %vm841_vm0, %v6822_v44  ;;  %953 = vmatmul.mubr.bf16.gmra.mrb[12].mxu1 %v4706_v23 }
  0xf3   : > { %1889 = vmatprep.mubr.bf16.mxu0 %v6749_v5  ;;  %2334 = vmatpush1.bf16.msra.mxu0 %v5843_v27  ;;  %v6897_v27 = vcombine.low %v6321_v40, %v6339_v46  ;;  %v5893_v40 = vld [vmem:[%s8190_s1 + $0x350] ss:$8 sps:$4 sm:$0xff]   ;;  %v4715_v46 = vcombine.low %v6509_v49, %v6522_v52  ;;  %v5915_v49 = vld [vmem:[%s8190_s1 + $0x374] ss:$8 sps:$4 sm:$0xff]  }
  0xf4   : > { %2335 = vmatprep.subr.bf16.mxu0 %v5849_v58  ;;  %962 = vmatprep.mubr.bf16.mxu1 %v4710_v12  ;;  %v5883_v58 = vld [vmem:[%s8190_s1 + $0x340] ss:$8 sps:$4 sm:$0xff]   ;;  %v6931_v52 = vld [vmem:[%s6227_s16 + $0xd8] sm:$0xff]  ;;  %v4722_v12 = vcombine.high %v6539_v59, %v6554_v3 }
  0xf5   : > { %v4718_v23 = vcombine.low %v6525_v55, %v6931_v52 }
  0xf7   : > { %2336 = vmatpush1.bf16.msra.mxu0 %v5847_v20  ;;  %v6920_v20 = vcombine.low %v6343_v47, %v6360_v53  ;;  %v5913_v47 = vld [vmem:[%s8190_s1 + $0x370] ss:$8 sps:$4 sm:$0xff]   ;;  %v4719_v53 = vcombine.high %v6525_v55, %v6931_v52  ;;  %v5935_v55 = vld [vmem:[%s8190_s1 + $0x394] ss:$8 sps:$4 sm:$0xff]  }
  0xf8   : > { %2337 = vmatprep.subr.bf16.mxu0 %v5853_v8  ;;  %v5925_v8 = vld [vmem:[%s8190_s1 + $0x384] ss:$8 sps:$4 sm:$0xff]  }
  0xfa   : > { %4896 = vmatmul.mubr.msk.bf16.gmra.mrb[12].mxu0 %vm841_vm0, %v6854_v15  ;;  %963 = vmatmul.mubr.bf16.gmra.mrb[16].mxu1 %v4709_v18  ;;  %v5943_v18 = vld [vmem:[%s8190_s1 + $0x3a4] ss:$8 sps:$4 sm:$0xff]  }
  0xfb   : > { %1899 = vmatprep.mubr.bf16.mxu0 %v6749_v5  ;;  %2338 = vmatpush1.bf16.msra.mxu0 %v5851_v1  ;;  %v6946_v1 = vcombine.low %v6364_v54, %v6382_v60  ;;  %v267_v54 = vld [vmem:[%s6227_s16 + $0xf8] sm:$0xf]  ;;  %v6961_v60 = vld [vmem:[%s6227_s16 + $0x104] sm:$0xf] }
  0xfc   : > { %2339 = vmatprep.subr.bf16.mxu0 %v5857_v28  ;;  %972 = vmatprep.mubr.bf16.mxu1 %v4713_v37  ;;  %v5923_v28 = vld [vmem:[%s8190_s1 + $0x380] ss:$8 sps:$4 sm:$0xff]   ;;  %v4728_v37 = vcombine.high %v6578_v17, %v6603_v34 }
  0xff   : > { %2340 = vmatpush1.bf16.msra.mxu0 %v5855_v32  ;;  %v4721_v32 = vcombine.low %v6539_v59, %v6554_v3  ;;  %v6977_v59 = vld [vmem:[%s6227_s16 + $0x110] sm:$0xf]  ;;  %v6980_v3 = vld [vmem:[%s6227_s16 + $0x11c] sm:$0xf] }
 0x100   : > { %2341 = vmatprep.subr.bf16.mxu0 %v5864_v9  ;;  %v4829_v9 = vcombine.low %v267_v54, %v6961_v60  ;;  %v7080_v54 = vld [vmem:[%s6227_s16 + $0x1c4] sm:$0xf] }
 0x102   : > { %4897 = vmatmul.mubr.msk.bf16.gmra.mrb[16].mxu0 %vm841_vm0, %v4817_v0  ;;  %973 = vmatmul.mubr.bf16.gmra.mrb[20].mxu1 %v4712_v42  ;;  %v4725_v0 = vcombine.high %v6557_v4, %v6575_v13  ;;  %v6997_v42 = vld [vmem:[%s6227_s16 + $0x134] sm:$0xf] }
 0x103   : > { %1909 = vmatprep.mubr.bf16.mxu0 %v6749_v5  ;;  %2342 = vmatpush1.bf16.msra.mxu0 %v5862_v7  ;;  %v4724_v7 = vcombine.low %v6557_v4, %v6575_v13  ;;  %v4727_v4 = vcombine.low %v6578_v17, %v6603_v34 }
 0x104   : > { %2343 = vmatprep.subr.bf16.mxu0 %v5875_v11  ;;  %982 = vmatprep.mubr.bf16.mxu1 %v4716_v48  ;;  %v6986_v11 = vcombine.low %v6977_v59, %v6980_v3 }
 0x107   : > { %2344 = vmatpush1.bf16.msra.mxu0 %v5873_v39  ;;  %v6994_v39 = vld [vmem:[%s6227_s16 + $0x128] sm:$0xf] }
 0x108   : > { %2345 = vmatprep.subr.bf16.mxu0 %v5885_v16  ;;  %v7003_v13 = vcombine.low %v6994_v39, %v6997_v42  ;;  %v7008_v16 = vld [vmem:[%s6227_s16 + $0x150] sm:$0xff] }
 0x109   : > { %v4731_v17 = vcombine.high %v6606_v36, %v7008_v16  ;;  %v4730_v34 = vcombine.low %v6606_v36, %v7008_v16  ;;  %v4733_v36 = vcombine.low %v6632_v6, %v6653_v41 }
 0x10a   : > { %4898 = vmatmul.mubr.msk.bf16.gmra.mrb[20].mxu0 %vm841_vm0, %v6897_v27  ;;  %983 = vmatmul.mubr.bf16.gmra.mrb[24].mxu1 %v4715_v46  ;;  %v287_v46 = vld [vmem:[%s6227_s16 + $0x170] sm:$0xf] }
 0x10b   : > { %1919 = vmatprep.mubr.bf16.mxu0 %v6749_v5  ;;  %2346 = vmatpush1.bf16.msra.mxu0 %v5883_v58  ;;  %v7012_v58 = vld [vmem:[%s6227_s16 + $0x140] sm:$0xf] }
 0x10c   : > { %2347 = vmatprep.subr.bf16.mxu0 %v5895_v43  ;;  %992 = vmatprep.mubr.bf16.mxu1 %v4719_v53  ;;  %v7015_v43 = vld [vmem:[%s6227_s16 + $0x14c] sm:$0xf]  ;;  %v7045_v53 = vld [vmem:[%s6227_s16 + $0x194] sm:$0xf] }
 0x10d   : > { %v7023_v48 = vcombine.low %v7012_v58, %v7015_v43 }
 0x10f   : > { %2348 = vmatpush1.bf16.msra.mxu0 %v5893_v40  ;;  %v4734_v40 = vcombine.high %v6632_v6, %v6653_v41  ;;  %v4736_v6 = vcombine.low %v6656_v62, %v6677_v30 }
 0x110   : > { %2349 = vmatprep.subr.bf16.mxu0 %v5905_v19  ;;  %v7032_v19 = vld [vmem:[%s6227_s16 + $0x17c] sm:$0xf] }
 0x112   : > { %4899 = vmatmul.mubr.msk.bf16.gmra.mrb[24].mxu0 %vm841_vm0, %v6920_v20  ;;  %993 = vmatmul.mubr.bf16.gmra.mrb[28].mxu1 %v4718_v23  ;;  %v4740_v23 = vcombine.high %v6680_v31, %v6705_v10 }
 0x113   : > { %1929 = vmatprep.mubr.bf16.mxu0 %v6749_v5  ;;  %2350 = vmatpush1.bf16.msra.mxu0 %v5903_v21  ;;  %v4841_v21 = vcombine.low %v287_v46, %v7032_v19  ;;  %v8225_v46 = vld [vmem:[#allocation7_spill] sm:$0xff] }
 0x114   : > { %2351 = vmatprep.subr.bf16.mxu0 %v5915_v49  ;;  %1002 = vmatprep.mubr.bf16.mxu1 %v4722_v12  ;;  %v4737_v49 = vcombine.high %v6656_v62, %v6677_v30  ;;  %v4739_v62 = vcombine.low %v6680_v31, %v6705_v10  ;;  %v7077_v12 = vld [vmem:[%s6227_s16 + $0x1b8] sm:$0xf] }
 0x117   : > { %2352 = vmatpush1.bf16.msra.mxu0 %v5913_v47  ;;  %v7042_v47 = vld [vmem:[%s6227_s16 + $0x188] sm:$0xf] }
 0x118   : > { %2353 = vmatprep.subr.bf16.mxu0 %v5925_v8  ;;  %v7051_v41 = vcombine.low %v7042_v47, %v7045_v53  ;;  %v7059_v8 = vld [vmem:[%s6227_s16 + $0x1a0] sm:$0xf] }
 0x11a   : > { %4900 = vmatmul.mubr.msk.bf16.gmra.mrb[28].mxu0 %vm841_vm0, %v6946_v1  ;;  %1003 = vmatmul.mubr.bf16.gmra.mrb[32].mxu1 %v4721_v32  ;;  %v4723_v32 = vcombine.low %v6961_v60, %v6977_v59  ;;  %v4726_v60 = vcombine.low %v6980_v3, %v6994_v39  ;;  %v4729_v59 = vcombine.low %v6997_v42, %v7012_v58  ;;  %v244_v3 = vld [vmem:[%s6227_s16 + $0x6c] sm:$0xff]  ;;  %v8221_v58 = vld [vmem:[#allocation3_spill] sm:$0xff] }
 0x11b   : > { %1939 = vmatprep.mubr.bf16.mxu0 %v6749_v5  ;;  %2354 = vmatpush1.bf16.msra.mxu0 %v5923_v28  ;;  %v7062_v28 = vld [vmem:[%s6227_s16 + $0x1ac] sm:$0xf]  ;;  %v4951_v42 = vcombine.low %v6839_v25, %v244_v3 }
 0x11c   : > { %2355 = vmatprep.subr.bf16.mxu0 %v5935_v55  ;;  %1012 = vmatprep.mubr.bf16.mxu1 %v4725_v0  ;;  %v7068_v30 = vcombine.low %v7059_v8, %v7062_v28  ;;  %v7073_v55 = vld [vmem:[%s6227_s16 + $0x1c8] sm:$0xff]  ;;  %v5973_v0 = vld [vmem:[%s8190_s1 + $0x3d0] ss:$8 sps:$4 sm:$0xff]  }
 0x11d   : > { %v4743_v10 = vcombine.high %v6708_v63, %v7073_v55  ;;  %v4742_v31 = vcombine.low %v6708_v63, %v7073_v55  ;;  %v5941_v63 = vld [vmem:[%s8190_s1 + $0x3a0] ss:$8 sps:$4 sm:$0xff]  }
 0x11f   : > { %2356 = vmatpush1.bf16.msra.mxu0 %v5933_v26  ;;  %v7088_v26 = vcombine.low %v7077_v12, %v7080_v54 }
 0x120   : > { %2518 = vmatprep.subr.bf16.mxu0 %v5943_v18  ;;  %v5954_v18 = vld [vmem:[%s8190_s1 + $0x3b4] ss:$8 sps:$4 sm:$0xff]  }
 0x122   : > { %4901 = vmatmul.mubr.msk.bf16.gmra.mrb[32].mxu0 %vm841_vm0, %v4829_v9  ;;  %1013 = vmatmul.mubr.bf16.gmra.mrb[36].mxu1 %v4724_v7  ;;  %v5963_v9 = vld [vmem:[%s8190_s1 + $0x3c4] ss:$8 sps:$4 sm:$0xff]  }
 0x123   : > { %1949 = vmatprep.mubr.bf16.mxu0 %v6749_v5  ;;  %1022 = vmatprep.mubr.bf16.mxu1 %v4728_v37  ;;  %v5987_v7 = vld [vmem:[%s8190_s1 + $0x3e4] ss:$8 sps:$4 sm:$0xff]   ;;  %v4952_v37 = vcombine.high %v6839_v25, %v244_v3  ;;  %v4738_v25 = vcombine.low %v7045_v53, %v7059_v8 }
 0x124   : > { %v6007_v8 = vld [vmem:[%s8192_s3 + $0xe4] ss:$8 sps:$4 sm:$0xff]  }
 0x125   : > { %5222 = vmatprep.subr.bf16.mxu1 %v6007_v8 }
 0x12a   : > { %4902 = vmatmul.mubr.msk.bf16.gmra.mrb[36].mxu0 %vm841_vm0, %v6986_v11  ;;  %1023 = vmatmul.mubr.bf16.gmra.mrb[40].mxu1 %v4727_v4  ;;  %v264_v4 = vld [vmem:[%s6227_s16 + $0xe4] sm:$0xff] }
 0x12b   : > { %1959 = vmatprep.mubr.bf16.mxu0 %v6749_v5  ;;  %1032 = vmatprep.mubr.bf16.mxu1 %v4731_v17  ;;  %v8223_v17 = vld [vmem:[#allocation5_spill] sm:$0xff] }
 0x132   : > { %4903 = vmatmul.mubr.msk.bf16.gmra.mrb[40].mxu0 %vm841_vm0, %v7003_v13  ;;  %1033 = vmatmul.mubr.bf16.gmra.mrb[44].mxu1 %v4730_v34  ;;  %v284_v34 = vld [vmem:[%s6227_s16 + $0x15c] sm:$0xff] }
 0x133   : > { %1969 = vmatprep.mubr.bf16.mxu0 %v6749_v5  ;;  %1042 = vmatprep.mubr.bf16.mxu1 %v4734_v40  ;;  %v4958_v40 = vcombine.high %v7008_v16, %v284_v34 }
 0x13a   : > { %4904 = vmatmul.mubr.msk.bf16.gmra.mrb[44].mxu0 %vm841_vm0, %v7023_v48  ;;  %1043 = vmatmul.mubr.bf16.gmra.mrb[48].mxu1 %v4733_v36  ;;  %v8228_v36 = vld [vmem:[#allocation10_spill] sm:$0xff] }
 0x13b   : > { %1979 = vmatprep.mubr.bf16.mxu0 %v6749_v5  ;;  %1052 = vmatprep.mubr.bf16.mxu1 %v4737_v49  ;;  %v8230_v49 = vld [vmem:[#allocation12_spill] sm:$0xff] }
 0x142   : > { %4905 = vmatmul.mubr.msk.bf16.gmra.mrb[48].mxu0 %vm841_vm0, %v4841_v21  ;;  %1053 = vmatmul.mubr.bf16.gmra.mrb[52].mxu1 %v4736_v6  ;;  %v8229_v21 = vld [vmem:[#allocation11_spill] sm:$0xff]  ;;  %v8231_v6 = vld [vmem:[#allocation13_spill] sm:$0xff] }
 0x143   : > { %1989 = vmatprep.mubr.bf16.mxu0 %v6749_v5  ;;  %1062 = vmatprep.mubr.bf16.mxu1 %v4740_v23 }
 0x14a   : > { %4906 = vmatmul.mubr.msk.bf16.gmra.mrb[52].mxu0 %vm841_vm0, %v7051_v41  ;;  %1063 = vmatmul.mubr.bf16.gmra.mrb[56].mxu1 %v4739_v62  ;;  %v6005_v62 = vld [vmem:[%s8192_s3 + $0xe0] ss:$8 sps:$4 sm:$0xff]  }
 0x14b   : > { %1999 = vmatprep.mubr.bf16.mxu0 %v6749_v5  ;;  %1072 = vmatprep.mubr.bf16.mxu1 %v4743_v10 }
 0x152   : > { %4907 = vmatmul.mubr.msk.bf16.gmra.mrb[56].mxu0 %vm841_vm0, %v7068_v30  ;;  %1073 = vmatmul.mubr.bf16.gmra.mrb[60].mxu1 %v4742_v31 }
 0x153   : > { %2009 = vmatprep.mubr.bf16.mxu0 %v6749_v5  ;;  %1195 = vmatprep.mubr.bf16.mxu1 %v6749_v5 }
 0x15a   : > { %4908 = vmatmul.mubr.msk.bf16.gmra.mrb[60].mxu0 %vm841_vm0, %v7088_v26  ;;  %4795 = vmatmul.mubr.msk.bf16.vlgmr.msra.gmra.mrb[32].mxu1 %vm841_vm0, %v4723_v32  ;;  %v6008_v32 = vld [vmem:[%s8192_s3 + $0xf0] ss:$8 sps:$4 sm:$0xff]  }
 0x15b   : > { %2357 = vmatprep.mubr.bf16.mxu0 %v6424_v14  ;;  %1205 = vmatprep.mubr.bf16.mxu1 %v6749_v5  ;;  %v5952_v14 = vld [vmem:[%s8190_s1 + $0x3b0] ss:$8 sps:$4 sm:$0xff]  }
 0x15c   : > { %5236 = vmatpush1.bf16.msra.mxu1 %v6005_v62 }
 0x162   : > { %2358 = vmatmul.mubr.bf16.vlgmr.msra.gmra.mrb[0].mxu0 %v6444_v22  ;;  %v5961_v22 = vld [vmem:[%s8190_s1 + $0x3c0] ss:$8 sps:$4 sm:$0xff]   ;;  %4796 = vmatmul.mubr.msk.bf16.gmra.mrb[36].mxu1 %vm841_vm0, %v4726_v60 }
 0x163   : > { %2519 = vmatpush1.bf16.msra.mxu0 %v5941_v63  ;;  %2367 = vmatprep.mubr.bf16.mxu0 %v6451_v24  ;;  %v5975_v24 = vld [vmem:[%s8190_s1 + $0x3d4] ss:$8 sps:$4 sm:$0xff]  }
 0x164   : > { %2520 = vmatprep.subr.bf16.mxu0 %v5954_v18  ;;  %1215 = vmatprep.mubr.bf16.mxu1 %v6749_v5  ;;  %v6013_v18 = vld [vmem:[%s8192_s3 + $0x104] ss:$8 sps:$4 sm:$0xff]  }
 0x167   : > { %2521 = vmatpush1.bf16.msra.mxu0 %v5952_v14 }
 0x168   : > { %2522 = vmatprep.subr.bf16.mxu0 %v5963_v9 }
 0x16a   : > { %2368 = vmatmul.mubr.bf16.gmra.mrb[4].mxu0 %v6472_v33  ;;  %v5985_v33 = vld [vmem:[%s8190_s1 + $0x3e0] ss:$8 sps:$4 sm:$0xff]   ;;  %4797 = vmatmul.mubr.msk.bf16.gmra.mrb[40].mxu1 %vm841_vm0, %v4729_v59 }
 0x16b   : > { %2377 = vmatprep.mubr.bf16.mxu0 %v6479_v35  ;;  %2523 = vmatpush1.bf16.msra.mxu0 %v5961_v22  ;;  %v7141_v35 = vld [vmem:[%s6227_s16 + $0x158] sm:$0xf]  ;;  %v6011_v22 = vld [vmem:[%s8192_s3 + $0x100] ss:$8 sps:$4 sm:$0xff]  }
 0x16c   : > { %2524 = vmatprep.subr.bf16.mxu0 %v5975_v24  ;;  %1225 = vmatprep.mubr.bf16.mxu1 %v6749_v5  ;;  %v4732_v39 = vcombine.low %v7015_v43, %v7141_v35  ;;  %v8222_v43 = vld [vmem:[#allocation4_spill] sm:$0xff] }
 0x16f   : > { %2525 = vmatpush1.bf16.msra.mxu0 %v5973_v0  ;;  %v6016_v0 = vld [vmem:[%s8192_s3 + $0x114] ss:$8 sps:$4 sm:$0xff]  }
 0x170   : > { %2526 = vmatprep.subr.bf16.mxu0 %v5987_v7  ;;  %v6014_v7 = vld [vmem:[%s8192_s3 + $0x110] ss:$8 sps:$4 sm:$0xff]  }
 0x172   : > { %2378 = vmatmul.mubr.bf16.gmra.mrb[8].mxu0 %v6489_v38  ;;  %4798 = vmatmul.mubr.msk.bf16.gmra.mrb[44].mxu1 %vm841_vm0, %v4732_v39  ;;  %v4735_v38 = vcombine.low %v7032_v19, %v7042_v47  ;;  %v8226_v19 = vld [vmem:[#allocation8_spill] sm:$0xff]  ;;  %v304_v47 = vld [vmem:[%s6227_s16 + $0x1d4] sm:$0xff] }
 0x173   : > { %2387 = vmatprep.mubr.bf16.mxu0 %v4952_v37  ;;  %2527 = vmatpush1.bf16.msra.mxu0 %v5985_v33  ;;  %v4961_v53 = vcombine.high %v7073_v55, %v304_v47  ;;  %v4960_v23 = vcombine.low %v7073_v55, %v304_v47  ;;  %v6010_v55 = vld [vmem:[%s8192_s3 + $0xf4] ss:$8 sps:$4 sm:$0xff]   ;;  %v6019_v33 = vld [vmem:[%s8192_s3 + $0x124] ss:$8 sps:$4 sm:$0xff]   ;;  %v6026_v47 = vld [vmem:[%s8192_s3 + $0x150] ss:$8 sps:$4 sm:$0xff]  }
 0x174   : > { %1235 = vmatprep.mubr.bf16.mxu1 %v6749_v5  ;;  %3307 = vmatprep.subr.bf16.mxu0 %v6007_v8  ;;  %v6029_v8 = vld [vmem:[%s8192_s3 + $0x160] ss:$8 sps:$4 sm:$0xff]  }
 0x175   : > { %5223 = vmatprep.subr.bf16.mxu1 %v6010_v55 }
 0x176   : > { %5237 = vmatpush1.bf16.msra.mxu1 %v6008_v32 }
 0x177   : > { %5224 = vmatprep.subr.bf16.mxu1 %v6013_v18 }
 0x17a   : > { %2388 = vmatmul.mubr.bf16.gmra.mrb[12].mxu0 %v4951_v42  ;;  %4799 = vmatmul.mubr.msk.bf16.gmra.mrb[48].mxu1 %vm841_vm0, %v4735_v38 }
 0x17b   : > { %2397 = vmatprep.mubr.bf16.mxu0 %v6502_v45  ;;  %1245 = vmatprep.mubr.bf16.mxu1 %v6749_v5  ;;  %v4741_v45 = vcombine.low %v7062_v28, %v7077_v12 }
 0x17c   : > { %5238 = vmatpush1.bf16.msra.mxu1 %v6011_v22 }
 0x17d   : > { %5225 = vmatprep.subr.bf16.mxu1 %v6016_v0 }
 0x180   : > { %5239 = vmatpush1.bf16.msra.mxu1 %v6014_v7 }
 0x181   : > { %5226 = vmatprep.subr.bf16.mxu1 %v6019_v33 }
 0x182   : > { %2398 = vmatmul.mubr.bf16.gmra.mrb[16].mxu0 %v6513_v50  ;;  %4800 = vmatmul.mubr.msk.bf16.gmra.mrb[52].mxu1 %vm841_vm0, %v4738_v25  ;;  %v4955_v50 = vcombine.high %v6931_v52, %v264_v4  ;;  %v6017_v25 = vld [vmem:[%s8192_s3 + $0x120] ss:$8 sps:$4 sm:$0xff]  }
 0x183   : > { %2407 = vmatprep.mubr.bf16.mxu0 %v6517_v51  ;;  %1255 = vmatprep.mubr.bf16.mxu1 %v6749_v5  ;;  %v7169_v51 = vld [vmem:[%s6227_s16 + $0x1d0] sm:$0xf] }
 0x184   : > { %5240 = vmatpush1.bf16.msra.mxu1 %v6017_v25 }
 0x18a   : > { %2408 = vmatmul.mubr.bf16.gmra.mrb[20].mxu0 %v6529_v56  ;;  %4801 = vmatmul.mubr.msk.bf16.gmra.mrb[56].mxu1 %vm841_vm0, %v4741_v45  ;;  %v4744_v56 = vcombine.low %v7080_v54, %v7169_v51 }
 0x18b   : > { %2417 = vmatprep.mubr.bf16.mxu0 %v6533_v57  ;;  %1265 = vmatprep.mubr.bf16.mxu1 %v6749_v5  ;;  %v4954_v57 = vcombine.low %v6931_v52, %v264_v4  ;;  %v4957_v52 = vcombine.low %v7008_v16, %v284_v34  ;;  %v6022_v4 = vld [vmem:[%s8192_s3 + $0x134] ss:$8 sps:$4 sm:$0xff]  }
 0x18c   : > { %5227 = vmatprep.subr.bf16.mxu1 %v6022_v4  ;;  %v245_v34 = vld [vmem:[%s6227_s16 + $0x74] sm:$0xf] }
 0x192   : > { %2418 = vmatmul.mubr.bf16.gmra.mrb[24].mxu0 %v6543_v61  ;;  %4802 = vmatmul.mubr.msk.bf16.gmra.mrb[60].mxu1 %vm841_vm0, %v4744_v56  ;;  %v8224_v61 = vld [vmem:[#allocation6_spill] sm:$0xff] }
 0x193   : > { %2427 = vmatprep.mubr.bf16.mxu0 %v4955_v50 }
 0x19a   : > { %2428 = vmatmul.mubr.bf16.gmra.mrb[28].mxu0 %v4954_v57  ;;  %v6020_v57 = vld [vmem:[%s8192_s3 + $0x130] ss:$8 sps:$4 sm:$0xff]  }
 0x19b   : > { %2437 = vmatprep.mubr.bf16.mxu0 %v6562_v2  ;;  %v8227_v2 = vld [vmem:[#allocation9_spill] sm:$0xff]  ;;  %5241 = vmatpush1.bf16.msra.mxu1 %v6020_v57 }
 0x1a2   : > { %2438 = vmatmul.mubr.bf16.gmra.mrb[32].mxu0 %v8221_v58 }
 0x1a3   : > { %2447 = vmatprep.mubr.bf16.mxu0 %v8222_v43  ;;  %v6025_v43 = vld [vmem:[%s8192_s3 + $0x144] ss:$8 sps:$4 sm:$0xff]  }
 0x1a4   : > { %5228 = vmatprep.subr.bf16.mxu1 %v6025_v43 }
 0x1aa   : > { %2448 = vmatmul.mubr.bf16.gmra.mrb[36].mxu0 %v8223_v17 }
 0x1ab   : > { %2457 = vmatprep.mubr.bf16.mxu0 %v8224_v61 }
 0x1ad   : > { %v7193_v16 = vpop.f32.mrb[0].mxu1 }
 0x1ae   : > { %v7199_v28 = vpop.f32.mrb[1].mxu1 }
 0x1af   : > { %v7204_v12 = vpop.f32.mrb[2].mxu1 }
 0x1b0   : > { %v7209_v54 = vpop.f32.mrb[3].mxu1 }
 0x1b2   : > { %2458 = vmatmul.mubr.bf16.gmra.mrb[40].mxu0 %v8225_v46  ;;  %v6023_v46 = vld [vmem:[%s8192_s3 + $0x140] ss:$8 sps:$4 sm:$0xff]  }
 0x1b3   : > { %2467 = vmatprep.mubr.bf16.mxu0 %v4958_v40  ;;  %5242 = vmatpush1.bf16.msra.mxu1 %v6023_v46 }
 0x1b5   : > { %v7211_v10 = vpop.f32.mrb[4].mxu1 }
 0x1b6   : > { %v7213_v31 = vpop.f32.mrb[5].mxu1 }
 0x1b7   : > { %v7218_v63 = vpop.f32.mrb[6].mxu1 }
 0x1b8   : > { %v7223_v14 = vpop.f32.mrb[7].mxu1 }
 0x1ba   : > { %2468 = vmatmul.mubr.bf16.gmra.mrb[44].mxu0 %v4957_v52 }
 0x1bb   : > { %2477 = vmatprep.mubr.bf16.mxu0 %v8226_v19 }
 0x1bd   : > { %v7227_v60 = vpop.f32.mrb[8].mxu1 }
 0x1be   : > { %v7230_v9 = vpop.f32.mrb[9].mxu1 }
 0x1bf   : > { %v7235_v24 = vpop.f32.mrb[10].mxu1 }
 0x1c2   : > { %2478 = vmatmul.mubr.bf16.gmra.mrb[48].mxu0 %v8227_v2  ;;  %v6142_v2 = vld [vmem:[%s6227_s16 + $0x68] sm:$0xf] }
 0x1c3   : > { %2487 = vmatprep.mubr.bf16.mxu0 %v8228_v36  ;;  %v4953_v36 = vcombine.low %v6142_v2, %v245_v34  ;;  %v6043_v34 = vld [vmem:[%s8192_s3 + $0x1a4] ss:$8 sps:$4 sm:$0xff]  }
 0x1ca   : > { %2488 = vmatmul.mubr.bf16.gmra.mrb[52].mxu0 %v8229_v21 }
 0x1cb   : > { %2497 = vmatprep.mubr.bf16.mxu0 %v8230_v49 }
 0x1d2   : > { %2498 = vmatmul.mubr.bf16.gmra.mrb[56].mxu0 %v8231_v6  ;;  %v6031_v6 = vld [vmem:[%s8192_s3 + $0x164] ss:$8 sps:$4 sm:$0xff]  }
 0x1d3   : > { %2507 = vmatprep.mubr.bf16.mxu0 %v4961_v53 }
 0x1da   : > { %2508 = vmatmul.mubr.bf16.gmra.mrb[60].mxu0 %v4960_v23 }
 0x1db   : > { %2550 = vmatprep.mubr.bf16.mxu0 %v6749_v5 }
 0x1e2   : > { %5005 = vmatmul.mubr.msk.bf16.vlgmr.msra.gmra.mrb[0].mxu0 %vm841_vm0, %v6790_v29  ;;  %v7240_v29 = vpop.f32.mrb[11].mxu1 }
 0x1e3   : > { %2560 = vmatprep.mubr.bf16.mxu0 %v6749_v5  ;;  %3308 = vmatpush1.bf16.msra.mxu0 %v6005_v62  ;;  %v7242_v59 = vpop.f32.mrb[12].mxu1  ;;  %v265_v62 = vld [vmem:[%s6227_s16 + $0xec] sm:$0xf] }
 0x1e4   : > { %3309 = vmatprep.subr.bf16.mxu0 %v6010_v55  ;;  %v7244_v3 = vpop.f32.mrb[13].mxu1  ;;  %v6143_v55 = vld [vmem:[%s6227_s16 + $0xe0] sm:$0xf] }
 0x1e5   : > { %v7249_v37 = vpop.f32.mrb[14].mxu1 }
 0x1e6   : > { %v7254_v39 = vpop.f32.mrb[15].mxu1 }
 0x1e7   : > { %3310 = vmatpush1.bf16.msra.mxu0 %v6008_v32  ;;  %v7258_v42 = vpop.f32.mrb[16].mxu1  ;;  %v4956_v32 = vcombine.low %v6143_v55, %v265_v62 }
 0x1e8   : > { %3311 = vmatprep.subr.bf16.mxu0 %v6013_v18  ;;  %v7261_v38 = vpop.f32.mrb[17].mxu1 }
 0x1e9   : > { %v7266_v45 = vpop.f32.mrb[18].mxu1 }
 0x1ea   : > { %5006 = vmatmul.mubr.msk.bf16.gmra.mrb[4].mxu0 %vm841_vm0, %v6822_v44  ;;  %v7271_v44 = vpop.f32.mrb[19].mxu1 }
 0x1eb   : > { %2570 = vmatprep.mubr.bf16.mxu0 %v6749_v5  ;;  %3312 = vmatpush1.bf16.msra.mxu0 %v6011_v22  ;;  %v7273_v50 = vpop.f32.mrb[20].mxu1 }
 0x1ec   : > { %3313 = vmatprep.subr.bf16.mxu0 %v6016_v0  ;;  %v7275_v56 = vpop.f32.mrb[21].mxu1  ;;  %v6037_v0 = vld [vmem:[%s8192_s3 + $0x184] ss:$8 sps:$4 sm:$0xff]  }
 0x1ed   : > { %v7280_v58 = vpop.f32.mrb[22].mxu1 }
 0x1ee   : > { %v7285_v17 = vpop.f32.mrb[23].mxu1 }
 0x1ef   : > { %3314 = vmatpush1.bf16.msra.mxu0 %v6014_v7  ;;  %v7289_v61 = vpop.f32.mrb[24].mxu1  ;;  %v6035_v7 = vld [vmem:[%s8192_s3 + $0x180] ss:$8 sps:$4 sm:$0xff]  }
 0x1f0   : > { %3315 = vmatprep.subr.bf16.mxu0 %v6019_v33  ;;  %v7293_v40 = vpop.f32.mrb[25].mxu1 }
 0x1f1   : > { %v7298_v52 = vpop.f32.mrb[26].mxu1 }
 0x1f2   : > { %5007 = vmatmul.mubr.msk.bf16.gmra.mrb[8].mxu0 %vm841_vm0, %v6854_v15  ;;  %v6028_v15 = vld [vmem:[%s8192_s3 + $0x154] ss:$8 sps:$4 sm:$0xff]   ;;  %v7303_v19 = vpop.f32.mrb[27].mxu1 }
 0x1f3   : > { %2580 = vmatprep.mubr.bf16.mxu0 %v6749_v5  ;;  %3316 = vmatpush1.bf16.msra.mxu0 %v6017_v25  ;;  %v7306_v21 = vpop.f32.mrb[28].mxu1 }
 0x1f4   : > { %3317 = vmatprep.subr.bf16.mxu0 %v6022_v4  ;;  %5229 = vmatprep.subr.bf16.mxu1 %v6028_v15  ;;  %v7308_v49 = vpop.f32.mrb[29].mxu1  ;;  %v6040_v4 = vld [vmem:[%s8192_s3 + $0x194] ss:$8 sps:$4 sm:$0xff]  }
 0x1f5   : > { %v7313_v53 = vpop.f32.mrb[30].mxu1  ;;  %5243 = vmatpush1.bf16.msra.mxu1 %v6026_v47 }
 0x1f6   : > { %v7318_v23 = vpop.f32.mrb[31].mxu1  ;;  %5230 = vmatprep.subr.bf16.mxu1 %v6031_v6 }
 0x1f7   : > { %3318 = vmatpush1.bf16.msra.mxu0 %v6020_v57 }
 0x1f8   : > { %3319 = vmatprep.subr.bf16.mxu0 %v6025_v43  ;;  %v6038_v43 = vld [vmem:[%s8192_s3 + $0x190] ss:$8 sps:$4 sm:$0xff]  }
 0x1f9   : > { %5244 = vmatpush1.bf16.msra.mxu1 %v6029_v8 }
 0x1fa   : > { %5008 = vmatmul.mubr.msk.bf16.gmra.mrb[12].mxu0 %vm841_vm0, %v4953_v36 }
 0x1fb   : > { %2590 = vmatprep.mubr.bf16.mxu0 %v6749_v5  ;;  %3320 = vmatpush1.bf16.msra.mxu0 %v6023_v46  ;;  %v6041_v46 = vld [vmem:[%s8192_s3 + $0x1a0] ss:$8 sps:$4 sm:$0xff]  }
 0x1fc   : > { %3321 = vmatprep.subr.bf16.mxu0 %v6028_v15 }
 0x1ff   : > { %3322 = vmatpush1.bf16.msra.mxu0 %v6026_v47  ;;  %v6046_v47 = vld [vmem:[%s8192_s3 + $0x1b4] ss:$8 sps:$4 sm:$0xff]  }
 0x200   : > { %3323 = vmatprep.subr.bf16.mxu0 %v6031_v6 }
 0x202   : > { %5009 = vmatmul.mubr.msk.bf16.gmra.mrb[16].mxu0 %vm841_vm0, %v6897_v27 }
 0x203   : > { %2600 = vmatprep.mubr.bf16.mxu0 %v6749_v5  ;;  %3324 = vmatpush1.bf16.msra.mxu0 %v6029_v8 }
 0x20a   : > { %5010 = vmatmul.mubr.msk.bf16.gmra.mrb[20].mxu0 %vm841_vm0, %v6920_v20  ;;  %v285_v20 = vld [vmem:[%s6227_s16 + $0x164] sm:$0xf] }
 0x20b   : > { %2610 = vmatprep.mubr.bf16.mxu0 %v6749_v5 }
 0x212   : > { %5011 = vmatmul.mubr.msk.bf16.gmra.mrb[24].mxu0 %vm841_vm0, %v6946_v1 }
 0x213   : > { %2620 = vmatprep.mubr.bf16.mxu0 %v6749_v5 }
 0x21a   : > { %5012 = vmatmul.mubr.msk.bf16.gmra.mrb[28].mxu0 %vm841_vm0, %v4956_v32 }
 0x21b   : > { %2630 = vmatprep.mubr.bf16.mxu0 %v6749_v5 }
 0x222   : > { %5013 = vmatmul.mubr.msk.bf16.gmra.mrb[32].mxu0 %vm841_vm0, %v6986_v11  ;;  %v6034_v11 = vld [vmem:[%s8192_s3 + $0x174] ss:$8 sps:$4 sm:$0xff]  }
 0x223   : > { %2640 = vmatprep.mubr.bf16.mxu0 %v6749_v5  ;;  %3325 = vmatprep.subr.bf16.mxu0 %v6034_v11 }
 0x224   : > { %5231 = vmatprep.subr.bf16.mxu1 %v6034_v11  ;;  %v305_v11 = vld [vmem:[%s6227_s16 + $0x1dc] sm:$0xf]  ;;  %s5211_s16 = sshll.u32 %s8273_s19, 9 }
 0x225   : > { %s8020_s24 = scalar_lea.vmem %s8194_s5, %s5211_s16 }
 0x22a   : > { %5014 = vmatmul.mubr.msk.bf16.gmra.mrb[36].mxu0 %vm841_vm0, %v7003_v13  ;;  %v6032_v13 = vld [vmem:[%s8192_s3 + $0x170] ss:$8 sps:$4 sm:$0xff]  }
 0x22b   : > { %2650 = vmatprep.mubr.bf16.mxu0 %v6749_v5  ;;  %3326 = vmatpush1.bf16.msra.mxu0 %v6032_v13 }
 0x22c   : > { %5245 = vmatpush1.bf16.msra.mxu1 %v6032_v13  ;;  %3327 = vmatprep.subr.bf16.mxu0 %v6037_v0 }
 0x22d   : > { %v7346_v27 = vpop.f32.mrb[32].mxu1  ;;  %5232 = vmatprep.subr.bf16.mxu1 %v6037_v0  ;;  %v4962_v0 = vcombine.low %v7169_v51, %v305_v11 }
 0x22e   : > { %v7350_v1 = vpop.f32.mrb[33].mxu1 }
 0x22f   : > { %v7352_v18 = vpop.f32.mrb[34].mxu1  ;;  %3328 = vmatpush1.bf16.msra.mxu0 %v6035_v7 }
 0x230   : > { %v7357_v22 = vpop.f32.mrb[35].mxu1  ;;  %5246 = vmatpush1.bf16.msra.mxu1 %v6035_v7  ;;  %3329 = vmatprep.subr.bf16.mxu0 %v6040_v4 }
 0x231   : > { %5233 = vmatprep.subr.bf16.mxu1 %v6040_v4 }
 0x232   : > { %5015 = vmatmul.mubr.msk.bf16.gmra.mrb[40].mxu0 %vm841_vm0, %v7023_v48  ;;  %v4959_v48 = vcombine.low %v7141_v35, %v285_v20 }
 0x233   : > { %2660 = vmatprep.mubr.bf16.mxu0 %v6749_v5  ;;  %3330 = vmatpush1.bf16.msra.mxu0 %v6038_v43 }
 0x234   : > { %5247 = vmatpush1.bf16.msra.mxu1 %v6038_v43  ;;  %3331 = vmatprep.subr.bf16.mxu0 %v6043_v34 }
 0x235   : > { %v7370_v33 = vpop.f32.mrb[36].mxu1  ;;  %5234 = vmatprep.subr.bf16.mxu1 %v6043_v34 }
 0x236   : > { %v7373_v35 = vpop.f32.mrb[37].mxu1 }
 0x237   : > { %v7375_v25 = vpop.f32.mrb[38].mxu1  ;;  %3332 = vmatpush1.bf16.msra.mxu0 %v6041_v46 }
 0x238   : > { %v7380_v57 = vpop.f32.mrb[39].mxu1  ;;  %5248 = vmatpush1.bf16.msra.mxu1 %v6041_v46  ;;  %3333 = vmatprep.subr.bf16.mxu0 %v6046_v47 }
 0x239   : > { %5235 = vmatprep.subr.bf16.mxu1 %v6046_v47 }
 0x23a   : > { %5016 = vmatmul.mubr.msk.bf16.gmra.mrb[44].mxu0 %vm841_vm0, %v4959_v48 }
 0x23b   : > { %2670 = vmatprep.mubr.bf16.mxu0 %v6749_v5 }
 0x23d   : > { %v7409_v15 = vpop.f32.mrb[40].mxu1 }
 0x23e   : > { %v7412_v2 = vpop.f32.mrb[41].mxu1 }
 0x23f   : > { %v7414_v36 = vpop.f32.mrb[42].mxu1 }
 0x240   : > { %v7419_v6 = vpop.f32.mrb[43].mxu1 }
 0x242   : > { %5017 = vmatmul.mubr.msk.bf16.gmra.mrb[48].mxu0 %vm841_vm0, %v7051_v41  ;;  %v6044_v41 = vld [vmem:[%s8192_s3 + $0x1b0] ss:$8 sps:$4 sm:$0xff]  }
 0x243   : > { %2680 = vmatprep.mubr.bf16.mxu0 %v6749_v5  ;;  %3334 = vmatpush1.bf16.msra.mxu0 %v6044_v41 }
 0x244   : > { %5249 = vmatpush1.bf16.msra.mxu1 %v6044_v41 }
 0x245   : > { %v7426_v8 = vpop.f32.mrb[44].mxu1 }
 0x246   : > { %v7429_v62 = vpop.f32.mrb[45].mxu1 }
 0x247   : > { %v7431_v55 = vpop.f32.mrb[46].mxu1 }
 0x248   : > { %8232 = vst [vmem:[#allocation3_spill] sm:$0xff] %v7431_v55  ;;  %v7433_v32 = vpop.f32.mrb[47].mxu1 }
 0x249   : > { %8233 = vst [vmem:[#allocation4_spill] sm:$0xff] %v7433_v32 }
 0x24a   : > { %5018 = vmatmul.mubr.msk.bf16.gmra.mrb[52].mxu0 %vm841_vm0, %v7068_v30 }
 0x24b   : > { %2690 = vmatprep.mubr.bf16.mxu0 %v6749_v5 }
 0x24d   : > { %v7437_v20 = vpop.f32.mrb[48].mxu1 }
 0x24e   : > { %8234 = vst [vmem:[#allocation5_spill] sm:$0xff] %v7437_v20  ;;  %v7441_v13 = vpop.f32.mrb[49].mxu1 }
 0x24f   : > { %8235 = vst [vmem:[#allocation6_spill] sm:$0xff] %v7441_v13  ;;  %v7443_v30 = vpop.f32.mrb[50].mxu1 }
 0x250   : > { %8236 = vst [vmem:[#allocation7_spill] sm:$0xff] %v7443_v30  ;;  %v7445_v48 = vpop.f32.mrb[51].mxu1 }
 0x251   : > { %8237 = vst [vmem:[#allocation8_spill] sm:$0xff] %v7445_v48 }
 0x252   : > { %5019 = vmatmul.mubr.msk.bf16.gmra.mrb[56].mxu0 %vm841_vm0, %v7088_v26 }
 0x253   : > { %2700 = vmatprep.mubr.bf16.mxu0 %v6749_v5  ;;  %v6049_v5 = vld [vmem:[%s8192_s3 + $0x4] ss:$8 sps:$4 sm:$0xff]  }
 0x254   : > { %3688 = vmatprep.subr.bf16.mxu1 %v6049_v5  ;;  %v2775_v5 = vld [vmem:[%s8191_s2] sm:$0x3] }
 0x255   : > { %v7449_v7 = vpop.f32.mrb[52].mxu1 }
 0x256   : > { %8238 = vst [vmem:[#allocation9_spill] sm:$0xff] %v7449_v7  ;;  %v7451_v4 = vpop.f32.mrb[53].mxu1 }
 0x257   : > { %8239 = vst [vmem:[#allocation10_spill] sm:$0xff] %v7451_v4  ;;  %v7453_v26 = vpop.f32.mrb[54].mxu1 }
 0x258   : > { %8240 = vst [vmem:[#allocation11_spill] sm:$0xff] %v7453_v26  ;;  %v7455_v43 = vpop.f32.mrb[55].mxu1  ;;  %v2777_v26 = vlaneseq }
 0x259   : > { %8241 = vst [vmem:[#allocation12_spill] sm:$0xff] %v7455_v43 }
 0x25a   : > { %5020 = vmatmul.mubr.msk.bf16.gmra.mrb[60].mxu0 %vm841_vm0, %v4962_v0  ;;  %v7476_v4 = vshrl.u32 %v2777_v26, 7 }
 0x25c   : > { %8250 = vst [vmem:[#allocation21_spill] sm:$0xff] %v7476_v4 }
 0x25d   : > { %v7460_v34 = vpop.f32.mrb[56].mxu1 }
 0x25e   : > { %8242 = vst [vmem:[#allocation13_spill] sm:$0xff] %v7460_v34  ;;  %v7462_v46 = vpop.f32.mrb[57].mxu1  ;;  %v8206_v34 = vsub.s32 0, %v7476_v4 }
 0x25f   : > { %8243 = vst [vmem:[#allocation14_spill] sm:$0xff] %v7462_v46  ;;  %v7464_v51 = vpop.f32.mrb[58].mxu1 }
 0x260   : > { %8244 = vst [vmem:[#allocation15_spill] sm:$0xff] %v7464_v51  ;;  %v7466_v47 = vpop.f32.mrb[59].mxu1  ;;  %v8207_v51 = vsub.s32 1, %v7476_v4 }
 0x261   : > { %8245 = vst [vmem:[#allocation16_spill] sm:$0xff] %v7466_v47 }
 0x265   : > { %v7468_v41 = vpop.f32.mrb[60].mxu1 }
 0x266   : > { %8246 = vst [vmem:[#allocation17_spill] sm:$0xff] %v7468_v41  ;;  %v7470_v11 = vpop.f32.mrb[61].mxu1  ;;  %v7485_v41 = vrot.slane %v2775_v5, %v8206_v34 }
 0x267   : > { %8247 = vst [vmem:[#allocation18_spill] sm:$0xff] %v7470_v11  ;;  %v7472_v0 = vpop.f32.mrb[62].mxu1 }
 0x268   : > { %8248 = vst [vmem:[#allocation19_spill] sm:$0xff] %v7472_v0  ;;  %v7474_v43 = vpop.f32.mrb[63].mxu1  ;;  %v7489_v0 = vrot.slane %v2775_v5, %v8207_v51 }
 0x269   : > { %8249 = vst [vmem:[#allocation20_spill] sm:$0xff] %v7474_v43 }
 0x2b5   : > { %v2552_v11 = vpop.f32.mrb[0].mxu0 }
 0x2b6   : > { %v5250_v26 = vadd.f32 %v2552_v11, %v7193_v16  ;;  %v2554_v43 = vpop.f32.mrb[1].mxu0 }
 0x2b7   : > { %v5251_v47 = vadd.f32 %v2554_v43, %v7199_v28  ;;  %v2556_v46 = vpop.f32.mrb[2].mxu0 }
 0x2b8   : > { %v2787_v7 = vadd.f32 %v5250_v26, %v7485_v41  ;;  %v5252_v48 = vadd.f32 %v2556_v46, %v7204_v12  ;;  %v2558_v30 = vpop.f32.mrb[3].mxu0 }
 0x2b9   : > { %v2788_v13 = vadd.f32 %v5251_v47, %v7489_v0  ;;  %v5253_v34 = vadd.f32 %v2558_v30, %v7209_v54 }
 0x2ba   : > { %v2789_v20 = vadd.f32 %v5252_v48, %v7485_v41  ;;  %v2851_v51 = vmax.f32 %v2787_v7, 0.0 }
 0x2bb   : > { %v2790_v5 = vadd.f32 %v5253_v34, %v7489_v0  ;;  %v2852_v16 = vmax.f32 %v2788_v13, 0.0 }
 0x2bc   : > { %v2853_v4 = vmax.f32 %v2789_v20, 0.0 }
 0x2bd   : > { %v2854_v11 = vmax.f32 %v2790_v5, 0.0  ;;  %v2562_v32 = vpop.f32.mrb[4].mxu0 }
 0x2be   : > { %v2933_v28 = vpack.c.bf16 %v2853_v4, %v2851_v51  ;;  %v5254_v43 = vadd.f32 %v2562_v32, %v7211_v10  ;;  %v2564_v26 = vpop.f32.mrb[5].mxu0 }
 0x2bf   : > { %v2934_v55 = vpack.c.bf16 %v2854_v11, %v2852_v16  ;;  %v5255_v12 = vadd.f32 %v2564_v26, %v7213_v31  ;;  %v2566_v46 = vpop.f32.mrb[6].mxu0 }
 0x2c0   : > { %2966 = vst [vmem:[#allocation2 + $0x40] sm:$0xff] %v2933_v28  ;;  %v2791_v54 = vadd.f32 %v5254_v43, %v7485_v41  ;;  %v5256_v30 = vadd.f32 %v2566_v46, %v7218_v63  ;;  %v2568_v48 = vpop.f32.mrb[7].mxu0 }
 0x2c1   : > { %2967 = vst.msk [vmem:[#allocation2 + $0x48] sm:$0xff] %vm2916_vm1, %v2934_v55  ;;  %v2792_v20 = vadd.f32 %v5255_v12, %v7489_v0  ;;  %v5257_v13 = vadd.f32 %v2568_v48, %v7223_v14 }
 0x2c2   : > { %v2793_v7 = vadd.f32 %v5256_v30, %v7485_v41  ;;  %v2855_v32 = vmax.f32 %v2791_v54, 0.0 }
 0x2c3   : > { %v2794_v10 = vadd.f32 %v5257_v13, %v7489_v0  ;;  %v2856_v31 = vmax.f32 %v2792_v20, 0.0 }
 0x2c4   : > { %v2857_v4 = vmax.f32 %v2793_v7, 0.0 }
 0x2c5   : > { %v2858_v34 = vmax.f32 %v2794_v10, 0.0  ;;  %v2572_v51 = vpop.f32.mrb[8].mxu0 }
 0x2c6   : > { %v2935_v47 = vpack.c.bf16 %v2857_v4, %v2855_v32  ;;  %v5258_v5 = vadd.f32 %v2572_v51, %v7227_v60  ;;  %v2574_v63 = vpop.f32.mrb[9].mxu0 }
 0x2c7   : > { %v2936_v16 = vpack.c.bf16 %v2858_v34, %v2856_v31  ;;  %v5259_v55 = vadd.f32 %v2574_v63, %v7230_v9  ;;  %v2576_v11 = vpop.f32.mrb[10].mxu0 }
 0x2c8   : > { %2968 = vst [vmem:[#allocation2 + $0x50] sm:$0xff] %v2935_v47  ;;  %v2795_v14 = vadd.f32 %v5258_v5, %v7485_v41  ;;  %v5260_v43 = vadd.f32 %v2576_v11, %v7235_v24  ;;  %v2578_v26 = vpop.f32.mrb[11].mxu0  ;;  %v7512_v12 = vld [vmem:[#allocation2 + $0x48] sm:$0xff] }
 0x2c9   : > { %2969 = vst.msk [vmem:[#allocation2 + $0x58] sm:$0xff] %vm2916_vm1, %v2936_v16  ;;  %v2796_v46 = vadd.f32 %v5259_v55, %v7489_v0  ;;  %v5261_v54 = vadd.f32 %v2578_v26, %v7240_v29  ;;  %5077 = vmatprep.mubr.msk.bf16.mxu0 %vm2916_vm1, %v7512_v12 }
 0x2ca   : > { %v2797_v60 = vadd.f32 %v5260_v43, %v7485_v41  ;;  %3340 = vmatmul.mubr.bf16.vlgmr.msra.gmra.mrb[64].mxu0 %v2933_v28  ;;  %v2859_v30 = vmax.f32 %v2795_v14, 0.0 }
 0x2cb   : > { %v2798_v9 = vadd.f32 %v5261_v54, %v7489_v0  ;;  %v2860_v24 = vmax.f32 %v2796_v46, 0.0 }
 0x2cc   : > { %v2861_v48 = vmax.f32 %v2797_v60, 0.0 }
 0x2cd   : > { %v2862_v20 = vmax.f32 %v2798_v9, 0.0  ;;  %v2582_v13 = vpop.f32.mrb[12].mxu0 }
 0x2ce   : > { %v7521_v7 = vpack.c.bf16 %v2861_v48, %v2859_v30  ;;  %v5262_v10 = vadd.f32 %v2582_v13, %v7242_v59  ;;  %v2584_v32 = vpop.f32.mrb[13].mxu0 }
 0x2cf   : > { %v2938_v4 = vpack.c.bf16 %v2862_v20, %v2860_v24  ;;  %v5263_v29 = vadd.f32 %v2584_v32, %v7244_v3  ;;  %v2586_v31 = vpop.f32.mrb[14].mxu0  ;;  %v6050_v32 = vld [vmem:[%s8192_s3 + $0x10] ss:$8 sps:$4 sm:$0xff]  }
 0x2d0   : > { %v2799_v34 = vadd.f32 %v5262_v10, %v7485_v41  ;;  %v5264_v28 = vadd.f32 %v2586_v31, %v7249_v37  ;;  %v2588_v51 = vpop.f32.mrb[15].mxu0  ;;  %v7527_v5 = vld [vmem:[#allocation2 + $0x58] sm:$0xff] }
 0x2d1   : > { %2971 = vst.msk [vmem:[#allocation2 + $0x68] sm:$0xff] %vm2916_vm1, %v2938_v4  ;;  %v2800_v63 = vadd.f32 %v5263_v29, %v7489_v0  ;;  %v5265_v16 = vadd.f32 %v2588_v51, %v7254_v39  ;;  %5078 = vmatprep.mubr.msk.bf16.mxu0 %vm2916_vm1, %v7527_v5 }
 0x2d2   : > { %v2801_v59 = vadd.f32 %v5264_v28, %v7485_v41  ;;  %3350 = vmatmul.mubr.bf16.gmra.mrb[68].mxu0 %v2935_v47  ;;  %v2863_v55 = vmax.f32 %v2799_v34, 0.0  ;;  %v6047_v47 = vld [vmem:[%s8192_s3] ss:$8 sps:$4 sm:$0xff]  }
 0x2d3   : > { %v2802_v3 = vadd.f32 %v5265_v16, %v7489_v0  ;;  %v2864_v37 = vmax.f32 %v2800_v63, 0.0 }
 0x2d4   : > { %v2865_v11 = vmax.f32 %v2801_v59, 0.0 }
 0x2d5   : > { %v2866_v14 = vmax.f32 %v2802_v3, 0.0  ;;  %v2592_v43 = vpop.f32.mrb[16].mxu0 }
 0x2d6   : > { %v7536_v26 = vpack.c.bf16 %v2865_v11, %v2863_v55  ;;  %v5266_v46 = vadd.f32 %v2592_v43, %v7258_v42  ;;  %v2594_v54 = vpop.f32.mrb[17].mxu0  ;;  %v6052_v42 = vld [vmem:[%s8192_s3 + $0x14] ss:$8 sps:$4 sm:$0xff]   ;;  %v6053_v11 = vld [vmem:[%s8192_s3 + $0x20] ss:$8 sps:$4 sm:$0xff]  }
 0x2d7   : > { %v2940_v60 = vpack.c.bf16 %v2866_v14, %v2864_v37  ;;  %v5267_v39 = vadd.f32 %v2594_v54, %v7261_v38  ;;  %v2596_v9 = vpop.f32.mrb[18].mxu0 }
 0x2d8   : > { %v2803_v30 = vadd.f32 %v5266_v46, %v7485_v41  ;;  %v5268_v48 = vadd.f32 %v2596_v9, %v7266_v45  ;;  %v2598_v24 = vpop.f32.mrb[19].mxu0  ;;  %v7545_v20 = vld [vmem:[#allocation2 + $0x68] sm:$0xff] }
 0x2d9   : > { %2973 = vst.msk [vmem:[#allocation2 + $0x78] sm:$0xff] %vm2916_vm1, %v2940_v60  ;;  %v2804_v38 = vadd.f32 %v5267_v39, %v7489_v0  ;;  %v5269_v13 = vadd.f32 %v2598_v24, %v7271_v44  ;;  %5079 = vmatprep.mubr.msk.bf16.mxu1 %vm2916_vm1, %v7545_v20  ;;  %v6055_v44 = vld [vmem:[%s8192_s3 + $0x24] ss:$8 sps:$4 sm:$0xff]   ;;  %v6056_v39 = vld [vmem:[%s8192_s3 + $0x30] ss:$8 sps:$4 sm:$0xff]  }
 0x2da   : > { %v2805_v10 = vadd.f32 %v5268_v48, %v7485_v41  ;;  %3360 = vmatmul.mubr.bf16.vlgmr.msra.gmra.mrb[64].mxu1 %v7521_v7  ;;  %v2867_v4 = vmax.f32 %v2803_v30, 0.0 }
 0x2db   : > { %v2806_v45 = vadd.f32 %v5269_v13, %v7489_v0  ;;  %3689 = vmatpush1.bf16.msra.mxu1 %v6047_v47  ;;  %v2868_v31 = vmax.f32 %v2804_v38, 0.0 }
 0x2dc   : > { %v2869_v29 = vmax.f32 %v2805_v10, 0.0  ;;  %3690 = vmatprep.subr.bf16.mxu1 %v6052_v42 }
 0x2dd   : > { %v2870_v34 = vmax.f32 %v2806_v45, 0.0  ;;  %v2602_v28 = vpop.f32.mrb[20].mxu0 }
 0x2de   : > { %v7564_v51 = vpack.c.bf16 %v2869_v29, %v2867_v4  ;;  %v5270_v63 = vadd.f32 %v2602_v28, %v7273_v50  ;;  %v2604_v16 = vpop.f32.mrb[21].mxu0  ;;  %v6058_v50 = vld [vmem:[%s8192_s3 + $0x34] ss:$8 sps:$4 sm:$0xff]   ;;  %v6059_v4 = vld [vmem:[%s8192_s3 + $0x40] ss:$8 sps:$4 sm:$0xff]  }
 0x2df   : > { %v2942_v59 = vpack.c.bf16 %v2870_v34, %v2868_v31  ;;  %v5271_v3 = vadd.f32 %v2604_v16, %v7275_v56  ;;  %v2606_v55 = vpop.f32.mrb[22].mxu0  ;;  %3691 = vmatpush1.bf16.msra.mxu1 %v6050_v32  ;;  %v6062_v16 = vld [vmem:[%s8192_s3 + $0x50] ss:$8 sps:$4 sm:$0xff]  }
 0x2e0   : > { %2974 = vst [vmem:[#allocation2 + $0x80] sm:$0xff] %v7564_v51  ;;  %v2807_v37 = vadd.f32 %v5270_v63, %v7485_v41  ;;  %v5272_v14 = vadd.f32 %v2606_v55, %v7280_v58  ;;  %v2608_v43 = vpop.f32.mrb[23].mxu0  ;;  %v7574_v46 = vld [vmem:[#allocation2 + $0x78] sm:$0xff]  ;;  %3692 = vmatprep.subr.bf16.mxu1 %v6055_v44 }
 0x2e1   : > { %2975 = vst.msk [vmem:[#allocation2 + $0x88] sm:$0xff] %vm2916_vm1, %v2942_v59  ;;  %v2808_v56 = vadd.f32 %v5271_v3, %v7489_v0  ;;  %v5273_v54 = vadd.f32 %v2608_v43, %v7285_v17  ;;  %5080 = vmatprep.mubr.msk.bf16.mxu1 %vm2916_vm1, %v7574_v46  ;;  %v6061_v17 = vld [vmem:[%s8192_s3 + $0x44] ss:$8 sps:$4 sm:$0xff]  }
 0x2e2   : > { %v2809_v60 = vadd.f32 %v5272_v14, %v7485_v41  ;;  %3370 = vmatmul.mubr.bf16.gmra.mrb[68].mxu1 %v7536_v26  ;;  %v2871_v9 = vmax.f32 %v2807_v37, 0.0 }
 0x2e3   : > { %v2810_v58 = vadd.f32 %v5273_v54, %v7489_v0  ;;  %3693 = vmatpush1.bf16.msra.mxu1 %v6053_v11  ;;  %v2872_v30 = vmax.f32 %v2808_v56, 0.0 }
 0x2e4   : > { %v2873_v47 = vmax.f32 %v2809_v60, 0.0  ;;  %3694 = vmatprep.subr.bf16.mxu1 %v6058_v50 }
 0x2e5   : > { %v2874_v48 = vmax.f32 %v2810_v58, 0.0  ;;  %v2612_v24 = vpop.f32.mrb[24].mxu0  ;;  %v6065_v58 = vld [vmem:[%s8192_s3 + $0x60] ss:$8 sps:$4 sm:$0xff]  }
 0x2e6   : > { %v7593_v42 = vpack.c.bf16 %v2873_v47, %v2871_v9  ;;  %v5274_v38 = vadd.f32 %v2612_v24, %v7289_v61  ;;  %v2614_v13 = vpop.f32.mrb[25].mxu0  ;;  %v6064_v61 = vld [vmem:[%s8192_s3 + $0x54] ss:$8 sps:$4 sm:$0xff]   ;;  %v6068_v24 = vld [vmem:[%s8192_s3 + $0x70] ss:$8 sps:$4 sm:$0xff]  }
 0x2e7   : > { %v2944_v10 = vpack.c.bf16 %v2874_v48, %v2872_v30  ;;  %v5275_v45 = vadd.f32 %v2614_v13, %v7293_v40  ;;  %v2616_v32 = vpop.f32.mrb[26].mxu0  ;;  %3695 = vmatpush1.bf16.msra.mxu1 %v6056_v39 }
 0x2e8   : > { %v2811_v29 = vadd.f32 %v5274_v38, %v7485_v41  ;;  %v5276_v44 = vadd.f32 %v2616_v32, %v7298_v52  ;;  %v2618_v31 = vpop.f32.mrb[27].mxu0  ;;  %v7602_v34 = vld [vmem:[#allocation2 + $0x88] sm:$0xff]  ;;  %3696 = vmatprep.subr.bf16.mxu1 %v6061_v17 }
 0x2e9   : > { %2977 = vst.msk [vmem:[#allocation2 + $0x98] sm:$0xff] %vm2916_vm1, %v2944_v10  ;;  %v2812_v40 = vadd.f32 %v5275_v45, %v7489_v0  ;;  %v5277_v28 = vadd.f32 %v2618_v31, %v7303_v19  ;;  %5081 = vmatprep.mubr.msk.bf16.mxu1 %vm2916_vm1, %v7602_v34  ;;  %v6067_v19 = vld [vmem:[%s8192_s3 + $0x64] ss:$8 sps:$4 sm:$0xff]  }
 0x2ea   : > { %v2813_v63 = vadd.f32 %v5276_v44, %v7485_v41  ;;  %3380 = vmatmul.mubr.bf16.gmra.mrb[72].mxu1 %v7564_v51  ;;  %v2875_v59 = vmax.f32 %v2811_v29, 0.0 }
 0x2eb   : > { %v2814_v52 = vadd.f32 %v5277_v28, %v7489_v0  ;;  %3697 = vmatpush1.bf16.msra.mxu1 %v6059_v4  ;;  %v2876_v55 = vmax.f32 %v2812_v40, 0.0  ;;  %v6071_v28 = vld [vmem:[%s8192_s3 + $0x80] ss:$8 sps:$4 sm:$0xff]  }
 0x2ec   : > { %v2877_v3 = vmax.f32 %v2813_v63, 0.0  ;;  %3698 = vmatprep.subr.bf16.mxu1 %v6064_v61 }
 0x2ed   : > { %v2878_v11 = vmax.f32 %v2814_v52, 0.0  ;;  %v2622_v37 = vpop.f32.mrb[28].mxu0 }
 0x2ee   : > { %v7621_v14 = vpack.c.bf16 %v2877_v3, %v2875_v59  ;;  %v5278_v43 = vadd.f32 %v2622_v37, %v7306_v21  ;;  %v2624_v50 = vpop.f32.mrb[29].mxu0  ;;  %v6070_v21 = vld [vmem:[%s8192_s3 + $0x74] ss:$8 sps:$4 sm:$0xff]  }
 0x2ef   : > { %v2946_v56 = vpack.c.bf16 %v2878_v11, %v2876_v55  ;;  %v5279_v54 = vadd.f32 %v2624_v50, %v7308_v49  ;;  %v2626_v60 = vpop.f32.mrb[30].mxu0  ;;  %3699 = vmatpush1.bf16.msra.mxu1 %v6062_v16  ;;  %v6074_v55 = vld [vmem:[%s8192_s3 + $0x90] ss:$8 sps:$4 sm:$0xff]  }
 0x2f0   : > { %v2815_v39 = vadd.f32 %v5278_v43, %v7485_v41  ;;  %v5280_v9 = vadd.f32 %v2626_v60, %v7313_v53  ;;  %v2628_v47 = vpop.f32.mrb[31].mxu0  ;;  %v7630_v17 = vld [vmem:[#allocation2 + $0x98] sm:$0xff]  ;;  %3700 = vmatprep.subr.bf16.mxu1 %v6067_v19 }
 0x2f1   : > { %2979 = vst.msk [vmem:[#allocation2 + $0xa8] sm:$0xff] %vm2916_vm1, %v2946_v56  ;;  %v2816_v49 = vadd.f32 %v5279_v54, %v7489_v0  ;;  %v5281_v30 = vadd.f32 %v2628_v47, %v7318_v23  ;;  %5082 = vmatprep.mubr.msk.bf16.mxu1 %vm2916_vm1, %v7630_v17  ;;  %v6073_v23 = vld [vmem:[%s8192_s3 + $0x84] ss:$8 sps:$4 sm:$0xff]  }
 0x2f2   : > { %v2817_v48 = vadd.f32 %v5280_v9, %v7485_v41  ;;  %3390 = vmatmul.mubr.bf16.gmra.mrb[76].mxu1 %v7593_v42  ;;  %v2879_v38 = vmax.f32 %v2815_v39, 0.0 }
 0x2f3   : > { %v2818_v53 = vadd.f32 %v5281_v30, %v7489_v0  ;;  %3701 = vmatpush1.bf16.msra.mxu1 %v6065_v58  ;;  %v2880_v10 = vmax.f32 %v2816_v49, 0.0 }
 0x2f4   : > { %v2881_v13 = vmax.f32 %v2817_v48, 0.0  ;;  %3702 = vmatprep.subr.bf16.mxu1 %v6070_v21  ;;  %v6077_v21 = vld [vmem:[%s8192_s3 + $0xa0] ss:$8 sps:$4 sm:$0xff]  }
 0x2f5   : > { %v2882_v45 = vmax.f32 %v2818_v53, 0.0  ;;  %v2632_v32 = vpop.f32.mrb[32].mxu0 }
 0x2f6   : > { %v7649_v4 = vpack.c.bf16 %v2881_v13, %v2879_v38  ;;  %v5282_v29 = vadd.f32 %v2632_v32, %v7346_v27  ;;  %v2634_v44 = vpop.f32.mrb[33].mxu0  ;;  %v6076_v27 = vld [vmem:[%s8192_s3 + $0x94] ss:$8 sps:$4 sm:$0xff]   ;;  %v6080_v13 = vld [vmem:[%s8192_s3 + $0xb0] ss:$8 sps:$4 sm:$0xff]  }
 0x2f7   : > { %v2948_v31 = vpack.c.bf16 %v2882_v45, %v2880_v10  ;;  %v5283_v61 = vadd.f32 %v2634_v44, %v7350_v1  ;;  %v2636_v40 = vpop.f32.mrb[34].mxu0  ;;  %3703 = vmatpush1.bf16.msra.mxu1 %v6068_v24 }
 0x2f8   : > { %v2819_v63 = vadd.f32 %v5282_v29, %v7485_v41  ;;  %v5284_v52 = vadd.f32 %v2636_v40, %v7352_v18  ;;  %v2638_v16 = vpop.f32.mrb[35].mxu0  ;;  %v7658_v59 = vld [vmem:[#allocation2 + $0xa8] sm:$0xff]  ;;  %3704 = vmatprep.subr.bf16.mxu1 %v6073_v23 }
 0x2f9   : > { %2981 = vst.msk [vmem:[#allocation2 + $0xb8] sm:$0xff] %vm2916_vm1, %v2948_v31  ;;  %v2820_v1 = vadd.f32 %v5283_v61, %v7489_v0  ;;  %v5285_v3 = vadd.f32 %v2638_v16, %v7357_v22  ;;  %5083 = vmatprep.mubr.msk.bf16.mxu1 %vm2916_vm1, %v7658_v59  ;;  %v6079_v22 = vld [vmem:[%s8192_s3 + $0xa4] ss:$8 sps:$4 sm:$0xff]  }
 0x2fa   : > { %v2821_v19 = vadd.f32 %v5284_v52, %v7485_v41  ;;  %3400 = vmatmul.mubr.bf16.gmra.mrb[80].mxu1 %v7621_v14  ;;  %v2883_v11 = vmax.f32 %v2819_v63, 0.0  ;;  %v6083_v52 = vld [vmem:[%s8192_s3 + $0xc0] ss:$8 sps:$4 sm:$0xff]  }
 0x2fb   : > { %v2822_v18 = vadd.f32 %v5285_v3, %v7489_v0  ;;  %3705 = vmatpush1.bf16.msra.mxu1 %v6071_v28  ;;  %v2884_v43 = vmax.f32 %v2820_v1, 0.0 }
 0x2fc   : > { %v2885_v37 = vmax.f32 %v2821_v19, 0.0  ;;  %3706 = vmatprep.subr.bf16.mxu1 %v6076_v27 }
 0x2fd   : > { %v2886_v50 = vmax.f32 %v2822_v18, 0.0  ;;  %v2642_v56 = vpop.f32.mrb[36].mxu0 }
 0x2fe   : > { %v7677_v54 = vpack.c.bf16 %v2885_v37, %v2883_v11  ;;  %v5286_v60 = vadd.f32 %v2642_v56, %v7370_v33  ;;  %v2644_v58 = vpop.f32.mrb[37].mxu0  ;;  %v6082_v33 = vld [vmem:[%s8192_s3 + $0xb4] ss:$8 sps:$4 sm:$0xff]  }
 0x2ff   : > { %v2950_v39 = vpack.c.bf16 %v2886_v50, %v2884_v43  ;;  %v5287_v9 = vadd.f32 %v2644_v58, %v7373_v35  ;;  %v2646_v47 = vpop.f32.mrb[38].mxu0  ;;  %3707 = vmatpush1.bf16.msra.mxu1 %v6074_v55  ;;  %v6086_v55 = vld [vmem:[%s8192_s3 + $0xd0] ss:$8 sps:$4 sm:$0xff]  }
 0x300   : > { %v2823_v49 = vadd.f32 %v5286_v60, %v7485_v41  ;;  %v5288_v30 = vadd.f32 %v2646_v47, %v7375_v25  ;;  %v2648_v48 = vpop.f32.mrb[39].mxu0  ;;  %v7686_v53 = vld [vmem:[#allocation2 + $0xb8] sm:$0xff]  ;;  %3708 = vmatprep.subr.bf16.mxu1 %v6079_v22 }
 0x301   : > { %2983 = vst.msk [vmem:[#allocation2 + $0xc8] sm:$0xff] %vm2916_vm1, %v2950_v39  ;;  %v2824_v35 = vadd.f32 %v5287_v9, %v7489_v0  ;;  %v5289_v24 = vadd.f32 %v2648_v48, %v7380_v57  ;;  %5084 = vmatprep.mubr.msk.bf16.mxu1 %vm2916_vm1, %v7686_v53  ;;  %v6085_v57 = vld [vmem:[%s8192_s3 + $0xc4] ss:$8 sps:$4 sm:$0xff]  }
 0x302   : > { %v2825_v38 = vadd.f32 %v5288_v30, %v7485_v41  ;;  %3410 = vmatmul.mubr.bf16.gmra.mrb[84].mxu1 %v7649_v4  ;;  %v2887_v23 = vmax.f32 %v2823_v49, 0.0  ;;  %v8251_v49 = vld [vmem:[#allocation3_spill] sm:$0xff] }
 0x303   : > { %v2826_v25 = vadd.f32 %v5289_v24, %v7489_v0  ;;  %3709 = vmatpush1.bf16.msra.mxu1 %v6077_v21  ;;  %v2888_v45 = vmax.f32 %v2824_v35, 0.0  ;;  %v8252_v24 = vld [vmem:[#allocation4_spill] sm:$0xff] }
 0x304   : > { %v2889_v10 = vmax.f32 %v2825_v38, 0.0  ;;  %3710 = vmatprep.subr.bf16.mxu1 %v6082_v33 }
 0x305   : > { %v2890_v32 = vmax.f32 %v2826_v25, 0.0  ;;  %v2652_v29 = vpop.f32.mrb[40].mxu0 }
 0x306   : > { %v7705_v44 = vpack.c.bf16 %v2889_v10, %v2887_v23  ;;  %v5290_v31 = vadd.f32 %v2652_v29, %v7409_v15  ;;  %v2654_v61 = vpop.f32.mrb[41].mxu0  ;;  %v6088_v15 = vld [vmem:[%s8192_s3 + $0xd4] ss:$8 sps:$4 sm:$0xff]  }
 0x307   : > { %v2952_v40 = vpack.c.bf16 %v2890_v32, %v2888_v45  ;;  %v5291_v28 = vadd.f32 %v2654_v61, %v7412_v2  ;;  %v2656_v63 = vpop.f32.mrb[42].mxu0  ;;  %3711 = vmatpush1.bf16.msra.mxu1 %v6080_v13  ;;  %v8253_v32 = vld [vmem:[#allocation5_spill] sm:$0xff] }
 0x308   : > { %v2827_v16 = vadd.f32 %v5290_v31, %v7485_v41  ;;  %v5292_v27 = vadd.f32 %v2656_v63, %v7414_v36  ;;  %v2658_v1 = vpop.f32.mrb[43].mxu0  ;;  %v7714_v3 = vld [vmem:[#allocation2 + $0xc8] sm:$0xff]  ;;  %3712 = vmatprep.subr.bf16.mxu1 %v6085_v57 }
 0x309   : > { %2985 = vst.msk [vmem:[#allocation2 + $0xd8] sm:$0xff] %vm2916_vm1, %v2952_v40  ;;  %v2828_v2 = vadd.f32 %v5291_v28, %v7489_v0  ;;  %v5293_v19 = vadd.f32 %v2658_v1, %v7419_v6  ;;  %5085 = vmatprep.mubr.msk.bf16.mxu1 %vm2916_vm1, %v7714_v3  ;;  %v6091_v6 = vld [vmem:[%s8192_s3 + $0x1c4] ss:$8 sps:$4 sm:$0xff]   ;;  %v8254_v40 = vld [vmem:[#allocation6_spill] sm:$0xff] }
 0x30a   : > { %v2829_v18 = vadd.f32 %v5292_v27, %v7485_v41  ;;  %3420 = vmatmul.mubr.bf16.gmra.mrb[88].mxu1 %v7677_v54  ;;  %v2891_v11 = vmax.f32 %v2827_v16, 0.0  ;;  %v8255_v16 = vld [vmem:[#allocation7_spill] sm:$0xff] }
 0x30b   : > { %v2830_v36 = vadd.f32 %v5293_v19, %v7489_v0  ;;  %3713 = vmatpush1.bf16.msra.mxu1 %v6083_v52  ;;  %v2892_v22 = vmax.f32 %v2828_v2, 0.0  ;;  %v8256_v19 = vld [vmem:[#allocation8_spill] sm:$0xff] }
 0x30c   : > { %v2893_v37 = vmax.f32 %v2829_v18, 0.0  ;;  %3714 = vmatprep.subr.bf16.mxu1 %v6088_v15 }
 0x30d   : > { %v2894_v43 = vmax.f32 %v2830_v36, 0.0  ;;  %v2662_v50 = vpop.f32.mrb[44].mxu0 }
 0x30e   : > { %v7733_v56 = vpack.c.bf16 %v2893_v37, %v2891_v11  ;;  %v5294_v60 = vadd.f32 %v2662_v50, %v7426_v8  ;;  %v2664_v58 = vpop.f32.mrb[45].mxu0 }
 0x30f   : > { %v2954_v39 = vpack.c.bf16 %v2894_v43, %v2892_v22  ;;  %v5295_v9 = vadd.f32 %v2664_v58, %v7429_v62  ;;  %v2666_v47 = vpop.f32.mrb[46].mxu0  ;;  %3715 = vmatpush1.bf16.msra.mxu1 %v6086_v55 }
 0x310   : > { %v2831_v21 = vadd.f32 %v5294_v60, %v7485_v41  ;;  %v5296_v30 = vadd.f32 %v2666_v47, %v8251_v49  ;;  %v2668_v48 = vpop.f32.mrb[47].mxu0  ;;  %v7739_v33 = vld [vmem:[#allocation2 + $0xd8] sm:$0xff]  ;;  %4131 = vmatprep.subr.bf16.mxu1 %v6091_v6  ;;  %v8257_v60 = vld [vmem:[#allocation9_spill] sm:$0xff] }
 0x311   : > { %2987 = vst.msk [vmem:[#allocation2 + $0xe8] sm:$0xff] %vm2916_vm1, %v2954_v39  ;;  %v2832_v35 = vadd.f32 %v5295_v9, %v7489_v0  ;;  %v5297_v8 = vadd.f32 %v2668_v48, %v8252_v24  ;;  %5086 = vmatprep.mubr.msk.bf16.mxu1 %vm2916_vm1, %v7739_v33  ;;  %v8258_v47 = vld [vmem:[#allocation10_spill] sm:$0xff]  ;;  %v8259_v48 = vld [vmem:[#allocation11_spill] sm:$0xff] }
 0x312   : > { %v2833_v62 = vadd.f32 %v5296_v30, %v7485_v41  ;;  %3430 = vmatmul.mubr.bf16.gmra.mrb[92].mxu1 %v7705_v44  ;;  %v2895_v25 = vmax.f32 %v2831_v21, 0.0 }
 0x313   : > { %v2834_v38 = vadd.f32 %v5297_v8, %v7489_v0  ;;  %v2896_v23 = vmax.f32 %v2832_v35, 0.0 }
 0x314   : > { %v2897_v13 = vmax.f32 %v2833_v62, 0.0 }
 0x315   : > { %v2898_v10 = vmax.f32 %v2834_v38, 0.0  ;;  %v2672_v57 = vpop.f32.mrb[48].mxu0  ;;  %v8260_v38 = vld [vmem:[#allocation12_spill] sm:$0xff] }
 0x316   : > { %v7749_v45 = vpack.c.bf16 %v2897_v13, %v2895_v25  ;;  %v5298_v29 = vadd.f32 %v2672_v57, %v8253_v32  ;;  %v2674_v31 = vpop.f32.mrb[49].mxu0 }
 0x317   : > { %v2956_v61 = vpack.c.bf16 %v2898_v10, %v2896_v23  ;;  %v5299_v28 = vadd.f32 %v2674_v31, %v8254_v40  ;;  %v2676_v63 = vpop.f32.mrb[50].mxu0  ;;  %v8261_v40 = vld [vmem:[#allocation13_spill] sm:$0xff] }
 0x318   : > { %v2835_v52 = vadd.f32 %v5298_v29, %v7485_v41  ;;  %v5300_v27 = vadd.f32 %v2676_v63, %v8255_v16  ;;  %v2678_v1 = vpop.f32.mrb[51].mxu0  ;;  %v7755_v15 = vld [vmem:[#allocation2 + $0xe8] sm:$0xff]  ;;  %v8262_v16 = vld [vmem:[#allocation14_spill] sm:$0xff] }
 0x319   : > { %2989 = vst.msk [vmem:[#allocation2 + $0xf8] sm:$0xff] %vm2916_vm1, %v2956_v61  ;;  %v2836_v2 = vadd.f32 %v5299_v28, %v7489_v0  ;;  %v5301_v18 = vadd.f32 %v2678_v1, %v8256_v19  ;;  %5087 = vmatprep.mubr.msk.bf16.mxu1 %vm2916_vm1, %v7755_v15  ;;  %v8263_v19 = vld [vmem:[#allocation15_spill] sm:$0xff] }
 0x31a   : > { %v2837_v36 = vadd.f32 %v5300_v27, %v7485_v41  ;;  %3440 = vmatmul.mubr.bf16.gmra.mrb[96].mxu1 %v7733_v56  ;;  %v2899_v11 = vmax.f32 %v2835_v52, 0.0 }
 0x31b   : > { %v2838_v55 = vadd.f32 %v5301_v18, %v7489_v0  ;;  %v2900_v6 = vmax.f32 %v2836_v2, 0.0 }
 0x31c   : > { %v2901_v37 = vmax.f32 %v2837_v36, 0.0 }
 0x31d   : > { %v2902_v22 = vmax.f32 %v2838_v55, 0.0  ;;  %v2682_v43 = vpop.f32.mrb[52].mxu0 }
 0x31e   : > { %v7765_v50 = vpack.c.bf16 %v2901_v37, %v2899_v11  ;;  %v5302_v58 = vadd.f32 %v2682_v43, %v8257_v60  ;;  %v2684_v39 = vpop.f32.mrb[53].mxu0  ;;  %v8264_v37 = vld [vmem:[#allocation16_spill] sm:$0xff] }
 0x31f   : > { %v2958_v9 = vpack.c.bf16 %v2902_v22, %v2900_v6  ;;  %v5303_v21 = vadd.f32 %v2684_v39, %v8258_v47  ;;  %v2686_v49 = vpop.f32.mrb[54].mxu0 }
 0x320   : > { %v2839_v30 = vadd.f32 %v5302_v58, %v7485_v41  ;;  %v5304_v35 = vadd.f32 %v2686_v49, %v8259_v48  ;;  %v2688_v24 = vpop.f32.mrb[55].mxu0  ;;  %v7771_v8 = vld [vmem:[#allocation2 + $0xf8] sm:$0xff]  ;;  %v8265_v49 = vld [vmem:[#allocation17_spill] sm:$0xff] }
 0x321   : > { %2991 = vst.msk [vmem:[#allocation2 + $0x108] sm:$0xff] %vm2916_vm1, %v2958_v9  ;;  %v2840_v62 = vadd.f32 %v5303_v21, %v7489_v0  ;;  %v5305_v25 = vadd.f32 %v2688_v24, %v8260_v38  ;;  %5088 = vmatprep.mubr.msk.bf16.mxu1 %vm2916_vm1, %v7771_v8  ;;  %v8266_v24 = vld [vmem:[#allocation18_spill] sm:$0xff] }
 0x322   : > { %v2841_v13 = vadd.f32 %v5304_v35, %v7485_v41  ;;  %3450 = vmatmul.mubr.bf16.gmra.mrb[100].mxu1 %v7749_v45  ;;  %v2903_v10 = vmax.f32 %v2839_v30, 0.0 }
 0x323   : > { %v2842_v23 = vadd.f32 %v5305_v25, %v7489_v0  ;;  %v2904_v32 = vmax.f32 %v2840_v62, 0.0 }
 0x324   : > { %v2905_v57 = vmax.f32 %v2841_v13, 0.0  ;;  %v8267_v13 = vld [vmem:[#allocation19_spill] sm:$0xff] }
 0x325   : > { %v2906_v29 = vmax.f32 %v2842_v23, 0.0  ;;  %v2692_v31 = vpop.f32.mrb[56].mxu0 }
 0x326   : > { %v7781_v61 = vpack.c.bf16 %v2905_v57, %v2903_v10  ;;  %v5306_v28 = vadd.f32 %v2692_v31, %v8261_v40  ;;  %v2694_v63 = vpop.f32.mrb[57].mxu0 }
 0x327   : > { %v2960_v52 = vpack.c.bf16 %v2906_v29, %v2904_v32  ;;  %v5307_v27 = vadd.f32 %v2694_v63, %v8262_v16  ;;  %v2696_v1 = vpop.f32.mrb[58].mxu0  ;;  %v8268_v29 = vld [vmem:[#allocation20_spill] sm:$0xff] }
 0x328   : > { %v2843_v2 = vadd.f32 %v5306_v28, %v7485_v41  ;;  %v5308_v18 = vadd.f32 %v2696_v1, %v8263_v19  ;;  %v2698_v36 = vpop.f32.mrb[59].mxu0  ;;  %v7787_v55 = vld [vmem:[#allocation2 + $0x108] sm:$0xff] }
 0x329   : > { %2993 = vst.msk [vmem:[#allocation2 + $0x118] sm:$0xff] %vm2916_vm1, %v2960_v52  ;;  %v2844_v11 = vadd.f32 %v5307_v27, %v7489_v0  ;;  %v5309_v6 = vadd.f32 %v2698_v36, %v8264_v37  ;;  %5089 = vmatprep.mubr.msk.bf16.mxu1 %vm2916_vm1, %v7787_v55  ;;  %v3001_v36 = vld [vmem:[#allocation2 + $0x18] sm:$0xff]  ;;  %v7833_v37 = vld [vmem:[#allocation2] sm:$0xff] }
 0x32a   : > { %v2845_v22 = vadd.f32 %v5308_v18, %v7485_v41  ;;  %3460 = vmatmul.mubr.bf16.gmra.mrb[104].mxu1 %v7765_v50  ;;  %v2907_v60 = vmax.f32 %v2843_v2, 0.0  ;;  %v2999_v18 = vld [vmem:[#allocation2 + $0x8] sm:$0xff] }
 0x32b   : > { %v2846_v43 = vadd.f32 %v5309_v6, %v7489_v0  ;;  %v2908_v39 = vmax.f32 %v2844_v11, 0.0  ;;  %v6094_v11 = vld [vmem:[%s8192_s3 + $0x1d4] ss:$8 sps:$4 sm:$0xff]   ;;  %v6092_v6 = vld [vmem:[%s8192_s3 + $0x1d0] ss:$8 sps:$4 sm:$0xff]  }
 0x32c   : > { %v2909_v58 = vmax.f32 %v2845_v22, 0.0  ;;  %v6097_v22 = vld [vmem:[%s8192_s3 + $0x1e4] ss:$8 sps:$4 sm:$0xff]  }
 0x32d   : > { %v2910_v9 = vmax.f32 %v2846_v43, 0.0  ;;  %v2702_v47 = vpop.f32.mrb[60].mxu0  ;;  %v6095_v43 = vld [vmem:[%s8192_s3 + $0x1e0] ss:$8 sps:$4 sm:$0xff]  }
 0x32e   : > { %v7797_v21 = vpack.c.bf16 %v2909_v58, %v2907_v60  ;;  %v5310_v30 = vadd.f32 %v2702_v47, %v8265_v49  ;;  %v2704_v48 = vpop.f32.mrb[61].mxu0  ;;  %v3003_v60 = vld [vmem:[#allocation2 + $0x28] sm:$0xff]  ;;  %v6100_v58 = vld [vmem:[%s8192_s3 + $0x1f4] ss:$8 sps:$4 sm:$0xff]  }
 0x32f   : > { %v2962_v35 = vpack.c.bf16 %v2910_v9, %v2908_v39  ;;  %v5311_v62 = vadd.f32 %v2704_v48, %v8266_v24  ;;  %v2706_v38 = vpop.f32.mrb[62].mxu0  ;;  %v6098_v39 = vld [vmem:[%s8192_s3 + $0x1f0] ss:$8 sps:$4 sm:$0xff]   ;;  %v6103_v9 = vld [vmem:[%s8192_s3 + $0x204] ss:$8 sps:$4 sm:$0xff]  }
 0x330   : > { %v2847_v25 = vadd.f32 %v5310_v30, %v7485_v41  ;;  %v5312_v23 = vadd.f32 %v2706_v38, %v8267_v13  ;;  %v2708_v10 = vpop.f32.mrb[63].mxu0  ;;  %v7803_v57 = vld [vmem:[#allocation2 + $0x118] sm:$0xff]  ;;  %v6101_v47 = vld [vmem:[%s8192_s3 + $0x200] ss:$8 sps:$4 sm:$0xff]  }
 0x331   : > { %2995 = vst.msk [vmem:[#allocation2 + $0x128] sm:$0xff] %vm2916_vm1, %v2962_v35  ;;  %v2848_v32 = vadd.f32 %v5311_v62, %v7489_v0  ;;  %v5313_v31 = vadd.f32 %v2708_v10, %v8268_v29  ;;  %5090 = vmatprep.mubr.msk.bf16.mxu1 %vm2916_vm1, %v7803_v57  ;;  %v3005_v49 = vld [vmem:[#allocation2 + $0x38] sm:$0xff]  ;;  %v6109_v35 = vld [vmem:[%s8192_s3 + $0x224] ss:$8 sps:$4 sm:$0xff]   ;;  %v6107_v24 = vld [vmem:[%s8192_s3 + $0x220] ss:$8 sps:$4 sm:$0xff]  }
 0x332   : > { %v2849_v40 = vadd.f32 %v5312_v23, %v7485_v41  ;;  %3470 = vmatmul.mubr.bf16.gmra.mrb[108].mxu1 %v7781_v61  ;;  %v2911_v63 = vmax.f32 %v2847_v25, 0.0  ;;  %v6106_v30 = vld [vmem:[%s8192_s3 + $0x214] ss:$8 sps:$4 sm:$0xff]   ;;  %v6104_v48 = vld [vmem:[%s8192_s3 + $0x210] ss:$8 sps:$4 sm:$0xff]   ;;  %v3006_v23 = vld [vmem:[#allocation2 + $0x40] sm:$0xff] }
 0x333   : > { %v2850_v28 = vadd.f32 %v5313_v31, %v7489_v0  ;;  %v2912_v16 = vmax.f32 %v2848_v32, 0.0  ;;  %v6089_v0 = vld [vmem:[%s8192_s3 + $0x1c0] ss:$8 sps:$4 sm:$0xff]   ;;  %v6112_v62 = vld [vmem:[%s8192_s3 + $0x234] ss:$8 sps:$4 sm:$0xff]  }
 0x334   : > { %v2913_v52 = vmax.f32 %v2849_v40, 0.0  ;;  %v6110_v38 = vld [vmem:[%s8192_s3 + $0x230] ss:$8 sps:$4 sm:$0xff]   ;;  %v6115_v25 = vld [vmem:[%s8192_s3 + $0x244] ss:$8 sps:$4 sm:$0xff]  }
 0x335   : > { %v2914_v27 = vmax.f32 %v2850_v28, 0.0  ;;  %v6113_v13 = vld [vmem:[%s8192_s3 + $0x240] ss:$8 sps:$4 sm:$0xff]   ;;  %v6116_v10 = vld [vmem:[%s8192_s3 + $0x250] ss:$8 sps:$4 sm:$0xff]  }
 0x336   : > { %v7813_v1 = vpack.c.bf16 %v2913_v52, %v2911_v63  ;;  %v6121_v32 = vld [vmem:[%s8192_s3 + $0x264] ss:$8 sps:$4 sm:$0xff]   ;;  %v6119_v29 = vld [vmem:[%s8192_s3 + $0x260] ss:$8 sps:$4 sm:$0xff]   ;;  %v3008_v31 = vld [vmem:[#allocation2 + $0x50] sm:$0xff] }
 0x337   : > { %v2964_v2 = vpack.c.bf16 %v2914_v27, %v2912_v16  ;;  %v6122_v40 = vld [vmem:[%s8192_s3 + $0x270] ss:$8 sps:$4 sm:$0xff]   ;;  %v6127_v28 = vld [vmem:[%s8192_s3 + $0x284] ss:$8 sps:$4 sm:$0xff]   ;;  %v6125_v63 = vld [vmem:[%s8192_s3 + $0x280] ss:$8 sps:$4 sm:$0xff]  }
 0x338   : > { %v7815_v19 = vld [vmem:[#allocation2 + $0x128] sm:$0xff]  ;;  %v6128_v52 = vld [vmem:[%s8192_s3 + $0x290] ss:$8 sps:$4 sm:$0xff]  }
 0x339   : > { %2997 = vst.msk [vmem:[#allocation2 + $0x138] sm:$0xff] %vm2916_vm1, %v2964_v2  ;;  %5091 = vmatprep.mubr.msk.bf16.mxu1 %vm2916_vm1, %v7815_v19 }
 0x33a   : > { %3480 = vmatmul.mubr.bf16.gmra.mrb[112].mxu1 %v7797_v21 }
 0x340   : > { %v7821_v41 = vld [vmem:[#allocation2 + $0x138] sm:$0xff] }
 0x341   : > { %5092 = vmatprep.mubr.msk.bf16.mxu1 %vm2916_vm1, %v7821_v41 }
 0x342   : > { %3490 = vmatmul.mubr.bf16.gmra.mrb[116].mxu1 %v7813_v1 }
 0x343   : > { %5121 = vmatprep.mubr.msk.bf16.mxu1 %vm2916_vm1, %v2999_v18 }
 0x34a   : > { %3721 = vmatmul.mubr.bf16.vlgmr.msra.gmra.mrb[120].mxu1 %v7833_v37 }
 0x34b   : > { %4132 = vmatpush1.bf16.msra.mxu1 %v6089_v0  ;;  %5122 = vmatprep.mubr.msk.bf16.mxu1 %vm2916_vm1, %v3001_v36  ;;  %v3882_v0 = vld [vmem:[#allocation2 + $0x80] sm:$0xff] }
 0x34c   : > { %4133 = vmatprep.subr.bf16.mxu1 %v6094_v11 }
 0x34f   : > { %4134 = vmatpush1.bf16.msra.mxu1 %v6092_v6 }
 0x350   : > { %4135 = vmatprep.subr.bf16.mxu1 %v6097_v22 }
 0x352   : > { %3731 = vmatmul.mubr.bf16.gmra.mrb[124].mxu1 %v7833_v37 }
 0x353   : > { %5123 = vmatprep.mubr.msk.bf16.mxu1 %vm2916_vm1, %v3003_v60  ;;  %4136 = vmatpush1.bf16.msra.mxu1 %v6095_v43 }
 0x354   : > { %4137 = vmatprep.subr.bf16.mxu1 %v6100_v58 }
 0x357   : > { %4138 = vmatpush1.bf16.msra.mxu1 %v6098_v39 }
 0x358   : > { %4139 = vmatprep.subr.bf16.mxu1 %v6103_v9 }
 0x35a   : > { %3741 = vmatmul.mubr.bf16.gmra.mrb[64].mxu1 %v7833_v37 }
 0x35b   : > { %5124 = vmatprep.mubr.msk.bf16.mxu1 %vm2916_vm1, %v3005_v49  ;;  %4140 = vmatpush1.bf16.msra.mxu1 %v6101_v47 }
 0x35c   : > { %4141 = vmatprep.subr.bf16.mxu1 %v6106_v30 }
 0x35f   : > { %4142 = vmatpush1.bf16.msra.mxu1 %v6104_v48 }
 0x360   : > { %4143 = vmatprep.subr.bf16.mxu1 %v6109_v35 }
 0x362   : > { %3751 = vmatmul.mubr.bf16.gmra.mrb[68].mxu1 %v7833_v37 }
 0x363   : > { %5125 = vmatprep.mubr.msk.bf16.mxu1 %vm2916_vm1, %v7512_v12  ;;  %4144 = vmatpush1.bf16.msra.mxu1 %v6107_v24  ;;  %v6118_v12 = vld [vmem:[%s8192_s3 + $0x254] ss:$8 sps:$4 sm:$0xff]  }
 0x364   : > { %4145 = vmatprep.subr.bf16.mxu1 %v6112_v62 }
 0x367   : > { %4146 = vmatpush1.bf16.msra.mxu1 %v6110_v38 }
 0x368   : > { %4147 = vmatprep.subr.bf16.mxu1 %v6115_v25 }
 0x36a   : > { %3761 = vmatmul.mubr.bf16.gmra.mrb[72].mxu1 %v3006_v23 }
 0x36b   : > { %5126 = vmatprep.mubr.msk.bf16.mxu1 %vm2916_vm1, %v7527_v5  ;;  %4148 = vmatpush1.bf16.msra.mxu1 %v6113_v13  ;;  %v6124_v5 = vld [vmem:[%s8192_s3 + $0x274] ss:$8 sps:$4 sm:$0xff]  }
 0x36c   : > { %4149 = vmatprep.subr.bf16.mxu1 %v6118_v12 }
 0x36f   : > { %4150 = vmatpush1.bf16.msra.mxu1 %v6116_v10 }
 0x370   : > { %4151 = vmatprep.subr.bf16.mxu1 %v6121_v32 }
 0x372   : > { %3771 = vmatmul.mubr.bf16.gmra.mrb[76].mxu1 %v3008_v31 }
 0x373   : > { %5127 = vmatprep.mubr.msk.bf16.mxu1 %vm2916_vm1, %v7545_v20  ;;  %4152 = vmatpush1.bf16.msra.mxu1 %v6119_v29  ;;  %v6130_v20 = vld [vmem:[%s8192_s3 + $0x294] ss:$8 sps:$4 sm:$0xff]  }
 0x374   : > { %4153 = vmatprep.subr.bf16.mxu1 %v6124_v5 }
 0x377   : > { %4154 = vmatpush1.bf16.msra.mxu1 %v6122_v40 }
 0x378   : > { %4155 = vmatprep.subr.bf16.mxu1 %v6127_v28 }
 0x37a   : > { %3781 = vmatmul.mubr.bf16.gmra.mrb[80].mxu1 %v7521_v7 }
 0x37b   : > { %5128 = vmatprep.mubr.msk.bf16.mxu1 %vm2916_vm1, %v7574_v46  ;;  %4156 = vmatpush1.bf16.msra.mxu1 %v6125_v63 }
 0x37c   : > { %4157 = vmatprep.subr.bf16.mxu1 %v6130_v20 }
 0x37f   : > { %4158 = vmatpush1.bf16.msra.mxu1 %v6128_v52 }
 0x382   : > { %3791 = vmatmul.mubr.bf16.gmra.mrb[84].mxu1 %v7536_v26 }
 0x383   : > { %5129 = vmatprep.mubr.msk.bf16.mxu1 %vm2916_vm1, %v7602_v34 }
 0x38a   : > { %3801 = vmatmul.mubr.bf16.gmra.mrb[88].mxu1 %v7564_v51 }
 0x38b   : > { %5130 = vmatprep.mubr.msk.bf16.mxu1 %vm2916_vm1, %v7630_v17 }
 0x392   : > { %3811 = vmatmul.mubr.bf16.gmra.mrb[92].mxu1 %v7593_v42 }
 0x393   : > { %5131 = vmatprep.mubr.msk.bf16.mxu1 %vm2916_vm1, %v7658_v59 }
 0x39a   : > { %3821 = vmatmul.mubr.bf16.gmra.mrb[96].mxu1 %v7621_v14 }
 0x39b   : > { %5132 = vmatprep.mubr.msk.bf16.mxu1 %vm2916_vm1, %v7686_v53 }
 0x39d   : > { %v3341_v7 = vpop.f32.mrb[64].mxu0 }
 0x39e   : > { %v3343_v26 = vpop.f32.mrb[65].mxu0 }
 0x39f   : > { %v3345_v46 = vpop.f32.mrb[66].mxu0 }
 0x3a0   : > { %v7938_v16 = vpop.f32.mrb[67].mxu0 }
 0x3a2   : > { %3831 = vmatmul.mubr.bf16.gmra.mrb[100].mxu1 %v7649_v4 }
 0x3a3   : > { %5133 = vmatprep.mubr.msk.bf16.mxu1 %vm2916_vm1, %v7714_v3 }
 0x3a5   : > { %v7943_v51 = vpop.f32.mrb[68].mxu0 }
 0x3a6   : > { %v7945_v27 = vpop.f32.mrb[69].mxu0 }
 0x3a7   : > { %v7947_v2 = vpop.f32.mrb[70].mxu0 }
 0x3a8   : > { %v7949_v18 = vpop.f32.mrb[71].mxu0 }
 0x3aa   : > { %3841 = vmatmul.mubr.bf16.gmra.mrb[104].mxu1 %v7677_v54 }
 0x3ab   : > { %5134 = vmatprep.mubr.msk.bf16.mxu1 %vm2916_vm1, %v7739_v33 }
 0x3b2   : > { %3851 = vmatmul.mubr.bf16.gmra.mrb[108].mxu1 %v7705_v44 }
 0x3b3   : > { %5135 = vmatprep.mubr.msk.bf16.mxu1 %vm2916_vm1, %v7755_v15 }
 0x3ba   : > { %3861 = vmatmul.mubr.bf16.gmra.mrb[112].mxu1 %v7733_v56 }
 0x3bb   : > { %5136 = vmatprep.mubr.msk.bf16.mxu1 %vm2916_vm1, %v7771_v8 }
 0x3c2   : > { %3871 = vmatmul.mubr.bf16.gmra.mrb[116].mxu1 %v7749_v45 }
 0x3c3   : > { %5193 = vmatprep.mubr.msk.bf16.mxu1 %vm2916_vm1, %v7602_v34  ;;  %v3909_v34 = vld [vmem:[#allocation2 + $0x158] sm:$0xff] }
 0x3ca   : > { %4164 = vmatmul.mubr.bf16.vlgmr.msra.gmra.mrb[120].mxu1 %v3882_v0 }
 0x3cb   : > { %5194 = vmatprep.mubr.msk.bf16.mxu1 %vm2916_vm1, %v7630_v17  ;;  %v3913_v17 = vld [vmem:[#allocation2 + $0x178] sm:$0xff] }
 0x3d2   : > { %4174 = vmatmul.mubr.bf16.gmra.mrb[124].mxu1 %v7593_v42  ;;  %v3907_v42 = vld [vmem:[#allocation2 + $0x148] sm:$0xff] }
 0x3d3   : > { %5195 = vmatprep.mubr.msk.bf16.mxu1 %vm2916_vm1, %v7658_v59  ;;  %v8269_v59 = vld [vmem:[#allocation21_spill] sm:$0xff] }
 0x3da   : > { %4184 = vmatmul.mubr.bf16.gmra.mrb[64].mxu1 %v7621_v14  ;;  %v3911_v14 = vld [vmem:[#allocation2 + $0x168] sm:$0xff] }
 0x3db   : > { %5196 = vmatprep.mubr.msk.bf16.mxu1 %vm2916_vm1, %v7686_v53 }
 0x3e2   : > { %4194 = vmatmul.mubr.bf16.gmra.mrb[68].mxu1 %v7649_v4  ;;  %v4388_v4 = vld [vmem:[%s8193_s4] sm:$0x3] }
 0x3e3   : > { %5197 = vmatprep.mubr.msk.bf16.mxu1 %vm2916_vm1, %v7714_v3  ;;  %v8271_v3 = vsub.s32 1, %v8269_v59 }
 0x3ea   : > { %4204 = vmatmul.mubr.bf16.gmra.mrb[72].mxu1 %v7677_v54  ;;  %v8270_v54 = vsub.s32 0, %v8269_v59 }
 0x3eb   : > { %5198 = vmatprep.mubr.msk.bf16.mxu1 %vm2916_vm1, %v7739_v33 }
 0x3ec   : > { %v8009_v53 = vrot.slane %v4388_v4, %v8270_v54 }
 0x3f2   : > { %4214 = vmatmul.mubr.bf16.gmra.mrb[76].mxu1 %v7705_v44 }
 0x3f3   : > { %5199 = vmatprep.mubr.msk.bf16.mxu1 %vm2916_vm1, %v7755_v15 }
 0x3fa   : > { %4224 = vmatmul.mubr.bf16.gmra.mrb[80].mxu1 %v7733_v56  ;;  %v8013_v56 = vrot.slane %v4388_v4, %v8271_v3 }
 0x3fb   : > { %5200 = vmatprep.mubr.msk.bf16.mxu1 %vm2916_vm1, %v7771_v8 }
 0x402   : > { %4234 = vmatmul.mubr.bf16.gmra.mrb[84].mxu1 %v7749_v45 }
 0x403   : > { %5201 = vmatprep.mubr.msk.bf16.mxu1 %vm2916_vm1, %v7787_v55 }
 0x40a   : > { %4244 = vmatmul.mubr.bf16.gmra.mrb[88].mxu1 %v7765_v50 }
 0x40b   : > { %5202 = vmatprep.mubr.msk.bf16.mxu1 %vm2916_vm1, %v7803_v57 }
 0x412   : > { %4254 = vmatmul.mubr.bf16.gmra.mrb[92].mxu1 %v7781_v61 }
 0x413   : > { %5203 = vmatprep.mubr.msk.bf16.mxu1 %vm2916_vm1, %v7815_v19 }
 0x41a   : > { %4264 = vmatmul.mubr.bf16.gmra.mrb[96].mxu1 %v7797_v21 }
 0x41b   : > { %5204 = vmatprep.mubr.msk.bf16.mxu1 %vm2916_vm1, %v7821_v41 }
 0x422   : > { %4274 = vmatmul.mubr.bf16.gmra.mrb[100].mxu1 %v7813_v1 }
 0x423   : > { %5205 = vmatprep.mubr.msk.bf16.mxu1 %vm2916_vm1, %v3907_v42 }
 0x42a   : > { %4284 = vmatmul.mubr.bf16.gmra.mrb[104].mxu1 %v7833_v37 }
 0x42b   : > { %5206 = vmatprep.mubr.msk.bf16.mxu1 %vm2916_vm1, %v3909_v34 }
 0x432   : > { %4294 = vmatmul.mubr.bf16.gmra.mrb[108].mxu1 %v7833_v37 }
 0x433   : > { %5207 = vmatprep.mubr.msk.bf16.mxu1 %vm2916_vm1, %v3911_v14 }
 0x43a   : > { %4304 = vmatmul.mubr.bf16.gmra.mrb[112].mxu1 %v7833_v37 }
 0x43b   : > { %5208 = vmatprep.mubr.msk.bf16.mxu1 %vm2916_vm1, %v3913_v17 }
 0x442   : > { %4314 = vmatmul.mubr.bf16.gmra.mrb[116].mxu1 %v7833_v37 }
 0x49d   : > { %v4165_v44 = vpop.f32.mrb[120].mxu1 }
 0x49e   : > { %v5314_v33 = vadd.f32 %v4165_v44, %v3341_v7  ;;  %v4167_v45 = vpop.f32.mrb[121].mxu1 }
 0x49f   : > { %v5315_v15 = vadd.f32 %v4167_v45, %v3343_v26  ;;  %v4169_v50 = vpop.f32.mrb[122].mxu1 }
 0x4a0   : > { %v4400_v8 = vadd.f32 %v5314_v33, %v8009_v53  ;;  %v5316_v61 = vadd.f32 %v4169_v50, %v3345_v46  ;;  %v4171_v55 = vpop.f32.mrb[123].mxu1 }
 0x4a1   : > { %v4401_v21 = vadd.f32 %v5315_v15, %v8013_v56  ;;  %v5317_v57 = vadd.f32 %v4171_v55, %v7938_v16 }
 0x4a2   : > { %v4464_v1 = vmax.f32 %v4400_v8, 0.0  ;;  %v4402_v19 = vadd.f32 %v5316_v61, %v8009_v53 }
 0x4a3   : > { %v4465_v41 = vmax.f32 %v4401_v21, 0.0  ;;  %v4403_v36 = vadd.f32 %v5317_v57, %v8013_v56 }
 0x4a4   : > { %4528 = vst [vmem:[%s8020_s24] sm:$0xff] %v4464_v1  ;;  %v4466_v11 = vmax.f32 %v4402_v19, 0.0 }
 0x4a5   : > { %4529 = vst.msk [vmem:[%s8020_s24 + $0x8] sm:$0xff] %vm2916_vm1, %v4465_v41  ;;  %v4467_v37 = vmax.f32 %v4403_v36, 0.0  ;;  %v4175_v6 = vpop.f32.mrb[124].mxu1 }
 0x4a6   : > { %4530 = vst [vmem:[%s8020_s24 + $0x10] sm:$0xff] %v4466_v11  ;;  %v5318_v22 = vadd.f32 %v4175_v6, %v7943_v51  ;;  %v4177_v43 = vpop.f32.mrb[125].mxu1 }
 0x4a7   : > { %4531 = vst.msk [vmem:[%s8020_s24 + $0x18] sm:$0xff] %vm2916_vm1, %v4467_v37  ;;  %v5319_v60 = vadd.f32 %v4177_v43, %v7945_v27  ;;  %v4179_v58 = vpop.f32.mrb[126].mxu1 }
 0x4a8   : > { %v4404_v39 = vadd.f32 %v5318_v22, %v8009_v53  ;;  %v5320_v9 = vadd.f32 %v4179_v58, %v7947_v2  ;;  %v4181_v47 = vpop.f32.mrb[127].mxu1 }
 0x4a9   : > { %v4405_v49 = vadd.f32 %v5319_v60, %v8013_v56  ;;  %v5321_v30 = vadd.f32 %v4181_v47, %v7949_v18 }
 0x4aa   : > { %v4468_v48 = vmax.f32 %v4404_v39, 0.0  ;;  %v4406_v35 = vadd.f32 %v5320_v9, %v8009_v53 }
 0x4ab   : > { %v4469_v24 = vmax.f32 %v4405_v49, 0.0  ;;  %v4407_v62 = vadd.f32 %v5321_v30, %v8013_v56 }
 0x4ac   : > { %4532 = vst [vmem:[%s8020_s24 + $0x20] sm:$0xff] %v4468_v48  ;;  %v4470_v38 = vmax.f32 %v4406_v35, 0.0 }
 0x4ad   : > { %4533 = vst.msk [vmem:[%s8020_s24 + $0x28] sm:$0xff] %vm2916_vm1, %v4469_v24  ;;  %v4471_v25 = vmax.f32 %v4407_v62, 0.0  ;;  %v4185_v13 = vpop.f32.mrb[64].mxu1 }
 0x4ae   : > { %4534 = vst [vmem:[%s8020_s24 + $0x30] sm:$0xff] %v4470_v38  ;;  %v4408_v12 = vadd.f32 %v8009_v53, %v4185_v13  ;;  %v4187_v23 = vpop.f32.mrb[65].mxu1 }
 0x4af   : > { %4535 = vst.msk [vmem:[%s8020_s24 + $0x38] sm:$0xff] %vm2916_vm1, %v4471_v25  ;;  %v4409_v10 = vadd.f32 %v8013_v56, %v4187_v23  ;;  %v4189_v32 = vpop.f32.mrb[66].mxu1 }
 0x4b0   : > { %v4472_v29 = vmax.f32 %v4408_v12, 0.0  ;;  %v4410_v5 = vadd.f32 %v8009_v53, %v4189_v32  ;;  %v4191_v31 = vpop.f32.mrb[67].mxu1 }
 0x4b1   : > { %v4473_v40 = vmax.f32 %v4409_v10, 0.0  ;;  %v4411_v28 = vadd.f32 %v8013_v56, %v4191_v31 }
 0x4b2   : > { %4536 = vst [vmem:[%s8020_s24 + $0x40] sm:$0xff] %v4472_v29  ;;  %v4474_v63 = vmax.f32 %v4410_v5, 0.0 }
 0x4b3   : > { %4537 = vst.msk [vmem:[%s8020_s24 + $0x48] sm:$0xff] %vm2916_vm1, %v4473_v40  ;;  %v4475_v20 = vmax.f32 %v4411_v28, 0.0 }
 0x4b4   : > { %4538 = vst [vmem:[%s8020_s24 + $0x50] sm:$0xff] %v4474_v63 }
 0x4b5   : > { %4539 = vst.msk [vmem:[%s8020_s24 + $0x58] sm:$0xff] %vm2916_vm1, %v4475_v20  ;;  %v4195_v52 = vpop.f32.mrb[68].mxu1 }
 0x4b6   : > { %v4412_v7 = vadd.f32 %v8009_v53, %v4195_v52  ;;  %v4197_v26 = vpop.f32.mrb[69].mxu1 }
 0x4b7   : > { %v4413_v46 = vadd.f32 %v8013_v56, %v4197_v26  ;;  %v4199_v16 = vpop.f32.mrb[70].mxu1 }
 0x4b8   : > { %v4476_v51 = vmax.f32 %v4412_v7, 0.0  ;;  %v4414_v27 = vadd.f32 %v8009_v53, %v4199_v16  ;;  %v4201_v2 = vpop.f32.mrb[71].mxu1 }
 0x4b9   : > { %v4477_v18 = vmax.f32 %v4413_v46, 0.0  ;;  %v4415_v0 = vadd.f32 %v8013_v56, %v4201_v2 }
 0x4ba   : > { %4540 = vst [vmem:[%s8020_s24 + $0x60] sm:$0xff] %v4476_v51  ;;  %v4478_v42 = vmax.f32 %v4414_v27, 0.0 }
 0x4bb   : > { %4541 = vst.msk [vmem:[%s8020_s24 + $0x68] sm:$0xff] %vm2916_vm1, %v4477_v18  ;;  %v4479_v34 = vmax.f32 %v4415_v0, 0.0 }
 0x4bc   : > { %4542 = vst [vmem:[%s8020_s24 + $0x70] sm:$0xff] %v4478_v42 }
 0x4bd   : > { %4543 = vst.msk [vmem:[%s8020_s24 + $0x78] sm:$0xff] %vm2916_vm1, %v4479_v34  ;;  %v4205_v14 = vpop.f32.mrb[72].mxu1 }
 0x4be   : > { %v4416_v17 = vadd.f32 %v8009_v53, %v4205_v14  ;;  %v4207_v4 = vpop.f32.mrb[73].mxu1 }
 0x4bf   : > { %v4417_v59 = vadd.f32 %v8013_v56, %v4207_v4  ;;  %v4209_v54 = vpop.f32.mrb[74].mxu1 }
 0x4c0   : > { %v4480_v44 = vmax.f32 %v4416_v17, 0.0  ;;  %v4418_v3 = vadd.f32 %v8009_v53, %v4209_v54  ;;  %v4211_v33 = vpop.f32.mrb[75].mxu1 }
 0x4c1   : > { %v4481_v45 = vmax.f32 %v4417_v59, 0.0  ;;  %v4419_v15 = vadd.f32 %v8013_v56, %v4211_v33 }
 0x4c2   : > { %4544 = vst [vmem:[%s8020_s24 + $0x80] sm:$0xff] %v4480_v44  ;;  %v4482_v50 = vmax.f32 %v4418_v3, 0.0 }
 0x4c3   : > { %4545 = vst.msk [vmem:[%s8020_s24 + $0x88] sm:$0xff] %vm2916_vm1, %v4481_v45  ;;  %v4483_v8 = vmax.f32 %v4419_v15, 0.0 }
 0x4c4   : > { %4546 = vst [vmem:[%s8020_s24 + $0x90] sm:$0xff] %v4482_v50 }
 0x4c5   : > { %4547 = vst.msk [vmem:[%s8020_s24 + $0x98] sm:$0xff] %vm2916_vm1, %v4483_v8  ;;  %v4215_v61 = vpop.f32.mrb[76].mxu1 }
 0x4c6   : > { %v4420_v55 = vadd.f32 %v8009_v53, %v4215_v61  ;;  %v4217_v21 = vpop.f32.mrb[77].mxu1 }
 0x4c7   : > { %v4421_v57 = vadd.f32 %v8013_v56, %v4217_v21  ;;  %v4219_v1 = vpop.f32.mrb[78].mxu1 }
 0x4c8   : > { %v4484_v19 = vmax.f32 %v4420_v55, 0.0  ;;  %v4422_v41 = vadd.f32 %v8009_v53, %v4219_v1  ;;  %v4221_v36 = vpop.f32.mrb[79].mxu1 }
 0x4c9   : > { %v4485_v11 = vmax.f32 %v4421_v57, 0.0  ;;  %v4423_v37 = vadd.f32 %v8013_v56, %v4221_v36 }
 0x4ca   : > { %4548 = vst [vmem:[%s8020_s24 + $0xa0] sm:$0xff] %v4484_v19  ;;  %v4486_v6 = vmax.f32 %v4422_v41, 0.0 }
 0x4cb   : > { %4549 = vst.msk [vmem:[%s8020_s24 + $0xa8] sm:$0xff] %vm2916_vm1, %v4485_v11  ;;  %v4487_v22 = vmax.f32 %v4423_v37, 0.0 }
 0x4cc   : > { %4550 = vst [vmem:[%s8020_s24 + $0xb0] sm:$0xff] %v4486_v6 }
 0x4cd   : > { %4551 = vst.msk [vmem:[%s8020_s24 + $0xb8] sm:$0xff] %vm2916_vm1, %v4487_v22  ;;  %v4225_v43 = vpop.f32.mrb[80].mxu1 }
 0x4ce   : > { %v4424_v60 = vadd.f32 %v8009_v53, %v4225_v43  ;;  %v4227_v58 = vpop.f32.mrb[81].mxu1 }
 0x4cf   : > { %v4425_v39 = vadd.f32 %v8013_v56, %v4227_v58  ;;  %v4229_v9 = vpop.f32.mrb[82].mxu1 }
 0x4d0   : > { %v4488_v47 = vmax.f32 %v4424_v60, 0.0  ;;  %v4426_v49 = vadd.f32 %v8009_v53, %v4229_v9  ;;  %v4231_v30 = vpop.f32.mrb[83].mxu1 }
 0x4d1   : > { %v4489_v48 = vmax.f32 %v4425_v39, 0.0  ;;  %v4427_v35 = vadd.f32 %v8013_v56, %v4231_v30 }
 0x4d2   : > { %4552 = vst [vmem:[%s8020_s24 + $0xc0] sm:$0xff] %v4488_v47  ;;  %v4490_v24 = vmax.f32 %v4426_v49, 0.0 }
 0x4d3   : > { %4553 = vst.msk [vmem:[%s8020_s24 + $0xc8] sm:$0xff] %vm2916_vm1, %v4489_v48  ;;  %v4491_v62 = vmax.f32 %v4427_v35, 0.0 }
 0x4d4   : > { %4554 = vst [vmem:[%s8020_s24 + $0xd0] sm:$0xff] %v4490_v24 }
 0x4d5   : > { %4555 = vst.msk [vmem:[%s8020_s24 + $0xd8] sm:$0xff] %vm2916_vm1, %v4491_v62  ;;  %v4235_v38 = vpop.f32.mrb[84].mxu1 }
 0x4d6   : > { %v4428_v25 = vadd.f32 %v8009_v53, %v4235_v38  ;;  %v4237_v13 = vpop.f32.mrb[85].mxu1 }
 0x4d7   : > { %v4429_v12 = vadd.f32 %v8013_v56, %v4237_v13  ;;  %v4239_v23 = vpop.f32.mrb[86].mxu1 }
 0x4d8   : > { %v4492_v10 = vmax.f32 %v4428_v25, 0.0  ;;  %v4430_v32 = vadd.f32 %v8009_v53, %v4239_v23  ;;  %v4241_v29 = vpop.f32.mrb[87].mxu1 }
 0x4d9   : > { %v4493_v5 = vmax.f32 %v4429_v12, 0.0  ;;  %v4431_v31 = vadd.f32 %v8013_v56, %v4241_v29 }
 0x4da   : > { %4556 = vst [vmem:[%s8020_s24 + $0xe0] sm:$0xff] %v4492_v10  ;;  %v4494_v40 = vmax.f32 %v4430_v32, 0.0 }
 0x4db   : > { %4557 = vst.msk [vmem:[%s8020_s24 + $0xe8] sm:$0xff] %vm2916_vm1, %v4493_v5  ;;  %v4495_v28 = vmax.f32 %v4431_v31, 0.0 }
 0x4dc   : > { %4558 = vst [vmem:[%s8020_s24 + $0xf0] sm:$0xff] %v4494_v40 }
 0x4dd   : > { %4559 = vst.msk [vmem:[%s8020_s24 + $0xf8] sm:$0xff] %vm2916_vm1, %v4495_v28  ;;  %v4245_v63 = vpop.f32.mrb[88].mxu1 }
 0x4de   : > { %v4432_v20 = vadd.f32 %v8009_v53, %v4245_v63  ;;  %v4247_v52 = vpop.f32.mrb[89].mxu1 }
 0x4df   : > { %v4433_v7 = vadd.f32 %v8013_v56, %v4247_v52  ;;  %v4249_v26 = vpop.f32.mrb[90].mxu1 }
 0x4e0   : > { %v4496_v46 = vmax.f32 %v4432_v20, 0.0  ;;  %v4434_v16 = vadd.f32 %v8009_v53, %v4249_v26  ;;  %v4251_v51 = vpop.f32.mrb[91].mxu1 }
 0x4e1   : > { %v4497_v27 = vmax.f32 %v4433_v7, 0.0  ;;  %v4435_v2 = vadd.f32 %v8013_v56, %v4251_v51 }
 0x4e2   : > { %4560 = vst [vmem:[%s8020_s24 + $0x100] sm:$0xff] %v4496_v46  ;;  %v4498_v18 = vmax.f32 %v4434_v16, 0.0 }
 0x4e3   : > { %4561 = vst.msk [vmem:[%s8020_s24 + $0x108] sm:$0xff] %vm2916_vm1, %v4497_v27  ;;  %v4499_v0 = vmax.f32 %v4435_v2, 0.0 }
 0x4e4   : > { %4562 = vst [vmem:[%s8020_s24 + $0x110] sm:$0xff] %v4498_v18 }
 0x4e5   : > { %4563 = vst.msk [vmem:[%s8020_s24 + $0x118] sm:$0xff] %vm2916_vm1, %v4499_v0  ;;  %v4255_v42 = vpop.f32.mrb[92].mxu1 }
 0x4e6   : > { %v4436_v34 = vadd.f32 %v8009_v53, %v4255_v42  ;;  %v4257_v14 = vpop.f32.mrb[93].mxu1 }
 0x4e7   : > { %v4437_v17 = vadd.f32 %v8013_v56, %v4257_v14  ;;  %v4259_v4 = vpop.f32.mrb[94].mxu1 }
 0x4e8   : > { %v4500_v59 = vmax.f32 %v4436_v34, 0.0  ;;  %v4438_v54 = vadd.f32 %v8009_v53, %v4259_v4  ;;  %v4261_v44 = vpop.f32.mrb[95].mxu1 }
 0x4e9   : > { %v4501_v3 = vmax.f32 %v4437_v17, 0.0  ;;  %v4439_v33 = vadd.f32 %v8013_v56, %v4261_v44 }
 0x4ea   : > { %4564 = vst [vmem:[%s8020_s24 + $0x120] sm:$0xff] %v4500_v59  ;;  %v4502_v45 = vmax.f32 %v4438_v54, 0.0 }
 0x4eb   : > { %4565 = vst.msk [vmem:[%s8020_s24 + $0x128] sm:$0xff] %vm2916_vm1, %v4501_v3  ;;  %v4503_v15 = vmax.f32 %v4439_v33, 0.0 }
 0x4ec   : > { %4566 = vst [vmem:[%s8020_s24 + $0x130] sm:$0xff] %v4502_v45 }
 0x4ed   : > { %4567 = vst.msk [vmem:[%s8020_s24 + $0x138] sm:$0xff] %vm2916_vm1, %v4503_v15  ;;  %v4265_v50 = vpop.f32.mrb[96].mxu1 }
 0x4ee   : > { %v4440_v8 = vadd.f32 %v8009_v53, %v4265_v50  ;;  %v4267_v61 = vpop.f32.mrb[97].mxu1 }
 0x4ef   : > { %v4441_v55 = vadd.f32 %v8013_v56, %v4267_v61  ;;  %v4269_v21 = vpop.f32.mrb[98].mxu1 }
 0x4f0   : > { %v4504_v57 = vmax.f32 %v4440_v8, 0.0  ;;  %v4442_v1 = vadd.f32 %v8009_v53, %v4269_v21  ;;  %v4271_v19 = vpop.f32.mrb[99].mxu1 }
 0x4f1   : > { %v4505_v41 = vmax.f32 %v4441_v55, 0.0  ;;  %v4443_v36 = vadd.f32 %v8013_v56, %v4271_v19 }
 0x4f2   : > { %4568 = vst [vmem:[%s8020_s24 + $0x140] sm:$0xff] %v4504_v57  ;;  %v4506_v11 = vmax.f32 %v4442_v1, 0.0 }
 0x4f3   : > { %4569 = vst.msk [vmem:[%s8020_s24 + $0x148] sm:$0xff] %vm2916_vm1, %v4505_v41  ;;  %v4507_v37 = vmax.f32 %v4443_v36, 0.0 }
 0x4f4   : > { %4570 = vst [vmem:[%s8020_s24 + $0x150] sm:$0xff] %v4506_v11 }
 0x4f5   : > { %4571 = vst.msk [vmem:[%s8020_s24 + $0x158] sm:$0xff] %vm2916_vm1, %v4507_v37  ;;  %v4275_v6 = vpop.f32.mrb[100].mxu1 }
 0x4f6   : > { %v4444_v22 = vadd.f32 %v8009_v53, %v4275_v6  ;;  %v4277_v43 = vpop.f32.mrb[101].mxu1 }
 0x4f7   : > { %v4445_v60 = vadd.f32 %v8013_v56, %v4277_v43  ;;  %v4279_v58 = vpop.f32.mrb[102].mxu1 }
 0x4f8   : > { %v4508_v39 = vmax.f32 %v4444_v22, 0.0  ;;  %v4446_v9 = vadd.f32 %v8009_v53, %v4279_v58  ;;  %v4281_v47 = vpop.f32.mrb[103].mxu1 }
 0x4f9   : > { %v4509_v49 = vmax.f32 %v4445_v60, 0.0  ;;  %v4447_v30 = vadd.f32 %v8013_v56, %v4281_v47 }
 0x4fa   : > { %4572 = vst [vmem:[%s8020_s24 + $0x160] sm:$0xff] %v4508_v39  ;;  %v4510_v48 = vmax.f32 %v4446_v9, 0.0 }
 0x4fb   : > { %4573 = vst.msk [vmem:[%s8020_s24 + $0x168] sm:$0xff] %vm2916_vm1, %v4509_v49  ;;  %v4511_v35 = vmax.f32 %v4447_v30, 0.0 }
 0x4fc   : > { %4574 = vst [vmem:[%s8020_s24 + $0x170] sm:$0xff] %v4510_v48 }
 0x4fd   : > { %4575 = vst.msk [vmem:[%s8020_s24 + $0x178] sm:$0xff] %vm2916_vm1, %v4511_v35  ;;  %v4285_v24 = vpop.f32.mrb[104].mxu1 }
 0x4fe   : > { %v4448_v62 = vadd.f32 %v8009_v53, %v4285_v24  ;;  %v4287_v38 = vpop.f32.mrb[105].mxu1 }
 0x4ff   : > { %v4449_v25 = vadd.f32 %v8013_v56, %v4287_v38  ;;  %v4289_v13 = vpop.f32.mrb[106].mxu1 }
 0x500   : > { %v4512_v12 = vmax.f32 %v4448_v62, 0.0  ;;  %v4450_v23 = vadd.f32 %v8009_v53, %v4289_v13  ;;  %v4291_v10 = vpop.f32.mrb[107].mxu1 }
 0x501   : > { %v4513_v32 = vmax.f32 %v4449_v25, 0.0  ;;  %v4451_v29 = vadd.f32 %v8013_v56, %v4291_v10 }
 0x502   : > { %4576 = vst [vmem:[%s8020_s24 + $0x180] sm:$0xff] %v4512_v12  ;;  %v4514_v5 = vmax.f32 %v4450_v23, 0.0 }
 0x503   : > { %4577 = vst.msk [vmem:[%s8020_s24 + $0x188] sm:$0xff] %vm2916_vm1, %v4513_v32  ;;  %v4515_v31 = vmax.f32 %v4451_v29, 0.0 }
 0x504   : > { %4578 = vst [vmem:[%s8020_s24 + $0x190] sm:$0xff] %v4514_v5 }
 0x505   : > { %4579 = vst.msk [vmem:[%s8020_s24 + $0x198] sm:$0xff] %vm2916_vm1, %v4515_v31  ;;  %v4295_v40 = vpop.f32.mrb[108].mxu1 }
 0x506   : > { %v4452_v28 = vadd.f32 %v8009_v53, %v4295_v40  ;;  %v4297_v63 = vpop.f32.mrb[109].mxu1 }
 0x507   : > { %v4453_v20 = vadd.f32 %v8013_v56, %v4297_v63  ;;  %v4299_v52 = vpop.f32.mrb[110].mxu1 }
 0x508   : > { %v4516_v7 = vmax.f32 %v4452_v28, 0.0  ;;  %v4454_v26 = vadd.f32 %v8009_v53, %v4299_v52  ;;  %v4301_v46 = vpop.f32.mrb[111].mxu1 }
 0x509   : > { %v4517_v16 = vmax.f32 %v4453_v20, 0.0  ;;  %v4455_v51 = vadd.f32 %v8013_v56, %v4301_v46 }
 0x50a   : > { %4580 = vst [vmem:[%s8020_s24 + $0x1a0] sm:$0xff] %v4516_v7  ;;  %v4518_v27 = vmax.f32 %v4454_v26, 0.0 }
 0x50b   : > { %4581 = vst.msk [vmem:[%s8020_s24 + $0x1a8] sm:$0xff] %vm2916_vm1, %v4517_v16  ;;  %v4519_v2 = vmax.f32 %v4455_v51, 0.0 }
 0x50c   : > { %4582 = vst [vmem:[%s8020_s24 + $0x1b0] sm:$0xff] %v4518_v27 }
 0x50d   : > { %4583 = vst.msk [vmem:[%s8020_s24 + $0x1b8] sm:$0xff] %vm2916_vm1, %v4519_v2  ;;  %v4305_v18 = vpop.f32.mrb[112].mxu1 }
 0x50e   : > { %v4456_v0 = vadd.f32 %v8009_v53, %v4305_v18  ;;  %v4307_v42 = vpop.f32.mrb[113].mxu1 }
 0x50f   : > { %v4457_v34 = vadd.f32 %v8013_v56, %v4307_v42  ;;  %v4309_v14 = vpop.f32.mrb[114].mxu1 }
 0x510   : > { %v4520_v17 = vmax.f32 %v4456_v0, 0.0  ;;  %v4458_v4 = vadd.f32 %v8009_v53, %v4309_v14  ;;  %v4311_v59 = vpop.f32.mrb[115].mxu1 }
 0x511   : > { %v4521_v54 = vmax.f32 %v4457_v34, 0.0  ;;  %v4459_v44 = vadd.f32 %v8013_v56, %v4311_v59 }
 0x512   : > { %4584 = vst [vmem:[%s8020_s24 + $0x1c0] sm:$0xff] %v4520_v17  ;;  %v4522_v3 = vmax.f32 %v4458_v4, 0.0 }
 0x513   : > { %4585 = vst.msk [vmem:[%s8020_s24 + $0x1c8] sm:$0xff] %vm2916_vm1, %v4521_v54  ;;  %v4523_v33 = vmax.f32 %v4459_v44, 0.0 }
 0x514   : > { %4586 = vst [vmem:[%s8020_s24 + $0x1d0] sm:$0xff] %v4522_v3 }
 0x515   : > { %4587 = vst.msk [vmem:[%s8020_s24 + $0x1d8] sm:$0xff] %vm2916_vm1, %v4523_v33  ;;  %v4315_v45 = vpop.f32.mrb[116].mxu1 }
 0x516   : > { %v4460_v15 = vadd.f32 %v8009_v53, %v4315_v45  ;;  %v4317_v50 = vpop.f32.mrb[117].mxu1 }
 0x517   : > { %v4461_v8 = vadd.f32 %v8013_v56, %v4317_v50  ;;  %v4319_v61 = vpop.f32.mrb[118].mxu1 }
 0x518   : > { %v4524_v55 = vmax.f32 %v4460_v15, 0.0  ;;  %v4462_v21 = vadd.f32 %v8009_v53, %v4319_v61  ;;  %v4321_v57 = vpop.f32.mrb[119].mxu1 }
 0x519   : > { %v4525_v1 = vmax.f32 %v4461_v8, 0.0  ;;  %v4463_v19 = vadd.f32 %v8013_v56, %v4321_v57 }
 0x51a   : > { %4588 = vst [vmem:[%s8020_s24 + $0x1e0] sm:$0xff] %v4524_v55  ;;  %v4526_v41 = vmax.f32 %v4462_v21, 0.0 }
 0x51b   : > { %4589 = vst.msk [vmem:[%s8020_s24 + $0x1e8] sm:$0xff] %vm2916_vm1, %v4525_v1  ;;  %v4527_v36 = vmax.f32 %v4463_v19, 0.0 }
 0x51c   : > { %4590 = vst [vmem:[%s8020_s24 + $0x1f0] sm:$0xff] %v4526_v41 }
 0x51d   : > { %4591 = vst.msk [vmem:[%s8020_s24 + $0x1f8] sm:$0xff] %vm2916_vm1, %v4527_v36 }
 0x51e PF: > { %s15_s18 = sadd.s32 1, %s6151_s18  }
 0x51f   : > { %p12_p4 = scmp.ge.s32.totalorder %s15_s18, 4  }
 0x521   :  { %14 = sbr.rel (!%p12_p4) target bundleno = 1 (0x1), region = 77 }

</bundles_post_ra>
